<compile_context>
chip_gen: v6e
topology: v6e:2x2x1
jax: 0.10.0
libtpu: 0.0.40
codegen_flags: <defaults>
</compile_context>

<pallas_src>
import functools

import jax
import jax.numpy as jnp
from jax import lax
from jax.experimental import pallas as pl
from jax.experimental.pallas import tpu as pltpu


def _round_up(x, m):
    return ((x + m - 1) // m) * m


@functools.lru_cache(maxsize=None)
def _vmem_limit():
    """Generation-aware scoped-VMEM limit (<=48 MiB on v7x, up to 96 MiB on v5e/v6e)."""
    cap = 64 * 1024 * 1024
    try:
        cap = int(pltpu.get_tpu_info().vmem_capacity_bytes)
    except Exception:
        pass
    return min((cap * 3) // 4, 96 * 1024 * 1024)


# ----------------------------------------------------------------------------
# GRU Pallas kernel (masked PyTorch GRUCell, x and h as separate inputs)
# ----------------------------------------------------------------------------
def _gru_kernel(x_ref, h_ref, wx_ref, wh_ref, bi_ref, bh_ref, m_ref, out_ref,
                *, hidden):
    h = h_ref[...]                                            # f32 (TM, mem)
    # bf16 operands on the MXU, f32 accumulation; gate math in f32.
    gi = jnp.dot(x_ref[...], wx_ref[...],
                 preferred_element_type=jnp.float32) + bi_ref[...]
    gh = jnp.dot(h.astype(jnp.bfloat16), wh_ref[...],
                 preferred_element_type=jnp.float32) + bh_ref[...]
    r = jax.nn.sigmoid(gi[:, :hidden] + gh[:, :hidden])
    z = jax.nn.sigmoid(gi[:, hidden:2 * hidden] + gh[:, hidden:2 * hidden])
    n = jnp.tanh(gi[:, 2 * hidden:] + r * gh[:, 2 * hidden:])
    h_new = (1.0 - z) * n + z * h
    # never-updated cells MUST keep the old state (their x rows are garbage).
    out_ref[...] = jnp.where(m_ref[...] > 0, h_new, h)


def gru_update(x, h, wx, wh, bi, bh, mask, *, tile_m=512):
    """Tiled masked GRU update over the (padded) map cells."""
    Npad, hidden = h.shape
    ego = x.shape[1]
    TM = min(tile_m, Npad)
    kernel = functools.partial(_gru_kernel, hidden=hidden)
    return pl.pallas_call(
        kernel,
        grid=(Npad // TM,),
        in_specs=[
            pl.BlockSpec((TM, ego), lambda i: (i, 0)),
            pl.BlockSpec((TM, hidden), lambda i: (i, 0)),
            pl.BlockSpec(wx.shape, lambda i: (0, 0)),     # resident weights
            pl.BlockSpec(wh.shape, lambda i: (0, 0)),
            pl.BlockSpec(bi.shape, lambda i: (0, 0)),
            pl.BlockSpec(bh.shape, lambda i: (0, 0)),
            pl.BlockSpec((TM, 1), lambda i: (i, 0)),
        ],
        out_specs=pl.BlockSpec((TM, hidden), lambda i: (i, 0)),
        out_shape=jax.ShapeDtypeStruct((Npad, hidden), jnp.float32),
        compiler_params=pltpu.CompilerParams(
            dimension_semantics=("parallel",),
            vmem_limit_bytes=_vmem_limit()),
    )(x, h, wx, wh, bi, bh, mask)


# ----------------------------------------------------------------------------
# Conv (+ folded BN + ReLU) Pallas kernels with width-tap fusion
# ----------------------------------------------------------------------------
def _conv_taps(xc_ref, w_ref, *, kh, Wp, TM):
    """kh aligned loads + kh MXU dots with K = kw*Cin for one tile of TM pixels."""
    i = pl.program_id(0)
    base = pl.multiple_of(i * TM, TM)
    cout = w_ref.shape[-1]
    acc = jnp.zeros((TM, cout), jnp.float32)
    for dh in range(kh):                                # kh <= 7, one big dot each
        xrow = xc_ref[pl.ds(base + dh * Wp, TM), :]     # 8-sublane aligned
        acc = acc + jnp.dot(xrow, w_ref[dh],
                            preferred_element_type=jnp.float32)
    return acc


def _conv_bn_relu_kernel(xc_ref, w_ref, scale_ref, shift_ref, out_ref,
                         *, kh, Wp, TM):
    acc = _conv_taps(xc_ref, w_ref, kh=kh, Wp=Wp, TM=TM)
    y = jnp.maximum(acc * scale_ref[...] + shift_ref[...], 0.0)
    out_ref[...] = y.astype(out_ref.dtype)


def _conv_bn_relu_proj_kernel(xc_ref, w_ref, scale_ref, shift_ref,
                              w2_ref, b2_ref, out_ref, *, kh, Wp, TM):
    """obj1 conv+BN+ReLU with the obj2 1x1 conv fused into the epilogue."""
    acc = _conv_taps(xc_ref, w_ref, kh=kh, Wp=Wp, TM=TM)
    y = jnp.maximum(acc * scale_ref[...] + shift_ref[...], 0.0)       # (TM, 48) f32
    y2 = jnp.dot(y.astype(jnp.bfloat16), w2_ref[...],
                 preferred_element_type=jnp.float32) + b2_ref[...]
    out_ref[...] = y2.astype(out_ref.dtype)


def _conv_inputs(x_hwc, w_oihw, tile_m):
    """Zero-pad rows+cols (no cmask), align row stride to 8 sublanes and fuse the
    kw horizontal taps along the channel (contraction) dim once in JAX.

    Output pixels are laid out with the padded width Wp; the extra columns are
    junk and sliced off after the kernel.
    """
    H, W, Cin = x_hwc.shape
    Cout, _, kh, kw = w_oihw.shape
    ph, pw = kh // 2, kw // 2
    Wp = _round_up(W + 2 * pw, 8)            # sublane-aligned row stride
    Pout = H * Wp
    TM = min(tile_m, _round_up(Pout, 8))
    Ppad = _round_up(Pout, TM)
    L = Ppad + (kh - 1) * Wp
    xp = jnp.pad(x_hwc, ((ph, ph), (pw, Wp - W - pw), (0, 0))).reshape(-1, Cin)
    xf = jnp.pad(xp, ((0, L + kw - 1 - xp.shape[0]), (0, 0)))
    # row r of xcat holds the channels of pixels r .. r+kw-1 -> K = kw*Cin dots.
    xcat = jnp.concatenate([xf[dw:dw + L] for dw in range(kw)], axis=1)
    xcat = xcat.astype(x_hwc.dtype)
    wt = jnp.transpose(w_oihw, (2, 3, 1, 0)).reshape(kh, kw * Cin, Cout)
    wt = wt.astype(x_hwc.dtype)
    return xcat, wt, (H, W, Wp, Cout, kh, Pout, Ppad, TM)
    # TODO(synk): for very large maps (v7x, 64 MiB VMEM), halo-tile the input
    # (2-D grid / manual DMA, in-kernel tap concat) instead of keeping the whole
    # width-fused activation VMEM-resident, and mark resident specs Buffered(1).


def conv_bn_relu(x_hwc, w_oihw, scale, shift, *, tile_m=256,
                 out_dtype=jnp.bfloat16):
    xcat, wt, (H, W, Wp, Cout, kh, Pout, Ppad, TM) = _conv_inputs(
        x_hwc, w_oihw, tile_m)
    kernel = functools.partial(_conv_bn_relu_kernel, kh=kh, Wp=Wp, TM=TM)
    out = pl.pallas_call(
        kernel,
        grid=(Ppad // TM,),
        in_specs=[
            pl.BlockSpec(xcat.shape, lambda i: (0, 0)),     # resident fused input
            pl.BlockSpec(wt.shape, lambda i: (0, 0, 0)),    # resident weights
            pl.BlockSpec((1, Cout), lambda i: (0, 0)),
            pl.BlockSpec((1, Cout), lambda i: (0, 0)),
        ],
        out_specs=pl.BlockSpec((TM, Cout), lambda i: (i, 0)),
        out_shape=jax.ShapeDtypeStruct((Ppad, Cout), out_dtype),
        compiler_params=pltpu.CompilerParams(
            dimension_semantics=("parallel",),
            vmem_limit_bytes=_vmem_limit()),
    )(xcat, wt,
      scale.reshape(1, Cout).astype(jnp.float32),
      shift.reshape(1, Cout).astype(jnp.float32))
    return out[:Pout].reshape(H, Wp, Cout)[:, :W, :]


def conv_bn_relu_proj(x_hwc, w_oihw, scale, shift, w2_oihw, b2, *, tile_m=256):
    xcat, wt, (H, W, Wp, Cout, kh, Pout, Ppad, TM) = _conv_inputs(
        x_hwc, w_oihw, tile_m)
    n_out = w2_oihw.shape[0]
    w2 = w2_oihw.reshape(n_out, Cout).T.astype(jnp.bfloat16)   # (Cout, n_obj)
    kernel = functools.partial(_conv_bn_relu_proj_kernel, kh=kh, Wp=Wp, TM=TM)
    out = pl.pallas_call(
        kernel,
        grid=(Ppad // TM,),
        in_specs=[
            pl.BlockSpec(xcat.shape, lambda i: (0, 0)),
            pl.BlockSpec(wt.shape, lambda i: (0, 0, 0)),
            pl.BlockSpec((1, Cout), lambda i: (0, 0)),
            pl.BlockSpec((1, Cout), lambda i: (0, 0)),
            pl.BlockSpec(w2.shape, lambda i: (0, 0)),
            pl.BlockSpec((1, n_out), lambda i: (0, 0)),
        ],
        out_specs=pl.BlockSpec((TM, n_out), lambda i: (i, 0)),
        out_shape=jax.ShapeDtypeStruct((Ppad, n_out), jnp.float32),
        compiler_params=pltpu.CompilerParams(
            dimension_semantics=("parallel",),
            vmem_limit_bytes=_vmem_limit()),
    )(xcat, wt,
      scale.reshape(1, Cout).astype(jnp.float32),
      shift.reshape(1, Cout).astype(jnp.float32),
      w2, b2.reshape(1, n_out).astype(jnp.float32))
    return out[:Pout].reshape(H, Wp, n_out)[:, :W, :]


# ----------------------------------------------------------------------------
# JAX glue: BN folding, decoder, parameter setup
# ----------------------------------------------------------------------------
def fold_bn(gamma, beta, mean, var, eps=1e-5):
    scale = gamma / jnp.sqrt(var + eps)
    shift = beta - mean * scale
    return scale, shift


def decoder_forward(params, mem_hwc):
    x = mem_hwc.astype(jnp.bfloat16)
    for name in ("dec1", "dec2", "dec3"):
        p = params[name]
        scale, shift = fold_bn(p["gamma"], p["beta"], p["mean"], p["var"])
        x = conv_bn_relu(x, p["w"], scale, shift)
    p1, p2 = params["obj1"], params["obj2"]
    scale, shift = fold_bn(p1["gamma"], p1["beta"], p1["mean"], p1["var"])
    return conv_bn_relu_proj(x, p1["w"], scale, shift, p2["w"], p2["b"])


def init_params(key, ego_dim, mem_dim, n_obj):
    keys = jax.random.split(key, 10)
    noise = 0.01
    params = {
        # GRUCell init matching the module's __init__ (uniform(-0.01, 0.01), b_hh = 0)
        "w_ih": jax.random.uniform(keys[0], (3 * mem_dim, ego_dim),
                                   minval=-noise, maxval=noise, dtype=jnp.float32),
        "w_hh": jax.random.uniform(keys[1], (3 * mem_dim, mem_dim),
                                   minval=-noise, maxval=noise, dtype=jnp.float32),
        "b_ih": jax.random.uniform(keys[2], (3 * mem_dim,),
                                   minval=-noise, maxval=noise, dtype=jnp.float32),
        "b_hh": jnp.zeros((3 * mem_dim,), jnp.float32),
    }

    def conv_bn(k, cin, cout, ksz):
        k1, k2, k3 = jax.random.split(k, 3)
        fan_in = cin * ksz * ksz
        w = jax.random.normal(k1, (cout, cin, ksz, ksz), jnp.float32) * jnp.sqrt(2.0 / fan_in)
        return {
            "w": w,
            "gamma": 1.0 + 0.1 * jax.random.normal(k2, (cout,), jnp.float32),
            "beta": 0.1 * jax.random.normal(k3, (cout,), jnp.float32),
            "mean": jnp.zeros((cout,), jnp.float32),
            "var": jnp.ones((cout,), jnp.float32),
        }

    params["dec1"] = conv_bn(keys[3], mem_dim, 128, 7)
    params["dec2"] = conv_bn(keys[4], 128, 64, 3)
    params["dec3"] = conv_bn(keys[5], 64, 48, 3)
    params["obj1"] = conv_bn(keys[6], 48, 48, 3)
    kw, kb = jax.random.split(keys[7])
    params["obj2"] = {
        "w": jax.random.normal(kw, (n_obj, 48, 1, 1), jnp.float32) * jnp.sqrt(2.0 / 48),
        "b": 0.01 * jax.random.normal(kb, (n_obj,), jnp.float32),
    }
    return params


# ----------------------------------------------------------------------------
# SMNet forward (encode + decode)
# ----------------------------------------------------------------------------
@functools.partial(jax.jit, static_argnums=(5, 6))
def smnet_forward(params, features, proj_wtm, mask_outliers, heights,
                  map_height, map_width):
    T, C, Hf, Wf = features.shape
    _, H, W, _ = proj_wtm.shape
    N = map_height * map_width
    P = H * W
    mem_dim = params["w_hh"].shape[1]

    TM_GRU = min(512, _round_up(N, 8))
    Npad = _round_up(N, TM_GRU)

    # ---- hoisted out of the time loop (built once, reused by every scan step)
    wx = params["w_ih"].T.astype(jnp.bfloat16)     # (ego, 3*mem)
    wh = params["w_hh"].T.astype(jnp.bfloat16)     # (mem, 3*mem)
    bi = params["b_ih"].reshape(1, -1).astype(jnp.float32)
    bh = params["b_hh"].reshape(1, -1).astype(jnp.float32)

    mask_inliers = ~mask_outliers
    pix_ids = jnp.arange(P, dtype=jnp.int32)

    # align_corners=True mapping from projection-grid coords to feature coords
    sy = (Hf - 1) / max(H - 1, 1)
    sx = (Wf - 1) / max(W - 1, 1)

    def step(carry, frame):
        state, observed, height_map = carry
        feat, wtm, inl, hgt = frame
        wtm = wtm.astype(jnp.int32)
        inl = inl.reshape(-1)
        hgt = hgt.reshape(-1) + 1000.0       # assumes world heights > -1000 m

        flat_idx = (map_width * wtm[..., 1] + wtm[..., 0]).reshape(-1)
        h_src = jnp.where(inl, hgt, -jnp.inf)

        # scatter_max(height, flat_indices, out=height_map) with argmax semantics
        seg_max = jnp.full((Npad,), -jnp.inf, jnp.float32).at[flat_idx].max(h_src)
        is_max = inl & (h_src == seg_max[flat_idx])
        arg = jnp.full((Npad,), -1, jnp.int32).at[flat_idx].max(
            jnp.where(is_max, pix_ids, -1))
        updated = seg_max > height_map        # cells whose max strictly improves
        height_map = jnp.where(updated, seg_max, height_map)
        observed = observed | updated

        # sparse align_corners=True bilinear: interpolate ONLY the winning pixels
        # (4-tap gather from the low-res feature map; no dense upsample).
        safe_pix = jnp.clip(arg, 0, P - 1)
        py = safe_pix // W
        px = safe_pix % W
        fy = py.astype(jnp.float32) * sy
        fx = px.astype(jnp.float32) * sx
        y0 = jnp.clip(jnp.floor(fy).astype(jnp.int32), 0, max(Hf - 2, 0))
        x0 = jnp.clip(jnp.floor(fx).astype(jnp.int32), 0, max(Wf - 2, 0))
        ty = (fy - y0.astype(jnp.float32))[:, None]
        tx = (fx - x0.astype(jnp.float32))[:, None]
        y1 = jnp.minimum(y0 + 1, Hf - 1)
        x1 = jnp.minimum(x0 + 1, Wf - 1)
        feat_flat = jnp.transpose(feat, (1, 2, 0)).reshape(Hf * Wf, C)
        f00 = feat_flat[y0 * Wf + x0]
        f01 = feat_flat[y0 * Wf + x1]
        f10 = feat_flat[y1 * Wf + x0]
        f11 = feat_flat[y1 * Wf + x1]
        tmp_memory = ((1.0 - ty) * (1.0 - tx) * f00 + (1.0 - ty) * tx * f01
                      + ty * (1.0 - tx) * f10 + ty * tx * f11)     # (Npad, C)
        # TODO(synk): fuse this 4-tap gather into the GRU kernel (scalar-prefetch
        # indices + in-kernel gather/DMA) to drop one more HBM round trip.

        m = updated.astype(jnp.float32)[:, None]
        state = gru_update(tmp_memory.astype(jnp.bfloat16), state,
                           wx, wh, bi, bh, m, tile_m=TM_GRU)
        return (state, observed, height_map), None

    init = (jnp.zeros((Npad, mem_dim), jnp.float32),
            jnp.zeros((Npad,), bool),
            jnp.zeros((Npad,), jnp.float32))
    (state, observed, height_map), _ = lax.scan(
        step, init, (features, proj_wtm, mask_inliers, heights))

    memory_hwc = state[:N].reshape(map_height, map_width, mem_dim)
    scores_hwc = decoder_forward(params, memory_hwc)            # (mh, mw, n_obj)
    semmap_scores = scores_hwc.transpose(2, 0, 1)               # (n_obj, mh, mw)
    return (semmap_scores,
            observed[:N].reshape(map_height, map_width),
            height_map[:N].reshape(map_height, map_width))


# ----------------------------------------------------------------------------
# Driver
# ----------------------------------------------------------------------------
if __name__ == "__main__":
    key = jax.random.PRNGKey(0)
    k_par, k_feat, k_wx, k_wy, k_mask, k_h = jax.random.split(key, 6)

    # cfg = {'ego_feature_dim': 32, 'mem_feature_dim': 32, 'n_obj_classes': 8,
    #        'mem_update': 'gru', 'ego_downsample': False}
    T, ego_dim, mem_dim, n_obj = 2, 32, 32, 8
    Hf, Wf = 12, 16          # ego feature spatial size
    H, W = 24, 32            # projection grid (stands in for 480x640)
    map_height, map_width = 16, 16

    params = init_params(k_par, ego_dim, mem_dim, n_obj)

    features = jax.random.normal(k_feat, (T, ego_dim, Hf, Wf), jnp.float32)
    wx = jax.random.randint(k_wx, (T, H, W), 0, map_width)
    wy = jax.random.randint(k_wy, (T, H, W), 0, map_height)
    proj_wtm = jnp.stack([wx, wy], axis=-1).astype(jnp.float32)  # (T,H,W,2) [x,y]
    mask_outliers = jax.random.bernoulli(k_mask, 0.3, (T, H, W))
    heights = jax.random.uniform(k_h, (T, H, W), jnp.float32, 0.0, 3.0)

    semmap_scores, observed_masks, height_map = smnet_forward(
        params, features, proj_wtm, mask_outliers, heights, map_height, map_width)
    jax.block_until_ready((semmap_scores, observed_masks, height_map))

    assert semmap_scores.shape == (n_obj, map_height, map_width)
    assert observed_masks.shape == (map_height, map_width)
    assert height_map.shape == (map_height, map_width)
    assert bool(jnp.all(jnp.isfinite(semmap_scores)))
    print("KERNEL_OK")
</pallas_src>

<mosaic_0001>
module attributes {stable_mosaic.version = 11 : i64} {
  func.func private @main(%arg0: i32) attributes {dimension_semantics = [#tpu.dimension_semantics<core_parallel>], iteration_bounds = array<i64: 2>, tpu.core_type = #tpu.core_type<sc_scalar_subcore>, window_params = []} {
    return
  }
}

module attributes {stable_mosaic.version = 11 : i64} {
  func.func private @main(%arg0: i32) attributes {dimension_semantics = [#tpu.dimension_semantics<core_parallel>], iteration_bounds = array<i64: 2>, tpu.core_type = #tpu.core_type<sc_scalar_subcore>, window_params = []} {
    return
  }
}

module attributes {stable_mosaic.version = 11 : i64} {
  func.func @_gru_kernel(%arg0: i32, %arg1: memref<256x32xbf16, #tpu.memory_space<vmem>>, %arg2: memref<256x32xf32, #tpu.memory_space<vmem>>, %arg3: memref<32x96xbf16, #tpu.memory_space<vmem>>, %arg4: memref<32x96xbf16, #tpu.memory_space<vmem>>, %arg5: memref<1x96xf32, #tpu.memory_space<vmem>>, %arg6: memref<1x96xf32, #tpu.memory_space<vmem>>, %arg7: memref<256x1xf32, #tpu.memory_space<vmem>>, %arg8: memref<256x32xf32, #tpu.memory_space<vmem>>) attributes {dimension_semantics = [#tpu.dimension_semantics<parallel>], iteration_bounds = array<i64: 1>, scalar_prefetch = 0 : i64, scratch_operands = 0 : i64, tpu.core_type = #tpu.core_type<tc>, window_params = [{transform_indices = @transform_0, window_bounds = array<i64: 256, 32>}, {transform_indices = @transform_1, window_bounds = array<i64: 256, 32>}, {pipeline_mode = #tpu.pipeline_mode<synchronous>, transform_indices = @transform_2, window_bounds = array<i64: 32, 96>}, {pipeline_mode = #tpu.pipeline_mode<synchronous>, transform_indices = @transform_3, window_bounds = array<i64: 32, 96>}, {pipeline_mode = #tpu.pipeline_mode<synchronous>, transform_indices = @transform_4, window_bounds = array<i64: 1, 96>}, {pipeline_mode = #tpu.pipeline_mode<synchronous>, transform_indices = @transform_5, window_bounds = array<i64: 1, 96>}, {transform_indices = @transform_6, window_bounds = array<i64: 256, 1>}, {transform_indices = @transform_7, window_bounds = array<i64: 256, 32>}]} {
    %c0 = arith.constant 0 : index
    %c0_0 = arith.constant 0 : index
    %0 = vector.load %arg2[%c0, %c0_0] : memref<256x32xf32, #tpu.memory_space<vmem>>, vector<256x32xf32>
    %c0_1 = arith.constant 0 : index
    %c0_2 = arith.constant 0 : index
    %1 = vector.load %arg1[%c0_1, %c0_2] : memref<256x32xbf16, #tpu.memory_space<vmem>>, vector<256x32xbf16>
    %c0_3 = arith.constant 0 : index
    %c0_4 = arith.constant 0 : index
    %2 = vector.load %arg3[%c0_3, %c0_4] : memref<32x96xbf16, #tpu.memory_space<vmem>>, vector<32x96xbf16>
    %cst = arith.constant dense<0.000000e+00> : vector<256x96xf32>
    %3 = tpu.matmul %1, %2, %cst {dimension_numbers = #tpu.dot_dimension_numbers<[1], [0], [0], [1], [0, 0, 1, 1], [], []>} : vector<256x32xbf16>, vector<32x96xbf16>, vector<256x96xf32> -> vector<256x96xf32>
    %c0_5 = arith.constant 0 : index
    %c0_6 = arith.constant 0 : index
    %4 = vector.load %arg5[%c0_5, %c0_6] : memref<1x96xf32, #tpu.memory_space<vmem>>, vector<1x96xf32>
    %5 = vector.broadcast %4 : vector<1x96xf32> to vector<256x96xf32>
    %6 = arith.addf %3, %5 : vector<256x96xf32>
    %7 = arith.truncf %0 : vector<256x32xf32> to vector<256x32xbf16>
    %c0_7 = arith.constant 0 : index
    %c0_8 = arith.constant 0 : index
    %8 = vector.load %arg4[%c0_7, %c0_8] : memref<32x96xbf16, #tpu.memory_space<vmem>>, vector<32x96xbf16>
    %cst_9 = arith.constant dense<0.000000e+00> : vector<256x96xf32>
    %9 = tpu.matmul %7, %8, %cst_9 {dimension_numbers = #tpu.dot_dimension_numbers<[1], [0], [0], [1], [0, 0, 1, 1], [], []>} : vector<256x32xbf16>, vector<32x96xbf16>, vector<256x96xf32> -> vector<256x96xf32>
    %c0_10 = arith.constant 0 : index
    %c0_11 = arith.constant 0 : index
    %10 = vector.load %arg6[%c0_10, %c0_11] : memref<1x96xf32, #tpu.memory_space<vmem>>, vector<1x96xf32>
    %11 = vector.broadcast %10 : vector<1x96xf32> to vector<256x96xf32>
    %12 = arith.addf %9, %11 : vector<256x96xf32>
    %13 = vector.extract_strided_slice %6 {offsets = [0, 0], sizes = [256, 32], strides = [1, 1]} : vector<256x96xf32> to vector<256x32xf32>
    %14 = vector.extract_strided_slice %12 {offsets = [0, 0], sizes = [256, 32], strides = [1, 1]} : vector<256x96xf32> to vector<256x32xf32>
    %15 = arith.addf %13, %14 : vector<256x32xf32>
    %16 = arith.negf %15 : vector<256x32xf32>
    %17 = math.exp %16 : vector<256x32xf32>
    %cst_12 = arith.constant 1.000000e+00 : f32
    %18 = vector.broadcast %cst_12 : f32 to vector<256x32xf32>
    %19 = arith.addf %18, %17 : vector<256x32xf32>
    %20 = arith.divf %18, %19 : vector<256x32xf32>
    %21 = vector.extract_strided_slice %6 {offsets = [0, 32], sizes = [256, 32], strides = [1, 1]} : vector<256x96xf32> to vector<256x32xf32>
    %22 = vector.extract_strided_slice %12 {offsets = [0, 32], sizes = [256, 32], strides = [1, 1]} : vector<256x96xf32> to vector<256x32xf32>
    %23 = arith.addf %21, %22 : vector<256x32xf32>
    %24 = arith.negf %23 : vector<256x32xf32>
    %25 = math.exp %24 : vector<256x32xf32>
    %cst_13 = arith.constant 1.000000e+00 : f32
    %26 = vector.broadcast %cst_13 : f32 to vector<256x32xf32>
    %27 = arith.addf %26, %25 : vector<256x32xf32>
    %28 = arith.divf %26, %27 : vector<256x32xf32>
    %29 = vector.extract_strided_slice %6 {offsets = [0, 64], sizes = [256, 32], strides = [1, 1]} : vector<256x96xf32> to vector<256x32xf32>
    %30 = vector.extract_strided_slice %12 {offsets = [0, 64], sizes = [256, 32], strides = [1, 1]} : vector<256x96xf32> to vector<256x32xf32>
    %31 = arith.mulf %20, %30 : vector<256x32xf32>
    %32 = arith.addf %29, %31 : vector<256x32xf32>
    %33 = math.tanh %32 : vector<256x32xf32>
    %cst_14 = arith.constant 1.000000e+00 : f32
    %34 = vector.broadcast %cst_14 : f32 to vector<256x32xf32>
    %35 = arith.subf %34, %28 : vector<256x32xf32>
    %36 = arith.mulf %35, %33 : vector<256x32xf32>
    %37 = arith.mulf %28, %0 : vector<256x32xf32>
    %38 = arith.addf %36, %37 : vector<256x32xf32>
    %c0_15 = arith.constant 0 : index
    %c0_16 = arith.constant 0 : index
    %39 = vector.load %arg7[%c0_15, %c0_16] : memref<256x1xf32, #tpu.memory_space<vmem>>, vector<256x1xf32>
    %cst_17 = arith.constant 0.000000e+00 : f32
    %40 = vector.broadcast %cst_17 : f32 to vector<256x1xf32>
    %41 = arith.cmpf ogt, %39, %40 : vector<256x1xf32>
    %42 = vector.shape_cast %41 : vector<256x1xi1> to vector<256x1xi1>
    %43 = vector.broadcast %42 : vector<256x1xi1> to vector<256x32xi1>
    %44 = arith.select %43, %38, %0 : vector<256x32xi1>, vector<256x32xf32>
    %c0_18 = arith.constant 0 : index
    %c0_19 = arith.constant 0 : index
    %45 = vector.load %arg8[%c0_18, %c0_19] : memref<256x32xf32, #tpu.memory_space<vmem>>, vector<256x32xf32>
    tpu.vector_store %arg8[%c0_18, %c0_19], %44 {strides = array<i32>} : memref<256x32xf32, #tpu.memory_space<vmem>>, vector<256x32xf32>,
    return
  }
  func.func @transform_0(%arg0: i32) -> (i32, i32) {
    %c0_i32 = arith.constant 0 : i32
    %c0_i32_0 = arith.constant 0 : i32
    return %arg0, %c0_i32 : i32, i32
  }
  func.func @transform_1(%arg0: i32) -> (i32, i32) {
    %c0_i32 = arith.constant 0 : i32
    %c0_i32_0 = arith.constant 0 : i32
    return %arg0, %c0_i32 : i32, i32
  }
  func.func @transform_2(%arg0: i32) -> (i32, i32) {
    %c0_i32 = arith.constant 0 : i32
    %c0_i32_0 = arith.constant 0 : i32
    %c0_i32_1 = arith.constant 0 : i32
    return %c0_i32, %c0_i32_0 : i32, i32
  }
  func.func @transform_3(%arg0: i32) -> (i32, i32) {
    %c0_i32 = arith.constant 0 : i32
    %c0_i32_0 = arith.constant 0 : i32
    %c0_i32_1 = arith.constant 0 : i32
    return %c0_i32, %c0_i32_0 : i32, i32
  }
  func.func @transform_4(%arg0: i32) -> (i32, i32) {
    %c0_i32 = arith.constant 0 : i32
    %c0_i32_0 = arith.constant 0 : i32
    %c0_i32_1 = arith.constant 0 : i32
    return %c0_i32, %c0_i32_0 : i32, i32
  }
  func.func @transform_5(%arg0: i32) -> (i32, i32) {
    %c0_i32 = arith.constant 0 : i32
    %c0_i32_0 = arith.constant 0 : i32
    %c0_i32_1 = arith.constant 0 : i32
    return %c0_i32, %c0_i32_0 : i32, i32
  }
  func.func @transform_6(%arg0: i32) -> (i32, i32) {
    %c0_i32 = arith.constant 0 : i32
    %c0_i32_0 = arith.constant 0 : i32
    return %arg0, %c0_i32 : i32, i32
  }
  func.func @transform_7(%arg0: i32) -> (i32, i32) {
    %c0_i32 = arith.constant 0 : i32
    %c0_i32_0 = arith.constant 0 : i32
    return %arg0, %c0_i32 : i32, i32
  }
}

module attributes {stable_mosaic.version = 11 : i64} {
  func.func @_conv_bn_relu_kernel(%arg0: i32, %arg1: memref<656x224xbf16, #tpu.memory_space<vmem>>, %arg2: memref<7x224x128xbf16, #tpu.memory_space<vmem>>, %arg3: memref<1x128xf32, #tpu.memory_space<vmem>>, %arg4: memref<1x128xf32, #tpu.memory_space<vmem>>, %arg5: memref<256x128xbf16, #tpu.memory_space<vmem>>) attributes {dimension_semantics = [#tpu.dimension_semantics<parallel>], iteration_bounds = array<i64: 2>, scalar_prefetch = 0 : i64, scratch_operands = 0 : i64, tpu.core_type = #tpu.core_type<tc>, window_params = [{pipeline_mode = #tpu.pipeline_mode<synchronous>, transform_indices = @transform_0, window_bounds = array<i64: 656, 224>}, {pipeline_mode = #tpu.pipeline_mode<synchronous>, transform_indices = @transform_1, window_bounds = array<i64: 7, 224, 128>}, {pipeline_mode = #tpu.pipeline_mode<synchronous>, transform_indices = @transform_2, window_bounds = array<i64: 1, 128>}, {pipeline_mode = #tpu.pipeline_mode<synchronous>, transform_indices = @transform_3, window_bounds = array<i64: 1, 128>}, {transform_indices = @transform_4, window_bounds = array<i64: 256, 128>}]} {
    %c256_i32 = arith.constant 256 : i32
    %0 = arith.muli %arg0, %c256_i32 : i32
    %1 = tpu.assume_multiple %0, 256 : i32
    %cst = arith.constant 0.000000e+00 : f32
    %2 = vector.broadcast %cst : f32 to vector<256x128xf32>
    %c0_i32 = arith.constant 0 : i32
    %3 = arith.addi %1, %c0_i32 : i32
    %4 = arith.index_cast %3 : i32 to index
    %c0 = arith.constant 0 : index
    %5 = vector.load %arg1[%4, %c0] : memref<656x224xbf16, #tpu.memory_space<vmem>>, vector<256x224xbf16>
    %c0_0 = arith.constant 0 : index
    %c0_1 = arith.constant 0 : index
    %c0_2 = arith.constant 0 : index
    %6 = vector.load %arg2[%c0_0, %c0_1, %c0_2] : memref<7x224x128xbf16, #tpu.memory_space<vmem>>, vector<1x224x128xbf16>
    %7 = vector.shape_cast %6 : vector<1x224x128xbf16> to vector<224x128xbf16>
    %cst_3 = arith.constant dense<0.000000e+00> : vector<256x128xf32>
    %8 = tpu.matmul %5, %7, %cst_3 {dimension_numbers = #tpu.dot_dimension_numbers<[1], [0], [0], [1], [0, 0, 1, 1], [], []>} : vector<256x224xbf16>, vector<224x128xbf16>, vector<256x128xf32> -> vector<256x128xf32>
    %9 = arith.addf %2, %8 : vector<256x128xf32>
    %c24_i32 = arith.constant 24 : i32
    %10 = arith.addi %1, %c24_i32 : i32
    %11 = arith.index_cast %10 : i32 to index
    %c0_4 = arith.constant 0 : index
    %12 = vector.load %arg1[%11, %c0_4] : memref<656x224xbf16, #tpu.memory_space<vmem>>, vector<256x224xbf16>
    %c1 = arith.constant 1 : index
    %c0_5 = arith.constant 0 : index
    %c0_6 = arith.constant 0 : index
    %13 = vector.load %arg2[%c1, %c0_5, %c0_6] : memref<7x224x128xbf16, #tpu.memory_space<vmem>>, vector<1x224x128xbf16>
    %14 = vector.shape_cast %13 : vector<1x224x128xbf16> to vector<224x128xbf16>
    %cst_7 = arith.constant dense<0.000000e+00> : vector<256x128xf32>
    %15 = tpu.matmul %12, %14, %cst_7 {dimension_numbers = #tpu.dot_dimension_numbers<[1], [0], [0], [1], [0, 0, 1, 1], [], []>} : vector<256x224xbf16>, vector<224x128xbf16>, vector<256x128xf32> -> vector<256x128xf32>
    %16 = arith.addf %9, %15 : vector<256x128xf32>
    %c48_i32 = arith.constant 48 : i32
    %17 = arith.addi %1, %c48_i32 : i32
    %18 = arith.index_cast %17 : i32 to index
    %c0_8 = arith.constant 0 : index
    %19 = vector.load %arg1[%18, %c0_8] : memref<656x224xbf16, #tpu.memory_space<vmem>>, vector<256x224xbf16>
    %c2 = arith.constant 2 : index
    %c0_9 = arith.constant 0 : index
    %c0_10 = arith.constant 0 : index
    %20 = vector.load %arg2[%c2, %c0_9, %c0_10] : memref<7x224x128xbf16, #tpu.memory_space<vmem>>, vector<1x224x128xbf16>
    %21 = vector.shape_cast %20 : vector<1x224x128xbf16> to vector<224x128xbf16>
    %cst_11 = arith.constant dense<0.000000e+00> : vector<256x128xf32>
    %22 = tpu.matmul %19, %21, %cst_11 {dimension_numbers = #tpu.dot_dimension_numbers<[1], [0], [0], [1], [0, 0, 1, 1], [], []>} : vector<256x224xbf16>, vector<224x128xbf16>, vector<256x128xf32> -> vector<256x128xf32>
    %23 = arith.addf %16, %22 : vector<256x128xf32>
    %c72_i32 = arith.constant 72 : i32
    %24 = arith.addi %1, %c72_i32 : i32
    %25 = arith.index_cast %24 : i32 to index
    %c0_12 = arith.constant 0 : index
    %26 = vector.load %arg1[%25, %c0_12] : memref<656x224xbf16, #tpu.memory_space<vmem>>, vector<256x224xbf16>
    %c3 = arith.constant 3 : index
    %c0_13 = arith.constant 0 : index
    %c0_14 = arith.constant 0 : index
    %27 = vector.load %arg2[%c3, %c0_13, %c0_14] : memref<7x224x128xbf16, #tpu.memory_space<vmem>>, vector<1x224x128xbf16>
    %28 = vector.shape_cast %27 : vector<1x224x128xbf16> to vector<224x128xbf16>
    %cst_15 = arith.constant dense<0.000000e+00> : vector<256x128xf32>
    %29 = tpu.matmul %26, %28, %cst_15 {dimension_numbers = #tpu.dot_dimension_numbers<[1], [0], [0], [1], [0, 0, 1, 1], [], []>} : vector<256x224xbf16>, vector<224x128xbf16>, vector<256x128xf32> -> vector<256x128xf32>
    %30 = arith.addf %23, %29 : vector<256x128xf32>
    %c96_i32 = arith.constant 96 : i32
    %31 = arith.addi %1, %c96_i32 : i32
    %32 = arith.index_cast %31 : i32 to index
    %c0_16 = arith.constant 0 : index
    %33 = vector.load %arg1[%32, %c0_16] : memref<656x224xbf16, #tpu.memory_space<vmem>>, vector<256x224xbf16>
    %c4 = arith.constant 4 : index
    %c0_17 = arith.constant 0 : index
    %c0_18 = arith.constant 0 : index
    %34 = vector.load %arg2[%c4, %c0_17, %c0_18] : memref<7x224x128xbf16, #tpu.memory_space<vmem>>, vector<1x224x128xbf16>
    %35 = vector.shape_cast %34 : vector<1x224x128xbf16> to vector<224x128xbf16>
    %cst_19 = arith.constant dense<0.000000e+00> : vector<256x128xf32>
    %36 = tpu.matmul %33, %35, %cst_19 {dimension_numbers = #tpu.dot_dimension_numbers<[1], [0], [0], [1], [0, 0, 1, 1], [], []>} : vector<256x224xbf16>, vector<224x128xbf16>, vector<256x128xf32> -> vector<256x128xf32>
    %37 = arith.addf %30, %36 : vector<256x128xf32>
    %c120_i32 = arith.constant 120 : i32
    %38 = arith.addi %1, %c120_i32 : i32
    %39 = arith.index_cast %38 : i32 to index
    %c0_20 = arith.constant 0 : index
    %40 = vector.load %arg1[%39, %c0_20] : memref<656x224xbf16, #tpu.memory_space<vmem>>, vector<256x224xbf16>
    %c5 = arith.constant 5 : index
    %c0_21 = arith.constant 0 : index
    %c0_22 = arith.constant 0 : index
    %41 = vector.load %arg2[%c5, %c0_21, %c0_22] : memref<7x224x128xbf16, #tpu.memory_space<vmem>>, vector<1x224x128xbf16>
    %42 = vector.shape_cast %41 : vector<1x224x128xbf16> to vector<224x128xbf16>
    %cst_23 = arith.constant dense<0.000000e+00> : vector<256x128xf32>
    %43 = tpu.matmul %40, %42, %cst_23 {dimension_numbers = #tpu.dot_dimension_numbers<[1], [0], [0], [1], [0, 0, 1, 1], [], []>} : vector<256x224xbf16>, vector<224x128xbf16>, vector<256x128xf32> -> vector<256x128xf32>
    %44 = arith.addf %37, %43 : vector<256x128xf32>
    %c144_i32 = arith.constant 144 : i32
    %45 = arith.addi %1, %c144_i32 : i32
    %46 = arith.index_cast %45 : i32 to index
    %c0_24 = arith.constant 0 : index
    %47 = vector.load %arg1[%46, %c0_24] : memref<656x224xbf16, #tpu.memory_space<vmem>>, vector<256x224xbf16>
    %c6 = arith.constant 6 : index
    %c0_25 = arith.constant 0 : index
    %c0_26 = arith.constant 0 : index
    %48 = vector.load %arg2[%c6, %c0_25, %c0_26] : memref<7x224x128xbf16, #tpu.memory_space<vmem>>, vector<1x224x128xbf16>
    %49 = vector.shape_cast %48 : vector<1x224x128xbf16> to vector<224x128xbf16>
    %cst_27 = arith.constant dense<0.000000e+00> : vector<256x128xf32>
    %50 = tpu.matmul %47, %49, %cst_27 {dimension_numbers = #tpu.dot_dimension_numbers<[1], [0], [0], [1], [0, 0, 1, 1], [], []>} : vector<256x224xbf16>, vector<224x128xbf16>, vector<256x128xf32> -> vector<256x128xf32>
    %51 = arith.addf %44, %50 : vector<256x128xf32>
    %c0_28 = arith.constant 0 : index
    %c0_29 = arith.constant 0 : index
    %52 = vector.load %arg3[%c0_28, %c0_29] : memref<1x128xf32, #tpu.memory_space<vmem>>, vector<1x128xf32>
    %53 = vector.broadcast %52 : vector<1x128xf32> to vector<256x128xf32>
    %54 = arith.mulf %51, %53 : vector<256x128xf32>
    %c0_30 = arith.constant 0 : index
    %c0_31 = arith.constant 0 : index
    %55 = vector.load %arg4[%c0_30, %c0_31] : memref<1x128xf32, #tpu.memory_space<vmem>>, vector<1x128xf32>
    %56 = vector.broadcast %55 : vector<1x128xf32> to vector<256x128xf32>
    %57 = arith.addf %54, %56 : vector<256x128xf32>
    %cst_32 = arith.constant 0.000000e+00 : f32
    %58 = vector.broadcast %cst_32 : f32 to vector<256x128xf32>
    %59 = arith.maximumf %57, %58 : vector<256x128xf32>
    %60 = arith.truncf %59 : vector<256x128xf32> to vector<256x128xbf16>
    %c0_33 = arith.constant 0 : index
    %c0_34 = arith.constant 0 : index
    %61 = vector.load %arg5[%c0_33, %c0_34] : memref<256x128xbf16, #tpu.memory_space<vmem>>, vector<256x128xbf16>
    tpu.vector_store %arg5[%c0_33, %c0_34], %60 {strides = array<i32>} : memref<256x128xbf16, #tpu.memory_space<vmem>>, vector<256x128xbf16>,
    return
  }
  func.func @transform_0(%arg0: i32) -> (i32, i32) {
    %c0_i32 = arith.constant 0 : i32
    %c0_i32_0 = arith.constant 0 : i32
    %c0_i32_1 = arith.constant 0 : i32
    return %c0_i32, %c0_i32_0 : i32, i32
  }
  func.func @transform_1(%arg0: i32) -> (i32, i32, i32) {
    %c0_i32 = arith.constant 0 : i32
    %c0_i32_0 = arith.constant 0 : i32
    %c0_i32_1 = arith.constant 0 : i32
    %c0_i32_2 = arith.constant 0 : i32
    return %c0_i32, %c0_i32_0, %c0_i32_1 : i32, i32, i32
  }
  func.func @transform_2(%arg0: i32) -> (i32, i32) {
    %c0_i32 = arith.constant 0 : i32
    %c0_i32_0 = arith.constant 0 : i32
    %c0_i32_1 = arith.constant 0 : i32
    return %c0_i32, %c0_i32_0 : i32, i32
  }
  func.func @transform_3(%arg0: i32) -> (i32, i32) {
    %c0_i32 = arith.constant 0 : i32
    %c0_i32_0 = arith.constant 0 : i32
    %c0_i32_1 = arith.constant 0 : i32
    return %c0_i32, %c0_i32_0 : i32, i32
  }
  func.func @transform_4(%arg0: i32) -> (i32, i32) {
    %c0_i32 = arith.constant 0 : i32
    %c0_i32_0 = arith.constant 0 : i32
    return %arg0, %c0_i32 : i32, i32
  }
}

module attributes {stable_mosaic.version = 11 : i64} {
  func.func @_conv_bn_relu_kernel(%arg0: i32, %arg1: memref<560x384xbf16, #tpu.memory_space<vmem>>, %arg2: memref<3x384x64xbf16, #tpu.memory_space<vmem>>, %arg3: memref<1x64xf32, #tpu.memory_space<vmem>>, %arg4: memref<1x64xf32, #tpu.memory_space<vmem>>, %arg5: memref<256x64xbf16, #tpu.memory_space<vmem>>) attributes {dimension_semantics = [#tpu.dimension_semantics<parallel>], iteration_bounds = array<i64: 2>, scalar_prefetch = 0 : i64, scratch_operands = 0 : i64, tpu.core_type = #tpu.core_type<tc>, window_params = [{pipeline_mode = #tpu.pipeline_mode<synchronous>, transform_indices = @transform_0, window_bounds = array<i64: 560, 384>}, {pipeline_mode = #tpu.pipeline_mode<synchronous>, transform_indices = @transform_1, window_bounds = array<i64: 3, 384, 64>}, {pipeline_mode = #tpu.pipeline_mode<synchronous>, transform_indices = @transform_2, window_bounds = array<i64: 1, 64>}, {pipeline_mode = #tpu.pipeline_mode<synchronous>, transform_indices = @transform_3, window_bounds = array<i64: 1, 64>}, {transform_indices = @transform_4, window_bounds = array<i64: 256, 64>}]} {
    %c256_i32 = arith.constant 256 : i32
    %0 = arith.muli %arg0, %c256_i32 : i32
    %1 = tpu.assume_multiple %0, 256 : i32
    %cst = arith.constant 0.000000e+00 : f32
    %2 = vector.broadcast %cst : f32 to vector<256x64xf32>
    %c0_i32 = arith.constant 0 : i32
    %3 = arith.addi %1, %c0_i32 : i32
    %4 = arith.index_cast %3 : i32 to index
    %c0 = arith.constant 0 : index
    %5 = vector.load %arg1[%4, %c0] : memref<560x384xbf16, #tpu.memory_space<vmem>>, vector<256x384xbf16>
    %c0_0 = arith.constant 0 : index
    %c0_1 = arith.constant 0 : index
    %c0_2 = arith.constant 0 : index
    %6 = vector.load %arg2[%c0_0, %c0_1, %c0_2] : memref<3x384x64xbf16, #tpu.memory_space<vmem>>, vector<1x384x64xbf16>
    %7 = vector.shape_cast %6 : vector<1x384x64xbf16> to vector<384x64xbf16>
    %cst_3 = arith.constant dense<0.000000e+00> : vector<256x64xf32>
    %8 = tpu.matmul %5, %7, %cst_3 {dimension_numbers = #tpu.dot_dimension_numbers<[1], [0], [0], [1], [0, 0, 1, 1], [], []>} : vector<256x384xbf16>, vector<384x64xbf16>, vector<256x64xf32> -> vector<256x64xf32>
    %9 = arith.addf %2, %8 : vector<256x64xf32>
    %c24_i32 = arith.constant 24 : i32
    %10 = arith.addi %1, %c24_i32 : i32
    %11 = arith.index_cast %10 : i32 to index
    %c0_4 = arith.constant 0 : index
    %12 = vector.load %arg1[%11, %c0_4] : memref<560x384xbf16, #tpu.memory_space<vmem>>, vector<256x384xbf16>
    %c1 = arith.constant 1 : index
    %c0_5 = arith.constant 0 : index
    %c0_6 = arith.constant 0 : index
    %13 = vector.load %arg2[%c1, %c0_5, %c0_6] : memref<3x384x64xbf16, #tpu.memory_space<vmem>>, vector<1x384x64xbf16>
    %14 = vector.shape_cast %13 : vector<1x384x64xbf16> to vector<384x64xbf16>
    %cst_7 = arith.constant dense<0.000000e+00> : vector<256x64xf32>
    %15 = tpu.matmul %12, %14, %cst_7 {dimension_numbers = #tpu.dot_dimension_numbers<[1], [0], [0], [1], [0, 0, 1, 1], [], []>} : vector<256x384xbf16>, vector<384x64xbf16>, vector<256x64xf32> -> vector<256x64xf32>
    %16 = arith.addf %9, %15 : vector<256x64xf32>
    %c48_i32 = arith.constant 48 : i32
    %17 = arith.addi %1, %c48_i32 : i32
    %18 = arith.index_cast %17 : i32 to index
    %c0_8 = arith.constant 0 : index
    %19 = vector.load %arg1[%18, %c0_8] : memref<560x384xbf16, #tpu.memory_space<vmem>>, vector<256x384xbf16>
    %c2 = arith.constant 2 : index
    %c0_9 = arith.constant 0 : index
    %c0_10 = arith.constant 0 : index
    %20 = vector.load %arg2[%c2, %c0_9, %c0_10] : memref<3x384x64xbf16, #tpu.memory_space<vmem>>, vector<1x384x64xbf16>
    %21 = vector.shape_cast %20 : vector<1x384x64xbf16> to vector<384x64xbf16>
    %cst_11 = arith.constant dense<0.000000e+00> : vector<256x64xf32>
    %22 = tpu.matmul %19, %21, %cst_11 {dimension_numbers = #tpu.dot_dimension_numbers<[1], [0], [0], [1], [0, 0, 1, 1], [], []>} : vector<256x384xbf16>, vector<384x64xbf16>, vector<256x64xf32> -> vector<256x64xf32>
    %23 = arith.addf %16, %22 : vector<256x64xf32>
    %c0_12 = arith.constant 0 : index
    %c0_13 = arith.constant 0 : index
    %24 = vector.load %arg3[%c0_12, %c0_13] : memref<1x64xf32, #tpu.memory_space<vmem>>, vector<1x64xf32>
    %25 = vector.broadcast %24 : vector<1x64xf32> to vector<256x64xf32>
    %26 = arith.mulf %23, %25 : vector<256x64xf32>
    %c0_14 = arith.constant 0 : index
    %c0_15 = arith.constant 0 : index
    %27 = vector.load %arg4[%c0_14, %c0_15] : memref<1x64xf32, #tpu.memory_space<vmem>>, vector<1x64xf32>
    %28 = vector.broadcast %27 : vector<1x64xf32> to vector<256x64xf32>
    %29 = arith.addf %26, %28 : vector<256x64xf32>
    %cst_16 = arith.constant 0.000000e+00 : f32
    %30 = vector.broadcast %cst_16 : f32 to vector<256x64xf32>
    %31 = arith.maximumf %29, %30 : vector<256x64xf32>
    %32 = arith.truncf %31 : vector<256x64xf32> to vector<256x64xbf16>
    %c0_17 = arith.constant 0 : index
    %c0_18 = arith.constant 0 : index
    %33 = vector.load %arg5[%c0_17, %c0_18] : memref<256x64xbf16, #tpu.memory_space<vmem>>, vector<256x64xbf16>
    tpu.vector_store %arg5[%c0_17, %c0_18], %32 {strides = array<i32>} : memref<256x64xbf16, #tpu.memory_space<vmem>>, vector<256x64xbf16>,
    return
  }
  func.func @transform_0(%arg0: i32) -> (i32, i32) {
    %c0_i32 = arith.constant 0 : i32
    %c0_i32_0 = arith.constant 0 : i32
    %c0_i32_1 = arith.constant 0 : i32
    return %c0_i32, %c0_i32_0 : i32, i32
  }
  func.func @transform_1(%arg0: i32) -> (i32, i32, i32) {
    %c0_i32 = arith.constant 0 : i32
    %c0_i32_0 = arith.constant 0 : i32
    %c0_i32_1 = arith.constant 0 : i32
    %c0_i32_2 = arith.constant 0 : i32
    return %c0_i32, %c0_i32_0, %c0_i32_1 : i32, i32, i32
  }
  func.func @transform_2(%arg0: i32) -> (i32, i32) {
    %c0_i32 = arith.constant 0 : i32
    %c0_i32_0 = arith.constant 0 : i32
    %c0_i32_1 = arith.constant 0 : i32
    return %c0_i32, %c0_i32_0 : i32, i32
  }
  func.func @transform_3(%arg0: i32) -> (i32, i32) {
    %c0_i32 = arith.constant 0 : i32
    %c0_i32_0 = arith.constant 0 : i32
    %c0_i32_1 = arith.constant 0 : i32
    return %c0_i32, %c0_i32_0 : i32, i32
  }
  func.func @transform_4(%arg0: i32) -> (i32, i32) {
    %c0_i32 = arith.constant 0 : i32
    %c0_i32_0 = arith.constant 0 : i32
    return %arg0, %c0_i32 : i32, i32
  }
}

module attributes {stable_mosaic.version = 11 : i64} {
  func.func @_conv_bn_relu_kernel(%arg0: i32, %arg1: memref<560x192xbf16, #tpu.memory_space<vmem>>, %arg2: memref<3x192x48xbf16, #tpu.memory_space<vmem>>, %arg3: memref<1x48xf32, #tpu.memory_space<vmem>>, %arg4: memref<1x48xf32, #tpu.memory_space<vmem>>, %arg5: memref<256x48xbf16, #tpu.memory_space<vmem>>) attributes {dimension_semantics = [#tpu.dimension_semantics<parallel>], iteration_bounds = array<i64: 2>, scalar_prefetch = 0 : i64, scratch_operands = 0 : i64, tpu.core_type = #tpu.core_type<tc>, window_params = [{pipeline_mode = #tpu.pipeline_mode<synchronous>, transform_indices = @transform_0, window_bounds = array<i64: 560, 192>}, {pipeline_mode = #tpu.pipeline_mode<synchronous>, transform_indices = @transform_1, window_bounds = array<i64: 3, 192, 48>}, {pipeline_mode = #tpu.pipeline_mode<synchronous>, transform_indices = @transform_2, window_bounds = array<i64: 1, 48>}, {pipeline_mode = #tpu.pipeline_mode<synchronous>, transform_indices = @transform_3, window_bounds = array<i64: 1, 48>}, {transform_indices = @transform_4, window_bounds = array<i64: 256, 48>}]} {
    %c256_i32 = arith.constant 256 : i32
    %0 = arith.muli %arg0, %c256_i32 : i32
    %1 = tpu.assume_multiple %0, 256 : i32
    %cst = arith.constant 0.000000e+00 : f32
    %2 = vector.broadcast %cst : f32 to vector<256x48xf32>
    %c0_i32 = arith.constant 0 : i32
    %3 = arith.addi %1, %c0_i32 : i32
    %4 = arith.index_cast %3 : i32 to index
    %c0 = arith.constant 0 : index
    %5 = vector.load %arg1[%4, %c0] : memref<560x192xbf16, #tpu.memory_space<vmem>>, vector<256x192xbf16>
    %c0_0 = arith.constant 0 : index
    %c0_1 = arith.constant 0 : index
    %c0_2 = arith.constant 0 : index
    %6 = vector.load %arg2[%c0_0, %c0_1, %c0_2] : memref<3x192x48xbf16, #tpu.memory_space<vmem>>, vector<1x192x48xbf16>
    %7 = vector.shape_cast %6 : vector<1x192x48xbf16> to vector<192x48xbf16>
    %cst_3 = arith.constant dense<0.000000e+00> : vector<256x48xf32>
    %8 = tpu.matmul %5, %7, %cst_3 {dimension_numbers = #tpu.dot_dimension_numbers<[1], [0], [0], [1], [0, 0, 1, 1], [], []>} : vector<256x192xbf16>, vector<192x48xbf16>, vector<256x48xf32> -> vector<256x48xf32>
    %9 = arith.addf %2, %8 : vector<256x48xf32>
    %c24_i32 = arith.constant 24 : i32
    %10 = arith.addi %1, %c24_i32 : i32
    %11 = arith.index_cast %10 : i32 to index
    %c0_4 = arith.constant 0 : index
    %12 = vector.load %arg1[%11, %c0_4] : memref<560x192xbf16, #tpu.memory_space<vmem>>, vector<256x192xbf16>
    %c1 = arith.constant 1 : index
    %c0_5 = arith.constant 0 : index
    %c0_6 = arith.constant 0 : index
    %13 = vector.load %arg2[%c1, %c0_5, %c0_6] : memref<3x192x48xbf16, #tpu.memory_space<vmem>>, vector<1x192x48xbf16>
    %14 = vector.shape_cast %13 : vector<1x192x48xbf16> to vector<192x48xbf16>
    %cst_7 = arith.constant dense<0.000000e+00> : vector<256x48xf32>
    %15 = tpu.matmul %12, %14, %cst_7 {dimension_numbers = #tpu.dot_dimension_numbers<[1], [0], [0], [1], [0, 0, 1, 1], [], []>} : vector<256x192xbf16>, vector<192x48xbf16>, vector<256x48xf32> -> vector<256x48xf32>
    %16 = arith.addf %9, %15 : vector<256x48xf32>
    %c48_i32 = arith.constant 48 : i32
    %17 = arith.addi %1, %c48_i32 : i32
    %18 = arith.index_cast %17 : i32 to index
    %c0_8 = arith.constant 0 : index
    %19 = vector.load %arg1[%18, %c0_8] : memref<560x192xbf16, #tpu.memory_space<vmem>>, vector<256x192xbf16>
    %c2 = arith.constant 2 : index
    %c0_9 = arith.constant 0 : index
    %c0_10 = arith.constant 0 : index
    %20 = vector.load %arg2[%c2, %c0_9, %c0_10] : memref<3x192x48xbf16, #tpu.memory_space<vmem>>, vector<1x192x48xbf16>
    %21 = vector.shape_cast %20 : vector<1x192x48xbf16> to vector<192x48xbf16>
    %cst_11 = arith.constant dense<0.000000e+00> : vector<256x48xf32>
    %22 = tpu.matmul %19, %21, %cst_11 {dimension_numbers = #tpu.dot_dimension_numbers<[1], [0], [0], [1], [0, 0, 1, 1], [], []>} : vector<256x192xbf16>, vector<192x48xbf16>, vector<256x48xf32> -> vector<256x48xf32>
    %23 = arith.addf %16, %22 : vector<256x48xf32>
    %c0_12 = arith.constant 0 : index
    %c0_13 = arith.constant 0 : index
    %24 = vector.load %arg3[%c0_12, %c0_13] : memref<1x48xf32, #tpu.memory_space<vmem>>, vector<1x48xf32>
    %25 = vector.broadcast %24 : vector<1x48xf32> to vector<256x48xf32>
    %26 = arith.mulf %23, %25 : vector<256x48xf32>
    %c0_14 = arith.constant 0 : index
    %c0_15 = arith.constant 0 : index
    %27 = vector.load %arg4[%c0_14, %c0_15] : memref<1x48xf32, #tpu.memory_space<vmem>>, vector<1x48xf32>
    %28 = vector.broadcast %27 : vector<1x48xf32> to vector<256x48xf32>
    %29 = arith.addf %26, %28 : vector<256x48xf32>
    %cst_16 = arith.constant 0.000000e+00 : f32
    %30 = vector.broadcast %cst_16 : f32 to vector<256x48xf32>
    %31 = arith.maximumf %29, %30 : vector<256x48xf32>
    %32 = arith.truncf %31 : vector<256x48xf32> to vector<256x48xbf16>
    %c0_17 = arith.constant 0 : index
    %c0_18 = arith.constant 0 : index
    %33 = vector.load %arg5[%c0_17, %c0_18] : memref<256x48xbf16, #tpu.memory_space<vmem>>, vector<256x48xbf16>
    tpu.vector_store %arg5[%c0_17, %c0_18], %32 {strides = array<i32>} : memref<256x48xbf16, #tpu.memory_space<vmem>>, vector<256x48xbf16>,
    return
  }
  func.func @transform_0(%arg0: i32) -> (i32, i32) {
    %c0_i32 = arith.constant 0 : i32
    %c0_i32_0 = arith.constant 0 : i32
    %c0_i32_1 = arith.constant 0 : i32
    return %c0_i32, %c0_i32_0 : i32, i32
  }
  func.func @transform_1(%arg0: i32) -> (i32, i32, i32) {
    %c0_i32 = arith.constant 0 : i32
    %c0_i32_0 = arith.constant 0 : i32
    %c0_i32_1 = arith.constant 0 : i32
    %c0_i32_2 = arith.constant 0 : i32
    return %c0_i32, %c0_i32_0, %c0_i32_1 : i32, i32, i32
  }
  func.func @transform_2(%arg0: i32) -> (i32, i32) {
    %c0_i32 = arith.constant 0 : i32
    %c0_i32_0 = arith.constant 0 : i32
    %c0_i32_1 = arith.constant 0 : i32
    return %c0_i32, %c0_i32_0 : i32, i32
  }
  func.func @transform_3(%arg0: i32) -> (i32, i32) {
    %c0_i32 = arith.constant 0 : i32
    %c0_i32_0 = arith.constant 0 : i32
    %c0_i32_1 = arith.constant 0 : i32
    return %c0_i32, %c0_i32_0 : i32, i32
  }
  func.func @transform_4(%arg0: i32) -> (i32, i32) {
    %c0_i32 = arith.constant 0 : i32
    %c0_i32_0 = arith.constant 0 : i32
    return %arg0, %c0_i32 : i32, i32
  }
}

module attributes {stable_mosaic.version = 11 : i64} {
  func.func @_conv_bn_relu_proj_kernel(%arg0: i32, %arg1: memref<560x144xbf16, #tpu.memory_space<vmem>>, %arg2: memref<3x144x48xbf16, #tpu.memory_space<vmem>>, %arg3: memref<1x48xf32, #tpu.memory_space<vmem>>, %arg4: memref<1x48xf32, #tpu.memory_space<vmem>>, %arg5: memref<48x8xbf16, #tpu.memory_space<vmem>>, %arg6: memref<1x8xf32, #tpu.memory_space<vmem>>, %arg7: memref<256x8xf32, #tpu.memory_space<vmem>>) attributes {dimension_semantics = [#tpu.dimension_semantics<parallel>], iteration_bounds = array<i64: 2>, scalar_prefetch = 0 : i64, scratch_operands = 0 : i64, tpu.core_type = #tpu.core_type<tc>, window_params = [{pipeline_mode = #tpu.pipeline_mode<synchronous>, transform_indices = @transform_0, window_bounds = array<i64: 560, 144>}, {pipeline_mode = #tpu.pipeline_mode<synchronous>, transform_indices = @transform_1, window_bounds = array<i64: 3, 144, 48>}, {pipeline_mode = #tpu.pipeline_mode<synchronous>, transform_indices = @transform_2, window_bounds = array<i64: 1, 48>}, {pipeline_mode = #tpu.pipeline_mode<synchronous>, transform_indices = @transform_3, window_bounds = array<i64: 1, 48>}, {pipeline_mode = #tpu.pipeline_mode<synchronous>, transform_indices = @transform_4, window_bounds = array<i64: 48, 8>}, {pipeline_mode = #tpu.pipeline_mode<synchronous>, transform_indices = @transform_5, window_bounds = array<i64: 1, 8>}, {transform_indices = @transform_6, window_bounds = array<i64: 256, 8>}]} {
    %c256_i32 = arith.constant 256 : i32
    %0 = arith.muli %arg0, %c256_i32 : i32
    %1 = tpu.assume_multiple %0, 256 : i32
    %cst = arith.constant 0.000000e+00 : f32
    %2 = vector.broadcast %cst : f32 to vector<256x48xf32>
    %c0_i32 = arith.constant 0 : i32
    %3 = arith.addi %1, %c0_i32 : i32
    %4 = arith.index_cast %3 : i32 to index
    %c0 = arith.constant 0 : index
    %5 = vector.load %arg1[%4, %c0] : memref<560x144xbf16, #tpu.memory_space<vmem>>, vector<256x144xbf16>
    %c0_0 = arith.constant 0 : index
    %c0_1 = arith.constant 0 : index
    %c0_2 = arith.constant 0 : index
    %6 = vector.load %arg2[%c0_0, %c0_1, %c0_2] : memref<3x144x48xbf16, #tpu.memory_space<vmem>>, vector<1x144x48xbf16>
    %7 = vector.shape_cast %6 : vector<1x144x48xbf16> to vector<144x48xbf16>
    %cst_3 = arith.constant dense<0.000000e+00> : vector<256x48xf32>
    %8 = tpu.matmul %5, %7, %cst_3 {dimension_numbers = #tpu.dot_dimension_numbers<[1], [0], [0], [1], [0, 0, 1, 1], [], []>} : vector<256x144xbf16>, vector<144x48xbf16>, vector<256x48xf32> -> vector<256x48xf32>
    %9 = arith.addf %2, %8 : vector<256x48xf32>
    %c24_i32 = arith.constant 24 : i32
    %10 = arith.addi %1, %c24_i32 : i32
    %11 = arith.index_cast %10 : i32 to index
    %c0_4 = arith.constant 0 : index
    %12 = vector.load %arg1[%11, %c0_4] : memref<560x144xbf16, #tpu.memory_space<vmem>>, vector<256x144xbf16>
    %c1 = arith.constant 1 : index
    %c0_5 = arith.constant 0 : index
    %c0_6 = arith.constant 0 : index
    %13 = vector.load %arg2[%c1, %c0_5, %c0_6] : memref<3x144x48xbf16, #tpu.memory_space<vmem>>, vector<1x144x48xbf16>
    %14 = vector.shape_cast %13 : vector<1x144x48xbf16> to vector<144x48xbf16>
    %cst_7 = arith.constant dense<0.000000e+00> : vector<256x48xf32>
    %15 = tpu.matmul %12, %14, %cst_7 {dimension_numbers = #tpu.dot_dimension_numbers<[1], [0], [0], [1], [0, 0, 1, 1], [], []>} : vector<256x144xbf16>, vector<144x48xbf16>, vector<256x48xf32> -> vector<256x48xf32>
    %16 = arith.addf %9, %15 : vector<256x48xf32>
    %c48_i32 = arith.constant 48 : i32
    %17 = arith.addi %1, %c48_i32 : i32
    %18 = arith.index_cast %17 : i32 to index
    %c0_8 = arith.constant 0 : index
    %19 = vector.load %arg1[%18, %c0_8] : memref<560x144xbf16, #tpu.memory_space<vmem>>, vector<256x144xbf16>
    %c2 = arith.constant 2 : index
    %c0_9 = arith.constant 0 : index
    %c0_10 = arith.constant 0 : index
    %20 = vector.load %arg2[%c2, %c0_9, %c0_10] : memref<3x144x48xbf16, #tpu.memory_space<vmem>>, vector<1x144x48xbf16>
    %21 = vector.shape_cast %20 : vector<1x144x48xbf16> to vector<144x48xbf16>
    %cst_11 = arith.constant dense<0.000000e+00> : vector<256x48xf32>
    %22 = tpu.matmul %19, %21, %cst_11 {dimension_numbers = #tpu.dot_dimension_numbers<[1], [0], [0], [1], [0, 0, 1, 1], [], []>} : vector<256x144xbf16>, vector<144x48xbf16>, vector<256x48xf32> -> vector<256x48xf32>
    %23 = arith.addf %16, %22 : vector<256x48xf32>
    %c0_12 = arith.constant 0 : index
    %c0_13 = arith.constant 0 : index
    %24 = vector.load %arg3[%c0_12, %c0_13] : memref<1x48xf32, #tpu.memory_space<vmem>>, vector<1x48xf32>
    %25 = vector.broadcast %24 : vector<1x48xf32> to vector<256x48xf32>
    %26 = arith.mulf %23, %25 : vector<256x48xf32>
    %c0_14 = arith.constant 0 : index
    %c0_15 = arith.constant 0 : index
    %27 = vector.load %arg4[%c0_14, %c0_15] : memref<1x48xf32, #tpu.memory_space<vmem>>, vector<1x48xf32>
    %28 = vector.broadcast %27 : vector<1x48xf32> to vector<256x48xf32>
    %29 = arith.addf %26, %28 : vector<256x48xf32>
    %cst_16 = arith.constant 0.000000e+00 : f32
    %30 = vector.broadcast %cst_16 : f32 to vector<256x48xf32>
    %31 = arith.maximumf %29, %30 : vector<256x48xf32>
    %32 = arith.truncf %31 : vector<256x48xf32> to vector<256x48xbf16>
    %c0_17 = arith.constant 0 : index
    %c0_18 = arith.constant 0 : index
    %33 = vector.load %arg5[%c0_17, %c0_18] : memref<48x8xbf16, #tpu.memory_space<vmem>>, vector<48x8xbf16>
    %cst_19 = arith.constant dense<0.000000e+00> : vector<256x8xf32>
    %34 = tpu.matmul %32, %33, %cst_19 {dimension_numbers = #tpu.dot_dimension_numbers<[1], [0], [0], [1], [0, 0, 1, 1], [], []>} : vector<256x48xbf16>, vector<48x8xbf16>, vector<256x8xf32> -> vector<256x8xf32>
    %c0_20 = arith.constant 0 : index
    %c0_21 = arith.constant 0 : index
    %35 = vector.load %arg6[%c0_20, %c0_21] : memref<1x8xf32, #tpu.memory_space<vmem>>, vector<1x8xf32>
    %36 = vector.broadcast %35 : vector<1x8xf32> to vector<256x8xf32>
    %37 = arith.addf %34, %36 : vector<256x8xf32>
    %c0_22 = arith.constant 0 : index
    %c0_23 = arith.constant 0 : index
    %38 = vector.load %arg7[%c0_22, %c0_23] : memref<256x8xf32, #tpu.memory_space<vmem>>, vector<256x8xf32>
    tpu.vector_store %arg7[%c0_22, %c0_23], %37 {strides = array<i32>} : memref<256x8xf32, #tpu.memory_space<vmem>>, vector<256x8xf32>,
    return
  }
  func.func @transform_0(%arg0: i32) -> (i32, i32) {
    %c0_i32 = arith.constant 0 : i32
    %c0_i32_0 = arith.constant 0 : i32
    %c0_i32_1 = arith.constant 0 : i32
    return %c0_i32, %c0_i32_0 : i32, i32
  }
  func.func @transform_1(%arg0: i32) -> (i32, i32, i32) {
    %c0_i32 = arith.constant 0 : i32
    %c0_i32_0 = arith.constant 0 : i32
    %c0_i32_1 = arith.constant 0 : i32
    %c0_i32_2 = arith.constant 0 : i32
    return %c0_i32, %c0_i32_0, %c0_i32_1 : i32, i32, i32
  }
  func.func @transform_2(%arg0: i32) -> (i32, i32) {
    %c0_i32 = arith.constant 0 : i32
    %c0_i32_0 = arith.constant 0 : i32
    %c0_i32_1 = arith.constant 0 : i32
    return %c0_i32, %c0_i32_0 : i32, i32
  }
  func.func @transform_3(%arg0: i32) -> (i32, i32) {
    %c0_i32 = arith.constant 0 : i32
    %c0_i32_0 = arith.constant 0 : i32
    %c0_i32_1 = arith.constant 0 : i32
    return %c0_i32, %c0_i32_0 : i32, i32
  }
  func.func @transform_4(%arg0: i32) -> (i32, i32) {
    %c0_i32 = arith.constant 0 : i32
    %c0_i32_0 = arith.constant 0 : i32
    %c0_i32_1 = arith.constant 0 : i32
    return %c0_i32, %c0_i32_0 : i32, i32
  }
  func.func @transform_5(%arg0: i32) -> (i32, i32) {
    %c0_i32 = arith.constant 0 : i32
    %c0_i32_0 = arith.constant 0 : i32
    %c0_i32_1 = arith.constant 0 : i32
    return %c0_i32, %c0_i32_0 : i32, i32
  }
  func.func @transform_6(%arg0: i32) -> (i32, i32) {
    %c0_i32 = arith.constant 0 : i32
    %c0_i32_0 = arith.constant 0 : i32
    return %arg0, %c0_i32 : i32, i32
  }
}

</mosaic_0001>

<bundles_post_ra>
// kernel: custom-call.1
= control target key start
LH: loop header
LB: loop body
LE: loop exit
PB: predicated region body
PF: predicated region fallthrough
CT: control target
= control target key end

     0   :  { %s6_s0 = inlined_call_operand.vmem [shape: f32[256], index: 0, kind: output, shape index: {}]  }

// kernel: custom-call
= control target key start
LH: loop header
LB: loop body
LE: loop exit
PB: predicated region body
PF: predicated region fallthrough
CT: control target
= control target key end

     0   :  { %s6_s0 = inlined_call_operand.vmem [shape: pred[256], index: 0, kind: output, shape index: {}]  }

// kernel: closed_call.11
= control target key start
LH: loop header
LB: loop body
LE: loop exit
PB: predicated region body
PF: predicated region fallthrough
CT: control target
= control target key end

     0   :  { %v3894_v1 = vmov 0   ;;  %vm194_vm0 = vcmask 261120   ;;  %s2445_s17 = smov 32   ;;  %s2446_s9 = smov 64   ;;  %s3886_s2 = inlined_call_operand.vmem [shape: bf16[32,96], index: 2, kind: input, shape index: {}]   ;;  %s3887_s3 = inlined_call_operand.vmem [shape: bf16[32,96], index: 3, kind: input, shape index: {}]   ;;  %s3888_s0 = inlined_call_operand.vmem [shape: bf16[256,32], index: 0, kind: input, shape index: {}]   ;;  %s3889_s1 = inlined_call_operand.vmem [shape: f32[256,32], index: 1, kind: input, shape index: {}]   ;;  %s3890_s6 = inlined_call_operand.vmem [shape: f32[256,1], index: 6, kind: input, shape index: {}]   ;;  %s3891_s5 = inlined_call_operand.vmem [shape: f32[1,96], index: 5, kind: input, shape index: {}]   ;;  %s3892_s4 = inlined_call_operand.vmem [shape: f32[1,96], index: 4, kind: input, shape index: {}]   ;;  %s3893_s7 = inlined_call_operand.vmem [shape: f32[256,32], index: 7, kind: output, shape index: {}]  }
   0x1   :  { %v2232_v0 = vld [vmem:[%s3886_s2 + $0x8] sm:$0xff]   ;;  %2231 = vset.pattern.permute.xlu1 %v3894_v1  ;;  %2230 = vset.pattern.permute.xlu0 %v3894_v1  ;;  %v2234_v3 = vld [vmem:[%s3886_s2] sm:$0xff]   ;;  %v29_v10 = vld [vmem:[%s3889_s1 + $0x10] sm:$0xff] }
   0x2   :  { %v2233_v2 = vld [vmem:[%s3887_s3 + $0x8] sm:$0xff]   ;;  %2154 = vmatprep.subr.bf16.mxu0 %v2232_v0  ;;  %v2235_v4 = vld [vmem:[%s3887_s3] sm:$0xff]   ;;  %v30_v11 = vld [vmem:[%s3889_s1 + $0x18] sm:$0xff] }
   0x3   :  { %2190 = vmatprep.subr.bf16.mxu1 %v2233_v2  ;;  %2155 = vmatpush3.bf16.msra.mxu0 %v2232_v0  ;;  %v2236_v5 = vld [vmem:[%s3888_s0] sm:$0xff]   ;;  %v28_v7 = vld [vmem:[%s3889_s1 + $0x8] sm:$0xff]  ;;  %v405_v12 = vpack.c.bf16 %v30_v11, %v29_v10  ;;  %v2238_v13 = vld [vmem:[%s3888_s0 + $0x10] sm:$0xff]  }
   0x4   :  { %2191 = vmatpush3.bf16.msra.mxu1 %v2233_v2  ;;  %2156 = vmatprep.subr.bf16.mxu0 %v2234_v3  ;;  %v27_v6 = vld [vmem:[%s3889_s1] sm:$0xff]  ;;  %v2237_v9 = vld [vmem:[%s3888_s0 + $0x8] sm:$0xff]   ;;  %v33_v17 = vld [vmem:[%s3889_s1 + $0x30] sm:$0xff] }
   0x5   :  { %2192 = vmatprep.subr.bf16.mxu1 %v2235_v4  ;;  %2158 = vmatprep.mubr.msk.bf16.mxu0 %vm194_vm0, %v2236_v5  ;;  %v404_v8 = vpack.c.bf16 %v28_v7, %v27_v6  ;;  %v31_v14 = vld [vmem:[%s3889_s1 + $0x20] sm:$0xff]  ;;  %v32_v15 = vld [vmem:[%s3889_s1 + $0x28] sm:$0xff]  ;;  %v34_v18 = vld [vmem:[%s3889_s1 + $0x38] sm:$0xff] }
   0x6   :  { %1454 = vrot.lane.b32.xlu1 %v28_v7, %s2445_s17  ;;  %1452 = vrot.lane.b32.xlu0 %v27_v6, %s2445_s17  ;;  %v406_v16 = vpack.c.bf16 %v32_v15, %v31_v14  ;;  %v35_v19 = vld [vmem:[%s3889_s1 + $0x40] sm:$0xff]  ;;  %v36_v20 = vld [vmem:[%s3889_s1 + $0x48] sm:$0xff]  ;;  %v407_v22 = vpack.c.bf16 %v34_v18, %v33_v17 }
   0x7   :  { %2157 = vmatpush3.bf16.msra.mxu0 %v2234_v3  ;;  %2194 = vmatprep.mubr.msk.bf16.mxu1 %vm194_vm0, %v404_v8  ;;  %v2239_v21 = vld [vmem:[%s3888_s0 + $0x18] sm:$0xff]   ;;  %v2240_v23 = vld [vmem:[%s3888_s0 + $0x20] sm:$0xff]   ;;  %v408_v24 = vpack.c.bf16 %v36_v20, %v35_v19  ;;  %v37_v25 = vld [vmem:[%s3889_s1 + $0x50] sm:$0xff] }
   0x8   :  { %2193 = vmatpush3.bf16.msra.mxu1 %v2235_v4  ;;  %v38_v26 = vld [vmem:[%s3889_s1 + $0x58] sm:$0xff]  ;;  %v39_v27 = vld [vmem:[%s3889_s1 + $0x60] sm:$0xff]  ;;  %v40_v28 = vld [vmem:[%s3889_s1 + $0x68] sm:$0xff] }
   0x9   :  { %v2241_v29 = vld [vmem:[%s3888_s0 + $0x28] sm:$0xff]   ;;  %v409_v30 = vpack.c.bf16 %v38_v26, %v37_v25  ;;  %v2242_v31 = vld [vmem:[%s3888_s0 + $0x30] sm:$0xff]   ;;  %v410_v32 = vpack.c.bf16 %v40_v28, %v39_v27  ;;  %v42_v34 = vld [vmem:[%s3889_s1 + $0x78] sm:$0xff] }
   0xa   :  { %2159 = vmatmul.mubr.msk.bf16.vlgmr.msra.gmra.mxu0 %vm194_vm0, %v2237_v9  ;;  %1458 = vrot.lane.b32.xlu1 %v30_v11, %s2445_s17  ;;  %v41_v33 = vld [vmem:[%s3889_s1 + $0x70] sm:$0xff]  ;;  %v43_v35 = vld [vmem:[%s3889_s1 + $0x80] sm:$0xff]  ;;  %v44_v36 = vld [vmem:[%s3889_s1 + $0x88] sm:$0xff] }
   0xb   :  { %2195 = vmatmul.mubr.msk.bf16.vlgmr.msra.gmra.mxu1 %vm194_vm0, %v405_v12  ;;  %2162 = vmatprep.mubr.msk.bf16.mxu0 %vm194_vm0, %v2238_v13  ;;  %v2243_v37 = vld [vmem:[%s3888_s0 + $0x38] sm:$0xff]   ;;  %v411_v38 = vpack.c.bf16 %v42_v34, %v41_v33  ;;  %v2244_v39 = vld [vmem:[%s3888_s0 + $0x40] sm:$0xff]   ;;  %v412_v40 = vpack.c.bf16 %v44_v36, %v43_v35  ;;  %v45_v41 = vld [vmem:[%s3889_s1 + $0x90] sm:$0xff] }
   0xc   :  { %2198 = vmatprep.mubr.msk.bf16.mxu1 %vm194_vm0, %v406_v16  ;;  %1456 = vrot.lane.b32.xlu0 %v29_v10, %s2445_s17  ;;  %v46_v42 = vld [vmem:[%s3889_s1 + $0x98] sm:$0xff]  ;;  %v47_v43 = vld [vmem:[%s3889_s1 + $0xa0] sm:$0xff]  ;;  %v48_v44 = vld [vmem:[%s3889_s1 + $0xa8] sm:$0xff] }
   0xd   :  { %v2245_v45 = vld [vmem:[%s3888_s0 + $0x48] sm:$0xff]   ;;  %v413_v46 = vpack.c.bf16 %v46_v42, %v45_v41  ;;  %v2246_v47 = vld [vmem:[%s3888_s0 + $0x50] sm:$0xff]   ;;  %v414_v48 = vpack.c.bf16 %v48_v44, %v47_v43  ;;  %v50_v50 = vld [vmem:[%s3889_s1 + $0xb8] sm:$0xff] }
   0xe   :  { %1462 = vrot.lane.b32.xlu1 %v32_v15, %s2445_s17  ;;  %v49_v49 = vld [vmem:[%s3889_s1 + $0xb0] sm:$0xff]  ;;  %v51_v51 = vld [vmem:[%s3889_s1 + $0xc0] sm:$0xff]  ;;  %v52_v52 = vld [vmem:[%s3889_s1 + $0xc8] sm:$0xff] }
   0xf   :  { %v2247_v53 = vld [vmem:[%s3888_s0 + $0x58] sm:$0xff]   ;;  %v415_v54 = vpack.c.bf16 %v50_v50, %v49_v49  ;;  %v2248_v55 = vld [vmem:[%s3888_s0 + $0x60] sm:$0xff]   ;;  %v416_v56 = vpack.c.bf16 %v52_v52, %v51_v51  ;;  %v53_v57 = vld [vmem:[%s3889_s1 + $0xd0] sm:$0xff] }
  0x10   :  { %1460 = vrot.lane.b32.xlu0 %v31_v14, %s2445_s17  ;;  %v54_v58 = vld [vmem:[%s3889_s1 + $0xd8] sm:$0xff]  ;;  %v55_v59 = vld [vmem:[%s3889_s1 + $0xe0] sm:$0xff]  ;;  %v56_v60 = vld [vmem:[%s3889_s1 + $0xe8] sm:$0xff] }
  0x11   :  { %v2249_v61 = vld [vmem:[%s3888_s0 + $0x68] sm:$0xff]   ;;  %v417_v62 = vpack.c.bf16 %v54_v58, %v53_v57  ;;  %v2250_v63 = vld [vmem:[%s3888_s0 + $0x70] sm:$0xff]   ;;  %v418_v0 = vpack.c.bf16 %v56_v60, %v55_v59  ;;  %v58_v3 = vld [vmem:[%s3889_s1 + $0xf8] sm:$0xff] }
  0x12   :  { %2163 = vmatmul.mubr.msk.bf16.gmra.mxu0 %vm194_vm0, %v2239_v21  ;;  %1466 = vrot.lane.b32.xlu1 %v34_v18, %s2445_s17  ;;  %v57_v2 = vld [vmem:[%s3889_s1 + $0xf0] sm:$0xff]  ;;  %v1613_v4 = vld [vmem:[%s3890_s6 + $0x8] sm:$0xff]  ;;  %v2251_v5 = vld [vmem:[%s3888_s0 + $0x78] sm:$0xff]  }
  0x13   :  { %2199 = vmatmul.mubr.msk.bf16.gmra.mxu1 %vm194_vm0, %v407_v22  ;;  %2166 = vmatprep.mubr.msk.bf16.mxu0 %vm194_vm0, %v2240_v23  ;;  %v419_v6 = vpack.c.bf16 %v58_v3, %v57_v2  ;;  %v1612_v7 = vld [vmem:[%s3890_s6] sm:$0xff]  ;;  %vm1645_vm1 = vcmp.gt.f32.partialorder %v1613_v4, 0.0  ;;  %v1614_v8 = vld [vmem:[%s3890_s6 + $0x10] sm:$0xff]  ;;  %v1615_v10 = vld [vmem:[%s3890_s6 + $0x18] sm:$0xff] }
  0x14   :  { %2202 = vmatprep.mubr.msk.bf16.mxu1 %vm194_vm0, %v408_v24  ;;  %1464 = vrot.lane.b32.xlu0 %v33_v17, %s2445_s17  ;;  %vm1644_vm2 = vcmp.gt.f32.partialorder %v1612_v7, 0.0  ;;  %v1677_v9 = vsel %vm1645_vm1, 1, %v3894_v1  ;;  %vm1646_vm3 = vcmp.gt.f32.partialorder %v1614_v8, 0.0  ;;  %v1616_v12 = vld [vmem:[%s3890_s6 + $0x20] sm:$0xff]  ;;  %vm1647_vm4 = vcmp.gt.f32.partialorder %v1615_v10, 0.0  ;;  %v1617_v14 = vld [vmem:[%s3890_s6 + $0x28] sm:$0xff] }
  0x15   :  { %v1676_v11 = vsel %vm1644_vm2, 1, %v3894_v1  ;;  %v1678_v13 = vsel %vm1646_vm3, 1, %v3894_v1  ;;  %vm1648_vm5 = vcmp.gt.f32.partialorder %v1616_v12, 0.0  ;;  %v1679_v15 = vsel %vm1647_vm4, 1, %v3894_v1  ;;  %v1618_v16 = vld [vmem:[%s3890_s6 + $0x30] sm:$0xff]  ;;  %v1619_v18 = vld [vmem:[%s3890_s6 + $0x38] sm:$0xff] }
  0x16   :  { %1470 = vrot.lane.b32.xlu1 %v36_v20, %s2445_s17  ;;  %vm1649_vm6 = vcmp.gt.f32.partialorder %v1617_v14, 0.0  ;;  %v1680_v17 = vsel %vm1648_vm5, 1, %v3894_v1  ;;  %vm1650_vm7 = vcmp.gt.f32.partialorder %v1618_v16, 0.0  ;;  %v1620_v20 = vld [vmem:[%s3890_s6 + $0x40] sm:$0xff]  ;;  %vm1651_vm8 = vcmp.gt.f32.partialorder %v1619_v18, 0.0  ;;  %v1621_v22 = vld [vmem:[%s3890_s6 + $0x48] sm:$0xff] }
  0x17   :  { %v1682_v21 = vsel %vm1650_vm7, 1, %v3894_v1  ;;  %vm1652_vm9 = vcmp.gt.f32.partialorder %v1620_v20, 0.0  ;;  %v1683_v23 = vsel %vm1651_vm8, 1, %v3894_v1  ;;  %v1622_v24 = vld [vmem:[%s3890_s6 + $0x50] sm:$0xff]  ;;  %vm1653_vm10 = vcmp.gt.f32.partialorder %v1621_v22, 0.0 }
  0x18   :  { %1468 = vrot.lane.b32.xlu0 %v35_v19, %s2445_s17  ;;  %v1681_v19 = vsel %vm1649_vm6, 1, %v3894_v1  ;;  %vm1654_vm11 = vcmp.gt.f32.partialorder %v1622_v24, 0.0 }
  0x1a   :  { %2167 = vmatmul.mubr.msk.bf16.gmra.mxu0 %vm194_vm0, %v2241_v29  ;;  %1474 = vrot.lane.b32.xlu1 %v38_v26, %s2445_s17  ;;  %v1623_v26 = vld [vmem:[%s3890_s6 + $0x58] sm:$0xff]  ;;  %v1686_v29 = vsel %vm1654_vm11, 1, %v3894_v1 }
  0x1b   :  { %2203 = vmatmul.mubr.msk.bf16.gmra.mxu1 %vm194_vm0, %v409_v30  ;;  %2170 = vmatprep.mubr.msk.bf16.mxu0 %vm194_vm0, %v2242_v31  ;;  %vm1655_vm12 = vcmp.gt.f32.partialorder %v1623_v26, 0.0  ;;  %v1625_v30 = vld [vmem:[%s3890_s6 + $0x68] sm:$0xff] }
  0x1c   :  { %2206 = vmatprep.mubr.msk.bf16.mxu1 %vm194_vm0, %v410_v32  ;;  %1472 = vrot.lane.b32.xlu0 %v37_v25, %s2445_s17  ;;  %v1684_v25 = vsel %vm1652_vm9, 1, %v3894_v1  ;;  %v1687_v31 = vsel %vm1655_vm12, 1, %v3894_v1  ;;  %v1626_v32 = vld [vmem:[%s3890_s6 + $0x70] sm:$0xff]  ;;  %vm1657_vm14 = vcmp.gt.f32.partialorder %v1625_v30, 0.0 }
  0x1d   :  { %vm1658_vm15 = vcmp.gt.f32.partialorder %v1626_v32, 0.0 }
  0x1e   :  { %1478 = vrot.lane.b32.xlu1 %v40_v28, %s2445_s17  ;;  %v1624_v28 = vld [vmem:[%s3890_s6 + $0x60] sm:$0xff] }
  0x1f   :  { %vm1656_vm13 = vcmp.gt.f32.partialorder %v1624_v28, 0.0 }
  0x20   :  { %1476 = vrot.lane.b32.xlu0 %v39_v27, %s2445_s17  ;;  %v1685_v27 = vsel %vm1653_vm10, 1, %v3894_v1 }
  0x22   :  { %2171 = vmatmul.mubr.msk.bf16.gmra.mxu0 %vm194_vm0, %v2243_v37  ;;  %1482 = vrot.lane.b32.xlu1 %v42_v34, %s2445_s17  ;;  %v1627_v34 = vld [vmem:[%s3890_s6 + $0x78] sm:$0xff]  ;;  %v1690_v37 = vsel %vm1658_vm15, 1, %v3894_v1 }
  0x23   :  { %2207 = vmatmul.mubr.msk.bf16.gmra.mxu1 %vm194_vm0, %v411_v38  ;;  %2174 = vmatprep.mubr.msk.bf16.mxu0 %vm194_vm0, %v2244_v39  ;;  %vm1659_vm1 = vcmp.gt.f32.partialorder %v1627_v34, 0.0  ;;  %v1629_v38 = vld [vmem:[%s3890_s6 + $0x88] sm:$0xff] }
  0x24   :  { %2210 = vmatprep.mubr.msk.bf16.mxu1 %vm194_vm0, %v412_v40  ;;  %1480 = vrot.lane.b32.xlu0 %v41_v33, %s2445_s17  ;;  %v1688_v33 = vsel %vm1656_vm13, 1, %v3894_v1  ;;  %v1691_v39 = vsel %vm1659_vm1, 1, %v3894_v1  ;;  %v1630_v40 = vld [vmem:[%s3890_s6 + $0x90] sm:$0xff]  ;;  %vm1661_vm3 = vcmp.gt.f32.partialorder %v1629_v38, 0.0 }
  0x25   :  { %vm1662_vm4 = vcmp.gt.f32.partialorder %v1630_v40, 0.0 }
  0x26   :  { %1486 = vrot.lane.b32.xlu1 %v44_v36, %s2445_s17  ;;  %v1628_v36 = vld [vmem:[%s3890_s6 + $0x80] sm:$0xff] }
  0x27   :  { %vm1660_vm2 = vcmp.gt.f32.partialorder %v1628_v36, 0.0 }
  0x28   :  { %1484 = vrot.lane.b32.xlu0 %v43_v35, %s2445_s17  ;;  %v1689_v35 = vsel %vm1657_vm14, 1, %v3894_v1 }
  0x2a   :  { %2175 = vmatmul.mubr.msk.bf16.gmra.mxu0 %vm194_vm0, %v2245_v45  ;;  %1490 = vrot.lane.b32.xlu1 %v46_v42, %s2445_s17  ;;  %v1631_v42 = vld [vmem:[%s3890_s6 + $0x98] sm:$0xff]  ;;  %v1694_v45 = vsel %vm1662_vm4, 1, %v3894_v1 }
  0x2b   :  { %2211 = vmatmul.mubr.msk.bf16.gmra.mxu1 %vm194_vm0, %v413_v46  ;;  %2178 = vmatprep.mubr.msk.bf16.mxu0 %vm194_vm0, %v2246_v47  ;;  %vm1663_vm5 = vcmp.gt.f32.partialorder %v1631_v42, 0.0  ;;  %v1633_v46 = vld [vmem:[%s3890_s6 + $0xa8] sm:$0xff] }
  0x2c   :  { %2214 = vmatprep.mubr.msk.bf16.mxu1 %vm194_vm0, %v414_v48  ;;  %1488 = vrot.lane.b32.xlu0 %v45_v41, %s2445_s17  ;;  %v1692_v41 = vsel %vm1660_vm2, 1, %v3894_v1  ;;  %v1695_v47 = vsel %vm1663_vm5, 1, %v3894_v1  ;;  %v1634_v48 = vld [vmem:[%s3890_s6 + $0xb0] sm:$0xff]  ;;  %vm1665_vm7 = vcmp.gt.f32.partialorder %v1633_v46, 0.0 }
  0x2d   :  { %vm1666_vm8 = vcmp.gt.f32.partialorder %v1634_v48, 0.0 }
  0x2e   :  { %1494 = vrot.lane.b32.xlu1 %v48_v44, %s2445_s17  ;;  %v1632_v44 = vld [vmem:[%s3890_s6 + $0xa0] sm:$0xff] }
  0x2f   :  { %vm1664_vm6 = vcmp.gt.f32.partialorder %v1632_v44, 0.0 }
  0x30   :  { %1492 = vrot.lane.b32.xlu0 %v47_v43, %s2445_s17  ;;  %v1693_v43 = vsel %vm1661_vm3, 1, %v3894_v1 }
  0x32   :  { %2179 = vmatmul.mubr.msk.bf16.gmra.mxu0 %vm194_vm0, %v2247_v53  ;;  %1498 = vrot.lane.b32.xlu1 %v50_v50, %s2445_s17  ;;  %v1635_v50 = vld [vmem:[%s3890_s6 + $0xb8] sm:$0xff]  ;;  %v1698_v53 = vsel %vm1666_vm8, 1, %v3894_v1 }
  0x33   :  { %2215 = vmatmul.mubr.msk.bf16.gmra.mxu1 %vm194_vm0, %v415_v54  ;;  %2182 = vmatprep.mubr.msk.bf16.mxu0 %vm194_vm0, %v2248_v55  ;;  %vm1667_vm9 = vcmp.gt.f32.partialorder %v1635_v50, 0.0  ;;  %v1637_v54 = vld [vmem:[%s3890_s6 + $0xc8] sm:$0xff] }
  0x34   :  { %2218 = vmatprep.mubr.msk.bf16.mxu1 %vm194_vm0, %v416_v56  ;;  %1496 = vrot.lane.b32.xlu0 %v49_v49, %s2445_s17  ;;  %v1696_v49 = vsel %vm1664_vm6, 1, %v3894_v1  ;;  %v1699_v55 = vsel %vm1667_vm9, 1, %v3894_v1  ;;  %vm1669_vm11 = vcmp.gt.f32.partialorder %v1637_v54, 0.0 }
  0x36   :  { %1502 = vrot.lane.b32.xlu1 %v52_v52, %s2445_s17  ;;  %v1636_v52 = vld [vmem:[%s3890_s6 + $0xc0] sm:$0xff] }
  0x37   :  { %vm1668_vm10 = vcmp.gt.f32.partialorder %v1636_v52, 0.0 }
  0x38   :  { %1500 = vrot.lane.b32.xlu0 %v51_v51, %s2445_s17  ;;  %v1697_v51 = vsel %vm1665_vm7, 1, %v3894_v1  ;;  %v1700_v56 = vsel %vm1668_vm10, 1, %v3894_v1 }
  0x3a   :  { %2183 = vmatmul.mubr.msk.bf16.gmra.mxu0 %vm194_vm0, %v2249_v61  ;;  %1506 = vrot.lane.b32.xlu1 %v54_v58, %s2445_s17 }
  0x3b   :  { %2219 = vmatmul.mubr.msk.bf16.gmra.mxu1 %vm194_vm0, %v417_v62  ;;  %2186 = vmatprep.mubr.msk.bf16.mxu0 %vm194_vm0, %v2250_v63 }
  0x3c   :  { %2222 = vmatprep.mubr.msk.bf16.mxu1 %vm194_vm0, %v418_v0  ;;  %1504 = vrot.lane.b32.xlu0 %v53_v57, %s2445_s17  ;;  %v1701_v57 = vsel %vm1669_vm11, 1, %v3894_v1 }
  0x3e   :  { %1510 = vrot.lane.b32.xlu1 %v56_v60, %s2445_s17 }
  0x40   :  { %1508 = vrot.lane.b32.xlu0 %v55_v59, %s2445_s17 }
  0x42   :  { %2187 = vmatmul.mubr.msk.bf16.gmra.mxu0 %vm194_vm0, %v2251_v5  ;;  %1514 = vrot.lane.b32.xlu1 %v58_v3, %s2445_s17 }
  0x43   :  { %2223 = vmatmul.mubr.msk.bf16.gmra.mxu1 %vm194_vm0, %v419_v6 }
  0x44   :  { %1512 = vrot.lane.b32.xlu0 %v57_v2, %s2445_s17 }
  0x46   :  { %1712 = vperm.xlu1 %2231, %v1677_v9  }
  0x48   :  { %1709 = vperm.xlu0 %2230, %v1676_v11  }
  0x4a   :  { %1715 = vperm.xlu1 %2231, %v1678_v13   ;;  %v2853_v13 = vld [vmem:[%s3891_s5] ss:$0 sm:$0xff] }
  0x4c   :  { %1718 = vperm.xlu0 %2230, %v1679_v15  }
  0x4e   :  { %1721 = vperm.xlu1 %2231, %v1680_v17  }
  0x50   :  { %1724 = vperm.xlu0 %2230, %v1681_v19  }
  0x52   :  { %1727 = vperm.xlu1 %2231, %v1682_v21  }
  0x54   :  { %1730 = vperm.xlu0 %2230, %v1683_v23  }
  0x56   :  { %1733 = vperm.xlu1 %2231, %v1684_v25  }
  0x58   :  { %1736 = vperm.xlu0 %2230, %v1685_v27  }
  0x5a   :  { %1739 = vperm.xlu1 %2231, %v1686_v29  }
  0x5c   :  { %1742 = vperm.xlu0 %2230, %v1687_v31  }
  0x5e   :  { %1745 = vperm.xlu1 %2231, %v1688_v33  }
  0x60   :  { %1748 = vperm.xlu0 %2230, %v1689_v35  }
  0x62   :  { %1751 = vperm.xlu1 %2231, %v1690_v37  }
  0x64   :  { %1754 = vperm.xlu0 %2230, %v1691_v39  }
  0x66   :  { %1757 = vperm.xlu1 %2231, %v1692_v41  }
  0x68   :  { %1760 = vperm.xlu0 %2230, %v1693_v43  }
  0x6a   :  { %1763 = vperm.xlu1 %2231, %v1694_v45  }
  0x6c   :  { %1766 = vperm.xlu0 %2230, %v1695_v47  }
  0x6e   :  { %1769 = vperm.xlu1 %2231, %v1696_v49  }
  0x70   :  { %1772 = vperm.xlu0 %2230, %v1697_v51  }
  0x72   :  { %1775 = vperm.xlu1 %2231, %v1698_v53  }
  0x74   :  { %1778 = vperm.xlu0 %2230, %v1699_v55  }
  0x76   :  { %1781 = vperm.xlu1 %2231, %v1700_v56  }
  0x78   :  { %1784 = vperm.xlu0 %2230, %v1701_v57   ;;  %v2814_v58 = vpop.permute.xlu1 %1454  ;;  %v2816_v59 = vpop.permute.xlu0 %1452 }
  0x79   :  { %3955 = vst [vmem:[#allocation2_spill] sm:$0xff] %v2814_v58  ;;  %3956 = vst [vmem:[#allocation3_spill] sm:$0xff] %v2816_v59 }
  0x7c   :  { %v2818_v60 = vpop.permute.xlu1 %1458 }
  0x7d   :  { %3957 = vst [vmem:[#allocation4_spill] sm:$0xff] %v2818_v60 }
  0x7e   :  { %v2820_v61 = vpop.permute.xlu0 %1456 }
  0x80   :  { %v2822_v62 = vpop.permute.xlu1 %1462 }
  0x81   :  { %3958 = vst [vmem:[#allocation5_spill] sm:$0xff] %v2822_v62 }
  0x82   :  { %v2824_v63 = vpop.permute.xlu0 %1460 }
  0x83   :  { %3959 = vst [vmem:[#allocation6_spill] sm:$0xff] %v2824_v63 }
  0x84   :  { %v2826_v0 = vpop.permute.xlu1 %1466 }
  0x85   :  { %3960 = vst [vmem:[#allocation7_spill] sm:$0xff] %v2826_v0 }
  0x86   :  { %v2828_v2 = vpop.permute.xlu0 %1464 }
  0x87   :  { %3961 = vst [vmem:[#allocation8_spill] sm:$0xff] %v2828_v2 }
  0x88   :  { %v2830_v3 = vpop.permute.xlu1 %1470 }
  0x89   :  { %3962 = vst [vmem:[#allocation9_spill] sm:$0xff] %v2830_v3 }
  0x8a   :  { %v2832_v4 = vpop.permute.xlu0 %1468 }
  0x8b   :  { %3963 = vst [vmem:[#allocation10_spill] sm:$0xff] %v2832_v4 }
  0x8c   :  { %v2834_v5 = vpop.permute.xlu1 %1474 }
  0x8d   :  { %3964 = vst [vmem:[#allocation11_spill] sm:$0xff] %v2834_v5 }
  0x8e   :  { %v2836_v6 = vpop.permute.xlu0 %1472 }
  0x8f   :  { %3965 = vst [vmem:[#allocation12_spill] sm:$0xff] %v2836_v6 }
  0x90   :  { %v2838_v7 = vpop.permute.xlu1 %1478 }
  0x91   :  { %3966 = vst [vmem:[#allocation13_spill] sm:$0xff] %v2838_v7 }
  0x92   :  { %v2840_v8 = vpop.permute.xlu0 %1476 }
  0x93   :  { %3967 = vst [vmem:[#allocation14_spill] sm:$0xff] %v2840_v8 }
  0x94   :  { %v2842_v9 = vpop.permute.xlu1 %1482 }
  0x95   :  { %3968 = vst [vmem:[#allocation15_spill] sm:$0xff] %v2842_v9 }
  0x96   :  { %v2844_v10 = vpop.permute.xlu0 %1480 }
  0x97   :  { %3969 = vst [vmem:[#allocation16_spill] sm:$0xff] %v2844_v10 }
  0x98   :  { %v2846_v11 = vpop.permute.xlu1 %1486 }
  0x99   :  { %3970 = vst [vmem:[#allocation17_spill] sm:$0xff] %v2846_v11 }
  0x9a   :  { %v2848_v12 = vpop.permute.xlu0 %1484 }
  0x9b   :  { %3971 = vst [vmem:[#allocation18_spill] sm:$0xff] %v2848_v12 }
  0x9c   :  { %v2855_v14 = vpop.permute.xlu1 %1490 }
  0x9d   :  { %3972 = vst [vmem:[#allocation19_spill] sm:$0xff] %v2855_v14 }
  0x9e   :  { %v2857_v16 = vpop.permute.xlu0 %1488 }
  0x9f   :  { %3973 = vst [vmem:[#allocation20_spill] sm:$0xff] %v2857_v16 }
  0xa0   :  { %v2867_v21 = vpop.permute.xlu1 %1494 }
  0xa1   :  { %3974 = vst [vmem:[#allocation21_spill] sm:$0xff] %v2867_v21 }
  0xa2   :  { %v2874_v24 = vpop.permute.xlu0 %1492 }
  0xa3   :  { %3975 = vst [vmem:[#allocation22_spill] sm:$0xff] %v2874_v24 }
  0xa4   :  { %v2885_v29 = vpop.permute.xlu1 %1498 }
  0xa5   :  { %3976 = vst [vmem:[#allocation23_spill] sm:$0xff] %v2885_v29 }
  0xa6   :  { %v2890_v32 = vpop.permute.xlu0 %1496 }
  0xa7   :  { %3977 = vst [vmem:[#allocation24_spill] sm:$0xff] %v2890_v32 }
  0xa8   :  { %v2904_v38 = vpop.permute.xlu1 %1502 }
  0xa9   :  { %3978 = vst [vmem:[#allocation25_spill] sm:$0xff] %v2904_v38 }
  0xaa   :  { %v2913_v42 = vpop.permute.xlu0 %1500 }
  0xab   :  { %3979 = vst [vmem:[#allocation26_spill] sm:$0xff] %v2913_v42 }
  0xac   :  { %v2927_v48 = vpop.permute.xlu1 %1506 }
  0xad   :  { %3980 = vst [vmem:[#allocation27_spill] sm:$0xff] %v2927_v48 }
  0xae   :  { %v2934_v51 = vpop.permute.xlu0 %1504 }
  0xaf   :  { %3981 = vst [vmem:[#allocation28_spill] sm:$0xff] %v2934_v51 }
  0xb0   :  { %v2948_v57 = vpop.permute.xlu1 %1510 }
  0xb1   :  { %3982 = vst [vmem:[#allocation29_spill] sm:$0xff] %v2948_v57 }
  0xca   :  { %v2883_v27 = vpop.f32.mrf.mxu0 }
  0xcb   :  { %v2196_v15 = vpop.f32.mrf.mxu1 }
  0xcc   :  { %v2860_v17 = vadd.f32 %v2196_v15, %v2853_v13  ;;  %v2897_v34 = vpop.f32.mrf.mxu0 }
  0xcd   :  { %v525_v18 = vpop.f32.mrf.mxu1 }
  0xce   :  { %v2863_v19 = vadd.f32 %v2853_v13, %v525_v18  ;;  %912 = vrot.lane.b32.xlu1 %v2860_v17, %s2446_s9  ;;  %v2911_v40 = vpop.f32.mrf.mxu0 }
  0xcf   :  { %v2197_v20 = vpop.f32.mrf.mxu1 }
  0xd0   :  { %v2870_v22 = vadd.f32 %v2197_v20, %v2853_v13  ;;  %908 = vrot.lane.b32.xlu0 %v2863_v19, %s2446_s9  ;;  %v2922_v45 = vpop.f32.mrf.mxu0 }
  0xd1   :  { %v528_v23 = vpop.f32.mrf.mxu1 }
  0xd2   :  { %v2877_v25 = vadd.f32 %v2853_v13, %v528_v23  ;;  %914 = vrot.lane.b32.xlu1 %v2870_v22, %s2446_s9  ;;  %v2938_v52 = vpop.f32.mrf.mxu0  ;;  %v2957_v23 = vpop.permute.xlu0 %1508 }
  0xd3   :  { %v2200_v26 = vpop.f32.mrf.mxu1  ;;  %3983 = vst [vmem:[#allocation30_spill] sm:$0xff] %v2957_v23 }
  0xd4   :  { %910 = vrot.lane.b32.xlu0 %v2877_v25, %s2446_s9  ;;  %v2888_v30 = vadd.f32 %v2200_v26, %v2853_v13  ;;  %v2955_v18 = vpop.f32.mrf.mxu0 }
  0xd5   :  { %v541_v28 = vpop.f32.mrf.mxu1 }
  0xd6   :  { %v2900_v36 = vadd.f32 %v2853_v13, %v541_v28 }
  0xd7   :  { %v2201_v31 = vpop.f32.mrf.mxu1 }
  0xd8   :  { %v2893_v33 = vadd.f32 %v2201_v31, %v2853_v13  ;;  %920 = vrot.lane.b32.xlu0 %v2888_v30, %s2446_s9  ;;  %v2966_v31 = vpop.f32.mrf.mxu0 }
  0xd9   :  { %v544_v35 = vpop.f32.mrf.mxu1 }
  0xda   :  { %922 = vrot.lane.b32.xlu1 %v2893_v33, %s2446_s9  ;;  %v2907_v39 = vadd.f32 %v2853_v13, %v544_v35 }
  0xdb   :  { %v2204_v37 = vpop.f32.mrf.mxu1 }
  0xdc   :  { %916 = vrot.lane.b32.xlu0 %v2900_v36, %s2446_s9  ;;  %v2916_v43 = vadd.f32 %v2204_v37, %v2853_v13 }
  0xdd   :  { %v557_v41 = vpop.f32.mrf.mxu1 }
  0xde   :  { %918 = vrot.lane.b32.xlu1 %v2907_v39, %s2446_s9  ;;  %v2930_v49 = vadd.f32 %v2853_v13, %v557_v41  ;;  %v2971_v41 = vpop.permute.xlu1 %1514 }
  0xdf   :  { %v2205_v44 = vpop.f32.mrf.mxu1  ;;  %3984 = vst [vmem:[#allocation31_spill] sm:$0xff] %v2971_v41 }
  0xe0   :  { %928 = vrot.lane.b32.xlu0 %v2916_v43, %s2446_s9  ;;  %v2925_v46 = vadd.f32 %v2205_v44, %v2853_v13 }
  0xe1   :  { %v560_v47 = vpop.f32.mrf.mxu1 }
  0xe2   :  { %930 = vrot.lane.b32.xlu1 %v2925_v46, %s2446_s9  ;;  %v2941_v53 = vadd.f32 %v2853_v13, %v560_v47  ;;  %v2992_v41 = vpop.permute.xlu1 %1712 }
  0xe3   :  { %v2208_v50 = vpop.f32.mrf.mxu1  ;;  %3986 = vst [vmem:[#allocation33_spill] sm:$0xff] %v2992_v41 }
  0xe4   :  { %924 = vrot.lane.b32.xlu0 %v2930_v49, %s2446_s9  ;;  %v2944_v55 = vadd.f32 %v2208_v50, %v2853_v13  ;;  %v2978_v50 = vpop.permute.xlu0 %1512 }
  0xe5   :  { %v573_v54 = vpop.f32.mrf.mxu1  ;;  %3985 = vst [vmem:[#allocation32_spill] sm:$0xff] %v2978_v50 }
  0xe6   :  { %926 = vrot.lane.b32.xlu1 %v2941_v53, %s2446_s9  ;;  %v2960_v26 = vadd.f32 %v2853_v13, %v573_v54  ;;  %v3015_v51 = vpop.permute.xlu1 %1715 }
  0xe7   :  { %v2209_v56 = vpop.f32.mrf.mxu1  ;;  %vm1806_vm3 = vcmp.eq.s32.totalorder %v3015_v51, 1 }
  0xe8   :  { %v2951_v15 = vadd.f32 %v2209_v56, %v2853_v13  ;;  %936 = vrot.lane.b32.xlu0 %v2944_v55, %s2446_s9  ;;  %v2985_v56 = vpop.f32.mrf.mxu0  ;;  %v3001_v23 = vpop.permute.xlu0 %1709 }
  0xe9   :  { %v576_v20 = vpop.f32.mrf.mxu1  ;;  %3987 = vst [vmem:[#allocation34_spill] sm:$0xff] %v3001_v23 }
  0xea   :  { %938 = vrot.lane.b32.xlu1 %v2951_v15, %s2446_s9  ;;  %v2969_v35 = vadd.f32 %v2853_v13, %v576_v20  ;;  %v3036_v12 = vpop.permute.xlu1 %1721 }
  0xeb   :  { %v2212_v28 = vpop.f32.mrf.mxu1  ;;  %3989 = vst [vmem:[#allocation36_spill] sm:$0xff] %v3036_v12 }
  0xec   :  { %932 = vrot.lane.b32.xlu0 %v2960_v26, %s2446_s9  ;;  %v2974_v44 = vadd.f32 %v2212_v28, %v2853_v13  ;;  %v3022_v24 = vpop.permute.xlu0 %1718 }
  0xed   :  { %v589_v37 = vpop.f32.mrf.mxu1  ;;  %3988 = vst [vmem:[#allocation35_spill] sm:$0xff] %v3022_v24 }
  0xee   :  { %934 = vrot.lane.b32.xlu1 %v2969_v35, %s2446_s9  ;;  %v2988_v1 = vadd.f32 %v2853_v13, %v589_v37  ;;  %v3059_v3 = vpop.permute.xlu1 %1727 }
  0xef   :  { %v2213_v47 = vpop.f32.mrf.mxu1  ;;  %3991 = vst [vmem:[#allocation38_spill] sm:$0xff] %v3059_v3 }
  0xf0   :  { %v2981_v54 = vadd.f32 %v2213_v47, %v2853_v13  ;;  %944 = vrot.lane.b32.xlu0 %v2974_v44, %s2446_s9  ;;  %v2996_v47 = vpop.f32.mrf.mxu0  ;;  %v3045_v7 = vpop.permute.xlu0 %1724  ;;  %v4029_v51 = vld [vmem:[#allocation34_spill] sm:$0xff] }
  0xf1   :  { %v592_v20 = vpop.f32.mrf.mxu1  ;;  %3990 = vst [vmem:[#allocation37_spill] sm:$0xff] %v3045_v7  ;;  %vm1804_vm4 = vcmp.eq.s32.totalorder %v4029_v51, 1 }
  0xf2   :  { %946 = vrot.lane.b32.xlu1 %v2981_v54, %s2446_s9  ;;  %v2999_v57 = vadd.f32 %v2853_v13, %v592_v20  ;;  %v3013_v48 = vpop.f32.mrf.mxu0 }
  0xf3   :  { %v2216_v28 = vpop.f32.mrf.mxu1 }
  0xf4   :  { %940 = vrot.lane.b32.xlu0 %v2988_v1, %s2446_s9  ;;  %v3004_v37 = vadd.f32 %v2216_v28, %v2853_v13  ;;  %v3066_v5 = vpop.permute.xlu0 %1730 }
  0xf5   :  { %v605_v50 = vpop.f32.mrf.mxu1  ;;  %3992 = vst [vmem:[#allocation39_spill] sm:$0xff] %v3066_v5 }
  0xf6   :  { %942 = vrot.lane.b32.xlu1 %v2999_v57, %s2446_s9  ;;  %v3018_v21 = vadd.f32 %v2853_v13, %v605_v50 }
  0xf7   :  { %v2217_v38 = vpop.f32.mrf.mxu1 }
  0xf8   :  { %v3009_v42 = vadd.f32 %v2217_v38, %v2853_v13  ;;  %952 = vrot.lane.b32.xlu0 %v3004_v37, %s2446_s9  ;;  %v3026_v38 = vpop.f32.mrf.mxu0  ;;  %v3089_v63 = vpop.permute.xlu0 %1736 }
  0xf9   :  { %v608_v20 = vpop.f32.mrf.mxu1  ;;  %3994 = vst [vmem:[#allocation41_spill] sm:$0xff] %v3089_v63 }
  0xfa   :  { %954 = vrot.lane.b32.xlu1 %v3009_v42, %s2446_s9  ;;  %v3029_v29 = vadd.f32 %v2853_v13, %v608_v20  ;;  %v3043_v16 = vpop.f32.mrf.mxu0 }
  0xfb   :  { %v2220_v28 = vpop.f32.mrf.mxu1 }
  0xfc   :  { %948 = vrot.lane.b32.xlu0 %v3018_v21, %s2446_s9  ;;  %v3032_v11 = vadd.f32 %v2220_v28, %v2853_v13 }
  0xfd   :  { %v621_v32 = vpop.f32.mrf.mxu1 }
  0xfe   :  { %950 = vrot.lane.b32.xlu1 %v3029_v29, %s2446_s9  ;;  %v3048_v28 = vadd.f32 %v2853_v13, %v621_v32 }
  0xff   :  { %v2221_v50 = vpop.f32.mrf.mxu1 }
 0x100   :  { %v3039_v14 = vadd.f32 %v2221_v50, %v2853_v13  ;;  %960 = vrot.lane.b32.xlu0 %v3032_v11, %s2446_s9  ;;  %v3054_v50 = vpop.f32.mrf.mxu0 }
 0x101   :  { %v624_v20 = vpop.f32.mrf.mxu1 }
 0x102   :  { %962 = vrot.lane.b32.xlu1 %v3039_v14, %s2446_s9  ;;  %v3057_v9 = vadd.f32 %v2853_v13, %v624_v20  ;;  %v3070_v7 = vpop.f32.mrf.mxu0 }
 0x103   :  { %v2224_v8 = vpop.f32.mrf.mxu1 }
 0x104   :  { %956 = vrot.lane.b32.xlu0 %v3048_v28, %s2446_s9  ;;  %v3062_v4 = vadd.f32 %v2224_v8, %v2853_v13  ;;  %v3080_v8 = vpop.permute.xlu1 %1733  ;;  %v3084_v62 = vpop.f32.mrf.mxu0 }
 0x105   :  { %v637_v10 = vpop.f32.mrf.mxu1  ;;  %3993 = vst [vmem:[#allocation40_spill] sm:$0xff] %v3080_v8 }
 0x106   :  { %958 = vrot.lane.b32.xlu1 %v3057_v9, %s2446_s9  ;;  %v3076_v6 = vadd.f32 %v2853_v13, %v637_v10  ;;  %v3094_v10 = vld [vmem:[%s3892_s4] ss:$0 sm:$0xff] }
 0x107   :  { %v2225_v32 = vpop.f32.mrf.mxu1  ;;  %v3102_v8 = vadd.f32 %v2883_v27, %v3094_v10  ;;  %v3118_v41 = vadd.f32 %v2911_v40, %v3094_v10  ;;  %v3136_v40 = vadd.f32 %v2938_v52, %v3094_v10 }
 0x108   :  { %968 = vrot.lane.b32.xlu0 %v3062_v4, %s2446_s9  ;;  %v3073_v20 = vadd.f32 %v2225_v32, %v2853_v13  ;;  %v3098_v32 = vpop.f32.mrf.mxu0  ;;  %v3104_v3 = vpop.permute.xlu1 %1739 }
 0x109   :  { %v640_v12 = vpop.f32.mrf.mxu1  ;;  %3995 = vst [vmem:[#allocation42_spill] sm:$0xff] %v3104_v3  ;;  %v654_v0 = vadd.f32 %v2860_v17, %v3102_v8  ;;  %v655_v17 = vadd.f32 %v2870_v22, %v3118_v41  ;;  %v658_v52 = vadd.f32 %v2888_v30, %v3136_v40 }
 0x10a   :  { %970 = vrot.lane.b32.xlu1 %v3073_v20, %s2446_s9  ;;  %v3087_v5 = vadd.f32 %v2853_v13, %v640_v12  ;;  %v3106_v12 = vpop.permute.xlu0 %1742  ;;  %v3110_v13 = vadd.f32 %v3094_v10, %v2897_v34  ;;  %v3112_v63 = vpop.f32.mrf.mxu0 }
 0x10b   :  { %3996 = vst [vmem:[#allocation43_spill] sm:$0xff] %v3106_v12  ;;  %v3126_v12 = vadd.f32 %v3094_v10, %v2922_v45  ;;  %v2088_v3 = vmul.f32 -1.442695, %v654_v0  ;;  %v3146_v0 = vadd.f32 %v2966_v31, %v3094_v10  ;;  %v2089_v24 = vmul.f32 -1.442695, %v655_v17 }
 0x10c   :  { %964 = vrot.lane.b32.xlu0 %v3076_v6, %s2446_s9  ;;  %v3120_v2 = vpop.permute.xlu1 %1745  ;;  %v652_v27 = vadd.f32 %v2863_v19, %v3110_v13  ;;  %v3128_v34 = vpop.f32.mrf.mxu0  ;;  %v3166_v17 = vadd.f32 %v2996_v47, %v3094_v10  ;;  %v2092_v30 = vmul.f32 -1.442695, %v658_v52  ;;  %v3192_v52 = vadd.f32 %v3094_v10, %v3043_v16 }
 0x10d   :  { %3997 = vst [vmem:[#allocation44_spill] sm:$0xff] %v3120_v2  ;;  %v3140_v2 = vadd.f32 %v3094_v10, %v2955_v18  ;;  %v653_v45 = vadd.f32 %v2877_v25, %v3126_v12  ;;  %2252 = vpow2.f32 %v2088_v3  ;;  %v659_v3 = vadd.f32 %v2893_v33, %v3146_v0 }
 0x10e   :  { %966 = vrot.lane.b32.xlu1 %v3087_v5, %s2446_s9  ;;  %v3130_v58 = vpop.permute.xlu0 %1748  ;;  %v2086_v19 = vmul.f32 -1.442695, %v652_v27  ;;  %v3158_v27 = vadd.f32 %v3094_v10, %v2985_v56  ;;  %v662_v47 = vadd.f32 %v2916_v43, %v3166_v17  ;;  %v661_v16 = vadd.f32 %v2941_v53, %v3192_v52 }
 0x10f   :  { %3998 = vst [vmem:[#allocation45_spill] sm:$0xff] %v3130_v58  ;;  %v3148_v58 = vpop.f32.mrf.mxu0  ;;  %v656_v18 = vadd.f32 %v2900_v36, %v3140_v2  ;;  %v2087_v31 = vmul.f32 -1.442695, %v653_v45  ;;  %v2093_v33 = vmul.f32 -1.442695, %v659_v3 }
 0x110   :  { %v3150_v22 = vpop.permute.xlu1 %1751  ;;  %2254 = vpow2.f32 %v2086_v19  ;;  %v657_v56 = vadd.f32 %v2907_v39, %v3158_v27  ;;  %v2096_v43 = vmul.f32 -1.442695, %v662_v47 }
 0x111   :  { %3999 = vst [vmem:[#allocation46_spill] sm:$0xff] %v3150_v22  ;;  %v3168_v22 = vpop.f32.mrf.mxu0  ;;  %2256 = vpow2.f32 %v2089_v24  ;;  %v2090_v36 = vmul.f32 -1.442695, %v656_v18  ;;  %v3186_v24 = vadd.f32 %v3026_v38, %v3094_v10 }
 0x112   :  { %v3160_v25 = vpop.permute.xlu0 %1754  ;;  %2258 = vpow2.f32 %v2087_v31  ;;  %v2091_v39 = vmul.f32 -1.442695, %v657_v56  ;;  %v3198_v31 = vadd.f32 %v3054_v50, %v3094_v10 }
 0x113   :  { %4000 = vst [vmem:[#allocation47_spill] sm:$0xff] %v3160_v25  ;;  %v3174_v25 = vadd.f32 %v3094_v10, %v3013_v48  ;;  %v3180_v45 = vpop.f32.mrf.mxu0  ;;  %2260 = vpow2.f32 %v2092_v30  ;;  %v663_v30 = vadd.f32 %v2925_v46, %v3186_v24  ;;  %v3218_v46 = vadd.f32 %v3084_v62, %v3094_v10 }
 0x114   :  { %v3176_v19 = vpop.permute.xlu1 %1757  ;;  %2262 = vpow2.f32 %v2090_v36  ;;  %v3208_v36 = vadd.f32 %v3094_v10, %v3070_v7  ;;  %v3230_v62 = vadd.f32 %v3094_v10, %v3098_v32 }
 0x115   :  { %4001 = vst [vmem:[#allocation48_spill] sm:$0xff] %v3176_v19  ;;  %v660_v48 = vadd.f32 %v2930_v49, %v3174_v25  ;;  %2264 = vpow2.f32 %v2093_v33  ;;  %v3194_v18 = vpop.f32.mrf.mxu0 }
 0x116   :  { %v3182_v23 = vpop.permute.xlu0 %1760  ;;  %2266 = vpow2.f32 %v2091_v39  ;;  %v2097_v39 = vmul.f32 -1.442695, %v663_v30  ;;  %v664_v7 = vadd.f32 %v2960_v26, %v3208_v36  ;;  %v3236_v26 = vadd.f32 %v3112_v63, %v3094_v10 }
 0x117   :  { %4002 = vst [vmem:[#allocation49_spill] sm:$0xff] %v3182_v23  ;;  %v2094_v49 = vmul.f32 -1.442695, %v660_v48  ;;  %2268 = vpow2.f32 %v2096_v43  ;;  %v3212_v50 = vpop.f32.mrf.mxu0  ;;  %v666_v23 = vadd.f32 %v2944_v55, %v3198_v31  ;;  %v2095_v48 = vmul.f32 -1.442695, %v661_v16 }
 0x118   :  { %v3200_v3 = vpop.permute.xlu1 %1763  ;;  %v667_v55 = vadd.f32 %v2951_v15, %v3218_v46 }
 0x119   :  { %4003 = vst [vmem:[#allocation50_spill] sm:$0xff] %v3200_v3  ;;  %2270 = vpow2.f32 %v2094_v49  ;;  %v2100_v3 = vmul.f32 -1.442695, %v666_v23 }
 0x11a   :  { %v2253_v38 = vpop.eup %2252  ;;  %v3210_v56 = vpop.permute.xlu0 %1766  ;;  %v2101_v32 = vmul.f32 -1.442695, %v667_v55 }
 0x11b   :  { %4004 = vst [vmem:[#allocation51_spill] sm:$0xff] %v3210_v56  ;;  %v782_v47 = vadd.f32 1.0, %v2253_v38  ;;  %v3224_v56 = vpop.f32.mrf.mxu0 }
 0x11c   :  { %v3222_v19 = vpop.permute.xlu1 %1769 }
 0x11d   :  { %v2255_v33 = vpop.eup %2254  ;;  %4005 = vst [vmem:[#allocation52_spill] sm:$0xff] %v3222_v19  ;;  %2272 = vrcp.f32 %v782_v47  ;;  %v3238_v19 = vpop.f32.mrf.mxu0 }
 0x11e   :  { %v2257_v53 = vpop.eup %2256  ;;  %v780_v43 = vadd.f32 1.0, %v2255_v33  ;;  %v3232_v30 = vpop.permute.xlu0 %1772  ;;  %2274 = vpow2.f32 %v2097_v39  ;;  %v2098_v33 = vmul.f32 -1.442695, %v664_v7  ;;  %v3244_v39 = vadd.f32 %v3094_v10, %v3128_v34 }
 0x11f   :  { %v2259_v38 = vpop.eup %2258  ;;  %4006 = vst [vmem:[#allocation53_spill] sm:$0xff] %v3232_v30  ;;  %v783_v49 = vadd.f32 1.0, %v2257_v53  ;;  %2276 = vpow2.f32 %v2095_v48  ;;  %v665_v30 = vadd.f32 %v2969_v35, %v3230_v62  ;;  %v670_v48 = vadd.f32 %v2974_v44, %v3236_v26  ;;  %v3256_v34 = vpop.f32.mrf.mxu0 }
 0x120   :  { %v2261_v16 = vpop.eup %2260  ;;  %2278 = vrcp.f32 %v780_v43  ;;  %v781_v23 = vadd.f32 1.0, %v2259_v38  ;;  %v3246_v63 = vpop.permute.xlu1 %1775  ;;  %v3252_v7 = vadd.f32 %v3148_v58, %v3094_v10  ;;  %v3262_v44 = vadd.f32 %v3094_v10, %v3168_v22 }
 0x121   :  { %v2263_v47 = vpop.eup %2262  ;;  %2280 = vpow2.f32 %v2100_v3  ;;  %4007 = vst [vmem:[#allocation54_spill] sm:$0xff] %v3246_v63  ;;  %v786_v53 = vadd.f32 1.0, %v2261_v16  ;;  %v668_v16 = vadd.f32 %v2988_v1, %v3244_v39  ;;  %v2104_v58 = vmul.f32 -1.442695, %v670_v48 }
 0x122   :  { %v2265_v15 = vpop.eup %2264  ;;  %2282 = vrcp.f32 %v783_v49  ;;  %v784_v3 = vadd.f32 1.0, %v2263_v47  ;;  %v3254_v43 = vpop.permute.xlu0 %1778  ;;  %v2099_v49 = vmul.f32 -1.442695, %v665_v30  ;;  %v3268_v47 = vadd.f32 %v3180_v45, %v3094_v10 }
 0x123   :  { %2284 = vpow2.f32 %v2098_v33  ;;  %4008 = vst [vmem:[#allocation55_spill] sm:$0xff] %v3254_v43  ;;  %v2267_v35 = vpop.eup %2266  ;;  %v787_v38 = vadd.f32 1.0, %v2265_v15  ;;  %v671_v33 = vadd.f32 %v2981_v54, %v3252_v7  ;;  %v2102_v22 = vmul.f32 -1.442695, %v668_v16 }
 0x124   :  { %2286 = vrcp.f32 %v781_v23  ;;  %v2269_v55 = vpop.eup %2268  ;;  %v785_v23 = vadd.f32 1.0, %v2267_v35  ;;  %v3270_v15 = vpop.permute.xlu1 %1781  ;;  %v3282_v35 = vadd.f32 %v3212_v50, %v3094_v10 }
 0x125   :  { %2288 = vpow2.f32 %v2101_v32  ;;  %4009 = vst [vmem:[#allocation56_spill] sm:$0xff] %v3270_v15  ;;  %v790_v1 = vadd.f32 1.0, %v2269_v55  ;;  %v2185_v32 = vpop.f32.mrf.mxu0  ;;  %v2105_v45 = vmul.f32 -1.442695, %v671_v33 }
 0x126   :  { %2290 = vrcp.f32 %v786_v53  ;;  %v2271_v30 = vpop.eup %2270  ;;  %v669_v53 = vadd.f32 %v2999_v57, %v3262_v44  ;;  %v3274_v48 = vpop.permute.xlu0 %1784  ;;  %v3286_v57 = vadd.f32 %v3094_v10, %v3194_v18 }
 0x127   :  { %2292 = vrcp.f32 %v784_v3  ;;  %4010 = vst [vmem:[#allocation57_spill] sm:$0xff] %v3274_v48  ;;  %v674_v3 = vadd.f32 %v3004_v37, %v3268_v47  ;;  %v788_v55 = vadd.f32 1.0, %v2271_v30  ;;  %v376_v48 = vpop.f32.mrf.mxu0  ;;  %v3295_v30 = vadd.f32 %v3094_v10, %v3224_v56 }
 0x128   :  { %2294 = vrcp.f32 %v787_v38  ;;  %v2103_v37 = vmul.f32 -1.442695, %v669_v53 }
 0x129   :  { %2296 = vpow2.f32 %v2099_v49  ;;  %v2108_v43 = vmul.f32 -1.442695, %v674_v3  ;;  %v3304_v3 = vadd.f32 %v3238_v19, %v3094_v10 }
 0x12a   :  { %v3276_v54 = vpop.eup %2272  ;;  %2298 = vpow2.f32 %v2104_v58 }
 0x12b   :  { %v2275_v38 = vpop.eup %2274  ;;  %2300 = vrcp.f32 %v785_v23  ;;  %v675_v23 = vadd.f32 %v3009_v42, %v3282_v35  ;;  %v2188_v42 = vpop.f32.mrf.mxu0 }
 0x12c   :  { %v2277_v16 = vpop.eup %2276  ;;  %2302 = vrcp.f32 %v790_v1  ;;  %v791_v1 = vadd.f32 1.0, %v2275_v38 }
 0x12d   :  { %v3289_v33 = vpop.eup %2278  ;;  %2304 = vpow2.f32 %v2102_v22 }
 0x12e   :  { %v2281_v50 = vpop.eup %2280  ;;  %2306 = vpow2.f32 %v2105_v45  ;;  %v672_v45 = vadd.f32 %v3018_v21, %v3286_v57  ;;  %v673_v21 = vadd.f32 %v3029_v29, %v3295_v30  ;;  %v678_v29 = vadd.f32 %v3032_v11, %v3304_v3 }
 0x12f   :  { %v3298_v18 = vpop.eup %2282  ;;  %2308 = vrcp.f32 %v788_v55  ;;  %v794_v59 = vadd.f32 1.0, %v2281_v50 }
 0x130   :  { %v2285_v53 = vpop.eup %2284  ;;  %2310 = vpow2.f32 %v2103_v37  ;;  %v3321_v37 = vadd.f32 %v2185_v32, %v3094_v10  ;;  %v2106_v50 = vmul.f32 -1.442695, %v672_v45  ;;  %v2107_v60 = vmul.f32 -1.442695, %v673_v21 }
 0x131   :  { %2312 = vpow2.f32 %v2108_v43  ;;  %v3342_v21 = vadd.f32 %v2188_v42, %v3094_v10 }
 0x132   :  { %2314 = vrcp.f32 %v791_v1  ;;  %v679_v45 = vadd.f32 %v3039_v14, %v3321_v37 }
 0x140   :  { %v913_v49 = vpop.permute.xlu1 %912 }
 0x141   :  { %v1006_v58 = vmul.f32 %v3276_v54, %v913_v49  ;;  %v789_v49 = vadd.f32 1.0, %v2277_v16  ;;  %v2109_v16 = vmul.f32 -1.442695, %v675_v23 }
 0x142   :  { %v909_v15 = vpop.permute.xlu0 %908 }
 0x143   :  { %1072 = vrot.lane.b32.xlu0 %v1006_v58, %s2446_s9  ;;  %v1004_v56 = vmul.f32 %v3289_v33, %v909_v15  ;;  %v3308_v58 = vpop.eup %2286  ;;  %v792_v15 = vadd.f32 1.0, %v2285_v53  ;;  %2316 = vrcp.f32 %v789_v49 }
 0x144   :  { %v915_v22 = vpop.permute.xlu1 %914  ;;  %4011 = vst [vmem:[#allocation58_spill] sm:$0xff] %v3308_v58  ;;  %v2289_v55 = vpop.eup %2288  ;;  %2318 = vrcp.f32 %v794_v59 }
 0x145   :  { %v1007_v63 = vmul.f32 %v3298_v18, %v915_v22  ;;  %v3314_v19 = vpop.eup %2290  ;;  %v3318_v22 = vadd.f32 %v3094_v10, %v3256_v34  ;;  %v795_v1 = vadd.f32 1.0, %v2289_v55  ;;  %2320 = vpow2.f32 %v2109_v16 }
 0x146   :  { %v911_v38 = vpop.permute.xlu0 %910  ;;  %4012 = vst [vmem:[#allocation59_spill] sm:$0xff] %v3314_v19  ;;  %v3323_v43 = vpop.eup %2292  ;;  %2322 = vrcp.f32 %v792_v15  ;;  %v2112_v16 = vmul.f32 -1.442695, %v678_v29  ;;  %v2113_v29 = vmul.f32 -1.442695, %v679_v45 }
 0x147   :  { %1074 = vrot.lane.b32.xlu1 %v1007_v63, %s2446_s9  ;;  %1068 = vrot.lane.b32.xlu0 %v1004_v56, %s2446_s9  ;;  %v389_v63 = vpop.f32.mrf.mxu0  ;;  %v1005_v23 = vmul.f32 %v3308_v58, %v911_v38  ;;  %v3328_v56 = vpop.eup %2294  ;;  %v676_v11 = vadd.f32 %v3048_v28, %v3318_v22  ;;  %v3337_v38 = vadd.f32 %v3094_v10, %v376_v48  ;;  %2324 = vpow2.f32 %v2106_v50 }
 0x148   :  { %4013 = vst [vmem:[#allocation60_spill] sm:$0xff] %v3328_v56  ;;  %v2297_v34 = vpop.eup %2296  ;;  %2326 = vrcp.f32 %v795_v1 }
 0x149   :  { %v2299_v49 = vpop.eup %2298  ;;  %v793_v14 = vadd.f32 1.0, %v2297_v34  ;;  %2328 = vpow2.f32 %v2107_v60  ;;  %v2110_v42 = vmul.f32 -1.442695, %v676_v11  ;;  %v682_v60 = vadd.f32 %v3062_v4, %v3342_v21 }
 0x14a   :  { %v921_v53 = vpop.permute.xlu0 %920  ;;  %v3339_v55 = vpop.eup %2300  ;;  %2330 = vpow2.f32 %v2112_v16  ;;  %v3360_v34 = vadd.f32 %v3094_v10, %v389_v63 }
 0x14b   :  { %v1010_v32 = vmul.f32 %v3314_v19, %v921_v53  ;;  %1070 = vrot.lane.b32.xlu1 %v1005_v23, %s2446_s9  ;;  %v2189_v23 = vpop.f32.mrf.mxu0  ;;  %v3346_v28 = vpop.eup %2302  ;;  %v798_v19 = vadd.f32 1.0, %v2299_v49  ;;  %2332 = vrcp.f32 %v793_v14  ;;  %v2116_v14 = vmul.f32 -1.442695, %v682_v60 }
 0x14c   :  { %v923_v59 = vpop.permute.xlu1 %922  ;;  %v2305_v48 = vpop.eup %2304 }
 0x14d   :  { %v1011_v15 = vmul.f32 %v3328_v56, %v923_v59  ;;  %1080 = vrot.lane.b32.xlu0 %v1010_v32, %s2446_s9  ;;  %v2307_v50 = vpop.eup %2306  ;;  %v677_v59 = vadd.f32 %v3057_v9, %v3337_v38  ;;  %v3353_v32 = vadd.f32 %v2189_v23, %v3094_v10  ;;  %v392_v49 = vpop.f32.mrf.mxu0  ;;  %v796_v9 = vadd.f32 1.0, %v2305_v48 }
 0x14e   :  { %v917_v53 = vpop.permute.xlu0 %916  ;;  %v3355_v1 = vpop.eup %2308  ;;  %2334 = vrcp.f32 %v798_v19  ;;  %v680_v19 = vadd.f32 %v3076_v6, %v3360_v34 }
 0x14f   :  { %v1008_v58 = vmul.f32 %v3323_v43, %v917_v53  ;;  %1082 = vrot.lane.b32.xlu1 %v1011_v15, %s2446_s9  ;;  %v2311_v23 = vpop.eup %2310  ;;  %v799_v15 = vadd.f32 1.0, %v2307_v50  ;;  %2336 = vpow2.f32 %v2113_v29  ;;  %v2111_v4 = vmul.f32 -1.442695, %v677_v59 }
 0x150   :  { %v919_v56 = vpop.permute.xlu1 %918  ;;  %v2313_v16 = vpop.eup %2312  ;;  %v683_v63 = vadd.f32 %v3073_v20, %v3353_v32  ;;  %2338 = vpow2.f32 %v2110_v42  ;;  %v797_v29 = vadd.f32 1.0, %v2311_v23 }
 0x151   :  { %v1009_v11 = vmul.f32 %v3339_v55, %v919_v56  ;;  %1076 = vrot.lane.b32.xlu0 %v1008_v58, %s2446_s9  ;;  %v3369_v56 = vadd.f32 %v3094_v10, %v392_v49  ;;  %v3371_v58 = vpop.eup %2314  ;;  %2340 = vrcp.f32 %v796_v9  ;;  %v802_v10 = vadd.f32 1.0, %v2313_v16 }
 0x152   :  { %v929_v45 = vpop.permute.xlu0 %928  ;;  %v3376_v50 = vpop.eup %2316  ;;  %2342 = vrcp.f32 %v799_v15  ;;  %v2117_v49 = vmul.f32 -1.442695, %v683_v63  ;;  %v2114_v9 = vmul.f32 -1.442695, %v680_v19 }
 0x153   :  { %v1014_v53 = vmul.f32 %v3346_v28, %v929_v45  ;;  %1078 = vrot.lane.b32.xlu1 %v1009_v11, %s2446_s9  ;;  %v3379_v11 = vpop.eup %2318  ;;  %2344 = vpow2.f32 %v2111_v4  ;;  %v681_v6 = vadd.f32 %v3087_v5, %v3369_v56 }
 0x154   :  { %v931_v48 = vpop.permute.xlu1 %930  ;;  %v2321_v60 = vpop.eup %2320  ;;  %2346 = vpow2.f32 %v2116_v14 }
 0x155   :  { %1088 = vrot.lane.b32.xlu0 %v1014_v53, %s2446_s9  ;;  %v1015_v59 = vmul.f32 %v3371_v58, %v931_v48  ;;  %v3385_v45 = vpop.eup %2322  ;;  %2348 = vrcp.f32 %v797_v29  ;;  %v803_v4 = vadd.f32 1.0, %v2321_v60 }
 0x156   :  { %v925_v20 = vpop.permute.xlu0 %924  ;;  %4014 = vst [vmem:[#allocation61_spill] sm:$0xff] %v3385_v45  ;;  %v2325_v53 = vpop.eup %2324  ;;  %2350 = vrcp.f32 %v802_v10 }
 0x157   :  { %v1012_v42 = vmul.f32 %v3355_v1, %v925_v20  ;;  %1090 = vrot.lane.b32.xlu1 %v1015_v59, %s2446_s9  ;;  %v3389_v48 = vpop.eup %2326  ;;  %2352 = vpow2.f32 %v2117_v49  ;;  %v2115_v59 = vmul.f32 -1.442695, %v681_v6  ;;  %v800_v14 = vadd.f32 1.0, %v2325_v53 }
 0x158   :  { %v927_v23 = vpop.permute.xlu1 %926  ;;  %v2329_v63 = vpop.eup %2328  ;;  %2354 = vpow2.f32 %v2114_v9 }
 0x159   :  { %1084 = vrot.lane.b32.xlu0 %v1012_v42, %s2446_s9  ;;  %v1013_v15 = vmul.f32 %v3376_v50, %v927_v23  ;;  %v2331_v29 = vpop.eup %2330  ;;  %2356 = vrcp.f32 %v803_v4  ;;  %v801_v49 = vadd.f32 1.0, %v2329_v63 }
 0x15a   :  { %v937_v16 = vpop.permute.xlu0 %936  ;;  %v3395_v23 = vpop.eup %2332  ;;  %2358 = vpow2.f32 %v2115_v59  ;;  %v806_v9 = vadd.f32 1.0, %v2331_v29 }
 0x15b   :  { %v1018_v5 = vmul.f32 %v3379_v11, %v937_v16  ;;  %1086 = vrot.lane.b32.xlu1 %v1013_v15, %s2446_s9  ;;  %4015 = vst [vmem:[#allocation62_spill] sm:$0xff] %v3395_v23  ;;  %v3398_v60 = vpop.eup %2334  ;;  %2360 = vrcp.f32 %v800_v14 }
 0x15c   :  { %v939_v19 = vpop.permute.xlu1 %938  ;;  %4016 = vst [vmem:[#allocation63_spill] sm:$0xff] %v3398_v60  ;;  %v2337_v6 = vpop.eup %2336  ;;  %2362 = vrcp.f32 %v801_v49 }
 0x15d   :  { %1096 = vrot.lane.b32.xlu0 %v1018_v5, %s2446_s9  ;;  %v1019_v20 = vmul.f32 %v3389_v48, %v939_v19  ;;  %v2339_v15 = vpop.eup %2338  ;;  %v807_v63 = vadd.f32 1.0, %v2337_v6  ;;  %2364 = vrcp.f32 %v806_v9 }
 0x15e   :  { %v933_v42 = vpop.permute.xlu0 %932  ;;  %v3403_v19 = vpop.eup %2340  ;;  %v804_v14 = vadd.f32 1.0, %v2339_v15 }
 0x15f   :  { %v1016_v10 = vmul.f32 %v3385_v45, %v933_v42  ;;  %1098 = vrot.lane.b32.xlu1 %v1019_v20, %s2446_s9  ;;  %v3406_v42 = vpop.eup %2342  ;;  %2366 = vrcp.f32 %v807_v63 }
 0x160   :  { %v935_v53 = vpop.permute.xlu1 %934  ;;  %4017 = vst [vmem:[#allocation64_spill] sm:$0xff] %v3406_v42  ;;  %v2345_v59 = vpop.eup %2344  ;;  %2368 = vrcp.f32 %v804_v14 }
 0x161   :  { %1092 = vrot.lane.b32.xlu0 %v1016_v10, %s2446_s9  ;;  %v1017_v16 = vmul.f32 %v3395_v23, %v935_v53  ;;  %v2347_v20 = vpop.eup %2346  ;;  %v805_v49 = vadd.f32 1.0, %v2345_v59 }
 0x162   :  { %v945_v5 = vpop.permute.xlu0 %944  ;;  %v3411_v23 = vpop.eup %2348  ;;  %v810_v9 = vadd.f32 1.0, %v2347_v20 }
 0x163   :  { %v1022_v4 = vmul.f32 %v3398_v60, %v945_v5  ;;  %1094 = vrot.lane.b32.xlu1 %v1017_v16, %s2446_s9  ;;  %v3414_v60 = vpop.eup %2350  ;;  %2370 = vrcp.f32 %v805_v49 }
 0x164   :  { %v947_v29 = vpop.permute.xlu1 %946  ;;  %v2353_v6 = vpop.eup %2352  ;;  %2372 = vrcp.f32 %v810_v9 }
 0x165   :  { %1104 = vrot.lane.b32.xlu0 %v1022_v4, %s2446_s9  ;;  %v1023_v10 = vmul.f32 %v3406_v42, %v947_v29  ;;  %v2355_v16 = vpop.eup %2354 }
 0x166   :  { %v941_v53 = vpop.permute.xlu0 %940  ;;  %v3420_v45 = vpop.eup %2356  ;;  %v808_v59 = vadd.f32 1.0, %v2355_v16 }
 0x167   :  { %v1020_v5 = vmul.f32 %v3403_v19, %v941_v53  ;;  %1106 = vrot.lane.b32.xlu1 %v1023_v10, %s2446_s9  ;;  %v811_v53 = vadd.f32 1.0, %v2353_v6  ;;  %v2359_v63 = vpop.eup %2358 }
 0x168   :  { %v943_v15 = vpop.permute.xlu1 %942  ;;  %v3424_v20 = vpop.eup %2360 }
 0x169   :  { %1100 = vrot.lane.b32.xlu0 %v1020_v5, %s2446_s9  ;;  %v1021_v4 = vmul.f32 %v3411_v23, %v943_v15  ;;  %2374 = vrcp.f32 %v811_v53  ;;  %v3429_v49 = vpop.eup %2362 }
 0x16a   :  { %v953_v29 = vpop.permute.xlu0 %952  ;;  %2376 = vrcp.f32 %v808_v59  ;;  %v3432_v9 = vpop.eup %2364 }
 0x16b   :  { %v1026_v42 = vmul.f32 %v3414_v60, %v953_v29  ;;  %1102 = vrot.lane.b32.xlu1 %v1021_v4, %s2446_s9  ;;  %v809_v29 = vadd.f32 1.0, %v2359_v63 }
 0x16c   :  { %v955_v14 = vpop.permute.xlu1 %954  ;;  %v3437_v53 = vpop.eup %2366 }
 0x16d   :  { %1112 = vrot.lane.b32.xlu0 %v1026_v42, %s2446_s9  ;;  %v1027_v10 = vmul.f32 %v3420_v45, %v955_v14  ;;  %2378 = vrcp.f32 %v809_v29  ;;  %4018 = vst [vmem:[#allocation65_spill] sm:$0xff] %v3437_v53  ;;  %v3440_v14 = vpop.eup %2368 }
 0x16e   :  { %v949_v5 = vpop.permute.xlu0 %948  ;;  %4019 = vst [vmem:[#allocation66_spill] sm:$0xff] %v3440_v14 }
 0x16f   :  { %v1024_v15 = vmul.f32 %v3424_v20, %v949_v5  ;;  %1114 = vrot.lane.b32.xlu1 %v1027_v10, %s2446_s9 }
 0x170   :  { %v951_v6 = vpop.permute.xlu1 %950 }
 0x171   :  { %1108 = vrot.lane.b32.xlu0 %v1024_v15, %s2446_s9  ;;  %v1025_v42 = vmul.f32 %v3429_v49, %v951_v6  ;;  %v3445_v15 = vpop.eup %2370 }
 0x172   :  { %v961_v16 = vpop.permute.xlu0 %960  ;;  %4020 = vst [vmem:[#allocation67_spill] sm:$0xff] %v3445_v15  ;;  %v3448_v29 = vpop.eup %2372 }
 0x173   :  { %v1030_v4 = vmul.f32 %v3432_v9, %v961_v16  ;;  %1110 = vrot.lane.b32.xlu1 %v1025_v42, %s2446_s9  ;;  %4021 = vst [vmem:[#allocation68_spill] sm:$0xff] %v3448_v29 }
 0x174   :  { %v963_v63 = vpop.permute.xlu1 %962 }
 0x175   :  { %1120 = vrot.lane.b32.xlu0 %v1030_v4, %s2446_s9  ;;  %v1031_v59 = vmul.f32 %v3437_v53, %v963_v63  ;;  %v1639_v63 = vld [vmem:[%s3890_s6 + $0xd8] sm:$0xff] }
 0x176   :  { %v957_v10 = vpop.permute.xlu0 %956  ;;  %vm1671_vm12 = vcmp.gt.f32.partialorder %v1639_v63, 0.0  ;;  %v1640_v63 = vld [vmem:[%s3890_s6 + $0xe0] sm:$0xff] }
 0x177   :  { %v1028_v5 = vmul.f32 %v3440_v14, %v957_v10  ;;  %1122 = vrot.lane.b32.xlu1 %v1031_v59, %s2446_s9  ;;  %v3456_v10 = vpop.eup %2374  ;;  %vm1672_vm15 = vcmp.gt.f32.partialorder %v1640_v63, 0.0 }
 0x178   :  { %v959_v6 = vpop.permute.xlu1 %958  ;;  %4022 = vst [vmem:[#allocation69_spill] sm:$0xff] %v3456_v10  ;;  %v3459_v14 = vpop.eup %2376 }
 0x179   :  { %1116 = vrot.lane.b32.xlu0 %v1028_v5, %s2446_s9  ;;  %v1029_v42 = vmul.f32 %v3445_v15, %v959_v6  ;;  %4023 = vst [vmem:[#allocation70_spill] sm:$0xff] %v3459_v14 }
 0x17a   :  { %v969_v16 = vpop.permute.xlu0 %968 }
 0x17b   :  { %v1034_v4 = vmul.f32 %v3448_v29, %v969_v16  ;;  %1118 = vrot.lane.b32.xlu1 %v1029_v42, %s2446_s9  ;;  %v1638_v42 = vld [vmem:[%s3890_s6 + $0xd0] sm:$0xff]  ;;  %v1641_v16 = vld [vmem:[%s3890_s6 + $0xe8] sm:$0xff]  ;;  %v3470_v29 = vpop.eup %2378 }
 0x17c   :  { %v971_v59 = vpop.permute.xlu1 %970  ;;  %4024 = vst [vmem:[#allocation71_spill] sm:$0xff] %v3470_v29  ;;  %vm1670_vm13 = vcmp.gt.f32.partialorder %v1638_v42, 0.0  ;;  %vm1673_vm14 = vcmp.gt.f32.partialorder %v1641_v16, 0.0  ;;  %v1642_v42 = vld [vmem:[%s3890_s6 + $0xf0] sm:$0xff] }
 0x17d   :  { %1128 = vrot.lane.b32.xlu0 %v1034_v4, %s2446_s9  ;;  %v1035_v5 = vmul.f32 %v3456_v10, %v971_v59  ;;  %v4025_v10 = vmov 0   ;;  %vm1674_vm2 = vcmp.gt.f32.partialorder %v1642_v42, 0.0 }
 0x17e   :  { %v965_v53 = vpop.permute.xlu0 %964  ;;  %v1704_v16 = vsel %vm1672_vm15, 1, %v4025_v10 }
 0x17f   :  { %v1032_v6 = vmul.f32 %v3459_v14, %v965_v53  ;;  %1130 = vrot.lane.b32.xlu1 %v1035_v5, %s2446_s9  ;;  %v1703_v53 = vsel %vm1671_vm12, 1, %v4025_v10  ;;  %v1643_v5 = vld [vmem:[%s3890_s6 + $0xf8] sm:$0xff]  ;;  %v1702_v14 = vsel %vm1670_vm13, 1, %v4025_v10  ;;  %s2447_s6 = smov 96  }
 0x180   :  { %v967_v4 = vpop.permute.xlu1 %966  ;;  %vm1675_vm1 = vcmp.gt.f32.partialorder %v1643_v5, 0.0 }
 0x181   :  { %1124 = vrot.lane.b32.xlu0 %v1032_v6, %s2446_s9  ;;  %v1033_v59 = vmul.f32 %v3470_v29, %v967_v4  ;;  %v1705_v6 = vsel %vm1673_vm14, 1, %v4025_v10  ;;  %v1707_v4 = vsel %vm1675_vm1, 1, %v4025_v10 }
 0x183   :  { %1126 = vrot.lane.b32.xlu1 %v1033_v59, %s2446_s9  ;;  %v1706_v59 = vsel %vm1674_vm2, 1, %v4025_v10 }
 0x185   :  { %1790 = vperm.xlu0 %2230, %v1703_v53  }
 0x187   :  { %1787 = vperm.xlu1 %2231, %v1702_v14  }
 0x189   :  { %1796 = vperm.xlu0 %2230, %v1705_v6  }
 0x18b   :  { %1793 = vperm.xlu1 %2231, %v1704_v16  }
 0x18d   :  { %1802 = vperm.xlu0 %2230, %v1707_v4  }
 0x18f   :  { %1799 = vperm.xlu1 %2231, %v1706_v59  }
 0x1b5   :  { %v1073_v53 = vpop.permute.xlu0 %1072 }
 0x1b6   :  { %v1166_v63 = vadd.f32 %v1073_v53, %v3102_v8 }
 0x1b8   :  { %2380 = vtanh.f32 %v1166_v63 }
 0x1b9   :  { %v1075_v5 = vpop.permute.xlu1 %1074  ;;  %v1069_v29 = vpop.permute.xlu0 %1068 }
 0x1ba   :  { %v1167_v15 = vadd.f32 %v1075_v5, %v3118_v41  ;;  %v1164_v14 = vadd.f32 %v1069_v29, %v3110_v13 }
 0x1bc   :  { %2382 = vtanh.f32 %v1167_v15 }
 0x1bd   :  { %2384 = vtanh.f32 %v1164_v14  ;;  %v1071_v6 = vpop.permute.xlu1 %1070 }
 0x1be   :  { %v1165_v42 = vadd.f32 %v1071_v6, %v3126_v12 }
 0x1bf   :  { %v1081_v16 = vpop.permute.xlu0 %1080 }
 0x1c0   :  { %2386 = vtanh.f32 %v1165_v42  ;;  %v1170_v10 = vadd.f32 %v1081_v16, %v3136_v40 }
 0x1c1   :  { %v1083_v4 = vpop.permute.xlu1 %1082 }
 0x1c2   :  { %2388 = vtanh.f32 %v1170_v10  ;;  %v1171_v8 = vadd.f32 %v1083_v4, %v3146_v0 }
 0x1c3   :  { %v1077_v59 = vpop.permute.xlu0 %1076 }
 0x1c4   :  { %2390 = vtanh.f32 %v1171_v8  ;;  %v1168_v53 = vadd.f32 %v1077_v59, %v3140_v2 }
 0x1c5   :  { %v2381_v41 = vpop.eup %2380  ;;  %v1079_v63 = vpop.permute.xlu1 %1078 }
 0x1c6   :  { %2392 = vtanh.f32 %v1168_v53  ;;  %v1169_v13 = vadd.f32 %v1079_v63, %v3158_v27  ;;  %1296 = vrot.lane.b32.xlu0 %v2381_v41, %s2447_s6 }
 0x1c7   :  { %v1089_v12 = vpop.permute.xlu0 %1088 }
 0x1c8   :  { %2394 = vtanh.f32 %v1169_v13  ;;  %v1174_v40 = vadd.f32 %v1089_v12, %v3166_v17 }
 0x1c9   :  { %v2383_v15 = vpop.eup %2382  ;;  %v1091_v0 = vpop.permute.xlu1 %1090 }
 0x1ca   :  { %v2385_v29 = vpop.eup %2384  ;;  %2396 = vtanh.f32 %v1174_v40  ;;  %1298 = vrot.lane.b32.xlu1 %v2383_v15, %s2447_s6  ;;  %v1175_v2 = vadd.f32 %v1091_v0, %v3186_v24 }
 0x1cb   :  { %1292 = vrot.lane.b32.xlu0 %v2385_v29, %s2447_s6  ;;  %v1085_v5 = vpop.permute.xlu0 %1084 }
 0x1cc   :  { %v1172_v27 = vadd.f32 %v1085_v5, %v3174_v25  ;;  %2398 = vtanh.f32 %v1175_v2 }
 0x1cd   :  { %v2387_v14 = vpop.eup %2386  ;;  %v1087_v6 = vpop.permute.xlu1 %1086 }
 0x1ce   :  { %2400 = vtanh.f32 %v1172_v27  ;;  %1294 = vrot.lane.b32.xlu1 %v2387_v14, %s2447_s6  ;;  %v1173_v42 = vadd.f32 %v1087_v6, %v3192_v52 }
 0x1cf   :  { %v2389_v17 = vpop.eup %2388  ;;  %v1097_v16 = vpop.permute.xlu0 %1096 }
 0x1d0   :  { %v1178_v10 = vadd.f32 %v1097_v16, %v3198_v31  ;;  %1304 = vrot.lane.b32.xlu0 %v2389_v17, %s2447_s6  ;;  %2402 = vtanh.f32 %v1173_v42 }
 0x1d1   :  { %v2391_v24 = vpop.eup %2390  ;;  %v1099_v4 = vpop.permute.xlu1 %1098 }
 0x1d2   :  { %2404 = vtanh.f32 %v1178_v10  ;;  %1306 = vrot.lane.b32.xlu1 %v2391_v24, %s2447_s6  ;;  %v1179_v8 = vadd.f32 %v1099_v4, %v3218_v46 }
 0x1d3   :  { %v2393_v25 = vpop.eup %2392  ;;  %v1093_v59 = vpop.permute.xlu0 %1092 }
 0x1d4   :  { %v1176_v53 = vadd.f32 %v1093_v59, %v3208_v36  ;;  %1300 = vrot.lane.b32.xlu0 %v2393_v25, %s2447_s6  ;;  %2406 = vtanh.f32 %v1179_v8 }
 0x1d5   :  { %v2395_v52 = vpop.eup %2394  ;;  %v1095_v31 = vpop.permute.xlu1 %1094 }
 0x1d6   :  { %2408 = vtanh.f32 %v1176_v53  ;;  %1302 = vrot.lane.b32.xlu1 %v2395_v52, %s2447_s6  ;;  %v1177_v63 = vadd.f32 %v1095_v31, %v3230_v62 }
 0x1d7   :  { %v2397_v41 = vpop.eup %2396  ;;  %v1105_v13 = vpop.permute.xlu0 %1104 }
 0x1d8   :  { %v1182_v12 = vadd.f32 %v1105_v13, %v3236_v26  ;;  %1312 = vrot.lane.b32.xlu0 %v2397_v41, %s2447_s6  ;;  %2410 = vtanh.f32 %v1177_v63 }
 0x1d9   :  { %v2399_v46 = vpop.eup %2398  ;;  %v1107_v36 = vpop.permute.xlu1 %1106 }
 0x1da   :  { %2412 = vtanh.f32 %v1182_v12  ;;  %v1183_v15 = vadd.f32 %v1107_v36, %v3252_v7  ;;  %1314 = vrot.lane.b32.xlu1 %v2399_v46, %s2447_s6 }
 0x1db   :  { %v2401_v40 = vpop.eup %2400  ;;  %v1101_v29 = vpop.permute.xlu0 %1100 }
 0x1dc   :  { %v1180_v0 = vadd.f32 %v1101_v29, %v3244_v39  ;;  %1308 = vrot.lane.b32.xlu0 %v2401_v40, %s2447_s6  ;;  %2414 = vtanh.f32 %v1183_v15 }
 0x1dd   :  { %v2403_v62 = vpop.eup %2402  ;;  %v1103_v26 = vpop.permute.xlu1 %1102 }
 0x1de   :  { %2416 = vtanh.f32 %v1180_v0  ;;  %v1181_v5 = vadd.f32 %v1103_v26, %v3262_v44  ;;  %1310 = vrot.lane.b32.xlu1 %v2403_v62, %s2447_s6 }
 0x1df   :  { %v2405_v2 = vpop.eup %2404  ;;  %v1113_v27 = vpop.permute.xlu0 %1112 }
 0x1e0   :  { %v1186_v14 = vadd.f32 %v1113_v27, %v3268_v47  ;;  %1320 = vrot.lane.b32.xlu0 %v2405_v2, %s2447_s6  ;;  %2418 = vtanh.f32 %v1181_v5 }
 0x1e1   :  { %v2407_v7 = vpop.eup %2406  ;;  %v1115_v39 = vpop.permute.xlu1 %1114 }
 0x1e2   :  { %2420 = vtanh.f32 %v1186_v14  ;;  %v1187_v17 = vadd.f32 %v1115_v39, %v3282_v35  ;;  %1322 = vrot.lane.b32.xlu1 %v2407_v7, %s2447_s6 }
 0x1e3   :  { %v2409_v6 = vpop.eup %2408  ;;  %v1109_v42 = vpop.permute.xlu0 %1108 }
 0x1e4   :  { %v1184_v16 = vadd.f32 %v1109_v42, %v3286_v57  ;;  %1316 = vrot.lane.b32.xlu0 %v2409_v6, %s2447_s6  ;;  %2422 = vtanh.f32 %v1187_v17  ;;  %v1230_v6 = vsub.f32 1.0, %v3276_v54 }
 0x1e5   :  { %v2411_v44 = vpop.eup %2410  ;;  %v1111_v47 = vpop.permute.xlu1 %1110 }
 0x1e6   :  { %2424 = vtanh.f32 %v1184_v16  ;;  %v1185_v24 = vadd.f32 %v1111_v47, %v3295_v30  ;;  %1318 = vrot.lane.b32.xlu1 %v2411_v44, %s2447_s6  ;;  %v1550_v16 = vmul.f32 %v3276_v54, %v2820_v61 }
 0x1e7   :  { %v2413_v10 = vpop.eup %2412  ;;  %v1121_v4 = vpop.permute.xlu0 %1120 }
 0x1e8   :  { %v1190_v25 = vadd.f32 %v1121_v4, %v3304_v3  ;;  %1328 = vrot.lane.b32.xlu0 %v2413_v10, %s2447_s6  ;;  %2426 = vtanh.f32 %v1185_v24  ;;  %v1231_v10 = vsub.f32 1.0, %v3298_v18  ;;  %v1228_v4 = vsub.f32 1.0, %v3289_v33 }
 0x1e9   :  { %v2415_v35 = vpop.eup %2414  ;;  %v1123_v57 = vpop.permute.xlu1 %1122 }
 0x1ea   :  { %2428 = vtanh.f32 %v1190_v25  ;;  %v1191_v59 = vadd.f32 %v1123_v57, %v3321_v37  ;;  %1330 = vrot.lane.b32.xlu1 %v2415_v35, %s2447_s6  ;;  %v4026_v25 = vld [vmem:[#allocation4_spill] sm:$0xff] }
 0x1eb   :  { %v2417_v8 = vpop.eup %2416  ;;  %v1117_v53 = vpop.permute.xlu0 %1116  ;;  %v1551_v35 = vmul.f32 %v3298_v18, %v4026_v25  ;;  %v4031_v18 = vld [vmem:[#allocation2_spill] sm:$0xff] }
 0x1ec   :  { %v1188_v52 = vadd.f32 %v1117_v53, %v3318_v22  ;;  %1324 = vrot.lane.b32.xlu0 %v2417_v8, %s2447_s6  ;;  %2430 = vtanh.f32 %v1191_v59  ;;  %v4027_v53 = vld [vmem:[#allocation3_spill] sm:$0xff] }
 0x1ed   :  { %v2419_v30 = vpop.eup %2418  ;;  %v1119_v3 = vpop.permute.xlu1 %1118 }
 0x1ee   :  { %2432 = vtanh.f32 %v1188_v52  ;;  %v1189_v41 = vadd.f32 %v1119_v3, %v3337_v38  ;;  %1326 = vrot.lane.b32.xlu1 %v2419_v30, %s2447_s6  ;;  %v1548_v52 = vmul.f32 %v3289_v33, %v4027_v53  ;;  %v4028_v3 = vld [vmem:[#allocation58_spill] sm:$0xff] }
 0x1ef   :  { %v2421_v31 = vpop.eup %2420  ;;  %v1129_v63 = vpop.permute.xlu0 %1128 }
 0x1f0   :  { %v1194_v13 = vadd.f32 %v1129_v63, %v3342_v21  ;;  %1336 = vrot.lane.b32.xlu0 %v2421_v31, %s2447_s6  ;;  %2434 = vtanh.f32 %v1189_v41  ;;  %v1229_v31 = vsub.f32 1.0, %v4028_v3  ;;  %v4030_v41 = vld [vmem:[#allocation35_spill] sm:$0xff] }
 0x1f1   :  { %v2423_v37 = vpop.eup %2422  ;;  %v1131_v22 = vpop.permute.xlu1 %1130  ;;  %vm1807_vm5 = vcmp.eq.s32.totalorder %v4030_v41, 1  ;;  %v4042_v41 = vld [vmem:[#allocation12_spill] sm:$0xff] }
 0x1f2   :  { %2436 = vtanh.f32 %v1194_v13  ;;  %v1195_v46 = vadd.f32 %v1131_v22, %v3353_v32  ;;  %1338 = vrot.lane.b32.xlu1 %v2423_v37, %s2447_s6  ;;  %v1549_v37 = vmul.f32 %v4028_v3, %v4031_v18  ;;  %v4041_v3 = vld [vmem:[#allocation36_spill] sm:$0xff] }
 0x1f3   :  { %v2425_v12 = vpop.eup %2424  ;;  %v1125_v36 = vpop.permute.xlu0 %1124  ;;  %vm1808_vm9 = vcmp.eq.s32.totalorder %v4041_v3, 1 }
 0x1f4   :  { %v1192_v40 = vadd.f32 %v1125_v36, %v3360_v34  ;;  %1332 = vrot.lane.b32.xlu0 %v2425_v12, %s2447_s6  ;;  %2438 = vtanh.f32 %v1195_v46  ;;  %v4032_v12 = vld [vmem:[#allocation59_spill] sm:$0xff] }
 0x1f5   :  { %v2427_v38 = vpop.eup %2426  ;;  %v1127_v21 = vpop.permute.xlu1 %1126  ;;  %v1234_v33 = vsub.f32 1.0, %v4032_v12 }
 0x1f6   :  { %2440 = vtanh.f32 %v1192_v40  ;;  %v1193_v29 = vadd.f32 %v1127_v21, %v3369_v56  ;;  %1334 = vrot.lane.b32.xlu1 %v2427_v38, %s2447_s6  ;;  %v4033_v38 = vld [vmem:[#allocation8_spill] sm:$0xff] }
 0x1f7   :  { %v2429_v15 = vpop.eup %2428  ;;  %v1554_v21 = vmul.f32 %v4032_v12, %v4033_v38 }
 0x1f8   :  { %1344 = vrot.lane.b32.xlu0 %v2429_v15, %s2447_s6  ;;  %2442 = vtanh.f32 %v1193_v29  ;;  %v4034_v29 = vld [vmem:[#allocation60_spill] sm:$0xff] }
 0x1f9   :  { %v2431_v32 = vpop.eup %2430 }
 0x1fa   :  { %1346 = vrot.lane.b32.xlu1 %v2431_v32, %s2447_s6  ;;  %v1235_v32 = vsub.f32 1.0, %v4034_v29 }
 0x1fb   :  { %v2433_v0 = vpop.eup %2432 }
 0x1fc   :  { %1340 = vrot.lane.b32.xlu0 %v2433_v0, %s2447_s6  ;;  %v4035_v0 = vld [vmem:[#allocation33_spill] sm:$0xff] }
 0x1fd   :  { %v2435_v34 = vpop.eup %2434  ;;  %vm1805_vm6 = vcmp.eq.s32.totalorder %v4035_v0, 1 }
 0x1fe   :  { %1342 = vrot.lane.b32.xlu1 %v2435_v34, %s2447_s6  ;;  %v4036_v34 = vld [vmem:[#allocation7_spill] sm:$0xff] }
 0x1ff   :  { %v2437_v62 = vpop.eup %2436 }
 0x200   :  { %1352 = vrot.lane.b32.xlu0 %v2437_v62, %s2447_s6  ;;  %v3554_v5 = vpop.permute.xlu0 %1790  ;;  %v1555_v62 = vmul.f32 %v4034_v29, %v4036_v34 }
 0x201   :  { %v2439_v26 = vpop.eup %2438 }
 0x202   :  { %1354 = vrot.lane.b32.xlu1 %v2439_v26, %s2447_s6  ;;  %v3556_v27 = vpop.permute.xlu1 %1787 }
 0x203   :  { %v2441_v2 = vpop.eup %2440 }
 0x204   :  { %1348 = vrot.lane.b32.xlu0 %v2441_v2, %s2447_s6  ;;  %v3558_v14 = vpop.permute.xlu0 %1796 }
 0x205   :  { %v2443_v56 = vpop.eup %2442 }
 0x206   :  { %1350 = vrot.lane.b32.xlu1 %v2443_v56, %s2447_s6  ;;  %v3560_v7 = vpop.permute.xlu1 %1793 }
 0x208   :  { %v3562_v39 = vpop.permute.xlu0 %1802 }
 0x20a   :  { %v3565_v17 = vpop.permute.xlu1 %1799 }
 0x238   :  { %v1297_v42 = vpop.permute.xlu0 %1296 }
 0x239   :  { %v1390_v44 = vmul.f32 %v1297_v42, %v1230_v6  ;;  %v1232_v42 = vsub.f32 1.0, %v3323_v43 }
 0x23b   :  { %v1582_v47 = vadd.f32 %v1550_v16, %v1390_v44  ;;  %v4037_v16 = vld [vmem:[#allocation38_spill] sm:$0xff] }
 0x23c   :  { %v1299_v24 = vpop.permute.xlu1 %1298  ;;  %vm1810_vm7 = vcmp.eq.s32.totalorder %v4037_v16, 1  ;;  %v4038_v44 = vld [vmem:[#allocation6_spill] sm:$0xff] }
 0x23d   :  { %v1391_v57 = vmul.f32 %v1299_v24, %v1231_v10  ;;  %v1293_v8 = vpop.permute.xlu0 %1292  ;;  %v1838_v59 = vsel %vm1806_vm3, %v1582_v47, %v2820_v61  ;;  %v1552_v47 = vmul.f32 %v3323_v43, %v4038_v44  ;;  %v1238_v43 = vsub.f32 1.0, %v3346_v28 }
 0x23e   :  { %v1388_v54 = vmul.f32 %v1293_v8, %v1228_v4  ;;  %1904 = vrot.lane.b32.xlu1 %v1838_v59, %s2447_s6  ;;  %v4040_v8 = vld [vmem:[#allocation5_spill] sm:$0xff] }
 0x23f   :  { %v1583_v30 = vadd.f32 %v1551_v35, %v1391_v57  ;;  %v4039_v57 = vld [vmem:[#allocation39_spill] sm:$0xff]  ;;  %v1553_v59 = vmul.f32 %v3339_v55, %v4040_v8 }
 0x240   :  { %v1580_v63 = vadd.f32 %v1548_v52, %v1388_v54  ;;  %v1295_v13 = vpop.permute.xlu1 %1294  ;;  %vm1811_vm8 = vcmp.eq.s32.totalorder %v4039_v57, 1  ;;  %v4051_v57 = vld [vmem:[#allocation41_spill] sm:$0xff] }
 0x241   :  { %v1389_v22 = vmul.f32 %v1295_v13, %v1229_v31  ;;  %v1839_v61 = vsel %vm1807_vm5, %v1583_v30, %v4026_v25  ;;  %v1233_v25 = vsub.f32 1.0, %v3339_v55  ;;  %vm1813_vm14 = vcmp.eq.s32.totalorder %v4051_v57, 1 }
 0x242   :  { %1906 = vrot.lane.b32.xlu0 %v1839_v61, %s2447_s6  ;;  %v1836_v46 = vsel %vm1804_vm4, %v1580_v63, %v4027_v53  ;;  %v1305_v36 = vpop.permute.xlu0 %1304  ;;  %v1558_v63 = vmul.f32 %v3346_v28, %v4042_v41  ;;  %v1245_v57 = vsub.f32 1.0, %v3411_v23 }
 0x243   :  { %v1581_v40 = vadd.f32 %v1549_v37, %v1389_v22  ;;  %1900 = vrot.lane.b32.xlu1 %v1836_v46, %s2447_s6  ;;  %v1394_v15 = vmul.f32 %v1305_v36, %v1234_v33  ;;  %v1239_v37 = vsub.f32 1.0, %v3371_v58  ;;  %v1236_v33 = vsub.f32 1.0, %v3355_v1  ;;  %v4044_v46 = vld [vmem:[#allocation42_spill] sm:$0xff]  ;;  %v4045_v36 = vld [vmem:[#allocation11_spill] sm:$0xff] }
 0x244   :  { %v1307_v26 = vpop.permute.xlu1 %1306  ;;  %vm1814_vm11 = vcmp.eq.s32.totalorder %v4044_v46, 1  ;;  %v1559_v28 = vmul.f32 %v3371_v58, %v4045_v36  ;;  %v1242_v58 = vsub.f32 1.0, %v3379_v11  ;;  %v4060_v46 = vld [vmem:[#allocation13_spill] sm:$0xff] }
 0x245   :  { %v1586_v2 = vadd.f32 %v1554_v21, %v1394_v15  ;;  %v1395_v56 = vmul.f32 %v1307_v26, %v1235_v32  ;;  %v1837_v6 = vsel %vm1805_vm6, %v1581_v40, %v4031_v18  ;;  %v4043_v18 = vld [vmem:[#allocation37_spill] sm:$0xff]  ;;  %v4046_v21 = vld [vmem:[#allocation10_spill] sm:$0xff] }
 0x246   :  { %1902 = vrot.lane.b32.xlu0 %v1837_v6, %s2447_s6  ;;  %v1301_v10 = vpop.permute.xlu0 %1300  ;;  %vm1809_vm10 = vcmp.eq.s32.totalorder %v4043_v18, 1  ;;  %v1556_v15 = vmul.f32 %v3355_v1, %v4046_v21  ;;  %v4049_v6 = vld [vmem:[#allocation9_spill] sm:$0xff] }
 0x247   :  { %v1587_v24 = vadd.f32 %v1555_v62, %v1395_v56  ;;  %v1392_v4 = vmul.f32 %v1301_v10, %v1232_v42  ;;  %v1842_v35 = vsel %vm1810_vm7, %v1586_v2, %v4033_v38  ;;  %v4047_v62 = vld [vmem:[#allocation43_spill] sm:$0xff]  ;;  %v4048_v56 = vld [vmem:[#allocation40_spill] sm:$0xff]  ;;  %v1557_v42 = vmul.f32 %v3376_v50, %v4049_v6 }
 0x248   :  { %v1303_v53 = vpop.permute.xlu1 %1302  ;;  %1912 = vrot.lane.b32.xlu1 %v1842_v35, %s2447_s6  ;;  %vm1815_vm12 = vcmp.eq.s32.totalorder %v4047_v62, 1  ;;  %vm1812_vm13 = vcmp.eq.s32.totalorder %v4048_v56, 1  ;;  %v1243_v35 = vsub.f32 1.0, %v3389_v48  ;;  %v1244_v56 = vsub.f32 1.0, %v3403_v19 }
 0x249   :  { %v1584_v52 = vadd.f32 %v1552_v47, %v1392_v4  ;;  %v1393_v54 = vmul.f32 %v1303_v53, %v1233_v25  ;;  %v1843_v30 = vsel %vm1811_vm8, %v1587_v24, %v4036_v34  ;;  %v1237_v34 = vsub.f32 1.0, %v3376_v50  ;;  %v4050_v47 = vld [vmem:[#allocation16_spill] sm:$0xff] }
 0x24a   :  { %1914 = vrot.lane.b32.xlu0 %v1843_v30, %s2447_s6  ;;  %v1313_v31 = vpop.permute.xlu0 %1312  ;;  %v1562_v10 = vmul.f32 %v3379_v11, %v4050_v47 }
 0x24b   :  { %v1585_v51 = vadd.f32 %v1553_v59, %v1393_v54  ;;  %v1398_v13 = vmul.f32 %v1313_v31, %v1238_v43  ;;  %v1840_v55 = vsel %vm1808_vm9, %v1584_v52, %v4038_v44  ;;  %v4052_v59 = vld [vmem:[#allocation61_spill] sm:$0xff]  ;;  %v4053_v52 = vld [vmem:[#allocation46_spill] sm:$0xff]  ;;  %v4054_v54 = vld [vmem:[#allocation15_spill] sm:$0xff] }
 0x24c   :  { %1908 = vrot.lane.b32.xlu1 %v1840_v55, %s2447_s6  ;;  %v1315_v61 = vpop.permute.xlu1 %1314  ;;  %v1240_v53 = vsub.f32 1.0, %v4052_v59  ;;  %vm1818_vm15 = vcmp.eq.s32.totalorder %v4053_v52, 1  ;;  %v1563_v30 = vmul.f32 %v3389_v48, %v4054_v54  ;;  %v4055_v31 = vld [vmem:[#allocation14_spill] sm:$0xff]  ;;  %v4068_v52 = vld [vmem:[#allocation48_spill] sm:$0xff] }
 0x24d   :  { %v1590_v22 = vadd.f32 %v1558_v63, %v1398_v13  ;;  %v1841_v12 = vsel %vm1809_vm10, %v1585_v51, %v4040_v8  ;;  %v1399_v40 = vmul.f32 %v1315_v61, %v1239_v37  ;;  %v1560_v51 = vmul.f32 %v4052_v59, %v4055_v31  ;;  %v4056_v55 = vld [vmem:[#allocation62_spill] sm:$0xff]  ;;  %v4057_v37 = vld [vmem:[#allocation47_spill] sm:$0xff] }
 0x24e   :  { %1910 = vrot.lane.b32.xlu0 %v1841_v12, %s2447_s6  ;;  %v1309_v38 = vpop.permute.xlu0 %1308  ;;  %v1241_v18 = vsub.f32 1.0, %v4056_v55  ;;  %vm1819_vm1 = vcmp.eq.s32.totalorder %v4057_v37, 1  ;;  %v4058_v61 = vld [vmem:[#allocation63_spill] sm:$0xff]  ;;  %vm1820_vm6 = vcmp.eq.s32.totalorder %v4068_v52, 1  ;;  %v1248_v37 = vsub.f32 1.0, %v3424_v20 }
 0x24f   :  { %v1396_v29 = vmul.f32 %v1309_v38, %v1236_v33  ;;  %v1846_v32 = vsel %vm1814_vm11, %v1590_v22, %v4042_v41  ;;  %v1591_v0 = vadd.f32 %v1559_v28, %v1399_v40  ;;  %v1246_v12 = vsub.f32 1.0, %v4058_v61  ;;  %v4059_v33 = vld [vmem:[#allocation44_spill] sm:$0xff] }
 0x250   :  { %1920 = vrot.lane.b32.xlu1 %v1846_v32, %s2447_s6  ;;  %v1311_v2 = vpop.permute.xlu1 %1310  ;;  %vm1816_vm2 = vcmp.eq.s32.totalorder %v4059_v33, 1 }
 0x251   :  { %v1588_v26 = vadd.f32 %v1556_v15, %v1396_v29  ;;  %v1397_v1 = vmul.f32 %v1311_v2, %v1237_v34  ;;  %v1847_v16 = vsel %vm1815_vm12, %v1591_v0, %v4045_v36  ;;  %v1561_v36 = vmul.f32 %v4056_v55, %v4060_v46  ;;  %v4062_v34 = vld [vmem:[#allocation64_spill] sm:$0xff]  ;;  %v4071_v55 = vld [vmem:[#allocation49_spill] sm:$0xff] }
 0x252   :  { %v1321_v44 = vpop.permute.xlu0 %1320  ;;  %1922 = vrot.lane.b32.xlu0 %v1847_v16, %s2447_s6  ;;  %v1247_v62 = vsub.f32 1.0, %v4062_v34  ;;  %vm1821_vm7 = vcmp.eq.s32.totalorder %v4071_v55, 1  ;;  %vm1830_vm12 = vcmp.eq.s32.totalorder %v3556_v27, 1 }
 0x253   :  { %v1402_v24 = vmul.f32 %v1321_v44, %v1242_v58  ;;  %v1844_v4 = vsel %vm1812_vm13, %v1588_v26, %v4046_v21  ;;  %v1589_v25 = vadd.f32 %v1557_v42, %v1397_v1  ;;  %v4061_v21 = vld [vmem:[#allocation20_spill] sm:$0xff]  ;;  %v4063_v26 = vld [vmem:[#allocation45_spill] sm:$0xff]  ;;  %v4065_v42 = vld [vmem:[#allocation19_spill] sm:$0xff]  ;;  %vm1831_vm13 = vcmp.eq.s32.totalorder %v3554_v5, 1 }
 0x254   :  { %1916 = vrot.lane.b32.xlu1 %v1844_v4, %s2447_s6  ;;  %v1323_v8 = vpop.permute.xlu1 %1322  ;;  %v1566_v15 = vmul.f32 %v4058_v61, %v4061_v21  ;;  %vm1817_vm3 = vcmp.eq.s32.totalorder %v4063_v26, 1  ;;  %v1567_v1 = vmul.f32 %v4062_v34, %v4065_v42  ;;  %v4077_v34 = vld [vmem:[#allocation21_spill] sm:$0xff]  ;;  %v4088_v5 = vld [vmem:[#allocation68_spill] sm:$0xff] }
 0x255   :  { %v1594_v50 = vadd.f32 %v1562_v10, %v1402_v24  ;;  %v1403_v11 = vmul.f32 %v1323_v8, %v1243_v35  ;;  %v1845_v43 = vsel %vm1813_vm14, %v1589_v25, %v4049_v6  ;;  %v4064_v6 = vld [vmem:[#allocation50_spill] sm:$0xff] }
 0x256   :  { %v1317_v3 = vpop.permute.xlu0 %1316  ;;  %1918 = vrot.lane.b32.xlu0 %v1845_v43, %s2447_s6  ;;  %vm1822_vm4 = vcmp.eq.s32.totalorder %v4064_v6, 1  ;;  %v4066_v10 = vld [vmem:[#allocation18_spill] sm:$0xff] }
 0x257   :  { %v1400_v41 = vmul.f32 %v1317_v3, %v1240_v53  ;;  %v1850_v63 = vsel %vm1818_vm15, %v1594_v50, %v4050_v47  ;;  %v1595_v13 = vadd.f32 %v1563_v30, %v1403_v11  ;;  %v1564_v24 = vmul.f32 %v3403_v19, %v4066_v10  ;;  %v4067_v50 = vld [vmem:[#allocation51_spill] sm:$0xff]  ;;  %v4070_v3 = vld [vmem:[#allocation24_spill] sm:$0xff] }
 0x258   :  { %1928 = vrot.lane.b32.xlu1 %v1850_v63, %s2447_s6  ;;  %v1319_v22 = vpop.permute.xlu1 %1318  ;;  %vm1823_vm5 = vcmp.eq.s32.totalorder %v4067_v50, 1  ;;  %v1250_v53 = vsub.f32 1.0, %v3414_v60 }
 0x259   :  { %v1592_v48 = vadd.f32 %v1560_v51, %v1400_v41  ;;  %v1401_v28 = vmul.f32 %v1319_v22, %v1241_v18  ;;  %v1851_v40 = vsel %vm1819_vm1, %v1595_v13, %v4054_v54  ;;  %v4069_v54 = vld [vmem:[#allocation17_spill] sm:$0xff]  ;;  %v1251_v13 = vsub.f32 1.0, %v3420_v45  ;;  %v4073_v22 = vld [vmem:[#allocation23_spill] sm:$0xff] }
 0x25a   :  { %v1329_v38 = vpop.permute.xlu0 %1328  ;;  %1930 = vrot.lane.b32.xlu0 %v1851_v40, %s2447_s6  ;;  %v1565_v30 = vmul.f32 %v3411_v23, %v4069_v54  ;;  %v1571_v61 = vmul.f32 %v3420_v45, %v4073_v22  ;;  %vm1832_vm1 = vcmp.eq.s32.totalorder %v3560_v7, 1 }
 0x25b   :  { %v1406_v29 = vmul.f32 %v1329_v38, %v1246_v12  ;;  %v1848_v32 = vsel %vm1816_vm2, %v1592_v48, %v4055_v31  ;;  %v1593_v0 = vadd.f32 %v1561_v36, %v1401_v28  ;;  %v1570_v31 = vmul.f32 %v3414_v60, %v4070_v3  ;;  %v4072_v48 = vld [vmem:[#allocation54_spill] sm:$0xff] }
 0x25c   :  { %1924 = vrot.lane.b32.xlu1 %v1848_v32, %s2447_s6  ;;  %v1331_v58 = vpop.permute.xlu1 %1330  ;;  %vm1826_vm8 = vcmp.eq.s32.totalorder %v4072_v48, 1  ;;  %v1254_v32 = vsub.f32 1.0, %v3432_v9  ;;  %v4089_v48 = vld [vmem:[#allocation70_spill] sm:$0xff]  ;;  %vm1833_vm2 = vcmp.eq.s32.totalorder %v3558_v14, 1 }
 0x25d   :  { %v1598_v2 = vadd.f32 %v1566_v15, %v1406_v29  ;;  %v1407_v16 = vmul.f32 %v1331_v58, %v1247_v62  ;;  %v1849_v44 = vsel %vm1817_vm3, %v1593_v0, %v4060_v46  ;;  %v4074_v46 = vld [vmem:[#allocation22_spill] sm:$0xff]  ;;  %v4075_v15 = vld [vmem:[#allocation55_spill] sm:$0xff]  ;;  %v4076_v0 = vld [vmem:[#allocation52_spill] sm:$0xff]  ;;  %v1569_v62 = vmul.f32 %v3429_v49, %v4077_v34 }
 0x25e   :  { %v1325_v47 = vpop.permute.xlu0 %1324  ;;  %1926 = vrot.lane.b32.xlu0 %v1849_v44, %s2447_s6  ;;  %v1568_v36 = vmul.f32 %v3424_v20, %v4074_v46  ;;  %vm1827_vm9 = vcmp.eq.s32.totalorder %v4075_v15, 1  ;;  %vm1824_vm10 = vcmp.eq.s32.totalorder %v4076_v0, 1  ;;  %v4078_v58 = vld [vmem:[#allocation28_spill] sm:$0xff]  ;;  %vm1834_vm3 = vcmp.eq.s32.totalorder %v3565_v17, 1 }
 0x25f   :  { %v1404_v4 = vmul.f32 %v1325_v47, %v1244_v56  ;;  %v1854_v25 = vsel %vm1822_vm4, %v1598_v2, %v4061_v21  ;;  %v1599_v35 = vadd.f32 %v1567_v1, %v1407_v16  ;;  %v1249_v21 = vsub.f32 1.0, %v3429_v49  ;;  %v4079_v16 = vld [vmem:[#allocation65_spill] sm:$0xff]  ;;  %v4093_v15 = vld [vmem:[#allocation32_spill] sm:$0xff] }
 0x260   :  { %1936 = vrot.lane.b32.xlu1 %v1854_v25, %s2447_s6  ;;  %v1327_v59 = vpop.permute.xlu1 %1326  ;;  %v1574_v56 = vmul.f32 %v3432_v9, %v4078_v58  ;;  %v1255_v44 = vsub.f32 1.0, %v4079_v16  ;;  %v4080_v47 = vld [vmem:[#allocation53_spill] sm:$0xff]  ;;  %v4082_v25 = vld [vmem:[#allocation27_spill] sm:$0xff]  ;;  %vm1835_vm4 = vcmp.eq.s32.totalorder %v3562_v39, 1 }
 0x261   :  { %v1596_v8 = vadd.f32 %v1564_v24, %v1404_v4  ;;  %v1405_v19 = vmul.f32 %v1327_v59, %v1245_v57  ;;  %v1855_v11 = vsel %vm1823_vm5, %v1599_v35, %v4065_v42  ;;  %vm1825_vm11 = vcmp.eq.s32.totalorder %v4080_v47, 1  ;;  %v4081_v24 = vld [vmem:[#allocation66_spill] sm:$0xff] }
 0x262   :  { %v1337_v43 = vpop.permute.xlu0 %1336  ;;  %1938 = vrot.lane.b32.xlu0 %v1855_v11, %s2447_s6  ;;  %v1252_v4 = vsub.f32 1.0, %v4081_v24  ;;  %v1575_v35 = vmul.f32 %v4079_v16, %v4082_v25 }
 0x263   :  { %v1410_v51 = vmul.f32 %v1337_v43, %v1250_v53  ;;  %v1852_v41 = vsel %vm1820_vm6, %v1596_v8, %v4066_v10  ;;  %v1597_v63 = vadd.f32 %v1565_v30, %v1405_v19  ;;  %v4083_v8 = vld [vmem:[#allocation26_spill] sm:$0xff]  ;;  %v4084_v30 = vld [vmem:[#allocation67_spill] sm:$0xff]  ;;  %v4085_v43 = vld [vmem:[#allocation56_spill] sm:$0xff] }
 0x264   :  { %1932 = vrot.lane.b32.xlu1 %v1852_v41, %s2447_s6  ;;  %v1339_v18 = vpop.permute.xlu1 %1338  ;;  %v1572_v59 = vmul.f32 %v4081_v24, %v4083_v8  ;;  %v1253_v19 = vsub.f32 1.0, %v4084_v30  ;;  %vm1828_vm14 = vcmp.eq.s32.totalorder %v4085_v43, 1 }
 0x265   :  { %v1602_v23 = vadd.f32 %v1570_v31, %v1410_v51  ;;  %v1411_v60 = vmul.f32 %v1339_v18, %v1251_v13  ;;  %v1853_v12 = vsel %vm1821_vm7, %v1597_v63, %v4069_v54  ;;  %v1258_v18 = vsub.f32 1.0, %v4088_v5 }
 0x266   :  { %v1333_v33 = vpop.permute.xlu0 %1332  ;;  %1934 = vrot.lane.b32.xlu0 %v1853_v12, %s2447_s6 }
 0x267   :  { %v1408_v28 = vmul.f32 %v1333_v33, %v1248_v37  ;;  %v1858_v40 = vsel %vm1826_vm8, %v1602_v23, %v4070_v3  ;;  %v1603_v38 = vadd.f32 %v1571_v61, %v1411_v60  ;;  %v4086_v3 = vld [vmem:[#allocation25_spill] sm:$0xff]  ;;  %v4090_v33 = vld [vmem:[#allocation30_spill] sm:$0xff] }
 0x268   :  { %1944 = vrot.lane.b32.xlu1 %v1858_v40, %s2447_s6  ;;  %v1335_v29 = vpop.permute.xlu1 %1334  ;;  %v1573_v31 = vmul.f32 %v4084_v30, %v4086_v3  ;;  %v4087_v23 = vld [vmem:[#allocation57_spill] sm:$0xff] }
 0x269   :  { %v1600_v45 = vadd.f32 %v1568_v36, %v1408_v28  ;;  %v1409_v20 = vmul.f32 %v1335_v29, %v1249_v21  ;;  %v1859_v26 = vsel %vm1827_vm9, %v1603_v38, %v4073_v22  ;;  %vm1829_vm15 = vcmp.eq.s32.totalorder %v4087_v23, 1  ;;  %v4091_v28 = vld [vmem:[#allocation69_spill] sm:$0xff]  ;;  %v4092_v38 = vld [vmem:[#allocation71_spill] sm:$0xff] }
 0x26a   :  { %v1345_v2 = vpop.permute.xlu0 %1344  ;;  %1946 = vrot.lane.b32.xlu0 %v1859_v26, %s2447_s6  ;;  %v1256_v22 = vsub.f32 1.0, %v4089_v48  ;;  %v1259_v40 = vsub.f32 1.0, %v4091_v28  ;;  %v1257_v21 = vsub.f32 1.0, %v4092_v38 }
 0x26b   :  { %v1414_v6 = vmul.f32 %v1345_v2, %v1254_v32  ;;  %v1856_v42 = vsel %vm1824_vm10, %v1600_v45, %v4074_v46  ;;  %v1601_v1 = vadd.f32 %v1569_v62, %v1409_v20  ;;  %v1576_v46 = vmul.f32 %v4089_v48, %v4090_v33 }
 0x26c   :  { %1940 = vrot.lane.b32.xlu1 %v1856_v42, %s2447_s6  ;;  %v1347_v10 = vpop.permute.xlu1 %1346  ;;  %v1578_v45 = vmul.f32 %v4088_v5, %v4093_v15 }
 0x26d   :  { %v1606_v49 = vadd.f32 %v1574_v56, %v1414_v6  ;;  %v1415_v9 = vmul.f32 %v1347_v10, %v1255_v44  ;;  %v1857_v57 = vsel %vm1825_vm11, %v1601_v1, %v4077_v34  ;;  %v4094_v34 = vld [vmem:[#allocation29_spill] sm:$0xff] }
 0x26e   :  { %v1341_v50 = vpop.permute.xlu0 %1340  ;;  %1942 = vrot.lane.b32.xlu0 %v1857_v57, %s2447_s6  ;;  %v1577_v62 = vmul.f32 %v4092_v38, %v4094_v34 }
 0x26f   :  { %v1412_v53 = vmul.f32 %v1341_v50, %v1252_v4  ;;  %v1862_v52 = vsel %vm1830_vm12, %v1606_v49, %v4078_v58  ;;  %v1607_v54 = vadd.f32 %v1575_v35, %v1415_v9  ;;  %v4095_v58 = vld [vmem:[#allocation31_spill] sm:$0xff] }
 0x270   :  { %1952 = vrot.lane.b32.xlu1 %v1862_v52, %s2447_s6  ;;  %v1343_v11 = vpop.permute.xlu1 %1342  ;;  %v1579_v56 = vmul.f32 %v4091_v28, %v4095_v58 }
 0x271   :  { %v1604_v27 = vadd.f32 %v1572_v59, %v1412_v53  ;;  %v1413_v51 = vmul.f32 %v1343_v11, %v1253_v19  ;;  %v1863_v41 = vsel %vm1831_vm13, %v1607_v54, %v4082_v25 }
 0x272   :  { %v1353_v63 = vpop.permute.xlu0 %1352  ;;  %1954 = vrot.lane.b32.xlu0 %v1863_v41, %s2447_s6 }
 0x273   :  { %v1860_v13 = vsel %vm1828_vm14, %v1604_v27, %v4083_v8  ;;  %v1605_v55 = vadd.f32 %v1573_v31, %v1413_v51  ;;  %v1418_v12 = vmul.f32 %v1353_v63, %v1258_v18 }
 0x274   :  { %1948 = vrot.lane.b32.xlu1 %v1860_v13, %s2447_s6  ;;  %v1355_v37 = vpop.permute.xlu1 %1354 }
 0x275   :  { %v1861_v61 = vsel %vm1829_vm15, %v1605_v55, %v4086_v3  ;;  %v1419_v0 = vmul.f32 %v1355_v37, %v1259_v40  ;;  %v1610_v26 = vadd.f32 %v1578_v45, %v1418_v12 }
 0x276   :  { %v1349_v60 = vpop.permute.xlu0 %1348  ;;  %1950 = vrot.lane.b32.xlu0 %v1861_v61, %s2447_s6 }
 0x277   :  { %v1416_v36 = vmul.f32 %v1349_v60, %v1256_v22  ;;  %v1611_v42 = vadd.f32 %v1579_v56, %v1419_v0  ;;  %v1866_v1 = vsel %vm1834_vm3, %v1610_v26, %v4093_v15 }
 0x278   :  { %v1351_v32 = vpop.permute.xlu1 %1350 }
 0x279   :  { %v1608_v29 = vadd.f32 %v1576_v46, %v1416_v36  ;;  %v1417_v20 = vmul.f32 %v1351_v32, %v1257_v21  ;;  %v1867_v16 = vsel %vm1835_vm4, %v1611_v42, %v4095_v58 }
 0x27b   :  { %v1864_v2 = vsel %vm1832_vm1, %v1608_v29, %v4090_v33  ;;  %v1609_v6 = vadd.f32 %v1577_v62, %v1417_v20 }
 0x27c   :  { %1956 = vrot.lane.b32.xlu1 %v1864_v2, %s2447_s6 }
 0x27d   :  { %v1865_v7 = vsel %vm1833_vm2, %v1609_v6, %v4094_v34 }
 0x27e   :  { %1958 = vrot.lane.b32.xlu0 %v1865_v7, %s2447_s6 }
 0x280   :  { %1960 = vrot.lane.b32.xlu1 %v1866_v1, %s2447_s6 }
 0x282   :  { %1962 = vrot.lane.b32.xlu0 %v1867_v16, %s2447_s6 }
 0x2b0   :  { %v1905_v44 = vpop.permute.xlu1 %1904 }
 0x2b1   :  { %1998 = vst.msk [vmem:[%s3893_s7 + $0x10] sm:$0xff] %vm194_vm0, %v1905_v44 }
 0x2b4   :  { %v1907_v14 = vpop.permute.xlu0 %1906 }
 0x2b5   :  { %v1901_v17 = vpop.permute.xlu1 %1900  ;;  %1999 = vst.msk [vmem:[%s3893_s7 + $0x18] sm:$0xff] %vm194_vm0, %v1907_v14 }
 0x2b6   :  { %1996 = vst.msk [vmem:[%s3893_s7] sm:$0xff] %vm194_vm0, %v1901_v17 }
 0x2b8   :  { %v1903_v39 = vpop.permute.xlu0 %1902 }
 0x2b9   :  { %1997 = vst.msk [vmem:[%s3893_s7 + $0x8] sm:$0xff] %vm194_vm0, %v1903_v39 }
 0x2ba   :  { %v1913_v47 = vpop.permute.xlu1 %1912 }
 0x2bb   :  { %2002 = vst.msk [vmem:[%s3893_s7 + $0x30] sm:$0xff] %vm194_vm0, %v1913_v47 }
 0x2bc   :  { %v1915_v49 = vpop.permute.xlu0 %1914 }
 0x2bd   :  { %2003 = vst.msk [vmem:[%s3893_s7 + $0x38] sm:$0xff] %vm194_vm0, %v1915_v49 }
 0x2be   :  { %v1909_v10 = vpop.permute.xlu1 %1908 }
 0x2bf   :  { %2000 = vst.msk [vmem:[%s3893_s7 + $0x20] sm:$0xff] %vm194_vm0, %v1909_v10 }
 0x2c0   :  { %v1911_v24 = vpop.permute.xlu0 %1910 }
 0x2c1   :  { %2001 = vst.msk [vmem:[%s3893_s7 + $0x28] sm:$0xff] %vm194_vm0, %v1911_v24 }
 0x2c2   :  { %v1921_v4 = vpop.permute.xlu1 %1920 }
 0x2c3   :  { %2006 = vst.msk [vmem:[%s3893_s7 + $0x50] sm:$0xff] %vm194_vm0, %v1921_v4 }
 0x2c4   :  { %v1923_v25 = vpop.permute.xlu0 %1922 }
 0x2c5   :  { %2007 = vst.msk [vmem:[%s3893_s7 + $0x58] sm:$0xff] %vm194_vm0, %v1923_v25 }
 0x2c6   :  { %v1917_v35 = vpop.permute.xlu1 %1916 }
 0x2c7   :  { %2004 = vst.msk [vmem:[%s3893_s7 + $0x40] sm:$0xff] %vm194_vm0, %v1917_v35 }
 0x2c8   :  { %v1919_v9 = vpop.permute.xlu0 %1918 }
 0x2c9   :  { %2005 = vst.msk [vmem:[%s3893_s7 + $0x48] sm:$0xff] %vm194_vm0, %v1919_v9 }
 0x2ca   :  { %v1929_v57 = vpop.permute.xlu1 %1928 }
 0x2cb   :  { %2010 = vst.msk [vmem:[%s3893_s7 + $0x70] sm:$0xff] %vm194_vm0, %v1929_v57 }
 0x2cc   :  { %v1931_v50 = vpop.permute.xlu0 %1930 }
 0x2cd   :  { %2011 = vst.msk [vmem:[%s3893_s7 + $0x78] sm:$0xff] %vm194_vm0, %v1931_v50 }
 0x2ce   :  { %v1925_v8 = vpop.permute.xlu1 %1924 }
 0x2cf   :  { %2008 = vst.msk [vmem:[%s3893_s7 + $0x60] sm:$0xff] %vm194_vm0, %v1925_v8 }
 0x2d0   :  { %v1927_v59 = vpop.permute.xlu0 %1926 }
 0x2d1   :  { %2009 = vst.msk [vmem:[%s3893_s7 + $0x68] sm:$0xff] %vm194_vm0, %v1927_v59 }
 0x2d2   :  { %v1937_v53 = vpop.permute.xlu1 %1936 }
 0x2d3   :  { %2014 = vst.msk [vmem:[%s3893_s7 + $0x90] sm:$0xff] %vm194_vm0, %v1937_v53 }
 0x2d4   :  { %v1939_v52 = vpop.permute.xlu0 %1938 }
 0x2d5   :  { %2015 = vst.msk [vmem:[%s3893_s7 + $0x98] sm:$0xff] %vm194_vm0, %v1939_v52 }
 0x2d6   :  { %v1933_v54 = vpop.permute.xlu1 %1932 }
 0x2d7   :  { %2012 = vst.msk [vmem:[%s3893_s7 + $0x80] sm:$0xff] %vm194_vm0, %v1933_v54 }
 0x2d8   :  { %v1935_v30 = vpop.permute.xlu0 %1934 }
 0x2d9   :  { %2013 = vst.msk [vmem:[%s3893_s7 + $0x88] sm:$0xff] %vm194_vm0, %v1935_v30 }
 0x2da   :  { %v1945_v19 = vpop.permute.xlu1 %1944 }
 0x2db   :  { %2018 = vst.msk [vmem:[%s3893_s7 + $0xb0] sm:$0xff] %vm194_vm0, %v1945_v19 }
 0x2dc   :  { %v1947_v27 = vpop.permute.xlu0 %1946 }
 0x2dd   :  { %2019 = vst.msk [vmem:[%s3893_s7 + $0xb8] sm:$0xff] %vm194_vm0, %v1947_v27 }
 0x2de   :  { %v1941_v11 = vpop.permute.xlu1 %1940 }
 0x2df   :  { %2016 = vst.msk [vmem:[%s3893_s7 + $0xa0] sm:$0xff] %vm194_vm0, %v1941_v11 }
 0x2e0   :  { %v1943_v43 = vpop.permute.xlu0 %1942 }
 0x2e1   :  { %2017 = vst.msk [vmem:[%s3893_s7 + $0xa8] sm:$0xff] %vm194_vm0, %v1943_v43 }
 0x2e2   :  { %v1953_v3 = vpop.permute.xlu1 %1952 }
 0x2e3   :  { %2022 = vst.msk [vmem:[%s3893_s7 + $0xd0] sm:$0xff] %vm194_vm0, %v1953_v3 }
 0x2e4   :  { %v1955_v31 = vpop.permute.xlu0 %1954 }
 0x2e5   :  { %2023 = vst.msk [vmem:[%s3893_s7 + $0xd8] sm:$0xff] %vm194_vm0, %v1955_v31 }
 0x2e6   :  { %v1949_v51 = vpop.permute.xlu1 %1948 }
 0x2e7   :  { %2020 = vst.msk [vmem:[%s3893_s7 + $0xc0] sm:$0xff] %vm194_vm0, %v1949_v51 }
 0x2e8   :  { %v1951_v41 = vpop.permute.xlu0 %1950 }
 0x2e9   :  { %2021 = vst.msk [vmem:[%s3893_s7 + $0xc8] sm:$0xff] %vm194_vm0, %v1951_v41 }
 0x2ee   :  { %v1957_v63 = vpop.permute.xlu1 %1956 }
 0x2ef   :  { %2024 = vst.msk [vmem:[%s3893_s7 + $0xe0] sm:$0xff] %vm194_vm0, %v1957_v63 }
 0x2f0   :  { %v1959_v13 = vpop.permute.xlu0 %1958 }
 0x2f1   :  { %2025 = vst.msk [vmem:[%s3893_s7 + $0xe8] sm:$0xff] %vm194_vm0, %v1959_v13 }
 0x2f2   :  { %v1961_v55 = vpop.permute.xlu1 %1960 }
 0x2f3   :  { %2026 = vst.msk [vmem:[%s3893_s7 + $0xf0] sm:$0xff] %vm194_vm0, %v1961_v55 }
 0x2f4   :  { %v1963_v23 = vpop.permute.xlu0 %1962 }
 0x2f5   :  { %2027 = vst.msk [vmem:[%s3893_s7 + $0xf8] sm:$0xff] %vm194_vm0, %v1963_v23 }

// kernel: smnet_forward.4
= control target key start
LH: loop header
LB: loop body
LE: loop exit
PB: predicated region body
PF: predicated region fallthrough
CT: control target
= control target key end

     0   :  { %s5494_s15 = smov 0   ;;  %s6678_s0 = inlined_call_operand.vmem [shape: bf16[656,224], index: 0, kind: input, shape index: {}]   ;;  %s6679_s1 = inlined_call_operand.vmem [shape: bf16[7,224,128], index: 1, kind: input, shape index: {}]   ;;  %s6680_s2 = inlined_call_operand.vmem [shape: f32[1,128], index: 2, kind: input, shape index: {}]   ;;  %s6681_s3 = inlined_call_operand.vmem [shape: f32[1,128], index: 3, kind: input, shape index: {}]   ;;  %s6682_s4 = inlined_call_operand.vmem [shape: bf16[512,128], index: 4, kind: output, shape index: {}]  }
   0x1 LB: > { %s4196_s16 = sadd.s32 4294967295, %s5466_s15   ;;  %p4199_p0 = scmp.ge.s32.totalorder %s5466_s15, 1  ;;  %s5466_s15 = sphi %s5494_s15, %s14_s15  }
   0x2   : > { %p152_p1 = scmp.lt.s32.totalorder %s5466_s15, 3 }
   0x4   : > { %p153_p2 = pnand %p4199_p0, %p152_p1 }
   0x5   : > { %s5509_s19 = sshll.u32 (!%p153_p2), %s4196_s16, 8 }
   0x6   : > { %156 = sbr.rel (%p153_p2) target bundleno = 718 (0x2ce), region = 36  ;;  %s246_s22 = sadd.s32 (!%p153_p2), 24, %s5509_s19 }
   0x7   : > { %s247_s25 = sshra.s32 (!%p153_p2), %s246_s22, 3  ;;  %s1188_s29 = sadd.s32 (!%p153_p2), 48, %s5509_s19 }
   0x8   : > { %s4856_s26 = sshll.u32 (!%p153_p2), %s247_s25, 3  ;;  %s1189_s9 = sshra.s32 (!%p153_p2), %s1188_s29, 3 }
   0x9   : > { %s5530_s5 = scalar_lea.vmem (!%p153_p2), %s6678_s0, %s4856_s26  ;;  %s4857_s14 = sshll.u32 (!%p153_p2), %s1189_s9, 3 }
   0xa   : > { %s5621_s24 = scalar_lea.vmem (!%p153_p2), %s6678_s0, %s5509_s19  ;;  %s5629_s27 = scalar_lea.vmem (!%p153_p2), %s6678_s0, %s4857_s14 }
   0xb   : > { %v5026_v0 = vld [vmem:[%s6679_s1 + $0xa8] sm:$0xff]   ;;  %v5468_v1 = vmov 0   ;;  %v5027_v2 = vld [vmem:[%s6679_s1 + $0xa0] sm:$0xff]   ;;  %v5028_v3 = vld [vmem:[%s6679_s1 + $0x98] sm:$0xff]   ;;  %vm541_vm0 = vcmask 785408   ;;  %s1724_s14 = sadd.s32 72, %s5509_s19 }
   0xc   : > { %590 = vmatprep.subr.bf16.mxu0 %v5468_v1  ;;  %4989 = vmatprep.subr.bf16.mxu1 %v5468_v1  ;;  %v5029_v4 = vld [vmem:[%s6679_s1 + $0x90] sm:$0xff]   ;;  %v5030_v5 = vld [vmem:[%s6679_s1 + $0x88] sm:$0xff]   ;;  %v5031_v8 = vld [vmem:[%s6679_s1 + $0x80] sm:$0xff]   ;;  %s2260_s17 = sadd.s32 96, %s5509_s19  ;;  %s1725_s23 = sshra.s32 %s1724_s14, 3 }
   0xd   : > { %591 = vmatpush1.bf16.msra.mxu0 %v5026_v0  ;;  %5003 = vmatpush1.bf16.msra.mxu1 %v5026_v0  ;;  %v5042_v6 = vld [vmem:[%s5530_s5 + $0x4] ss:$8 sps:$4 sm:$0xff]   ;;  %v5032_v9 = vld [vmem:[%s6679_s1 + $0x78] sm:$0xff]   ;;  %v5033_v10 = vld [vmem:[%s6679_s1 + $0x70] sm:$0xff]   ;;  %s2261_s25 = sshra.s32 %s2260_s17, 3  ;;  %s4858_s26 = sshll.u32 %s1725_s23, 3 }
   0xe   : > { %592 = vmatprep.subr.bf16.mxu0 %v5468_v1  ;;  %4990 = vmatprep.subr.bf16.mxu1 %v5468_v1  ;;  %v5045_v7 = vld [vmem:[%s5530_s5 + $0x84] ss:$8 sps:$4 sm:$0xff]   ;;  %v5034_v11 = vld [vmem:[%s6679_s1 + $0xd8] sm:$0xff]   ;;  %v5035_v12 = vld [vmem:[%s6679_s1 + $0xd0] sm:$0xff]   ;;  %s5811_s9 = scalar_lea.vmem %s6678_s0, %s4858_s26  ;;  %s2796_s17 = sadd.s32 120, %s5509_s19 }
   0xf   : > { %4281 = vmatprep.mubr.msk.bf16.mxu0 %vm541_vm0, %v5042_v6  ;;  %4289 = vmatprep.mubr.msk.bf16.mxu1 %vm541_vm0, %v5045_v7  ;;  %v5036_v13 = vld [vmem:[%s6679_s1 + $0xc8] sm:$0xff]   ;;  %v5037_v14 = vld [vmem:[%s6679_s1 + $0xc0] sm:$0xff]   ;;  %v5038_v15 = vld [vmem:[%s6679_s1 + $0xb8] sm:$0xff]   ;;  %s3332_s18 = sadd.s32 144, %s5509_s19  ;;  %s2797_s20 = sshra.s32 %s2796_s17, 3 }
  0x10   : > { %v5039_v16 = vld [vmem:[%s6679_s1 + $0xb0] sm:$0xff]   ;;  %v5040_v17 = vld [vmem:[%s5530_s5] ss:$8 sps:$4 sm:$0xff]   ;;  %v5046_v19 = vld [vmem:[%s6679_s1 + $0x38] sm:$0xff]   ;;  %s3333_s21 = sshra.s32 %s3332_s18, 3  ;;  %s4860_s22 = sshll.u32 %s2797_s20, 3 }
  0x11   : > { %593 = vmatpush1.bf16.msra.mxu0 %v5027_v2  ;;  %5004 = vmatpush1.bf16.msra.mxu1 %v5027_v2  ;;  %v5043_v18 = vld [vmem:[%s5530_s5 + $0x80] ss:$8 sps:$4 sm:$0xff]   ;;  %v5047_v20 = vld [vmem:[%s6679_s1 + $0x118] sm:$0xff]   ;;  %v5048_v23 = vld [vmem:[%s6679_s1 + $0x30] sm:$0xff]   ;;  %s4861_s23 = sshll.u32 %s3333_s21, 3  ;;  %s5993_s30 = scalar_lea.vmem %s6678_s0, %s4860_s22 }
  0x12   : > { %594 = vmatprep.subr.bf16.mxu0 %v5468_v1  ;;  %4991 = vmatprep.subr.bf16.mxu1 %v5468_v1  ;;  %v5049_v21 = vld [vmem:[%s5530_s5 + $0x14] ss:$8 sps:$4 sm:$0xff]   ;;  %v5053_v25 = vld [vmem:[%s5530_s5 + $0x10] ss:$8 sps:$4 sm:$0xff]   ;;  %v5056_v27 = vld [vmem:[%s6679_s1 + $0x28] sm:$0xff]  }
  0x13   : > { %v5051_v22 = vld [vmem:[%s5530_s5 + $0x94] ss:$8 sps:$4 sm:$0xff]   ;;  %v5054_v26 = vld [vmem:[%s5530_s5 + $0x90] ss:$8 sps:$4 sm:$0xff]   ;;  %v5057_v28 = vld [vmem:[%s6679_s1 + $0x108] sm:$0xff]  }
  0x14   : > { %v5055_v24 = vld [vmem:[%s6679_s1 + $0x110] sm:$0xff]   ;;  %v5058_v29 = vld [vmem:[%s5530_s5 + $0x24] ss:$8 sps:$4 sm:$0xff]   ;;  %v5063_v33 = vld [vmem:[%s5530_s5 + $0x20] ss:$8 sps:$4 sm:$0xff]  }
  0x15   : > { %595 = vmatpush1.bf16.msra.mxu0 %v5028_v3  ;;  %5005 = vmatpush1.bf16.msra.mxu1 %v5028_v3  ;;  %v5060_v30 = vld [vmem:[%s5530_s5 + $0xa4] ss:$8 sps:$4 sm:$0xff]   ;;  %v5064_v34 = vld [vmem:[%s5530_s5 + $0xa0] ss:$8 sps:$4 sm:$0xff]   ;;  %v5066_v35 = vld [vmem:[%s6679_s1 + $0x18] sm:$0xff]  }
  0x16   : > { %596 = vmatprep.subr.bf16.mxu0 %v5468_v1  ;;  %4992 = vmatprep.subr.bf16.mxu1 %v5468_v1  ;;  %v5062_v31 = vld [vmem:[%s6679_s1 + $0x20] sm:$0xff]   ;;  %v5067_v36 = vld [vmem:[%s6679_s1 + $0xf8] sm:$0xff]   ;;  %v5074_v39 = vld [vmem:[%s6679_s1 + $0x10] sm:$0xff]  }
  0x17   : > { %v5065_v32 = vld [vmem:[%s6679_s1 + $0x100] sm:$0xff]   ;;  %v5068_v37 = vld [vmem:[%s5530_s5 + $0x34] ss:$8 sps:$4 sm:$0xff]   ;;  %v5072_v41 = vld [vmem:[%s5530_s5 + $0x30] ss:$8 sps:$4 sm:$0xff]  }
  0x18   : > { %v5070_v38 = vld [vmem:[%s5530_s5 + $0xb4] ss:$8 sps:$4 sm:$0xff]   ;;  %v5073_v42 = vld [vmem:[%s5530_s5 + $0xb0] ss:$8 sps:$4 sm:$0xff]   ;;  %v5076_v43 = vld [vmem:[%s6679_s1 + $0x8] sm:$0xff]  }
  0x19   : > { %597 = vmatpush1.bf16.msra.mxu0 %v5029_v4  ;;  %5006 = vmatpush1.bf16.msra.mxu1 %v5029_v4  ;;  %v5075_v40 = vld [vmem:[%s6679_s1 + $0xf0] sm:$0xff]   ;;  %v5077_v44 = vld [vmem:[%s5530_s5 + $0x44] ss:$8 sps:$4 sm:$0xff]   ;;  %v5082_v49 = vld [vmem:[%s5530_s5 + $0x40] ss:$8 sps:$4 sm:$0xff]  }
  0x1a   : > { %598 = vmatprep.subr.bf16.mxu0 %v5468_v1  ;;  %4993 = vmatprep.subr.bf16.mxu1 %v5468_v1  ;;  %v5079_v45 = vld [vmem:[%s5530_s5 + $0xc4] ss:$8 sps:$4 sm:$0xff]   ;;  %v5083_v50 = vld [vmem:[%s5530_s5 + $0xc0] ss:$8 sps:$4 sm:$0xff]   ;;  %v5087_v52 = vld [vmem:[%s5530_s5 + $0x54] ss:$8 sps:$4 sm:$0xff]  }
  0x1b   : > { %v5081_v46 = vld [vmem:[%s6679_s1 + $0xe8] sm:$0xff]   ;;  %v5084_v47 = vld [vmem:[%s6679_s1] sm:$0xff]   ;;  %v5089_v53 = vld [vmem:[%s5530_s5 + $0xd4] ss:$8 sps:$4 sm:$0xff]  }
  0x1c   : > { %v5085_v48 = vld [vmem:[%s6679_s1 + $0xe0] sm:$0xff]   ;;  %v5086_v51 = vld [vmem:[%s6679_s1 + $0x68] sm:$0xff]   ;;  %v5091_v57 = vld [vmem:[%s5530_s5 + $0x50] ss:$8 sps:$4 sm:$0xff]  }
  0x1d   : > { %599 = vmatpush1.bf16.msra.mxu0 %v5030_v5  ;;  %5007 = vmatpush1.bf16.msra.mxu1 %v5030_v5  ;;  %v5093_v54 = vld [vmem:[%s6679_s1 + $0x148] sm:$0xff]   ;;  %v5094_v55 = vld [vmem:[%s6679_s1 + $0x60] sm:$0xff]   ;;  %v5092_v58 = vld [vmem:[%s5530_s5 + $0xd0] ss:$8 sps:$4 sm:$0xff]  }
  0x1e   : > { %600 = vmatprep.subr.bf16.mxu0 %v5468_v1  ;;  %4994 = vmatprep.subr.bf16.mxu1 %v5468_v1  ;;  %v5095_v56 = vld [vmem:[%s6679_s1 + $0x140] sm:$0xff]   ;;  %v5100_v61 = vld [vmem:[%s6679_s1 + $0x58] sm:$0xff]   ;;  %v5104_v63 = vld [vmem:[%s6679_s1 + $0x50] sm:$0xff]  }
  0x1f   : > { %v5096_v59 = vld [vmem:[%s5530_s5 + $0x64] ss:$8 sps:$4 sm:$0xff]   ;;  %v5103_v62 = vld [vmem:[%s6679_s1 + $0x138] sm:$0xff]   ;;  %v5101_v0 = vld [vmem:[%s5530_s5 + $0x60] ss:$8 sps:$4 sm:$0xff]  }
  0x20   : > { %v5098_v60 = vld [vmem:[%s5530_s5 + $0xe4] ss:$8 sps:$4 sm:$0xff]   ;;  %v5105_v2 = vld [vmem:[%s6679_s1 + $0x130] sm:$0xff]   ;;  %v5102_v3 = vld [vmem:[%s5530_s5 + $0xe0] ss:$8 sps:$4 sm:$0xff]  }
  0x21   : > { %601 = vmatpush1.bf16.msra.mxu0 %v5031_v8  ;;  %5008 = vmatpush1.bf16.msra.mxu1 %v5031_v8  ;;  %v5106_v4 = vld [vmem:[%s5530_s5 + $0x74] ss:$8 sps:$4 sm:$0xff]   ;;  %v5112_v6 = vld [vmem:[%s6679_s1 + $0x48] sm:$0xff]   ;;  %v5114_v8 = vld [vmem:[%s6679_s1 + $0x40] sm:$0xff]  }
  0x22   : > { %602 = vmatprep.subr.bf16.mxu0 %v5468_v1  ;;  %4995 = vmatprep.subr.bf16.mxu1 %v5468_v1  ;;  %v5108_v5 = vld [vmem:[%s5530_s5 + $0xf4] ss:$8 sps:$4 sm:$0xff]   ;;  %v5113_v7 = vld [vmem:[%s6679_s1 + $0x128] sm:$0xff]  }
  0x25   : > { %603 = vmatpush1.bf16.msra.mxu0 %v5032_v9  ;;  %5009 = vmatpush1.bf16.msra.mxu1 %v5032_v9  ;;  %v5115_v9 = vld [vmem:[%s6679_s1 + $0x120] sm:$0xff]  }
  0x26   : > { %604 = vmatprep.subr.bf16.mxu0 %v5468_v1  ;;  %4996 = vmatprep.subr.bf16.mxu1 %v5468_v1 }
  0x29   : > { %605 = vmatpush1.bf16.msra.mxu0 %v5033_v10  ;;  %5010 = vmatpush1.bf16.msra.mxu1 %v5033_v10  ;;  %v5110_v10 = vld [vmem:[%s5530_s5 + $0x70] ss:$8 sps:$4 sm:$0xff]  }
  0x2a   : > { %610 = vmatprep.subr.bf16.mxu0 %v5468_v1  ;;  %4997 = vmatprep.subr.bf16.mxu1 %v5468_v1 }
  0x2d   : > { %611 = vmatpush2.bf16.msra.mxu0 %v5034_v11  ;;  %5011 = vmatpush2.bf16.msra.mxu1 %v5034_v11  ;;  %v5111_v11 = vld [vmem:[%s5530_s5 + $0xf0] ss:$8 sps:$4 sm:$0xff]   ;;  %s4859_s5 = sshll.u32 %s2261_s25, 3 }
  0x2e   : > { %612 = vmatprep.subr.bf16.mxu0 %v5468_v1  ;;  %4998 = vmatprep.subr.bf16.mxu1 %v5468_v1  ;;  %s5819_s14 = scalar_lea.vmem %s6678_s0, %s4859_s5  ;;  %s5999_s5 = scalar_lea.vmem %s6678_s0, %s4861_s23 }
  0x31   : > { %613 = vmatpush2.bf16.msra.mxu0 %v5035_v12  ;;  %5012 = vmatpush2.bf16.msra.mxu1 %v5035_v12  ;;  %v5118_v12 = vld [vmem:[%s5621_s24 + $0x4] ss:$8 sps:$4 sm:$0xff]  }
  0x32   : > { %614 = vmatprep.subr.bf16.mxu0 %v5468_v1  ;;  %4999 = vmatprep.subr.bf16.mxu1 %v5468_v1 }
  0x35   : > { %615 = vmatpush2.bf16.msra.mxu0 %v5036_v13  ;;  %5013 = vmatpush2.bf16.msra.mxu1 %v5036_v13  ;;  %v5121_v13 = vld [vmem:[%s5629_s27 + $0x4] ss:$8 sps:$4 sm:$0xff]  }
  0x36   : > { %616 = vmatprep.subr.bf16.mxu0 %v5468_v1  ;;  %5000 = vmatprep.subr.bf16.mxu1 %v5468_v1 }
  0x39   : > { %617 = vmatpush2.bf16.msra.mxu0 %v5037_v14  ;;  %5014 = vmatpush2.bf16.msra.mxu1 %v5037_v14  ;;  %v5116_v14 = vld [vmem:[%s5621_s24] ss:$8 sps:$4 sm:$0xff]  }
  0x3a   : > { %618 = vmatprep.subr.bf16.mxu0 %v5468_v1  ;;  %5001 = vmatprep.subr.bf16.mxu1 %v5468_v1 }
  0x3d   : > { %619 = vmatpush2.bf16.msra.mxu0 %v5038_v15  ;;  %5015 = vmatpush2.bf16.msra.mxu1 %v5038_v15  ;;  %v5119_v15 = vld [vmem:[%s5629_s27] ss:$8 sps:$4 sm:$0xff]  }
  0x3e   : > { %620 = vmatprep.subr.bf16.mxu0 %v5468_v1  ;;  %5002 = vmatprep.subr.bf16.mxu1 %v5468_v1 }
  0x41   : > { %621 = vmatpush2.bf16.msra.mxu0 %v5039_v16  ;;  %5016 = vmatpush2.bf16.msra.mxu1 %v5039_v16  ;;  %v5122_v16 = vld [vmem:[%s6679_s1 + $0x188] sm:$0xff]  }
  0x42   : > { %1027 = vmatprep.subr.bf16.mxu1 %v5468_v1  ;;  %1531 = vmatprep.subr.bf16.mxu0 %v5468_v1 }
  0x44   : > { %623 = vmatmul.mubr.bf16.vlgmr.msra.gmra.mxu0 %v5040_v17  ;;  %687 = vmatmul.mubr.bf16.vlgmr.msra.gmra.mxu1 %v5043_v18  ;;  %v5123_v17 = vld [vmem:[%s6679_s1 + $0x1f8] sm:$0xff]  }
  0x45   : > { %1028 = vmatpush1.bf16.msra.mxu1 %v5046_v19  ;;  %1532 = vmatpush1.bf16.msra.mxu0 %v5047_v20  ;;  %v5124_v18 = vld [vmem:[%s5621_s24 + $0x14] ss:$8 sps:$4 sm:$0xff]   ;;  %v5130_v20 = vld [vmem:[%s6679_s1 + $0x180] sm:$0xff]  }
  0x46   : > { %1029 = vmatprep.subr.bf16.mxu1 %v5468_v1  ;;  %4282 = vmatprep.mubr.msk.bf16.mxu0 %vm541_vm0, %v5049_v21  ;;  %v5126_v19 = vld [vmem:[%s5629_s27 + $0x14] ss:$8 sps:$4 sm:$0xff]  }
  0x47   : > { %4290 = vmatprep.mubr.msk.bf16.mxu1 %vm541_vm0, %v5051_v22  ;;  %1533 = vmatprep.subr.bf16.mxu0 %v5468_v1  ;;  %v5131_v21 = vld [vmem:[%s6679_s1 + $0x1f0] sm:$0xff]  }
  0x48   : > { %v5128_v22 = vld [vmem:[%s5621_s24 + $0x10] ss:$8 sps:$4 sm:$0xff]  }
  0x49   : > { %1030 = vmatpush1.bf16.msra.mxu1 %v5048_v23  ;;  %1534 = vmatpush1.bf16.msra.mxu0 %v5055_v24  ;;  %v5129_v23 = vld [vmem:[%s5629_s27 + $0x10] ss:$8 sps:$4 sm:$0xff]   ;;  %v5132_v24 = vld [vmem:[%s5621_s24 + $0x24] ss:$8 sps:$4 sm:$0xff]  }
  0x4a   : > { %1031 = vmatprep.subr.bf16.mxu1 %v5468_v1  ;;  %1535 = vmatprep.subr.bf16.mxu0 %v5468_v1 }
  0x4c   : > { %631 = vmatmul.mubr.bf16.gmra.mxu0 %v5053_v25  ;;  %695 = vmatmul.mubr.bf16.gmra.mxu1 %v5054_v26  ;;  %v5134_v25 = vld [vmem:[%s5629_s27 + $0x24] ss:$8 sps:$4 sm:$0xff]   ;;  %v5138_v26 = vld [vmem:[%s6679_s1 + $0x178] sm:$0xff]  }
  0x4d   : > { %1032 = vmatpush1.bf16.msra.mxu1 %v5056_v27  ;;  %1536 = vmatpush1.bf16.msra.mxu0 %v5057_v28  ;;  %v5139_v27 = vld [vmem:[%s6679_s1 + $0x1e8] sm:$0xff]  }
  0x4e   : > { %1033 = vmatprep.subr.bf16.mxu1 %v5468_v1  ;;  %4283 = vmatprep.mubr.msk.bf16.mxu0 %vm541_vm0, %v5058_v29  ;;  %v5136_v28 = vld [vmem:[%s5621_s24 + $0x20] ss:$8 sps:$4 sm:$0xff]  }
  0x4f   : > { %4291 = vmatprep.mubr.msk.bf16.mxu1 %vm541_vm0, %v5060_v30  ;;  %1537 = vmatprep.subr.bf16.mxu0 %v5468_v1  ;;  %v5137_v29 = vld [vmem:[%s5629_s27 + $0x20] ss:$8 sps:$4 sm:$0xff]   ;;  %v5146_v30 = vld [vmem:[%s6679_s1 + $0x170] sm:$0xff]  }
  0x51   : > { %1034 = vmatpush1.bf16.msra.mxu1 %v5062_v31  ;;  %1538 = vmatpush1.bf16.msra.mxu0 %v5065_v32  ;;  %v5151_v31 = vld [vmem:[%s6679_s1 + $0x1e0] sm:$0xff]   ;;  %v5140_v32 = vld [vmem:[%s5621_s24 + $0x34] ss:$8 sps:$4 sm:$0xff]  }
  0x52   : > { %1035 = vmatprep.subr.bf16.mxu1 %v5468_v1  ;;  %1539 = vmatprep.subr.bf16.mxu0 %v5468_v1 }
  0x54   : > { %639 = vmatmul.mubr.bf16.gmra.mxu0 %v5063_v33  ;;  %703 = vmatmul.mubr.bf16.gmra.mxu1 %v5064_v34  ;;  %v5142_v33 = vld [vmem:[%s5629_s27 + $0x34] ss:$8 sps:$4 sm:$0xff]   ;;  %v5154_v34 = vld [vmem:[%s6679_s1 + $0x168] sm:$0xff]  }
  0x55   : > { %1036 = vmatpush1.bf16.msra.mxu1 %v5066_v35  ;;  %1540 = vmatpush1.bf16.msra.mxu0 %v5067_v36  ;;  %v5161_v35 = vld [vmem:[%s6679_s1 + $0x1d8] sm:$0xff]   ;;  %v5166_v36 = vld [vmem:[%s6679_s1 + $0x160] sm:$0xff]  }
  0x56   : > { %4284 = vmatprep.mubr.msk.bf16.mxu0 %vm541_vm0, %v5068_v37  ;;  %4292 = vmatprep.mubr.msk.bf16.mxu1 %vm541_vm0, %v5070_v38  ;;  %v5144_v37 = vld [vmem:[%s5621_s24 + $0x30] ss:$8 sps:$4 sm:$0xff]  }
  0x57   : > { %1037 = vmatprep.subr.bf16.mxu1 %v5468_v1  ;;  %1541 = vmatprep.subr.bf16.mxu0 %v5468_v1  ;;  %v5169_v38 = vld [vmem:[%s6679_s1 + $0x1d0] sm:$0xff]  }
  0x59   : > { %1038 = vmatpush1.bf16.msra.mxu1 %v5074_v39  ;;  %1542 = vmatpush1.bf16.msra.mxu0 %v5075_v40  ;;  %v5145_v39 = vld [vmem:[%s5629_s27 + $0x30] ss:$8 sps:$4 sm:$0xff]   ;;  %v5147_v40 = vld [vmem:[%s5621_s24 + $0x44] ss:$8 sps:$4 sm:$0xff]  }
  0x5a   : > { %1039 = vmatprep.subr.bf16.mxu1 %v5468_v1  ;;  %1543 = vmatprep.subr.bf16.mxu0 %v5468_v1 }
  0x5c   : > { %647 = vmatmul.mubr.bf16.gmra.mxu0 %v5072_v41  ;;  %711 = vmatmul.mubr.bf16.gmra.mxu1 %v5073_v42  ;;  %v5149_v41 = vld [vmem:[%s5629_s27 + $0x44] ss:$8 sps:$4 sm:$0xff]   ;;  %v5176_v42 = vld [vmem:[%s6679_s1 + $0x158] sm:$0xff]  }
  0x5d   : > { %1040 = vmatpush1.bf16.msra.mxu1 %v5076_v43  ;;  %4285 = vmatprep.mubr.msk.bf16.mxu0 %vm541_vm0, %v5077_v44  ;;  %v5177_v43 = vld [vmem:[%s6679_s1 + $0x1c8] sm:$0xff]   ;;  %v5184_v44 = vld [vmem:[%s6679_s1 + $0x150] sm:$0xff]  }
  0x5e   : > { %4293 = vmatprep.mubr.msk.bf16.mxu1 %vm541_vm0, %v5079_v45  ;;  %1544 = vmatpush1.bf16.msra.mxu0 %v5081_v46  ;;  %v5152_v45 = vld [vmem:[%s5621_s24 + $0x40] ss:$8 sps:$4 sm:$0xff]  }
  0x5f   : > { %1041 = vmatprep.subr.bf16.mxu1 %v5468_v1  ;;  %1545 = vmatprep.subr.bf16.mxu0 %v5468_v1  ;;  %v5185_v46 = vld [vmem:[%s6679_s1 + $0x1c0] sm:$0xff]  }
  0x61   : > { %1042 = vmatpush1.bf16.msra.mxu1 %v5084_v47  ;;  %v5153_v47 = vld [vmem:[%s5629_s27 + $0x40] ss:$8 sps:$4 sm:$0xff]  }
  0x62   : > { %1546 = vmatpush1.bf16.msra.mxu0 %v5085_v48  ;;  %1047 = vmatprep.subr.bf16.mxu1 %v5468_v1  ;;  %v5155_v48 = vld [vmem:[%s5621_s24 + $0x54] ss:$8 sps:$4 sm:$0xff]  }
  0x63   : > { %1551 = vmatprep.subr.bf16.mxu0 %v5468_v1 }
  0x64   : > { %655 = vmatmul.mubr.bf16.gmra.mxu0 %v5082_v49  ;;  %719 = vmatmul.mubr.bf16.gmra.mxu1 %v5083_v50  ;;  %v5157_v49 = vld [vmem:[%s5629_s27 + $0x54] ss:$8 sps:$4 sm:$0xff]  }
  0x65   : > { %1048 = vmatpush2.bf16.msra.mxu1 %v5086_v51  ;;  %4286 = vmatprep.mubr.msk.bf16.mxu0 %vm541_vm0, %v5087_v52  ;;  %v5192_v50 = vld [vmem:[%s6679_s1 + $0x1b8] sm:$0xff]   ;;  %v5193_v51 = vld [vmem:[%s6679_s1 + $0x228] sm:$0xff]   ;;  %v5200_v52 = vld [vmem:[%s6679_s1 + $0x1b0] sm:$0xff]  }
  0x66   : > { %4294 = vmatprep.mubr.msk.bf16.mxu1 %vm541_vm0, %v5089_v53  ;;  %1552 = vmatpush2.bf16.msra.mxu0 %v5093_v54  ;;  %v5159_v53 = vld [vmem:[%s5621_s24 + $0x50] ss:$8 sps:$4 sm:$0xff]  }
  0x67   : > { %1049 = vmatprep.subr.bf16.mxu1 %v5468_v1  ;;  %1553 = vmatprep.subr.bf16.mxu0 %v5468_v1  ;;  %v5160_v54 = vld [vmem:[%s5629_s27 + $0x50] ss:$8 sps:$4 sm:$0xff]  }
  0x69   : > { %1050 = vmatpush2.bf16.msra.mxu1 %v5094_v55  ;;  %v5201_v55 = vld [vmem:[%s6679_s1 + $0x220] sm:$0xff]  }
  0x6a   : > { %1554 = vmatpush2.bf16.msra.mxu0 %v5095_v56  ;;  %1051 = vmatprep.subr.bf16.mxu1 %v5468_v1  ;;  %v5162_v56 = vld [vmem:[%s5621_s24 + $0x64] ss:$8 sps:$4 sm:$0xff]  }
  0x6b   : > { %1555 = vmatprep.subr.bf16.mxu0 %v5468_v1 }
  0x6c   : > { %663 = vmatmul.mubr.bf16.gmra.mxu0 %v5091_v57  ;;  %727 = vmatmul.mubr.bf16.gmra.mxu1 %v5092_v58  ;;  %v5164_v57 = vld [vmem:[%s5629_s27 + $0x64] ss:$8 sps:$4 sm:$0xff]  }
  0x6d   : > { %4287 = vmatprep.mubr.msk.bf16.mxu0 %vm541_vm0, %v5096_v59  ;;  %4295 = vmatprep.mubr.msk.bf16.mxu1 %vm541_vm0, %v5098_v60  ;;  %v5208_v58 = vld [vmem:[%s6679_s1 + $0x1a8] sm:$0xff]   ;;  %v5213_v59 = vld [vmem:[%s6679_s1 + $0x218] sm:$0xff]   ;;  %v5216_v60 = vld [vmem:[%s6679_s1 + $0x1a0] sm:$0xff]  }
  0x6e   : > { %1052 = vmatpush2.bf16.msra.mxu1 %v5100_v61  ;;  %1556 = vmatpush2.bf16.msra.mxu0 %v5103_v62  ;;  %v5223_v61 = vld [vmem:[%s6679_s1 + $0x210] sm:$0xff]   ;;  %v5167_v62 = vld [vmem:[%s5621_s24 + $0x60] ss:$8 sps:$4 sm:$0xff]  }
  0x6f   : > { %1053 = vmatprep.subr.bf16.mxu1 %v5468_v1  ;;  %1557 = vmatprep.subr.bf16.mxu0 %v5468_v1 }
  0x72   : > { %1054 = vmatpush2.bf16.msra.mxu1 %v5104_v63  ;;  %1558 = vmatpush2.bf16.msra.mxu0 %v5105_v2  ;;  %v5168_v63 = vld [vmem:[%s5629_s27 + $0x60] ss:$8 sps:$4 sm:$0xff]   ;;  %v5172_v2 = vld [vmem:[%s5629_s27 + $0x74] ss:$8 sps:$4 sm:$0xff]  }
  0x73   : > { %1055 = vmatprep.subr.bf16.mxu1 %v5468_v1  ;;  %1559 = vmatprep.subr.bf16.mxu0 %v5468_v1 }
  0x74   : > { %671 = vmatmul.mubr.bf16.gmra.mxu0 %v5101_v0  ;;  %735 = vmatmul.mubr.bf16.gmra.mxu1 %v5102_v3  ;;  %v5170_v0 = vld [vmem:[%s5621_s24 + $0x74] ss:$8 sps:$4 sm:$0xff]  }
  0x75   : > { %4288 = vmatprep.mubr.msk.bf16.mxu0 %vm541_vm0, %v5106_v4  ;;  %4296 = vmatprep.mubr.msk.bf16.mxu1 %vm541_vm0, %v5108_v5  ;;  %v5228_v3 = vld [vmem:[%s6679_s1 + $0x198] sm:$0xff]   ;;  %v5231_v4 = vld [vmem:[%s6679_s1 + $0x208] sm:$0xff]   ;;  %v5238_v5 = vld [vmem:[%s6679_s1 + $0x190] sm:$0xff]  }
  0x76   : > { %1056 = vmatpush2.bf16.msra.mxu1 %v5112_v6  ;;  %1560 = vmatpush2.bf16.msra.mxu0 %v5113_v7  ;;  %v5239_v6 = vld [vmem:[%s6679_s1 + $0x200] sm:$0xff]   ;;  %v5174_v7 = vld [vmem:[%s5621_s24 + $0x70] ss:$8 sps:$4 sm:$0xff]  }
  0x77   : > { %1057 = vmatprep.subr.bf16.mxu1 %v5468_v1  ;;  %1561 = vmatprep.subr.bf16.mxu0 %v5468_v1 }
  0x7a   : > { %1058 = vmatpush2.bf16.msra.mxu1 %v5114_v8  ;;  %1562 = vmatpush2.bf16.msra.mxu0 %v5115_v9  ;;  %v5175_v8 = vld [vmem:[%s5629_s27 + $0x70] ss:$8 sps:$4 sm:$0xff]   ;;  %v5178_v9 = vld [vmem:[%s5621_s24 + $0x84] ss:$8 sps:$4 sm:$0xff]  }
  0x7b   : > { %2067 = vmatprep.subr.bf16.mxu1 %v5468_v1  ;;  %2603 = vmatprep.subr.bf16.mxu0 %v5468_v1 }
  0x7c   : > { %679 = vmatmul.mubr.bf16.gmra.mxu0 %v5110_v10  ;;  %743 = vmatmul.mubr.bf16.gmra.mxu1 %v5111_v11  ;;  %v5180_v10 = vld [vmem:[%s5629_s27 + $0x84] ss:$8 sps:$4 sm:$0xff]   ;;  %v5182_v11 = vld [vmem:[%s5621_s24 + $0x80] ss:$8 sps:$4 sm:$0xff]  }
  0x7d   : > { %4343 = vmatprep.mubr.msk.bf16.mxu1 %vm541_vm0, %v5118_v12  ;;  %4435 = vmatprep.mubr.msk.bf16.mxu0 %vm541_vm0, %v5121_v13  ;;  %v5183_v12 = vld [vmem:[%s5629_s27 + $0x80] ss:$8 sps:$4 sm:$0xff]   ;;  %v5186_v13 = vld [vmem:[%s5621_s24 + $0x94] ss:$8 sps:$4 sm:$0xff]  }
  0x84   : > { %1060 = vmatmul.mubr.bf16.vlgmr.msra.gmra.mxu1 %v5116_v14  ;;  %1564 = vmatmul.mubr.bf16.vlgmr.msra.gmra.mxu0 %v5119_v15  ;;  %v5188_v14 = vld [vmem:[%s5629_s27 + $0x94] ss:$8 sps:$4 sm:$0xff]   ;;  %v5190_v15 = vld [vmem:[%s5621_s24 + $0x90] ss:$8 sps:$4 sm:$0xff]  }
  0x85   : > { %2068 = vmatpush1.bf16.msra.mxu1 %v5122_v16  ;;  %2604 = vmatpush1.bf16.msra.mxu0 %v5123_v17  ;;  %v5191_v16 = vld [vmem:[%s5629_s27 + $0x90] ss:$8 sps:$4 sm:$0xff]   ;;  %v5194_v17 = vld [vmem:[%s5621_s24 + $0xa4] ss:$8 sps:$4 sm:$0xff]  }
  0x86   : > { %4344 = vmatprep.mubr.msk.bf16.mxu1 %vm541_vm0, %v5124_v18  ;;  %4436 = vmatprep.mubr.msk.bf16.mxu0 %vm541_vm0, %v5126_v19  ;;  %v5196_v18 = vld [vmem:[%s5629_s27 + $0xa4] ss:$8 sps:$4 sm:$0xff]   ;;  %v5198_v19 = vld [vmem:[%s5621_s24 + $0xa0] ss:$8 sps:$4 sm:$0xff]  }
  0x87   : > { %2069 = vmatprep.subr.bf16.mxu1 %v5468_v1  ;;  %2605 = vmatprep.subr.bf16.mxu0 %v5468_v1 }
  0x89   : > { %2070 = vmatpush1.bf16.msra.mxu1 %v5130_v20  ;;  %2606 = vmatpush1.bf16.msra.mxu0 %v5131_v21  ;;  %v5199_v20 = vld [vmem:[%s5629_s27 + $0xa0] ss:$8 sps:$4 sm:$0xff]   ;;  %v5202_v21 = vld [vmem:[%s5621_s24 + $0xb4] ss:$8 sps:$4 sm:$0xff]  }
  0x8a   : > { %2071 = vmatprep.subr.bf16.mxu1 %v5468_v1  ;;  %2607 = vmatprep.subr.bf16.mxu0 %v5468_v1 }
  0x8c   : > { %1068 = vmatmul.mubr.bf16.gmra.mxu1 %v5128_v22  ;;  %1572 = vmatmul.mubr.bf16.gmra.mxu0 %v5129_v23  ;;  %v5204_v22 = vld [vmem:[%s5629_s27 + $0xb4] ss:$8 sps:$4 sm:$0xff]   ;;  %v5206_v23 = vld [vmem:[%s5621_s24 + $0xb0] ss:$8 sps:$4 sm:$0xff]  }
  0x8d   : > { %4345 = vmatprep.mubr.msk.bf16.mxu1 %vm541_vm0, %v5132_v24  ;;  %4437 = vmatprep.mubr.msk.bf16.mxu0 %vm541_vm0, %v5134_v25  ;;  %v5207_v24 = vld [vmem:[%s5629_s27 + $0xb0] ss:$8 sps:$4 sm:$0xff]   ;;  %v5209_v25 = vld [vmem:[%s5621_s24 + $0xc4] ss:$8 sps:$4 sm:$0xff]  }
  0x8e   : > { %2072 = vmatpush1.bf16.msra.mxu1 %v5138_v26  ;;  %2608 = vmatpush1.bf16.msra.mxu0 %v5139_v27  ;;  %v5211_v26 = vld [vmem:[%s5629_s27 + $0xc4] ss:$8 sps:$4 sm:$0xff]   ;;  %v5214_v27 = vld [vmem:[%s5621_s24 + $0xc0] ss:$8 sps:$4 sm:$0xff]  }
  0x8f   : > { %2073 = vmatprep.subr.bf16.mxu1 %v5468_v1  ;;  %2609 = vmatprep.subr.bf16.mxu0 %v5468_v1 }
  0x92   : > { %2074 = vmatpush1.bf16.msra.mxu1 %v5146_v30  ;;  %2610 = vmatpush1.bf16.msra.mxu0 %v5151_v31  ;;  %v5219_v30 = vld [vmem:[%s5629_s27 + $0xd4] ss:$8 sps:$4 sm:$0xff]   ;;  %v5221_v31 = vld [vmem:[%s5621_s24 + $0xd0] ss:$8 sps:$4 sm:$0xff]  }
  0x93   : > { %2075 = vmatprep.subr.bf16.mxu1 %v5468_v1  ;;  %2611 = vmatprep.subr.bf16.mxu0 %v5468_v1 }
  0x94   : > { %1076 = vmatmul.mubr.bf16.gmra.mxu1 %v5136_v28  ;;  %1580 = vmatmul.mubr.bf16.gmra.mxu0 %v5137_v29  ;;  %v5215_v28 = vld [vmem:[%s5629_s27 + $0xc0] ss:$8 sps:$4 sm:$0xff]   ;;  %v5217_v29 = vld [vmem:[%s5621_s24 + $0xd4] ss:$8 sps:$4 sm:$0xff]  }
  0x95   : > { %4346 = vmatprep.mubr.msk.bf16.mxu1 %vm541_vm0, %v5140_v32  ;;  %4438 = vmatprep.mubr.msk.bf16.mxu0 %vm541_vm0, %v5142_v33  ;;  %v5222_v32 = vld [vmem:[%s5629_s27 + $0xd0] ss:$8 sps:$4 sm:$0xff]   ;;  %v5224_v33 = vld [vmem:[%s5621_s24 + $0xe4] ss:$8 sps:$4 sm:$0xff]  }
  0x96   : > { %2076 = vmatpush1.bf16.msra.mxu1 %v5154_v34  ;;  %2612 = vmatpush1.bf16.msra.mxu0 %v5161_v35  ;;  %v5226_v34 = vld [vmem:[%s5629_s27 + $0xe4] ss:$8 sps:$4 sm:$0xff]   ;;  %v5229_v35 = vld [vmem:[%s5621_s24 + $0xe0] ss:$8 sps:$4 sm:$0xff]  }
  0x97   : > { %2077 = vmatprep.subr.bf16.mxu1 %v5468_v1  ;;  %2613 = vmatprep.subr.bf16.mxu0 %v5468_v1 }
  0x9a   : > { %2078 = vmatpush1.bf16.msra.mxu1 %v5166_v36  ;;  %2614 = vmatpush1.bf16.msra.mxu0 %v5169_v38  ;;  %v5230_v36 = vld [vmem:[%s5629_s27 + $0xe0] ss:$8 sps:$4 sm:$0xff]   ;;  %v5234_v38 = vld [vmem:[%s5629_s27 + $0xf4] ss:$8 sps:$4 sm:$0xff]  }
  0x9b   : > { %2079 = vmatprep.subr.bf16.mxu1 %v5468_v1  ;;  %2615 = vmatprep.subr.bf16.mxu0 %v5468_v1 }
  0x9c   : > { %1084 = vmatmul.mubr.bf16.gmra.mxu1 %v5144_v37  ;;  %1588 = vmatmul.mubr.bf16.gmra.mxu0 %v5145_v39  ;;  %v5232_v37 = vld [vmem:[%s5621_s24 + $0xf4] ss:$8 sps:$4 sm:$0xff]   ;;  %v5236_v39 = vld [vmem:[%s5621_s24 + $0xf0] ss:$8 sps:$4 sm:$0xff]  }
  0x9d   : > { %4347 = vmatprep.mubr.msk.bf16.mxu1 %vm541_vm0, %v5147_v40  ;;  %4439 = vmatprep.mubr.msk.bf16.mxu0 %vm541_vm0, %v5149_v41  ;;  %v5237_v40 = vld [vmem:[%s5629_s27 + $0xf0] ss:$8 sps:$4 sm:$0xff]   ;;  %v5242_v41 = vld [vmem:[%s5811_s9 + $0x4] ss:$8 sps:$4 sm:$0xff]  }
  0x9e   : > { %2080 = vmatpush1.bf16.msra.mxu1 %v5176_v42  ;;  %2616 = vmatpush1.bf16.msra.mxu0 %v5177_v43  ;;  %v5245_v42 = vld [vmem:[%s5819_s14 + $0x4] ss:$8 sps:$4 sm:$0xff]   ;;  %v5240_v43 = vld [vmem:[%s5811_s9] ss:$8 sps:$4 sm:$0xff]  }
  0x9f   : > { %2081 = vmatprep.subr.bf16.mxu1 %v5468_v1  ;;  %2617 = vmatprep.subr.bf16.mxu0 %v5468_v1 }
  0xa2   : > { %2082 = vmatpush1.bf16.msra.mxu1 %v5184_v44  ;;  %2618 = vmatpush1.bf16.msra.mxu0 %v5185_v46  ;;  %v5243_v44 = vld [vmem:[%s5819_s14] ss:$8 sps:$4 sm:$0xff]   ;;  %v5247_v46 = vld [vmem:[%s6679_s1 + $0x2d8] sm:$0xff]  }
  0xa3   : > { %2087 = vmatprep.subr.bf16.mxu1 %v5468_v1  ;;  %2623 = vmatprep.subr.bf16.mxu0 %v5468_v1 }
  0xa4   : > { %1092 = vmatmul.mubr.bf16.gmra.mxu1 %v5152_v45  ;;  %1596 = vmatmul.mubr.bf16.gmra.mxu0 %v5153_v47  ;;  %v5246_v45 = vld [vmem:[%s6679_s1 + $0x268] sm:$0xff]   ;;  %v5248_v47 = vld [vmem:[%s5811_s9 + $0x14] ss:$8 sps:$4 sm:$0xff]  }
  0xa5   : > { %4348 = vmatprep.mubr.msk.bf16.mxu1 %vm541_vm0, %v5155_v48  ;;  %4440 = vmatprep.mubr.msk.bf16.mxu0 %vm541_vm0, %v5157_v49  ;;  %v5250_v48 = vld [vmem:[%s5819_s14 + $0x14] ss:$8 sps:$4 sm:$0xff]   ;;  %v5254_v49 = vld [vmem:[%s6679_s1 + $0x260] sm:$0xff]  }
  0xa6   : > { %2088 = vmatpush2.bf16.msra.mxu1 %v5192_v50  ;;  %2624 = vmatpush2.bf16.msra.mxu0 %v5193_v51  ;;  %v5255_v50 = vld [vmem:[%s6679_s1 + $0x2d0] sm:$0xff]  }
  0xa7   : > { %2089 = vmatprep.subr.bf16.mxu1 %v5468_v1  ;;  %2625 = vmatprep.subr.bf16.mxu0 %v5468_v1 }
  0xaa   : > { %2090 = vmatpush2.bf16.msra.mxu1 %v5200_v52  ;;  %2626 = vmatpush2.bf16.msra.mxu0 %v5201_v55  ;;  %v5252_v55 = vld [vmem:[%s5811_s9 + $0x10] ss:$8 sps:$4 sm:$0xff]  }
  0xab   : > { %2091 = vmatprep.subr.bf16.mxu1 %v5468_v1  ;;  %2627 = vmatprep.subr.bf16.mxu0 %v5468_v1 }
  0xac   : > { %1100 = vmatmul.mubr.bf16.gmra.mxu1 %v5159_v53  ;;  %1604 = vmatmul.mubr.bf16.gmra.mxu0 %v5160_v54 }
  0xad   : > { %4349 = vmatprep.mubr.msk.bf16.mxu1 %vm541_vm0, %v5162_v56  ;;  %4441 = vmatprep.mubr.msk.bf16.mxu0 %vm541_vm0, %v5164_v57  ;;  %v5253_v56 = vld [vmem:[%s5819_s14 + $0x10] ss:$8 sps:$4 sm:$0xff]  }
  0xae   : > { %2092 = vmatpush2.bf16.msra.mxu1 %v5208_v58  ;;  %2628 = vmatpush2.bf16.msra.mxu0 %v5213_v59  ;;  %v5256_v59 = vld [vmem:[%s5811_s9 + $0x24] ss:$8 sps:$4 sm:$0xff]  }
  0xaf   : > { %2093 = vmatprep.subr.bf16.mxu1 %v5468_v1  ;;  %2629 = vmatprep.subr.bf16.mxu0 %v5468_v1 }
  0xb2   : > { %2094 = vmatpush2.bf16.msra.mxu1 %v5216_v60  ;;  %2630 = vmatpush2.bf16.msra.mxu0 %v5223_v61  ;;  %v5258_v60 = vld [vmem:[%s5819_s14 + $0x24] ss:$8 sps:$4 sm:$0xff]  }
  0xb3   : > { %2095 = vmatprep.subr.bf16.mxu1 %v5468_v1  ;;  %2631 = vmatprep.subr.bf16.mxu0 %v5468_v1 }
  0xb4   : > { %1108 = vmatmul.mubr.bf16.gmra.mxu1 %v5167_v62  ;;  %1612 = vmatmul.mubr.bf16.gmra.mxu0 %v5168_v63  ;;  %v5262_v63 = vld [vmem:[%s6679_s1 + $0x258] sm:$0xff]  }
  0xb5   : > { %4350 = vmatprep.mubr.msk.bf16.mxu1 %vm541_vm0, %v5170_v0  ;;  %4442 = vmatprep.mubr.msk.bf16.mxu0 %vm541_vm0, %v5172_v2  ;;  %v5263_v0 = vld [vmem:[%s6679_s1 + $0x2c8] sm:$0xff]  }
  0xb6   : > { %2096 = vmatpush2.bf16.msra.mxu1 %v5228_v3  ;;  %2632 = vmatpush2.bf16.msra.mxu0 %v5231_v4  ;;  %v5270_v4 = vld [vmem:[%s6679_s1 + $0x250] sm:$0xff]  }
  0xb7   : > { %2097 = vmatprep.subr.bf16.mxu1 %v5468_v1  ;;  %2633 = vmatprep.subr.bf16.mxu0 %v5468_v1 }
  0xba   : > { %2098 = vmatpush2.bf16.msra.mxu1 %v5238_v5  ;;  %2634 = vmatpush2.bf16.msra.mxu0 %v5239_v6  ;;  %v5275_v5 = vld [vmem:[%s6679_s1 + $0x2c0] sm:$0xff]  }
  0xbb   : > { %3139 = vmatprep.subr.bf16.mxu1 %v5468_v1  ;;  %3675 = vmatprep.subr.bf16.mxu0 %v5468_v1 }
  0xbc   : > { %1116 = vmatmul.mubr.bf16.gmra.mxu1 %v5174_v7  ;;  %1620 = vmatmul.mubr.bf16.gmra.mxu0 %v5175_v8  ;;  %v5260_v8 = vld [vmem:[%s5811_s9 + $0x20] ss:$8 sps:$4 sm:$0xff]  }
  0xbd   : > { %4351 = vmatprep.mubr.msk.bf16.mxu1 %vm541_vm0, %v5178_v9  ;;  %4443 = vmatprep.mubr.msk.bf16.mxu0 %vm541_vm0, %v5180_v10  ;;  %v5261_v9 = vld [vmem:[%s5819_s14 + $0x20] ss:$8 sps:$4 sm:$0xff]  }
  0xc4   : > { %1124 = vmatmul.mubr.bf16.gmra.mxu1 %v5182_v11  ;;  %1628 = vmatmul.mubr.bf16.gmra.mxu0 %v5183_v12  ;;  %v5264_v12 = vld [vmem:[%s5811_s9 + $0x34] ss:$8 sps:$4 sm:$0xff]  }
  0xc5   : > { %4352 = vmatprep.mubr.msk.bf16.mxu1 %vm541_vm0, %v5186_v13  ;;  %4444 = vmatprep.mubr.msk.bf16.mxu0 %vm541_vm0, %v5188_v14  ;;  %v5266_v13 = vld [vmem:[%s5819_s14 + $0x34] ss:$8 sps:$4 sm:$0xff]  }
  0xcc   : > { %1132 = vmatmul.mubr.bf16.gmra.mxu1 %v5190_v15  ;;  %1636 = vmatmul.mubr.bf16.gmra.mxu0 %v5191_v16  ;;  %v5278_v16 = vld [vmem:[%s6679_s1 + $0x248] sm:$0xff]  }
  0xcd   : > { %4353 = vmatprep.mubr.msk.bf16.mxu1 %vm541_vm0, %v5194_v17  ;;  %4445 = vmatprep.mubr.msk.bf16.mxu0 %vm541_vm0, %v5196_v18  ;;  %v5285_v17 = vld [vmem:[%s6679_s1 + $0x2b8] sm:$0xff]  }
  0xd4   : > { %1140 = vmatmul.mubr.bf16.gmra.mxu1 %v5198_v19  ;;  %1644 = vmatmul.mubr.bf16.gmra.mxu0 %v5199_v20  ;;  %v5290_v20 = vld [vmem:[%s6679_s1 + $0x240] sm:$0xff]  }
  0xd5   : > { %4354 = vmatprep.mubr.msk.bf16.mxu1 %vm541_vm0, %v5202_v21  ;;  %4446 = vmatprep.mubr.msk.bf16.mxu0 %vm541_vm0, %v5204_v22  ;;  %v5293_v21 = vld [vmem:[%s6679_s1 + $0x2b0] sm:$0xff]  }
  0xdc   : > { %1148 = vmatmul.mubr.bf16.gmra.mxu1 %v5206_v23  ;;  %1652 = vmatmul.mubr.bf16.gmra.mxu0 %v5207_v24  ;;  %v5268_v24 = vld [vmem:[%s5811_s9 + $0x30] ss:$8 sps:$4 sm:$0xff]  }
  0xdd   : > { %4355 = vmatprep.mubr.msk.bf16.mxu1 %vm541_vm0, %v5209_v25  ;;  %4447 = vmatprep.mubr.msk.bf16.mxu0 %vm541_vm0, %v5211_v26  ;;  %v5269_v25 = vld [vmem:[%s5819_s14 + $0x30] ss:$8 sps:$4 sm:$0xff]  }
  0xe4   : > { %1156 = vmatmul.mubr.bf16.gmra.mxu1 %v5214_v27  ;;  %1660 = vmatmul.mubr.bf16.gmra.mxu0 %v5215_v28  ;;  %v5271_v28 = vld [vmem:[%s5811_s9 + $0x44] ss:$8 sps:$4 sm:$0xff]  }
  0xe5   : > { %4356 = vmatprep.mubr.msk.bf16.mxu1 %vm541_vm0, %v5217_v29  ;;  %4448 = vmatprep.mubr.msk.bf16.mxu0 %vm541_vm0, %v5219_v30  ;;  %v5273_v29 = vld [vmem:[%s5819_s14 + $0x44] ss:$8 sps:$4 sm:$0xff]  }
  0xec   : > { %1164 = vmatmul.mubr.bf16.gmra.mxu1 %v5221_v31  ;;  %1668 = vmatmul.mubr.bf16.gmra.mxu0 %v5222_v32  ;;  %v5300_v32 = vld [vmem:[%s6679_s1 + $0x238] sm:$0xff]  }
  0xed   : > { %4357 = vmatprep.mubr.msk.bf16.mxu1 %vm541_vm0, %v5224_v33  ;;  %4449 = vmatprep.mubr.msk.bf16.mxu0 %vm541_vm0, %v5226_v34  ;;  %v5301_v33 = vld [vmem:[%s6679_s1 + $0x2a8] sm:$0xff]  }
  0xf4   : > { %1172 = vmatmul.mubr.bf16.gmra.mxu1 %v5229_v35  ;;  %1676 = vmatmul.mubr.bf16.gmra.mxu0 %v5230_v36 }
  0xf5   : > { %4358 = vmatprep.mubr.msk.bf16.mxu1 %vm541_vm0, %v5232_v37  ;;  %4450 = vmatprep.mubr.msk.bf16.mxu0 %vm541_vm0, %v5234_v38  ;;  %v5308_v38 = vld [vmem:[%s6679_s1 + $0x230] sm:$0xff]  }
  0xfc   : > { %1180 = vmatmul.mubr.bf16.gmra.mxu1 %v5236_v39  ;;  %1684 = vmatmul.mubr.bf16.gmra.mxu0 %v5237_v40  ;;  %v5309_v39 = vld [vmem:[%s6679_s1 + $0x2a0] sm:$0xff]  }
  0xfd   : > { %4527 = vmatprep.mubr.msk.bf16.mxu1 %vm541_vm0, %v5242_v41  ;;  %4619 = vmatprep.mubr.msk.bf16.mxu0 %vm541_vm0, %v5245_v42  ;;  %v5276_v42 = vld [vmem:[%s5811_s9 + $0x40] ss:$8 sps:$4 sm:$0xff]  }
 0x104   : > { %v6008_v51 = vpop.f32.mrf.mxu0  ;;  %v6010_v52 = vpop.f32.mrf.mxu1  ;;  %2100 = vmatmul.mubr.bf16.vlgmr.msra.gmra.mxu1 %v5240_v43  ;;  %2636 = vmatmul.mubr.bf16.vlgmr.msra.gmra.mxu0 %v5243_v44  ;;  %v5277_v43 = vld [vmem:[%s5819_s14 + $0x40] ss:$8 sps:$4 sm:$0xff]   ;;  %v5279_v44 = vld [vmem:[%s5811_s9 + $0x54] ss:$8 sps:$4 sm:$0xff]  }
 0x105   : > { %3140 = vmatpush1.bf16.msra.mxu1 %v5246_v45  ;;  %3676 = vmatpush1.bf16.msra.mxu0 %v5247_v46  ;;  %v5281_v45 = vld [vmem:[%s5819_s14 + $0x54] ss:$8 sps:$4 sm:$0xff]  }
 0x106   : > { %v626_v53 = vpop.f32.mrf.mxu0  ;;  %v690_v54 = vpop.f32.mrf.mxu1  ;;  %4528 = vmatprep.mubr.msk.bf16.mxu1 %vm541_vm0, %v5248_v47  ;;  %4620 = vmatprep.mubr.msk.bf16.mxu0 %vm541_vm0, %v5250_v48  ;;  %v5316_v48 = vld [vmem:[%s6679_s1 + $0x298] sm:$0xff]  }
 0x107   : > { %3141 = vmatprep.subr.bf16.mxu1 %v5468_v1  ;;  %3677 = vmatprep.subr.bf16.mxu0 %v5468_v1 }
 0x108   : > { %v6018_v57 = vpop.f32.mrf.mxu0  ;;  %v6020_v58 = vpop.f32.mrf.mxu1 }
 0x109   : > { %3142 = vmatpush1.bf16.msra.mxu1 %v5254_v49  ;;  %3678 = vmatpush1.bf16.msra.mxu0 %v5255_v50  ;;  %v5317_v49 = vld [vmem:[%s6679_s1 + $0x308] sm:$0xff]  }
 0x10a   : > { %v629_v61 = vpop.f32.mrf.mxu0  ;;  %v693_v62 = vpop.f32.mrf.mxu1  ;;  %3143 = vmatprep.subr.bf16.mxu1 %v5468_v1  ;;  %3679 = vmatprep.subr.bf16.mxu0 %v5468_v1 }
 0x10b   : > { %v5283_v62 = vld [vmem:[%s5811_s9 + $0x50] ss:$8 sps:$4 sm:$0xff]  }
 0x10c   : > { %v6032_v2 = vpop.f32.mrf.mxu0  ;;  %v6034_v3 = vpop.f32.mrf.mxu1  ;;  %2108 = vmatmul.mubr.bf16.gmra.mxu1 %v5252_v55  ;;  %2644 = vmatmul.mubr.bf16.gmra.mxu0 %v5253_v56  ;;  %v5324_v56 = vld [vmem:[%s6679_s1 + $0x290] sm:$0xff]  }
 0x10d   : > { %4529 = vmatprep.mubr.msk.bf16.mxu1 %vm541_vm0, %v5256_v59  ;;  %4621 = vmatprep.mubr.msk.bf16.mxu0 %vm541_vm0, %v5258_v60  ;;  %v5325_v59 = vld [vmem:[%s6679_s1 + $0x300] sm:$0xff]  }
 0x10e   : > { %v634_v6 = vpop.f32.mrf.mxu0  ;;  %v698_v7 = vpop.f32.mrf.mxu1  ;;  %3144 = vmatpush1.bf16.msra.mxu1 %v5262_v63  ;;  %3680 = vmatpush1.bf16.msra.mxu0 %v5263_v0  ;;  %v5284_v63 = vld [vmem:[%s5819_s14 + $0x50] ss:$8 sps:$4 sm:$0xff]   ;;  %v5286_v0 = vld [vmem:[%s5811_s9 + $0x64] ss:$8 sps:$4 sm:$0xff]  }
 0x10f   : > { %3145 = vmatprep.subr.bf16.mxu1 %v5468_v1  ;;  %3681 = vmatprep.subr.bf16.mxu0 %v5468_v1  ;;  %v5332_v7 = vld [vmem:[%s6679_s1 + $0x288] sm:$0xff]  }
 0x110   : > { %v6048_v10 = vpop.f32.mrf.mxu0  ;;  %v6050_v11 = vpop.f32.mrf.mxu1 }
 0x112   : > { %v637_v14 = vpop.f32.mrf.mxu0  ;;  %v701_v15 = vpop.f32.mrf.mxu1  ;;  %3146 = vmatpush1.bf16.msra.mxu1 %v5270_v4  ;;  %3682 = vmatpush1.bf16.msra.mxu0 %v5275_v5  ;;  %v5288_v4 = vld [vmem:[%s5819_s14 + $0x64] ss:$8 sps:$4 sm:$0xff]  }
 0x113   : > { %3147 = vmatprep.subr.bf16.mxu1 %v5468_v1  ;;  %3683 = vmatprep.subr.bf16.mxu0 %v5468_v1  ;;  %v5340_v15 = vld [vmem:[%s6679_s1 + $0x280] sm:$0xff]  }
 0x114   : > { %v6062_v18 = vpop.f32.mrf.mxu0  ;;  %v6064_v19 = vpop.f32.mrf.mxu1  ;;  %2116 = vmatmul.mubr.bf16.gmra.mxu1 %v5260_v8  ;;  %2652 = vmatmul.mubr.bf16.gmra.mxu0 %v5261_v9  ;;  %v5337_v8 = vld [vmem:[%s6679_s1 + $0x2f8] sm:$0xff]  }
 0x115   : > { %4530 = vmatprep.mubr.msk.bf16.mxu1 %vm541_vm0, %v5264_v12  ;;  %4622 = vmatprep.mubr.msk.bf16.mxu0 %vm541_vm0, %v5266_v13 }
 0x116   : > { %v642_v22 = vpop.f32.mrf.mxu0  ;;  %v706_v23 = vpop.f32.mrf.mxu1  ;;  %3148 = vmatpush1.bf16.msra.mxu1 %v5278_v16  ;;  %3684 = vmatpush1.bf16.msra.mxu0 %v5285_v17  ;;  %v5347_v16 = vld [vmem:[%s6679_s1 + $0x2f0] sm:$0xff]  }
 0x117   : > { %3149 = vmatprep.subr.bf16.mxu1 %v5468_v1  ;;  %3685 = vmatprep.subr.bf16.mxu0 %v5468_v1  ;;  %v5292_v22 = vld [vmem:[%s5819_s14 + $0x60] ss:$8 sps:$4 sm:$0xff]   ;;  %v5294_v23 = vld [vmem:[%s5811_s9 + $0x74] ss:$8 sps:$4 sm:$0xff]  }
 0x118   : > { %v6078_v26 = vpop.f32.mrf.mxu0  ;;  %v6080_v27 = vpop.f32.mrf.mxu1 }
 0x11a   : > { %v645_v30 = vpop.f32.mrf.mxu0  ;;  %v709_v31 = vpop.f32.mrf.mxu1  ;;  %3150 = vmatpush1.bf16.msra.mxu1 %v5290_v20  ;;  %3686 = vmatpush1.bf16.msra.mxu0 %v5293_v21  ;;  %v5291_v21 = vld [vmem:[%s5811_s9 + $0x60] ss:$8 sps:$4 sm:$0xff]  }
 0x11b   : > { %3151 = vmatprep.subr.bf16.mxu1 %v5468_v1  ;;  %3687 = vmatprep.subr.bf16.mxu0 %v5468_v1  ;;  %v5355_v30 = vld [vmem:[%s6679_s1 + $0x2e8] sm:$0xff]  }
 0x11c   : > { %v6092_v34 = vpop.f32.mrf.mxu0  ;;  %v6094_v35 = vpop.f32.mrf.mxu1  ;;  %2124 = vmatmul.mubr.bf16.gmra.mxu1 %v5268_v24  ;;  %2660 = vmatmul.mubr.bf16.gmra.mxu0 %v5269_v25  ;;  %v5296_v24 = vld [vmem:[%s5819_s14 + $0x74] ss:$8 sps:$4 sm:$0xff]  }
 0x11d   : > { %4531 = vmatprep.mubr.msk.bf16.mxu1 %vm541_vm0, %v5271_v28  ;;  %4623 = vmatprep.mubr.msk.bf16.mxu0 %vm541_vm0, %v5273_v29  ;;  %v5352_v29 = vld [vmem:[%s6679_s1 + $0x278] sm:$0xff]  }
 0x11e   : > { %v650_v36 = vpop.f32.mrf.mxu0  ;;  %v714_v37 = vpop.f32.mrf.mxu1  ;;  %3152 = vmatpush1.bf16.msra.mxu1 %v5300_v32  ;;  %3688 = vmatpush1.bf16.msra.mxu0 %v5301_v33 }
 0x11f   : > { %3153 = vmatprep.subr.bf16.mxu1 %v5468_v1  ;;  %3689 = vmatprep.subr.bf16.mxu0 %v5468_v1  ;;  %v5362_v37 = vld [vmem:[%s6679_s1 + $0x270] sm:$0xff]  }
 0x120   : > { %v6106_v40 = vpop.f32.mrf.mxu0  ;;  %v6108_v41 = vpop.f32.mrf.mxu1 }
 0x122   : > { %v653_v46 = vpop.f32.mrf.mxu0  ;;  %v717_v47 = vpop.f32.mrf.mxu1  ;;  %3154 = vmatpush1.bf16.msra.mxu1 %v5308_v38  ;;  %3690 = vmatpush1.bf16.msra.mxu0 %v5309_v39  ;;  %v5363_v38 = vld [vmem:[%s6679_s1 + $0x2e0] sm:$0xff]  }
 0x123   : > { %3159 = vmatprep.subr.bf16.mxu1 %v5468_v1  ;;  %3695 = vmatprep.subr.bf16.mxu0 %v5468_v1  ;;  %v5304_v46 = vld [vmem:[%s5819_s14 + $0x84] ss:$8 sps:$4 sm:$0xff]  }
 0x124   : > { %v6122_v50 = vpop.f32.mrf.mxu0  ;;  %v6124_v53 = vpop.f32.mrf.mxu1  ;;  %2132 = vmatmul.mubr.bf16.gmra.mxu1 %v5276_v42  ;;  %2668 = vmatmul.mubr.bf16.gmra.mxu0 %v5277_v43  ;;  %v5298_v43 = vld [vmem:[%s5811_s9 + $0x70] ss:$8 sps:$4 sm:$0xff]  }
 0x125   : > { %4532 = vmatprep.mubr.msk.bf16.mxu1 %vm541_vm0, %v5279_v44  ;;  %4624 = vmatprep.mubr.msk.bf16.mxu0 %vm541_vm0, %v5281_v45  ;;  %v5299_v44 = vld [vmem:[%s5819_s14 + $0x70] ss:$8 sps:$4 sm:$0xff]   ;;  %v5302_v45 = vld [vmem:[%s5811_s9 + $0x84] ss:$8 sps:$4 sm:$0xff]  }
 0x126   : > { %v658_v54 = vpop.f32.mrf.mxu0  ;;  %v722_v55 = vpop.f32.mrf.mxu1  ;;  %3160 = vmatpush2.bf16.msra.mxu1 %v5316_v48  ;;  %3696 = vmatpush2.bf16.msra.mxu0 %v5317_v49 }
 0x127   : > { %3161 = vmatprep.subr.bf16.mxu1 %v5468_v1  ;;  %3697 = vmatprep.subr.bf16.mxu0 %v5468_v1 }
 0x128   : > { %v6136_v60 = vpop.f32.mrf.mxu0  ;;  %v6138_v61 = vpop.f32.mrf.mxu1 }
 0x12a   : > { %v661_v5 = vpop.f32.mrf.mxu0  ;;  %v725_v6 = vpop.f32.mrf.mxu1  ;;  %3162 = vmatpush2.bf16.msra.mxu1 %v5324_v56  ;;  %3698 = vmatpush2.bf16.msra.mxu0 %v5325_v59 }
 0x12b   : > { %3163 = vmatprep.subr.bf16.mxu1 %v5468_v1  ;;  %3699 = vmatprep.subr.bf16.mxu0 %v5468_v1 }
 0x12c   : > { %v6152_v9 = vpop.f32.mrf.mxu0  ;;  %v6154_v12 = vpop.f32.mrf.mxu1  ;;  %2140 = vmatmul.mubr.bf16.gmra.mxu1 %v5283_v62  ;;  %2676 = vmatmul.mubr.bf16.gmra.mxu0 %v5284_v63  ;;  %v5306_v62 = vld [vmem:[%s5811_s9 + $0x80] ss:$8 sps:$4 sm:$0xff]  }
 0x12d   : > { %4533 = vmatprep.mubr.msk.bf16.mxu1 %vm541_vm0, %v5286_v0  ;;  %4625 = vmatprep.mubr.msk.bf16.mxu0 %vm541_vm0, %v5288_v4  ;;  %v5307_v63 = vld [vmem:[%s5819_s14 + $0x80] ss:$8 sps:$4 sm:$0xff]   ;;  %v5310_v0 = vld [vmem:[%s5811_s9 + $0x94] ss:$8 sps:$4 sm:$0xff]  }
 0x12e   : > { %v666_v13 = vpop.f32.mrf.mxu0  ;;  %v730_v14 = vpop.f32.mrf.mxu1  ;;  %3164 = vmatpush2.bf16.msra.mxu1 %v5332_v7  ;;  %3700 = vmatpush2.bf16.msra.mxu0 %v5337_v8  ;;  %v5312_v4 = vld [vmem:[%s5819_s14 + $0x94] ss:$8 sps:$4 sm:$0xff]  }
 0x12f   : > { %3165 = vmatprep.subr.bf16.mxu1 %v5468_v1  ;;  %3701 = vmatprep.subr.bf16.mxu0 %v5468_v1 }
 0x130   : > { %v6166_v17 = vpop.f32.mrf.mxu0  ;;  %v6168_v20 = vpop.f32.mrf.mxu1 }
 0x132   : > { %v669_v25 = vpop.f32.mrf.mxu0  ;;  %v733_v28 = vpop.f32.mrf.mxu1  ;;  %3166 = vmatpush2.bf16.msra.mxu1 %v5340_v15  ;;  %3702 = vmatpush2.bf16.msra.mxu0 %v5347_v16 }
 0x133   : > { %3167 = vmatprep.subr.bf16.mxu1 %v5468_v1  ;;  %3703 = vmatprep.subr.bf16.mxu0 %v5468_v1  ;;  %v5318_v28 = vld [vmem:[%s5811_s9 + $0xa4] ss:$8 sps:$4 sm:$0xff]  }
 0x134   : > { %v6182_v31 = vpop.f32.mrf.mxu0  ;;  %v6184_v32 = vpop.f32.mrf.mxu1  ;;  %2148 = vmatmul.mubr.bf16.gmra.mxu1 %v5291_v21  ;;  %2684 = vmatmul.mubr.bf16.gmra.mxu0 %v5292_v22 }
 0x135   : > { %4534 = vmatprep.mubr.msk.bf16.mxu1 %vm541_vm0, %v5294_v23  ;;  %4626 = vmatprep.mubr.msk.bf16.mxu0 %vm541_vm0, %v5296_v24  ;;  %v5314_v23 = vld [vmem:[%s5811_s9 + $0x90] ss:$8 sps:$4 sm:$0xff]  }
 0x136   : > { %v674_v33 = vpop.f32.mrf.mxu0  ;;  %v738_v36 = vpop.f32.mrf.mxu1  ;;  %3168 = vmatpush2.bf16.msra.mxu1 %v5352_v29  ;;  %3704 = vmatpush2.bf16.msra.mxu0 %v5355_v30  ;;  %v5315_v24 = vld [vmem:[%s5819_s14 + $0x90] ss:$8 sps:$4 sm:$0xff]   ;;  %v5320_v29 = vld [vmem:[%s5819_s14 + $0xa4] ss:$8 sps:$4 sm:$0xff]  }
 0x137   : > { %3169 = vmatprep.subr.bf16.mxu1 %v5468_v1  ;;  %3705 = vmatprep.subr.bf16.mxu0 %v5468_v1 }
 0x138   : > { %v6196_v39 = vpop.f32.mrf.mxu0  ;;  %v6198_v42 = vpop.f32.mrf.mxu1 }
 0x13a   : > { %v677_v47 = vpop.f32.mrf.mxu0  ;;  %v741_v48 = vpop.f32.mrf.mxu1  ;;  %3170 = vmatpush2.bf16.msra.mxu1 %v5362_v37  ;;  %3706 = vmatpush2.bf16.msra.mxu0 %v5363_v38 }
 0x13b   : > { %v5322_v47 = vld [vmem:[%s5811_s9 + $0xa0] ss:$8 sps:$4 sm:$0xff]  }
 0x13c   : > { %v6204_v49 = vpop.f32.mrf.mxu0  ;;  %v6206_v54 = vpop.f32.mrf.mxu1  ;;  %2156 = vmatmul.mubr.bf16.gmra.mxu1 %v5298_v43  ;;  %2692 = vmatmul.mubr.bf16.gmra.mxu0 %v5299_v44  ;;  %v5323_v48 = vld [vmem:[%s5819_s14 + $0xa0] ss:$8 sps:$4 sm:$0xff]  }
 0x13d   : > { %4535 = vmatprep.mubr.msk.bf16.mxu1 %vm541_vm0, %v5302_v45  ;;  %4627 = vmatprep.mubr.msk.bf16.mxu0 %vm541_vm0, %v5304_v46 }
 0x13e   : > { %v682_v1 = vpop.f32.mrf.mxu0  ;;  %v746_v55 = vpop.f32.mrf.mxu1 }
 0x13f   : > { %v5326_v55 = vld [vmem:[%s5811_s9 + $0xb4] ss:$8 sps:$4 sm:$0xff]  }
 0x140   : > { %v6210_v56 = vpop.f32.mrf.mxu0  ;;  %v6212_v59 = vpop.f32.mrf.mxu1 }
 0x142   : > { %v685_v5 = vpop.f32.mrf.mxu0  ;;  %v749_v6 = vpop.f32.mrf.mxu1 }
 0x144   : > { %v1061_v7 = vpop.f32.mrf.mxu1  ;;  %v1565_v8 = vpop.f32.mrf.mxu0  ;;  %2164 = vmatmul.mubr.bf16.gmra.mxu1 %v5306_v62  ;;  %2700 = vmatmul.mubr.bf16.gmra.mxu0 %v5307_v63  ;;  %v5328_v62 = vld [vmem:[%s5819_s14 + $0xb4] ss:$8 sps:$4 sm:$0xff]  }
 0x145   : > { %v1062_v13 = vadd.f32 %v1061_v7, %v6008_v51  ;;  %4536 = vmatprep.mubr.msk.bf16.mxu1 %vm541_vm0, %v5310_v0  ;;  %4628 = vmatprep.mubr.msk.bf16.mxu0 %vm541_vm0, %v5312_v4 }
 0x146   : > { %v1063_v14 = vpop.f32.mrf.mxu1  ;;  %v1567_v15 = vpop.f32.mrf.mxu0 }
 0x147   : > { %v6221_v16 = vadd.f32 %v1565_v8, %v1062_v13  ;;  %v5330_v15 = vld [vmem:[%s5811_s9 + $0xb0] ss:$8 sps:$4 sm:$0xff]  }
 0x148   : > { %v1064_v21 = vpop.f32.mrf.mxu1  ;;  %v1568_v22 = vpop.f32.mrf.mxu0 }
 0x149   : > { %v1065_v25 = vadd.f32 %v1064_v21, %v6018_v57  ;;  %v5331_v21 = vld [vmem:[%s5819_s14 + $0xb0] ss:$8 sps:$4 sm:$0xff]  }
 0x14a   : > { %v1066_v30 = vpop.f32.mrf.mxu1  ;;  %v1570_v51 = vpop.f32.mrf.mxu0 }
 0x14b   : > { %v6228_v33 = vadd.f32 %v1568_v22, %v1065_v25 }
 0x14c   : > { %v1069_v36 = vpop.f32.mrf.mxu1  ;;  %v1573_v37 = vpop.f32.mrf.mxu0  ;;  %2172 = vmatmul.mubr.bf16.gmra.mxu1 %v5314_v23  ;;  %2708 = vmatmul.mubr.bf16.gmra.mxu0 %v5315_v24  ;;  %v5333_v23 = vld [vmem:[%s5811_s9 + $0xc4] ss:$8 sps:$4 sm:$0xff]  }
 0x14d   : > { %v1070_v38 = vadd.f32 %v1069_v36, %v6032_v2  ;;  %4537 = vmatprep.mubr.msk.bf16.mxu1 %vm541_vm0, %v5318_v28  ;;  %4629 = vmatprep.mubr.msk.bf16.mxu0 %vm541_vm0, %v5320_v29  ;;  %v5335_v24 = vld [vmem:[%s5819_s14 + $0xc4] ss:$8 sps:$4 sm:$0xff]  }
 0x14e   : > { %v1071_v57 = vpop.f32.mrf.mxu1  ;;  %v1575_v43 = vpop.f32.mrf.mxu0 }
 0x14f   : > { %v6233_v44 = vadd.f32 %v1573_v37, %v1070_v38  ;;  %v5338_v43 = vld [vmem:[%s5811_s9 + $0xc0] ss:$8 sps:$4 sm:$0xff]  }
 0x150   : > { %v1072_v45 = vpop.f32.mrf.mxu1  ;;  %v1576_v46 = vpop.f32.mrf.mxu0 }
 0x151   : > { %v1073_v1 = vadd.f32 %v1072_v45, %v6048_v10  ;;  %v5339_v45 = vld [vmem:[%s5819_s14 + $0xc0] ss:$8 sps:$4 sm:$0xff]  }
 0x152   : > { %v1074_v63 = vpop.f32.mrf.mxu1  ;;  %v1578_v2 = vpop.f32.mrf.mxu0 }
 0x153   : > { %v6240_v0 = vadd.f32 %v1576_v46, %v1073_v1 }
 0x154   : > { %v1077_v4 = vpop.f32.mrf.mxu1  ;;  %v1581_v5 = vpop.f32.mrf.mxu0  ;;  %2180 = vmatmul.mubr.bf16.gmra.mxu1 %v5322_v47  ;;  %2716 = vmatmul.mubr.bf16.gmra.mxu0 %v5323_v48  ;;  %v5341_v47 = vld [vmem:[%s5811_s9 + $0xd4] ss:$8 sps:$4 sm:$0xff]  }
 0x155   : > { %v1078_v6 = vadd.f32 %v1077_v4, %v6062_v18  ;;  %4538 = vmatprep.mubr.msk.bf16.mxu1 %vm541_vm0, %v5326_v55  ;;  %4630 = vmatprep.mubr.msk.bf16.mxu0 %vm541_vm0, %v5328_v62  ;;  %v5343_v48 = vld [vmem:[%s5819_s14 + $0xd4] ss:$8 sps:$4 sm:$0xff]  }
 0x156   : > { %v1079_v10 = vpop.f32.mrf.mxu1  ;;  %v1583_v7 = vpop.f32.mrf.mxu0 }
 0x157   : > { %v6245_v8 = vadd.f32 %v1581_v5, %v1078_v6  ;;  %v5345_v7 = vld [vmem:[%s5811_s9 + $0xd0] ss:$8 sps:$4 sm:$0xff]  }
 0x158   : > { %v1080_v13 = vpop.f32.mrf.mxu1  ;;  %v1584_v14 = vpop.f32.mrf.mxu0 }
 0x159   : > { %v1081_v22 = vadd.f32 %v1080_v13, %v6078_v26  ;;  %v5346_v13 = vld [vmem:[%s5819_s14 + $0xd0] ss:$8 sps:$4 sm:$0xff]  }
 0x15a   : > { %v1082_v25 = vpop.f32.mrf.mxu1  ;;  %v1586_v18 = vpop.f32.mrf.mxu0 }
 0x15b   : > { %v6252_v28 = vadd.f32 %v1584_v14, %v1081_v22 }
 0x15c   : > { %v1085_v29 = vpop.f32.mrf.mxu1  ;;  %v1589_v30 = vpop.f32.mrf.mxu0  ;;  %2188 = vmatmul.mubr.bf16.gmra.mxu1 %v5330_v15  ;;  %2724 = vmatmul.mubr.bf16.gmra.mxu0 %v5331_v21  ;;  %v5348_v15 = vld [vmem:[%s5811_s9 + $0xe4] ss:$8 sps:$4 sm:$0xff]  }
 0x15d   : > { %v1086_v51 = vadd.f32 %v1085_v29, %v6092_v34  ;;  %4539 = vmatprep.mubr.msk.bf16.mxu1 %vm541_vm0, %v5333_v23  ;;  %4631 = vmatprep.mubr.msk.bf16.mxu0 %vm541_vm0, %v5335_v24  ;;  %v5350_v21 = vld [vmem:[%s5819_s14 + $0xe4] ss:$8 sps:$4 sm:$0xff]  }
 0x15e   : > { %v1087_v26 = vpop.f32.mrf.mxu1  ;;  %v1591_v36 = vpop.f32.mrf.mxu0 }
 0x15f   : > { %v6257_v37 = vadd.f32 %v1589_v30, %v1086_v51  ;;  %v5353_v36 = vld [vmem:[%s5811_s9 + $0xe0] ss:$8 sps:$4 sm:$0xff]  }
 0x160   : > { %v1088_v38 = vpop.f32.mrf.mxu1  ;;  %v1592_v57 = vpop.f32.mrf.mxu0 }
 0x161   : > { %v1089_v46 = vadd.f32 %v1088_v38, %v6106_v40  ;;  %v5354_v38 = vld [vmem:[%s5819_s14 + $0xe0] ss:$8 sps:$4 sm:$0xff]  }
 0x162   : > { %v1090_v1 = vpop.f32.mrf.mxu1  ;;  %v1594_v34 = vpop.f32.mrf.mxu0 }
 0x163   : > { %v6264_v55 = vadd.f32 %v1592_v57, %v1089_v46 }
 0x164   : > { %v1093_v62 = vpop.f32.mrf.mxu1  ;;  %v1597_v63 = vpop.f32.mrf.mxu0  ;;  %2196 = vmatmul.mubr.bf16.gmra.mxu1 %v5338_v43  ;;  %2732 = vmatmul.mubr.bf16.gmra.mxu0 %v5339_v45  ;;  %v5356_v43 = vld [vmem:[%s5811_s9 + $0xf4] ss:$8 sps:$4 sm:$0xff]  }
 0x165   : > { %v1094_v2 = vadd.f32 %v1093_v62, %v6122_v50  ;;  %4540 = vmatprep.mubr.msk.bf16.mxu1 %vm541_vm0, %v5341_v47  ;;  %4632 = vmatprep.mubr.msk.bf16.mxu0 %vm541_vm0, %v5343_v48  ;;  %v5358_v45 = vld [vmem:[%s5819_s14 + $0xf4] ss:$8 sps:$4 sm:$0xff]  }
 0x166   : > { %v1095_v40 = vpop.f32.mrf.mxu1  ;;  %v1599_v4 = vpop.f32.mrf.mxu0 }
 0x167   : > { %v6269_v5 = vadd.f32 %v1597_v63, %v1094_v2  ;;  %v5360_v4 = vld [vmem:[%s5811_s9 + $0xf0] ss:$8 sps:$4 sm:$0xff]   ;;  %s4200_s9 = sshll.u32 %s4196_s16, 5 }
 0x168   : > { %v1096_v6 = vpop.f32.mrf.mxu1  ;;  %v1600_v10 = vpop.f32.mrf.mxu0  ;;  %p174_p3 = scmp.lt.s32.totalorder %s4200_s9, 63 }
 0x169   : > { %v1097_v14 = vadd.f32 %v1096_v6, %v6136_v60  ;;  %v5361_v6 = vld [vmem:[%s5819_s14 + $0xf0] ss:$8 sps:$4 sm:$0xff]  }
 0x16a   : > { %v1098_v22 = vpop.f32.mrf.mxu1  ;;  %v1602_v50 = vpop.f32.mrf.mxu0  ;;  %s6684_s9 = smov (!%p174_p3, %s4200_s9), 63 }
 0x16b   : > { %v6276_v23 = vadd.f32 %v1600_v10, %v1097_v14  ;;  %s4201_s16 = sshll.u32 %s6684_s9, 2 }
 0x16c   : > { %v1101_v24 = vpop.f32.mrf.mxu1  ;;  %v1605_v25 = vpop.f32.mrf.mxu0  ;;  %2204 = vmatmul.mubr.bf16.gmra.mxu1 %v5345_v7  ;;  %2740 = vmatmul.mubr.bf16.gmra.mxu0 %v5346_v13  ;;  %v5366_v7 = vld [vmem:[%s5993_s30 + $0x4] ss:$8 sps:$4 sm:$0xff]   ;;  %s6570_s26 = scalar_lea.vmem %s6682_s4, %s4201_s16 }
 0x16d   : > { %v1102_v18 = vadd.f32 %v1101_v24, %v6152_v9  ;;  %4541 = vmatprep.mubr.msk.bf16.mxu1 %vm541_vm0, %v5348_v15  ;;  %4633 = vmatprep.mubr.msk.bf16.mxu0 %vm541_vm0, %v5350_v21  ;;  %v5369_v13 = vld [vmem:[%s5999_s5 + $0x4] ss:$8 sps:$4 sm:$0xff]  }
 0x16e   : > { %v1103_v60 = vpop.f32.mrf.mxu1  ;;  %v1607_v29 = vpop.f32.mrf.mxu0 }
 0x16f   : > { %v6281_v30 = vadd.f32 %v1605_v25, %v1102_v18  ;;  %v5364_v29 = vld [vmem:[%s5993_s30] ss:$8 sps:$4 sm:$0xff]  }
 0x170   : > { %v1104_v51 = vpop.f32.mrf.mxu1  ;;  %v1608_v26 = vpop.f32.mrf.mxu0 }
 0x171   : > { %v1105_v57 = vadd.f32 %v1104_v51, %v6166_v17  ;;  %v5367_v51 = vld [vmem:[%s5999_s5] ss:$8 sps:$4 sm:$0xff]  }
 0x172   : > { %v1106_v46 = vpop.f32.mrf.mxu1  ;;  %v1610_v9 = vpop.f32.mrf.mxu0 }
 0x173   : > { %v6288_v47 = vadd.f32 %v1608_v26, %v1105_v57 }
 0x174   : > { %v1109_v48 = vpop.f32.mrf.mxu1  ;;  %v1613_v1 = vpop.f32.mrf.mxu0  ;;  %2212 = vmatmul.mubr.bf16.gmra.mxu1 %v5353_v36  ;;  %2748 = vmatmul.mubr.bf16.gmra.mxu0 %v5354_v38  ;;  %v5370_v36 = vld [vmem:[%s5993_s30 + $0x14] ss:$8 sps:$4 sm:$0xff]  }
 0x175   : > { %v1110_v34 = vadd.f32 %v1109_v48, %v6182_v31  ;;  %4542 = vmatprep.mubr.msk.bf16.mxu1 %vm541_vm0, %v5356_v43  ;;  %4634 = vmatprep.mubr.msk.bf16.mxu0 %vm541_vm0, %v5358_v45  ;;  %v5372_v38 = vld [vmem:[%s5999_s5 + $0x14] ss:$8 sps:$4 sm:$0xff]  }
 0x176   : > { %v1111_v17 = vpop.f32.mrf.mxu1  ;;  %v1615_v62 = vpop.f32.mrf.mxu0 }
 0x177   : > { %v6293_v63 = vadd.f32 %v1613_v1, %v1110_v34  ;;  %v5374_v62 = vld [vmem:[%s5993_s30 + $0x10] ss:$8 sps:$4 sm:$0xff]  }
 0x178   : > { %v1112_v2 = vpop.f32.mrf.mxu1  ;;  %v1616_v40 = vpop.f32.mrf.mxu0 }
 0x179   : > { %v1113_v10 = vadd.f32 %v1112_v2, %v6196_v39  ;;  %v5375_v2 = vld [vmem:[%s5999_s5 + $0x10] ss:$8 sps:$4 sm:$0xff]  }
 0x17a   : > { %v1114_v14 = vpop.f32.mrf.mxu1  ;;  %v1618_v31 = vpop.f32.mrf.mxu0 }
 0x17b   : > { %v6300_v15 = vadd.f32 %v1616_v40, %v1113_v10 }
 0x17c   : > { %v1117_v21 = vpop.f32.mrf.mxu1  ;;  %v1621_v22 = vpop.f32.mrf.mxu0  ;;  %2220 = vmatmul.mubr.bf16.gmra.mxu1 %v5360_v4  ;;  %2756 = vmatmul.mubr.bf16.gmra.mxu0 %v5361_v6  ;;  %v5376_v4 = vld [vmem:[%s5993_s30 + $0x24] ss:$8 sps:$4 sm:$0xff]  }
 0x17d   : > { %v1118_v50 = vadd.f32 %v1117_v21, %v6204_v49  ;;  %4711 = vmatprep.mubr.msk.bf16.mxu1 %vm541_vm0, %v5366_v7  ;;  %4803 = vmatprep.mubr.msk.bf16.mxu0 %vm541_vm0, %v5369_v13  ;;  %v5378_v6 = vld [vmem:[%s5999_s5 + $0x24] ss:$8 sps:$4 sm:$0xff]  }
 0x17e   : > { %v1119_v39 = vpop.f32.mrf.mxu1  ;;  %v1623_v24 = vpop.f32.mrf.mxu0 }
 0x17f   : > { %v6305_v25 = vadd.f32 %v1621_v22, %v1118_v50  ;;  %v5380_v24 = vld [vmem:[%s5993_s30 + $0x20] ss:$8 sps:$4 sm:$0xff]  }
 0x180   : > { %v1120_v18 = vpop.f32.mrf.mxu1  ;;  %v1624_v60 = vpop.f32.mrf.mxu0 }
 0x181   : > { %v1121_v26 = vadd.f32 %v1120_v18, %v6210_v56  ;;  %v5381_v18 = vld [vmem:[%s5999_s5 + $0x20] ss:$8 sps:$4 sm:$0xff]  }
 0x182   : > { %v1122_v57 = vpop.f32.mrf.mxu1  ;;  %v1626_v49 = vpop.f32.mrf.mxu0 }
 0x183   : > { %v6312_v43 = vadd.f32 %v1624_v60, %v1121_v26 }
 0x184   : > { %v1125_v45 = vpop.f32.mrf.mxu1  ;;  %v1629_v46 = vpop.f32.mrf.mxu0  ;;  %3172 = vmatmul.mubr.bf16.vlgmr.msra.gmra.mxu1 %v5364_v29  ;;  %3708 = vmatmul.mubr.bf16.vlgmr.msra.gmra.mxu0 %v5367_v51  ;;  %v5382_v29 = vld [vmem:[%s5993_s30 + $0x34] ss:$8 sps:$4 sm:$0xff]  }
 0x185   : > { %v1126_v9 = vadd.f32 %v1125_v45, %v6010_v52  ;;  %4712 = vmatprep.mubr.msk.bf16.mxu1 %vm541_vm0, %v5370_v36  ;;  %4804 = vmatprep.mubr.msk.bf16.mxu0 %vm541_vm0, %v5372_v38  ;;  %v5384_v51 = vld [vmem:[%s5999_s5 + $0x34] ss:$8 sps:$4 sm:$0xff]  }
 0x186   : > { %v1127_v56 = vpop.f32.mrf.mxu1  ;;  %v1631_v48 = vpop.f32.mrf.mxu0 }
 0x187   : > { %v6317_v1 = vadd.f32 %v1629_v46, %v1126_v9  ;;  %v5386_v48 = vld [vmem:[%s5993_s30 + $0x30] ss:$8 sps:$4 sm:$0xff]  }
 0x188   : > { %v1128_v34 = vpop.f32.mrf.mxu1  ;;  %v1632_v17 = vpop.f32.mrf.mxu0 }
 0x189   : > { %v1129_v40 = vadd.f32 %v1128_v34, %v6020_v58  ;;  %v5387_v34 = vld [vmem:[%s5999_s5 + $0x30] ss:$8 sps:$4 sm:$0xff]  }
 0x18a   : > { %v1130_v10 = vpop.f32.mrf.mxu1  ;;  %v1634_v52 = vpop.f32.mrf.mxu0 }
 0x18b   : > { %v6324_v7 = vadd.f32 %v1632_v17, %v1129_v40 }
 0x18c   : > { %v1133_v13 = vpop.f32.mrf.mxu1  ;;  %v1637_v14 = vpop.f32.mrf.mxu0  ;;  %3180 = vmatmul.mubr.bf16.gmra.mxu1 %v5374_v62  ;;  %3716 = vmatmul.mubr.bf16.gmra.mxu0 %v5375_v2  ;;  %v5388_v62 = vld [vmem:[%s5993_s30 + $0x44] ss:$8 sps:$4 sm:$0xff]  }
 0x18d   : > { %v1134_v31 = vadd.f32 %v1133_v13, %v6034_v3  ;;  %4713 = vmatprep.mubr.msk.bf16.mxu1 %vm541_vm0, %v5376_v4  ;;  %4805 = vmatprep.mubr.msk.bf16.mxu0 %vm541_vm0, %v5378_v6  ;;  %v5390_v2 = vld [vmem:[%s5999_s5 + $0x44] ss:$8 sps:$4 sm:$0xff]  }
 0x18e   : > { %v1135_v58 = vpop.f32.mrf.mxu1  ;;  %v1639_v21 = vpop.f32.mrf.mxu0 }
 0x18f   : > { %v6329_v22 = vadd.f32 %v1637_v14, %v1134_v31  ;;  %v5392_v21 = vld [vmem:[%s5993_s30 + $0x40] ss:$8 sps:$4 sm:$0xff]  }
 0x190   : > { %v1136_v50 = vpop.f32.mrf.mxu1  ;;  %v1640_v39 = vpop.f32.mrf.mxu0 }
 0x191   : > { %v1137_v60 = vadd.f32 %v1136_v50, %v6050_v11  ;;  %v5393_v50 = vld [vmem:[%s5999_s5 + $0x40] ss:$8 sps:$4 sm:$0xff]  }
 0x192   : > { %v1138_v26 = vpop.f32.mrf.mxu1  ;;  %v1642_v3 = vpop.f32.mrf.mxu0 }
 0x193   : > { %v6336_v36 = vadd.f32 %v1640_v39, %v1137_v60 }
 0x194   : > { %v1141_v38 = vpop.f32.mrf.mxu1  ;;  %v1645_v57 = vpop.f32.mrf.mxu0  ;;  %3188 = vmatmul.mubr.bf16.gmra.mxu1 %v5380_v24  ;;  %3724 = vmatmul.mubr.bf16.gmra.mxu0 %v5381_v18  ;;  %v5394_v24 = vld [vmem:[%s5993_s30 + $0x54] ss:$8 sps:$4 sm:$0xff]  }
 0x195   : > { %v1142_v49 = vadd.f32 %v1141_v38, %v6064_v19  ;;  %4714 = vmatprep.mubr.msk.bf16.mxu1 %vm541_vm0, %v5382_v29  ;;  %4806 = vmatprep.mubr.msk.bf16.mxu0 %vm541_vm0, %v5384_v51  ;;  %v5396_v18 = vld [vmem:[%s5999_s5 + $0x54] ss:$8 sps:$4 sm:$0xff]  }
 0x196   : > { %v1143_v11 = vpop.f32.mrf.mxu1  ;;  %v1647_v45 = vpop.f32.mrf.mxu0 }
 0x197   : > { %v6341_v46 = vadd.f32 %v1645_v57, %v1142_v49  ;;  %v5398_v45 = vld [vmem:[%s5993_s30 + $0x50] ss:$8 sps:$4 sm:$0xff]  }
 0x198   : > { %v1144_v9 = vpop.f32.mrf.mxu1  ;;  %v1648_v56 = vpop.f32.mrf.mxu0 }
 0x199   : > { %v1145_v17 = vadd.f32 %v1144_v9, %v6080_v27  ;;  %v5399_v9 = vld [vmem:[%s5999_s5 + $0x50] ss:$8 sps:$4 sm:$0xff]  }
 0x19a   : > { %v1146_v40 = vpop.f32.mrf.mxu1  ;;  %v1650_v19 = vpop.f32.mrf.mxu0 }
 0x19b   : > { %v6348_v4 = vadd.f32 %v1648_v56, %v1145_v17 }
 0x19c   : > { %v1149_v6 = vpop.f32.mrf.mxu1  ;;  %v1653_v10 = vpop.f32.mrf.mxu0  ;;  %3196 = vmatmul.mubr.bf16.gmra.mxu1 %v5386_v48  ;;  %3732 = vmatmul.mubr.bf16.gmra.mxu0 %v5387_v34  ;;  %v5400_v48 = vld [vmem:[%s5993_s30 + $0x64] ss:$8 sps:$4 sm:$0xff]  }
 0x19d   : > { %v1150_v52 = vadd.f32 %v1149_v6, %v6094_v35  ;;  %4715 = vmatprep.mubr.msk.bf16.mxu1 %vm541_vm0, %v5388_v62  ;;  %4807 = vmatprep.mubr.msk.bf16.mxu0 %vm541_vm0, %v5390_v2  ;;  %v5402_v34 = vld [vmem:[%s5999_s5 + $0x64] ss:$8 sps:$4 sm:$0xff]  }
 0x19e   : > { %v1151_v27 = vpop.f32.mrf.mxu1  ;;  %v1655_v13 = vpop.f32.mrf.mxu0 }
 0x19f   : > { %v6353_v14 = vadd.f32 %v1653_v10, %v1150_v52  ;;  %v5404_v13 = vld [vmem:[%s5993_s30 + $0x60] ss:$8 sps:$4 sm:$0xff]  }
 0x1a0   : > { %v1152_v31 = vpop.f32.mrf.mxu1  ;;  %v1656_v58 = vpop.f32.mrf.mxu0 }
 0x1a1   : > { %v1153_v39 = vadd.f32 %v1152_v31, %v6108_v41  ;;  %v5405_v31 = vld [vmem:[%s5999_s5 + $0x60] ss:$8 sps:$4 sm:$0xff]  }
 0x1a2   : > { %v1154_v60 = vpop.f32.mrf.mxu1  ;;  %v1658_v35 = vpop.f32.mrf.mxu0 }
 0x1a3   : > { %v6360_v29 = vadd.f32 %v1656_v58, %v1153_v39 }
 0x1a4   : > { %v1157_v51 = vpop.f32.mrf.mxu1  ;;  %v1661_v26 = vpop.f32.mrf.mxu0  ;;  %3204 = vmatmul.mubr.bf16.gmra.mxu1 %v5392_v21  ;;  %3740 = vmatmul.mubr.bf16.gmra.mxu0 %v5393_v50  ;;  %v5406_v21 = vld [vmem:[%s5993_s30 + $0x74] ss:$8 sps:$4 sm:$0xff]  }
 0x1a5   : > { %v1158_v3 = vadd.f32 %v1157_v51, %v6124_v53  ;;  %4716 = vmatprep.mubr.msk.bf16.mxu1 %vm541_vm0, %v5394_v24  ;;  %4808 = vmatprep.mubr.msk.bf16.mxu0 %vm541_vm0, %v5396_v18  ;;  %v5408_v50 = vld [vmem:[%s5999_s5 + $0x74] ss:$8 sps:$4 sm:$0xff]  }
 0x1a6   : > { %v1159_v41 = vpop.f32.mrf.mxu1  ;;  %v1663_v38 = vpop.f32.mrf.mxu0 }
 0x1a7   : > { %v6365_v57 = vadd.f32 %v1661_v26, %v1158_v3  ;;  %v5410_v38 = vld [vmem:[%s5993_s30 + $0x70] ss:$8 sps:$4 sm:$0xff]  }
 0x1a8   : > { %v1160_v49 = vpop.f32.mrf.mxu1  ;;  %v1664_v11 = vpop.f32.mrf.mxu0 }
 0x1a9   : > { %v1161_v56 = vadd.f32 %v1160_v49, %v6138_v61  ;;  %v5411_v49 = vld [vmem:[%s5999_s5 + $0x70] ss:$8 sps:$4 sm:$0xff]  }
 0x1aa   : > { %v1162_v17 = vpop.f32.mrf.mxu1  ;;  %v1666_v53 = vpop.f32.mrf.mxu0 }
 0x1ab   : > { %v6372_v62 = vadd.f32 %v1664_v11, %v1161_v56 }
 0x1ac   : > { %v1165_v2 = vpop.f32.mrf.mxu1  ;;  %v1669_v40 = vpop.f32.mrf.mxu0  ;;  %3212 = vmatmul.mubr.bf16.gmra.mxu1 %v5398_v45  ;;  %3748 = vmatmul.mubr.bf16.gmra.mxu0 %v5399_v9  ;;  %v5412_v45 = vld [vmem:[%s5993_s30 + $0x84] ss:$8 sps:$4 sm:$0xff]  }
 0x1ad   : > { %v1166_v19 = vadd.f32 %v1165_v2, %v6154_v12  ;;  %4717 = vmatprep.mubr.msk.bf16.mxu1 %vm541_vm0, %v5400_v48  ;;  %4809 = vmatprep.mubr.msk.bf16.mxu0 %vm541_vm0, %v5402_v34  ;;  %v5414_v9 = vld [vmem:[%s5999_s5 + $0x84] ss:$8 sps:$4 sm:$0xff]  }
 0x1ae   : > { %v1167_v61 = vpop.f32.mrf.mxu1  ;;  %v1671_v6 = vpop.f32.mrf.mxu0 }
 0x1af   : > { %v6377_v10 = vadd.f32 %v1669_v40, %v1166_v19  ;;  %v5416_v6 = vld [vmem:[%s5993_s30 + $0x80] ss:$8 sps:$4 sm:$0xff]  }
 0x1b0   : > { %v1168_v52 = vpop.f32.mrf.mxu1  ;;  %v1672_v27 = vpop.f32.mrf.mxu0 }
 0x1b1   : > { %v1169_v58 = vadd.f32 %v1168_v52, %v6168_v20  ;;  %v5417_v52 = vld [vmem:[%s5999_s5 + $0x80] ss:$8 sps:$4 sm:$0xff]  }
 0x1b2   : > { %v1170_v39 = vpop.f32.mrf.mxu1  ;;  %v1674_v12 = vpop.f32.mrf.mxu0 }
 0x1b3   : > { %v6384_v24 = vadd.f32 %v1672_v27, %v1169_v58 }
 0x1b4   : > { %v1173_v18 = vpop.f32.mrf.mxu1  ;;  %v1677_v60 = vpop.f32.mrf.mxu0  ;;  %3220 = vmatmul.mubr.bf16.gmra.mxu1 %v5404_v13  ;;  %3756 = vmatmul.mubr.bf16.gmra.mxu0 %v5405_v31  ;;  %v5418_v13 = vld [vmem:[%s5993_s30 + $0x94] ss:$8 sps:$4 sm:$0xff]  }
 0x1b5   : > { %v1174_v35 = vadd.f32 %v1173_v18, %v6184_v32  ;;  %4718 = vmatprep.mubr.msk.bf16.mxu1 %vm541_vm0, %v5406_v21  ;;  %4810 = vmatprep.mubr.msk.bf16.mxu0 %vm541_vm0, %v5408_v50  ;;  %v5420_v31 = vld [vmem:[%s5999_s5 + $0x94] ss:$8 sps:$4 sm:$0xff]  }
 0x1b6   : > { %v1175_v20 = vpop.f32.mrf.mxu1  ;;  %v1679_v51 = vpop.f32.mrf.mxu0 }
 0x1b7   : > { %v6389_v26 = vadd.f32 %v1677_v60, %v1174_v35  ;;  %v5422_v51 = vld [vmem:[%s5993_s30 + $0x90] ss:$8 sps:$4 sm:$0xff]  }
 0x1b8   : > { %v1176_v3 = vpop.f32.mrf.mxu1  ;;  %v1680_v41 = vpop.f32.mrf.mxu0 }
 0x1b9   : > { %v1177_v11 = vadd.f32 %v1176_v3, %v6198_v42  ;;  %v5423_v3 = vld [vmem:[%s5999_s5 + $0x90] ss:$8 sps:$4 sm:$0xff]  }
 0x1ba   : > { %v1178_v56 = vpop.f32.mrf.mxu1  ;;  %v1682_v32 = vpop.f32.mrf.mxu0 }
 0x1bb   : > { %v6396_v48 = vadd.f32 %v1680_v41, %v1177_v11 }
 0x1bc   : > { %v1181_v34 = vpop.f32.mrf.mxu1  ;;  %v1685_v17 = vpop.f32.mrf.mxu0  ;;  %3228 = vmatmul.mubr.bf16.gmra.mxu1 %v5410_v38  ;;  %3764 = vmatmul.mubr.bf16.gmra.mxu0 %v5411_v49  ;;  %v5424_v38 = vld [vmem:[%s5993_s30 + $0xa4] ss:$8 sps:$4 sm:$0xff]  }
 0x1bd   : > { %v1182_v53 = vadd.f32 %v1181_v34, %v6206_v54  ;;  %4719 = vmatprep.mubr.msk.bf16.mxu1 %vm541_vm0, %v5412_v45  ;;  %4811 = vmatprep.mubr.msk.bf16.mxu0 %vm541_vm0, %v5414_v9  ;;  %v5426_v49 = vld [vmem:[%s5999_s5 + $0xa4] ss:$8 sps:$4 sm:$0xff]  }
 0x1be   : > { %v1183_v42 = vpop.f32.mrf.mxu1  ;;  %v1687_v2 = vpop.f32.mrf.mxu0 }
 0x1bf   : > { %v6401_v40 = vadd.f32 %v1685_v17, %v1182_v53  ;;  %v5428_v2 = vld [vmem:[%s5993_s30 + $0xa0] ss:$8 sps:$4 sm:$0xff]  }
 0x1c0   : > { %v1184_v19 = vpop.f32.mrf.mxu1  ;;  %v1688_v61 = vpop.f32.mrf.mxu0 }
 0x1c1   : > { %v1185_v27 = vadd.f32 %v1184_v19, %v6212_v59  ;;  %v5429_v19 = vld [vmem:[%s5999_s5 + $0xa0] ss:$8 sps:$4 sm:$0xff]  }
 0x1c2   : > { %v1186_v58 = vpop.f32.mrf.mxu1  ;;  %v1690_v54 = vpop.f32.mrf.mxu0 }
 0x1c3   : > { %v6408_v21 = vadd.f32 %v1688_v61, %v1185_v27 }
 0x1c4   : > { %v2101_v50 = vpop.f32.mrf.mxu1  ;;  %v2637_v39 = vpop.f32.mrf.mxu0  ;;  %3236 = vmatmul.mubr.bf16.gmra.mxu1 %v5416_v6  ;;  %3772 = vmatmul.mubr.bf16.gmra.mxu0 %v5417_v52  ;;  %v5430_v6 = vld [vmem:[%s5993_s30 + $0xb4] ss:$8 sps:$4 sm:$0xff]  }
 0x1c5   : > { %v2228_v12 = vadd.f32 %v2101_v50, %v6221_v16  ;;  %4720 = vmatprep.mubr.msk.bf16.mxu1 %vm541_vm0, %v5418_v13  ;;  %4812 = vmatprep.mubr.msk.bf16.mxu0 %vm541_vm0, %v5420_v31  ;;  %v5432_v52 = vld [vmem:[%s5999_s5 + $0xb4] ss:$8 sps:$4 sm:$0xff]  }
 0x1c6   : > { %v2103_v59 = vpop.f32.mrf.mxu1  ;;  %v2639_v18 = vpop.f32.mrf.mxu0 }
 0x1c7   : > { %v6413_v60 = vadd.f32 %v2637_v39, %v2228_v12  ;;  %v5434_v18 = vld [vmem:[%s5993_s30 + $0xb0] ss:$8 sps:$4 sm:$0xff]  }
 0x1c8   : > { %v2104_v35 = vpop.f32.mrf.mxu1  ;;  %v2640_v20 = vpop.f32.mrf.mxu0 }
 0x1c9   : > { %v2229_v41 = vadd.f32 %v2104_v35, %v6228_v33  ;;  %v5435_v35 = vld [vmem:[%s5999_s5 + $0xb0] ss:$8 sps:$4 sm:$0xff]  }
 0x1ca   : > { %v2106_v11 = vpop.f32.mrf.mxu1  ;;  %v2642_v16 = vpop.f32.mrf.mxu0 }
 0x1cb   : > { %v6420_v45 = vadd.f32 %v2640_v20, %v2229_v41 }
 0x1cc   : > { %v2109_v9 = vpop.f32.mrf.mxu1  ;;  %v2645_v56 = vpop.f32.mrf.mxu0  ;;  %3244 = vmatmul.mubr.bf16.gmra.mxu1 %v5422_v51  ;;  %3780 = vmatmul.mubr.bf16.gmra.mxu0 %v5423_v3  ;;  %v5436_v51 = vld [vmem:[%s5993_s30 + $0xc4] ss:$8 sps:$4 sm:$0xff]  }
 0x1cd   : > { %v2230_v32 = vadd.f32 %v2109_v9, %v6233_v44  ;;  %4721 = vmatprep.mubr.msk.bf16.mxu1 %vm541_vm0, %v5424_v38  ;;  %4813 = vmatprep.mubr.msk.bf16.mxu0 %vm541_vm0, %v5426_v49  ;;  %v5438_v3 = vld [vmem:[%s5999_s5 + $0xc4] ss:$8 sps:$4 sm:$0xff]  }
 0x1ce   : > { %v2111_v33 = vpop.f32.mrf.mxu1  ;;  %v2647_v34 = vpop.f32.mrf.mxu0 }
 0x1cf   : > { %v6425_v17 = vadd.f32 %v2645_v56, %v2230_v32  ;;  %v5440_v34 = vld [vmem:[%s5993_s30 + $0xc0] ss:$8 sps:$4 sm:$0xff]  }
 0x1d0   : > { %v2112_v53 = vpop.f32.mrf.mxu1  ;;  %v2648_v42 = vpop.f32.mrf.mxu0 }
 0x1d1   : > { %v2231_v61 = vadd.f32 %v2112_v53, %v6240_v0  ;;  %v5441_v53 = vld [vmem:[%s5999_s5 + $0xc0] ss:$8 sps:$4 sm:$0xff]  }
 0x1d2   : > { %v2114_v27 = vpop.f32.mrf.mxu1  ;;  %v2650_v44 = vpop.f32.mrf.mxu0 }
 0x1d3   : > { %v6432_v13 = vadd.f32 %v2648_v42, %v2231_v61 }
 0x1d4   : > { %v2117_v31 = vpop.f32.mrf.mxu1  ;;  %v2653_v58 = vpop.f32.mrf.mxu0  ;;  %3252 = vmatmul.mubr.bf16.gmra.mxu1 %v5428_v2  ;;  %3788 = vmatmul.mubr.bf16.gmra.mxu0 %v5429_v19  ;;  %v5442_v2 = vld [vmem:[%s5993_s30 + $0xd4] ss:$8 sps:$4 sm:$0xff]  }
 0x1d5   : > { %v2232_v54 = vadd.f32 %v2117_v31, %v6245_v8  ;;  %4722 = vmatprep.mubr.msk.bf16.mxu1 %vm541_vm0, %v5430_v6  ;;  %4814 = vmatprep.mubr.msk.bf16.mxu0 %vm541_vm0, %v5432_v52  ;;  %v5444_v19 = vld [vmem:[%s5999_s5 + $0xd4] ss:$8 sps:$4 sm:$0xff]  }
 0x1d6   : > { %v2119_v0 = vpop.f32.mrf.mxu1  ;;  %v2655_v50 = vpop.f32.mrf.mxu0 }
 0x1d7   : > { %v6437_v39 = vadd.f32 %v2653_v58, %v2232_v54  ;;  %v5446_v50 = vld [vmem:[%s5993_s30 + $0xd0] ss:$8 sps:$4 sm:$0xff]  }
 0x1d8   : > { %v2120_v12 = vpop.f32.mrf.mxu1  ;;  %v2656_v59 = vpop.f32.mrf.mxu0 }
 0x1d9   : > { %v2233_v20 = vadd.f32 %v2120_v12, %v6252_v28  ;;  %v5447_v12 = vld [vmem:[%s5999_s5 + $0xd0] ss:$8 sps:$4 sm:$0xff]  }
 0x1da   : > { %v2122_v41 = vpop.f32.mrf.mxu1  ;;  %v2658_v8 = vpop.f32.mrf.mxu0 }
 0x1db   : > { %v6444_v38 = vadd.f32 %v2656_v59, %v2233_v20 }
 0x1dc   : > { %v2125_v49 = vpop.f32.mrf.mxu1  ;;  %v2661_v11 = vpop.f32.mrf.mxu0  ;;  %3260 = vmatmul.mubr.bf16.gmra.mxu1 %v5434_v18  ;;  %3796 = vmatmul.mubr.bf16.gmra.mxu0 %v5435_v35  ;;  %v5448_v18 = vld [vmem:[%s5993_s30 + $0xe4] ss:$8 sps:$4 sm:$0xff]  }
 0x1dd   : > { %v2234_v16 = vadd.f32 %v2125_v49, %v6257_v37  ;;  %4723 = vmatprep.mubr.msk.bf16.mxu1 %vm541_vm0, %v5436_v51  ;;  %4815 = vmatprep.mubr.msk.bf16.mxu0 %vm541_vm0, %v5438_v3  ;;  %v5450_v35 = vld [vmem:[%s5999_s5 + $0xe4] ss:$8 sps:$4 sm:$0xff]  }
 0x1de   : > { %v2127_v28 = vpop.f32.mrf.mxu1  ;;  %v2663_v9 = vpop.f32.mrf.mxu0 }
 0x1df   : > { %v6449_v56 = vadd.f32 %v2661_v11, %v2234_v16  ;;  %v5452_v9 = vld [vmem:[%s5993_s30 + $0xe0] ss:$8 sps:$4 sm:$0xff]  }
 0x1e0   : > { %v2128_v32 = vpop.f32.mrf.mxu1  ;;  %v2664_v33 = vpop.f32.mrf.mxu0 }
 0x1e1   : > { %v2235_v42 = vadd.f32 %v2128_v32, %v6264_v55  ;;  %v5453_v32 = vld [vmem:[%s5999_s5 + $0xe0] ss:$8 sps:$4 sm:$0xff]  }
 0x1e2   : > { %v2130_v61 = vpop.f32.mrf.mxu1  ;;  %v2666_v37 = vpop.f32.mrf.mxu0 }
 0x1e3   : > { %v6456_v6 = vadd.f32 %v2664_v33, %v2235_v42 }
 0x1e4   : > { %v2133_v52 = vpop.f32.mrf.mxu1  ;;  %v2669_v27 = vpop.f32.mrf.mxu0  ;;  %3268 = vmatmul.mubr.bf16.gmra.mxu1 %v5440_v34  ;;  %3804 = vmatmul.mubr.bf16.gmra.mxu0 %v5441_v53  ;;  %v5454_v34 = vld [vmem:[%s5993_s30 + $0xf4] ss:$8 sps:$4 sm:$0xff]  }
 0x1e5   : > { %v2236_v44 = vadd.f32 %v2133_v52, %v6269_v5  ;;  %4724 = vmatprep.mubr.msk.bf16.mxu1 %vm541_vm0, %v5442_v2  ;;  %4816 = vmatprep.mubr.msk.bf16.mxu0 %vm541_vm0, %v5444_v19  ;;  %v5456_v53 = vld [vmem:[%s5999_s5 + $0xf4] ss:$8 sps:$4 sm:$0xff]  }
 0x1e6   : > { %v2135_v55 = vpop.f32.mrf.mxu1  ;;  %v2671_v31 = vpop.f32.mrf.mxu0 }
 0x1e7   : > { %v6461_v58 = vadd.f32 %v2669_v27, %v2236_v44  ;;  %v5458_v31 = vld [vmem:[%s5993_s30 + $0xf0] ss:$8 sps:$4 sm:$0xff]  }
 0x1e8   : > { %v2136_v54 = vpop.f32.mrf.mxu1  ;;  %v2672_v0 = vpop.f32.mrf.mxu0 }
 0x1e9   : > { %v2237_v59 = vadd.f32 %v2136_v54, %v6276_v23  ;;  %v5459_v54 = vld [vmem:[%s5999_s5 + $0xf0] ss:$8 sps:$4 sm:$0xff]  }
 0x1ea   : > { %v2138_v20 = vpop.f32.mrf.mxu1  ;;  %v2674_v5 = vpop.f32.mrf.mxu0 }
 0x1eb   : > { %v6468_v51 = vadd.f32 %v2672_v0, %v2237_v59 }
 0x1ec   : > { %v2141_v3 = vpop.f32.mrf.mxu1  ;;  %v2677_v41 = vpop.f32.mrf.mxu0  ;;  %3276 = vmatmul.mubr.bf16.gmra.mxu1 %v5446_v50  ;;  %3812 = vmatmul.mubr.bf16.gmra.mxu0 %v5447_v12 }
 0x1ed   : > { %v2238_v8 = vadd.f32 %v2141_v3, %v6281_v30  ;;  %4725 = vmatprep.mubr.msk.bf16.mxu1 %vm541_vm0, %v5448_v18  ;;  %4817 = vmatprep.mubr.msk.bf16.mxu0 %vm541_vm0, %v5450_v35 }
 0x1ee   : > { %v2143_v23 = vpop.f32.mrf.mxu1  ;;  %v2679_v49 = vpop.f32.mrf.mxu0 }
 0x1ef   : > { %v6473_v11 = vadd.f32 %v2677_v41, %v2238_v8 }
 0x1f0   : > { %v2144_v16 = vpop.f32.mrf.mxu1  ;;  %v2680_v28 = vpop.f32.mrf.mxu0 }
 0x1f1   : > { %v2239_v33 = vadd.f32 %v2144_v16, %v6288_v47 }
 0x1f2   : > { %v2146_v42 = vpop.f32.mrf.mxu1  ;;  %v2682_v30 = vpop.f32.mrf.mxu0 }
 0x1f3   : > { %v6480_v2 = vadd.f32 %v2680_v28, %v2239_v33 }
 0x1f4   : > { %v2149_v19 = vpop.f32.mrf.mxu1  ;;  %v2685_v61 = vpop.f32.mrf.mxu0  ;;  %3284 = vmatmul.mubr.bf16.gmra.mxu1 %v5452_v9  ;;  %3820 = vmatmul.mubr.bf16.gmra.mxu0 %v5453_v32 }
 0x1f5   : > { %v2240_v37 = vadd.f32 %v2149_v19, %v6293_v63  ;;  %4726 = vmatprep.mubr.msk.bf16.mxu1 %vm541_vm0, %v5454_v34  ;;  %4818 = vmatprep.mubr.msk.bf16.mxu0 %vm541_vm0, %v5456_v53 }
 0x1f6   : > { %v2151_v52 = vpop.f32.mrf.mxu1  ;;  %v2687_v47 = vpop.f32.mrf.mxu0 }
 0x1f7   : > { %v6485_v27 = vadd.f32 %v2685_v61, %v2240_v37 }
 0x1f8   : > { %v2152_v44 = vpop.f32.mrf.mxu1  ;;  %v2688_v55 = vpop.f32.mrf.mxu0 }
 0x1f9   : > { %v2241_v0 = vadd.f32 %v2152_v44, %v6300_v15 }
 0x1fa   : > { %v2154_v50 = vpop.f32.mrf.mxu1  ;;  %v2690_v12 = vpop.f32.mrf.mxu0 }
 0x1fb   : > { %v6490_v59 = vadd.f32 %v2688_v55, %v2241_v0 }
 0x1fc   : > { %v2157_v18 = vpop.f32.mrf.mxu1  ;;  %v2693_v63 = vpop.f32.mrf.mxu0  ;;  %3292 = vmatmul.mubr.bf16.gmra.mxu1 %v5458_v31  ;;  %3828 = vmatmul.mubr.bf16.gmra.mxu0 %v5459_v54 }
 0x1fd   : > { %v2242_v35 = vadd.f32 %v2157_v18, %v6305_v25 }
 0x1fe   : > { %v2159_v20 = vpop.f32.mrf.mxu1  ;;  %v2695_v5 = vpop.f32.mrf.mxu0 }
 0x1ff   : > { %v6493_v3 = vadd.f32 %v2693_v63, %v2242_v35 }
 0x200   : > { %v2160_v41 = vpop.f32.mrf.mxu1  ;;  %v2696_v8 = vpop.f32.mrf.mxu0 }
 0x201   : > { %v2243_v23 = vadd.f32 %v2160_v41, %v6312_v43 }
 0x202   : > { %v2162_v49 = vpop.f32.mrf.mxu1  ;;  %v2698_v15 = vpop.f32.mrf.mxu0 }
 0x203   : > { %v6496_v16 = vadd.f32 %v2696_v8, %v2243_v23 }
 0x204   : > { %v2165_v28 = vpop.f32.mrf.mxu1  ;;  %v2701_v9 = vpop.f32.mrf.mxu0 }
 0x205   : > { %v2244_v32 = vadd.f32 %v2165_v28, %v6317_v1 }
 0x206   : > { %v2167_v33 = vpop.f32.mrf.mxu1  ;;  %v2703_v34 = vpop.f32.mrf.mxu0 }
 0x207   : > { %v6499_v53 = vadd.f32 %v2701_v9, %v2244_v32 }
 0x208   : > { %v2168_v25 = vpop.f32.mrf.mxu1  ;;  %v2704_v42 = vpop.f32.mrf.mxu0 }
 0x209   : > { %v2245_v30 = vadd.f32 %v2168_v25, %v6324_v7 }
 0x20a   : > { %v2170_v19 = vpop.f32.mrf.mxu1  ;;  %v2706_v61 = vpop.f32.mrf.mxu0 }
 0x20b   : > { %v6502_v37 = vadd.f32 %v2704_v42, %v2245_v30 }
 0x20c   : > { %v2173_v43 = vpop.f32.mrf.mxu1  ;;  %v2709_v52 = vpop.f32.mrf.mxu0 }
 0x20d   : > { %v2246_v47 = vadd.f32 %v2173_v43, %v6329_v22 }
 0x20e   : > { %v2175_v44 = vpop.f32.mrf.mxu1  ;;  %v2711_v55 = vpop.f32.mrf.mxu0 }
 0x20f   : > { %v6505_v31 = vadd.f32 %v2709_v52, %v2246_v47 }
 0x210   : > { %v2176_v1 = vpop.f32.mrf.mxu1  ;;  %v2712_v54 = vpop.f32.mrf.mxu0 }
 0x211   : > { %v2247_v0 = vadd.f32 %v2176_v1, %v6336_v36 }
 0x212   : > { %v2178_v50 = vpop.f32.mrf.mxu1  ;;  %v2714_v12 = vpop.f32.mrf.mxu0 }
 0x213   : > { %v6508_v18 = vadd.f32 %v2712_v54, %v2247_v0 }
 0x214   : > { %v2181_v7 = vpop.f32.mrf.mxu1  ;;  %v2717_v63 = vpop.f32.mrf.mxu0 }
 0x215   : > { %v2248_v35 = vadd.f32 %v2181_v7, %v6341_v46 }
 0x216   : > { %v2183_v20 = vpop.f32.mrf.mxu1  ;;  %v2719_v5 = vpop.f32.mrf.mxu0 }
 0x217   : > { %v6511_v41 = vadd.f32 %v2717_v63, %v2248_v35 }
 0x218   : > { %v2184_v22 = vpop.f32.mrf.mxu1  ;;  %v2720_v8 = vpop.f32.mrf.mxu0 }
 0x219   : > { %v2249_v23 = vadd.f32 %v2184_v22, %v6348_v4 }
 0x21a   : > { %v2186_v49 = vpop.f32.mrf.mxu1  ;;  %v2722_v15 = vpop.f32.mrf.mxu0 }
 0x21b   : > { %v6514_v28 = vadd.f32 %v2720_v8, %v2249_v23 }
 0x21c   : > { %v2189_v36 = vpop.f32.mrf.mxu1  ;;  %v2725_v9 = vpop.f32.mrf.mxu0 }
 0x21d   : > { %v2250_v32 = vadd.f32 %v2189_v36, %v6353_v14 }
 0x21e   : > { %v2191_v33 = vpop.f32.mrf.mxu1  ;;  %v2727_v34 = vpop.f32.mrf.mxu0 }
 0x21f   : > { %v6517_v25 = vadd.f32 %v2725_v9, %v2250_v32 }
 0x220   : > { %v2192_v46 = vpop.f32.mrf.mxu1  ;;  %v2728_v42 = vpop.f32.mrf.mxu0 }
 0x221   : > { %v2251_v30 = vadd.f32 %v2192_v46, %v6360_v29 }
 0x222   : > { %v2194_v19 = vpop.f32.mrf.mxu1  ;;  %v2730_v61 = vpop.f32.mrf.mxu0 }
 0x223   : > { %v6520_v43 = vadd.f32 %v2728_v42, %v2251_v30 }
 0x224   : > { %v2197_v4 = vpop.f32.mrf.mxu1  ;;  %v2733_v52 = vpop.f32.mrf.mxu0 }
 0x225   : > { %v2252_v47 = vadd.f32 %v2197_v4, %v6365_v57 }
 0x226   : > { %v2199_v44 = vpop.f32.mrf.mxu1  ;;  %v2735_v55 = vpop.f32.mrf.mxu0 }
 0x227   : > { %v6523_v1 = vadd.f32 %v2733_v52, %v2252_v47 }
 0x228   : > { %v2200_v14 = vpop.f32.mrf.mxu1  ;;  %v2736_v54 = vpop.f32.mrf.mxu0 }
 0x229   : > { %v2253_v0 = vadd.f32 %v2200_v14, %v6372_v62 }
 0x22a   : > { %v2202_v50 = vpop.f32.mrf.mxu1  ;;  %v2738_v12 = vpop.f32.mrf.mxu0 }
 0x22b   : > { %v6526_v7 = vadd.f32 %v2736_v54, %v2253_v0 }
 0x22c   : > { %v2205_v29 = vpop.f32.mrf.mxu1  ;;  %v2741_v63 = vpop.f32.mrf.mxu0 }
 0x22d   : > { %v2254_v35 = vadd.f32 %v2205_v29, %v6377_v10 }
 0x22e   : > { %v2207_v20 = vpop.f32.mrf.mxu1  ;;  %v2743_v5 = vpop.f32.mrf.mxu0 }
 0x22f   : > { %v6529_v22 = vadd.f32 %v2741_v63, %v2254_v35 }
 0x230   : > { %v2208_v57 = vpop.f32.mrf.mxu1  ;;  %v2744_v8 = vpop.f32.mrf.mxu0 }
 0x231   : > { %v2255_v23 = vadd.f32 %v2208_v57, %v6384_v24 }
 0x232   : > { %v2210_v49 = vpop.f32.mrf.mxu1  ;;  %v2746_v15 = vpop.f32.mrf.mxu0 }
 0x233   : > { %v6532_v36 = vadd.f32 %v2744_v8, %v2255_v23  ;;  %v6559_v15 = vld [vmem:[%s6681_s3] ss:$0 sm:$0xff] }
 0x234   : > { %v2213_v62 = vpop.f32.mrf.mxu1  ;;  %v2749_v9 = vpop.f32.mrf.mxu0 }
 0x235   : > { %v2256_v32 = vadd.f32 %v2213_v62, %v6389_v26 }
 0x236   : > { %v2215_v33 = vpop.f32.mrf.mxu1  ;;  %v2751_v34 = vpop.f32.mrf.mxu0 }
 0x237   : > { %v6535_v46 = vadd.f32 %v2749_v9, %v2256_v32 }
 0x238   : > { %v2216_v10 = vpop.f32.mrf.mxu1  ;;  %v2752_v42 = vpop.f32.mrf.mxu0 }
 0x239   : > { %v2257_v30 = vadd.f32 %v2216_v10, %v6396_v48 }
 0x23a   : > { %v2218_v19 = vpop.f32.mrf.mxu1  ;;  %v2754_v61 = vpop.f32.mrf.mxu0 }
 0x23b   : > { %v6538_v24 = vadd.f32 %v2752_v42, %v2257_v30 }
 0x23c   : > { %v2221_v4 = vpop.f32.mrf.mxu1  ;;  %v2757_v52 = vpop.f32.mrf.mxu0 }
 0x23d   : > { %v2258_v47 = vadd.f32 %v2221_v4, %v6401_v40  ;;  %v6552_v40 = vld [vmem:[%s6680_s2] ss:$0 sm:$0xff] }
 0x23e   : > { %v2223_v44 = vpop.f32.mrf.mxu1  ;;  %v2759_v55 = vpop.f32.mrf.mxu0 }
 0x23f   : > { %v6541_v26 = vadd.f32 %v2757_v52, %v2258_v47 }
 0x240   : > { %v2224_v14 = vpop.f32.mrf.mxu1  ;;  %v2760_v54 = vpop.f32.mrf.mxu0 }
 0x241   : > { %v2259_v0 = vadd.f32 %v2224_v14, %v6408_v21 }
 0x242   : > { %v2226_v50 = vpop.f32.mrf.mxu1  ;;  %v2762_v12 = vpop.f32.mrf.mxu0 }
 0x243   : > { %v6544_v48 = vadd.f32 %v2760_v54, %v2259_v0 }
 0x244   : > { %v3173_v29 = vpop.f32.mrf.mxu1  ;;  %v3709_v63 = vpop.f32.mrf.mxu0 }
 0x245   : > { %v3300_v35 = vadd.f32 %v3173_v29, %v6413_v60 }
 0x246   : > { %v3175_v20 = vpop.f32.mrf.mxu1  ;;  %v3711_v5 = vpop.f32.mrf.mxu0 }
 0x247   : > { %v3836_v57 = vadd.f32 %v3709_v63, %v3300_v35 }
 0x248   : > { %v3176_v21 = vpop.f32.mrf.mxu1  ;;  %v3712_v8 = vpop.f32.mrf.mxu0 }
 0x249   : > { %v3875_v23 = vmul.f32 %v6552_v40, %v3836_v57  ;;  %v3301_v49 = vadd.f32 %v3176_v21, %v6420_v45 }
 0x24a   : > { %v3178_v60 = vpop.f32.mrf.mxu1  ;;  %v3714_v62 = vpop.f32.mrf.mxu0 }
 0x24b   : > { %v3837_v9 = vadd.f32 %v3712_v8, %v3301_v49  ;;  %v3914_v34 = vadd.f32 %v6559_v15, %v3875_v23 }
 0x24c   : > { %v3181_v32 = vpop.f32.mrf.mxu1  ;;  %v3717_v33 = vpop.f32.mrf.mxu0 }
 0x24d   : > { %v3876_v10 = vmul.f32 %v6552_v40, %v3837_v9  ;;  %v3302_v42 = vadd.f32 %v3181_v32, %v6425_v17  ;;  %v3946_v47 = vmax.f32 %v3914_v34, 0.0 }
 0x24e   : > { %v3183_v30 = vpop.f32.mrf.mxu1  ;;  %v3719_v19 = vpop.f32.mrf.mxu0 }
 0x24f   : > { %v3915_v45 = vadd.f32 %v6559_v15, %v3876_v10  ;;  %v3838_v61 = vadd.f32 %v3717_v33, %v3302_v42 }
 0x250   : > { %v3184_v4 = vpop.f32.mrf.mxu1  ;;  %v3720_v52 = vpop.f32.mrf.mxu0 }
 0x251   : > { %v3947_v44 = vmax.f32 %v3915_v45, 0.0  ;;  %v3877_v55 = vmul.f32 %v6552_v40, %v3838_v61  ;;  %v3303_v14 = vadd.f32 %v3184_v4, %v6432_v13 }
 0x252   : > { %v3186_v17 = vpop.f32.mrf.mxu1  ;;  %v3722_v54 = vpop.f32.mrf.mxu0 }
 0x253   : > { %v4897_v0 = vpack.c.bf16 %v3947_v44, %v3946_v47  ;;  %v3839_v50 = vadd.f32 %v3720_v52, %v3303_v14  ;;  %v3916_v63 = vadd.f32 %v6559_v15, %v3877_v55 }
 0x254   : > { %v3189_v12 = vpop.f32.mrf.mxu1  ;;  %v3725_v29 = vpop.f32.mrf.mxu0 }
 0x255   : > { %4898 = vst [vmem:[%s6570_s26] sm:$0xff] %v4897_v0   ;;  %v3878_v35 = vmul.f32 %v6552_v40, %v3839_v50  ;;  %v3304_v20 = vadd.f32 %v3189_v12, %v6437_v39  ;;  %v3948_v49 = vmax.f32 %v3916_v63, 0.0 }
 0x256   : > { %v3191_v13 = vpop.f32.mrf.mxu1  ;;  %v3727_v5 = vpop.f32.mrf.mxu0 }
 0x257   : > { %v3917_v57 = vadd.f32 %v6559_v15, %v3878_v35  ;;  %v3840_v21 = vadd.f32 %v3725_v29, %v3304_v20 }
 0x258   : > { %v3192_v8 = vpop.f32.mrf.mxu1  ;;  %v3728_v23 = vpop.f32.mrf.mxu0 }
 0x259   : > { %v3949_v60 = vmax.f32 %v3917_v57, 0.0  ;;  %v3879_v62 = vmul.f32 %v6552_v40, %v3840_v21  ;;  %v3305_v9 = vadd.f32 %v3192_v8, %v6444_v38 }
 0x25a   : > { %v3194_v32 = vpop.f32.mrf.mxu1  ;;  %v3730_v33 = vpop.f32.mrf.mxu0 }
 0x25b   : > { %v4902_v34 = vpack.c.bf16 %v3949_v60, %v3948_v49  ;;  %v3841_v10 = vadd.f32 %v3728_v23, %v3305_v9  ;;  %v3918_v30 = vadd.f32 %v6559_v15, %v3879_v62 }
 0x25c   : > { %v3197_v42 = vpop.f32.mrf.mxu1  ;;  %v3733_v39 = vpop.f32.mrf.mxu0 }
 0x25d   : > { %4974 = vst [vmem:[%s6570_s26 + $0x8] sm:$0xff] %v4902_v34   ;;  %v3880_v19 = vmul.f32 %v6552_v40, %v3841_v10  ;;  %v3306_v45 = vadd.f32 %v3197_v42, %v6449_v56  ;;  %v3950_v55 = vmax.f32 %v3918_v30, 0.0 }
 0x25e   : > { %v3199_v61 = vpop.f32.mrf.mxu1  ;;  %v3735_v4 = vpop.f32.mrf.mxu0 }
 0x25f   : > { %v3919_v52 = vadd.f32 %v6559_v15, %v3880_v19  ;;  %v3842_v47 = vadd.f32 %v3733_v39, %v3306_v45 }
 0x260   : > { %v3200_v38 = vpop.f32.mrf.mxu1  ;;  %v3736_v44 = vpop.f32.mrf.mxu0 }
 0x261   : > { %v3951_v14 = vmax.f32 %v3919_v52, 0.0  ;;  %v3881_v17 = vmul.f32 %v6552_v40, %v3842_v47  ;;  %v3307_v54 = vadd.f32 %v3200_v38, %v6456_v6 }
 0x262   : > { %v3202_v0 = vpop.f32.mrf.mxu1  ;;  %v3738_v50 = vpop.f32.mrf.mxu0 }
 0x263   : > { %v4907_v12 = vpack.c.bf16 %v3951_v14, %v3950_v55  ;;  %v3843_v29 = vadd.f32 %v3736_v44, %v3307_v54  ;;  %v3920_v35 = vadd.f32 %v6559_v15, %v3881_v17 }
 0x264   : > { %v3205_v63 = vpop.f32.mrf.mxu1  ;;  %v3741_v56 = vpop.f32.mrf.mxu0 }
 0x265   : > { %4975 = vst [vmem:[%s6570_s26 + $0x10] sm:$0xff] %v4907_v12   ;;  %v3882_v20 = vmul.f32 %v6552_v40, %v3843_v29  ;;  %v3308_v13 = vadd.f32 %v3205_v63, %v6461_v58  ;;  %v3952_v49 = vmax.f32 %v3920_v35, 0.0 }
 0x266   : > { %v3207_v5 = vpop.f32.mrf.mxu1  ;;  %v3743_v57 = vpop.f32.mrf.mxu0 }
 0x267   : > { %v3921_v21 = vadd.f32 %v6559_v15, %v3882_v20  ;;  %v3844_v8 = vadd.f32 %v3741_v56, %v3308_v13 }
 0x268   : > { %v3208_v6 = vpop.f32.mrf.mxu1  ;;  %v3744_v23 = vpop.f32.mrf.mxu0 }
 0x269   : > { %v3953_v60 = vmax.f32 %v3921_v21, 0.0  ;;  %v3883_v62 = vmul.f32 %v6552_v40, %v3844_v8  ;;  %v3309_v9 = vadd.f32 %v3208_v6, %v6468_v51 }
 0x26a   : > { %v3210_v32 = vpop.f32.mrf.mxu1  ;;  %v3746_v33 = vpop.f32.mrf.mxu0 }
 0x26b   : > { %v4912_v34 = vpack.c.bf16 %v3953_v60, %v3952_v49  ;;  %v3845_v10 = vadd.f32 %v3744_v23, %v3309_v9  ;;  %v3922_v39 = vadd.f32 %v6559_v15, %v3883_v62 }
 0x26c   : > { %v3213_v42 = vpop.f32.mrf.mxu1  ;;  %v3749_v58 = vpop.f32.mrf.mxu0 }
 0x26d   : > { %4976 = vst [vmem:[%s6570_s26 + $0x18] sm:$0xff] %v4912_v34   ;;  %v3884_v30 = vmul.f32 %v6552_v40, %v3845_v10  ;;  %v3310_v19 = vadd.f32 %v3213_v42, %v6473_v11  ;;  %v3954_v38 = vmax.f32 %v3922_v39, 0.0 }
 0x26e   : > { %v3215_v45 = vpop.f32.mrf.mxu1  ;;  %v3751_v61 = vpop.f32.mrf.mxu0 }
 0x26f   : > { %v3923_v4 = vadd.f32 %v6559_v15, %v3884_v30  ;;  %v3846_v52 = vadd.f32 %v3749_v58, %v3310_v19 }
 0x270   : > { %v3216_v51 = vpop.f32.mrf.mxu1  ;;  %v3752_v47 = vpop.f32.mrf.mxu0 }
 0x271   : > { %v3955_v44 = vmax.f32 %v3923_v4, 0.0  ;;  %v3885_v55 = vmul.f32 %v6552_v40, %v3846_v52  ;;  %v3311_v14 = vadd.f32 %v3216_v51, %v6480_v2 }
 0x272   : > { %v3218_v17 = vpop.f32.mrf.mxu1  ;;  %v3754_v54 = vpop.f32.mrf.mxu0 }
 0x273   : > { %v4917_v0 = vpack.c.bf16 %v3955_v44, %v3954_v38  ;;  %v3847_v50 = vadd.f32 %v3752_v47, %v3311_v14  ;;  %v3924_v29 = vadd.f32 %v6559_v15, %v3885_v55 }
 0x274   : > { %v3221_v12 = vpop.f32.mrf.mxu1  ;;  %v3757_v11 = vpop.f32.mrf.mxu0 }
 0x275   : > { %4977 = vst [vmem:[%s6570_s26 + $0x20] sm:$0xff] %v4917_v0   ;;  %v3886_v63 = vmul.f32 %v6552_v40, %v3847_v50  ;;  %v3312_v56 = vadd.f32 %v3221_v12, %v6485_v27  ;;  %v3956_v21 = vmax.f32 %v3924_v29, 0.0 }
 0x276   : > { %v3223_v35 = vpop.f32.mrf.mxu1  ;;  %v3759_v20 = vpop.f32.mrf.mxu0 }
 0x277   : > { %v3925_v13 = vadd.f32 %v6559_v15, %v3886_v63  ;;  %v3848_v5 = vadd.f32 %v3757_v11, %v3312_v56 }
 0x278   : > { %v3224_v2 = vpop.f32.mrf.mxu1  ;;  %v3760_v57 = vpop.f32.mrf.mxu0 }
 0x279   : > { %v3957_v8 = vmax.f32 %v3925_v13, 0.0  ;;  %v3887_v6 = vmul.f32 %v6552_v40, %v3848_v5  ;;  %v3313_v23 = vadd.f32 %v3224_v2, %v6490_v59 }
 0x27a   : > { %v3226_v49 = vpop.f32.mrf.mxu1  ;;  %v3762_v60 = vpop.f32.mrf.mxu0 }
 0x27b   : > { %v4922_v62 = vpack.c.bf16 %v3957_v8, %v3956_v21  ;;  %v3849_v9 = vadd.f32 %v3760_v57, %v3313_v23  ;;  %v3926_v33 = vadd.f32 %v6559_v15, %v3887_v6 }
 0x27c   : > { %v3229_v32 = vpop.f32.mrf.mxu1  ;;  %v3765_v27 = vpop.f32.mrf.mxu0 }
 0x27d   : > { %4978 = vst [vmem:[%s6570_s26 + $0x28] sm:$0xff] %v4922_v62   ;;  %v3888_v34 = vmul.f32 %v6552_v40, %v3849_v9  ;;  %v3314_v10 = vadd.f32 %v3229_v32, %v6493_v3  ;;  %v3958_v45 = vmax.f32 %v3926_v33, 0.0 }
 0x27e   : > { %v3231_v42 = vpop.f32.mrf.mxu1  ;;  %v3767_v58 = vpop.f32.mrf.mxu0 }
 0x27f   : > { %v3927_v39 = vadd.f32 %v6559_v15, %v3888_v34  ;;  %v3850_v30 = vadd.f32 %v3765_v27, %v3314_v10 }
 0x280   : > { %v3232_v59 = vpop.f32.mrf.mxu1  ;;  %v3768_v19 = vpop.f32.mrf.mxu0 }
 0x281   : > { %v3959_v61 = vmax.f32 %v3927_v39, 0.0  ;;  %v3889_v4 = vmul.f32 %v6552_v40, %v3850_v30  ;;  %v3315_v52 = vadd.f32 %v3232_v59, %v6496_v16 }
 0x282   : > { %v3234_v51 = vpop.f32.mrf.mxu1  ;;  %v3770_v47 = vpop.f32.mrf.mxu0 }
 0x283   : > { %v4927_v38 = vpack.c.bf16 %v3959_v61, %v3958_v45  ;;  %v3851_v44 = vadd.f32 %v3768_v19, %v3315_v52  ;;  %v3928_v14 = vadd.f32 %v6559_v15, %v3889_v4 }
 0x284   : > { %v3237_v55 = vpop.f32.mrf.mxu1  ;;  %v3773_v3 = vpop.f32.mrf.mxu0 }
 0x285   : > { %4979 = vst [vmem:[%s6570_s26 + $0x30] sm:$0xff] %v4927_v38   ;;  %v3890_v17 = vmul.f32 %v6552_v40, %v3851_v44  ;;  %v3316_v54 = vadd.f32 %v3237_v55, %v6499_v53  ;;  %v3960_v63 = vmax.f32 %v3928_v14, 0.0 }
 0x286   : > { %v3239_v0 = vpop.f32.mrf.mxu1  ;;  %v3775_v50 = vpop.f32.mrf.mxu0 }
 0x287   : > { %v3929_v12 = vadd.f32 %v6559_v15, %v3890_v17  ;;  %v3852_v11 = vadd.f32 %v3773_v3, %v3316_v54 }
 0x288   : > { %v3240_v16 = vpop.f32.mrf.mxu1  ;;  %v3776_v29 = vpop.f32.mrf.mxu0 }
 0x289   : > { %v3961_v56 = vmax.f32 %v3929_v12, 0.0  ;;  %v3891_v35 = vmul.f32 %v6552_v40, %v3852_v11  ;;  %v3317_v20 = vadd.f32 %v3240_v16, %v6502_v37 }
 0x28a   : > { %v3242_v13 = vpop.f32.mrf.mxu1  ;;  %v3778_v5 = vpop.f32.mrf.mxu0 }
 0x28b   : > { %v4932_v2 = vpack.c.bf16 %v3961_v56, %v3960_v63  ;;  %v3853_v57 = vadd.f32 %v3776_v29, %v3317_v20  ;;  %v3930_v8 = vadd.f32 %v6559_v15, %v3891_v35 }
 0x28c   : > { %v3245_v21 = vpop.f32.mrf.mxu1  ;;  %v3781_v53 = vpop.f32.mrf.mxu0 }
 0x28d   : > { %4980 = vst [vmem:[%s6570_s26 + $0x38] sm:$0xff] %v4932_v2   ;;  %v3892_v6 = vmul.f32 %v6552_v40, %v3853_v57  ;;  %v3318_v23 = vadd.f32 %v3245_v21, %v6505_v31  ;;  %v3962_v27 = vmax.f32 %v3930_v8, 0.0 }
 0x28e   : > { %v3247_v49 = vpop.f32.mrf.mxu1  ;;  %v3783_v60 = vpop.f32.mrf.mxu0 }
 0x28f   : > { %v3931_v62 = vadd.f32 %v6559_v15, %v3892_v6  ;;  %v3854_v9 = vadd.f32 %v3781_v53, %v3318_v23 }
 0x290   : > { %v3248_v37 = vpop.f32.mrf.mxu1  ;;  %v3784_v32 = vpop.f32.mrf.mxu0 }
 0x291   : > { %v3963_v33 = vmax.f32 %v3931_v62, 0.0  ;;  %v3893_v34 = vmul.f32 %v6552_v40, %v3854_v9  ;;  %v3319_v10 = vadd.f32 %v3248_v37, %v6508_v18 }
 0x292   : > { %v3250_v42 = vpop.f32.mrf.mxu1  ;;  %v3786_v58 = vpop.f32.mrf.mxu0 }
 0x293   : > { %v4937_v39 = vpack.c.bf16 %v3963_v33, %v3962_v27  ;;  %v3855_v30 = vadd.f32 %v3784_v32, %v3319_v10  ;;  %v3932_v19 = vadd.f32 %v6559_v15, %v3893_v34 }
 0x294   : > { %v3253_v59 = vpop.f32.mrf.mxu1  ;;  %v3789_v31 = vpop.f32.mrf.mxu0 }
 0x295   : > { %4981 = vst [vmem:[%s6570_s26 + $0x40] sm:$0xff] %v4937_v39   ;;  %v3894_v45 = vmul.f32 %v6552_v40, %v3855_v30  ;;  %v3320_v61 = vadd.f32 %v3253_v59, %v6511_v41  ;;  %v3964_v44 = vmax.f32 %v3932_v19, 0.0 }
 0x296   : > { %v3255_v4 = vpop.f32.mrf.mxu1  ;;  %v3791_v52 = vpop.f32.mrf.mxu0 }
 0x297   : > { %v3933_v51 = vadd.f32 %v6559_v15, %v3894_v45  ;;  %v3856_v47 = vadd.f32 %v3789_v31, %v3320_v61 }
 0x298   : > { %v3256_v18 = vpop.f32.mrf.mxu1  ;;  %v3792_v38 = vpop.f32.mrf.mxu0 }
 0x299   : > { %v3965_v55 = vmax.f32 %v3933_v51, 0.0  ;;  %v3895_v3 = vmul.f32 %v6552_v40, %v3856_v47  ;;  %v3321_v14 = vadd.f32 %v3256_v18, %v6514_v28 }
 0x29a   : > { %v3258_v17 = vpop.f32.mrf.mxu1  ;;  %v3794_v54 = vpop.f32.mrf.mxu0 }
 0x29b   : > { %v4942_v0 = vpack.c.bf16 %v3965_v55, %v3964_v44  ;;  %v3857_v50 = vadd.f32 %v3792_v38, %v3321_v14  ;;  %v3934_v11 = vadd.f32 %v6559_v15, %v3895_v3 }
 0x29c   : > { %v3261_v12 = vpop.f32.mrf.mxu1  ;;  %v3797_v41 = vpop.f32.mrf.mxu0 }
 0x29d   : > { %4982 = vst [vmem:[%s6570_s26 + $0x48] sm:$0xff] %v4942_v0   ;;  %v3896_v16 = vmul.f32 %v6552_v40, %v3857_v50  ;;  %v3322_v29 = vadd.f32 %v3261_v12, %v6517_v25  ;;  %v3966_v5 = vmax.f32 %v3934_v11, 0.0 }
 0x29e   : > { %v3263_v63 = vpop.f32.mrf.mxu1  ;;  %v3799_v56 = vpop.f32.mrf.mxu0 }
 0x29f   : > { %v3935_v35 = vadd.f32 %v6559_v15, %v3896_v16  ;;  %v3858_v20 = vadd.f32 %v3797_v41, %v3322_v29 }
 0x2a0   : > { %v3264_v28 = vpop.f32.mrf.mxu1  ;;  %v3800_v13 = vpop.f32.mrf.mxu0 }
 0x2a1   : > { %v3967_v2 = vmax.f32 %v3935_v35, 0.0  ;;  %v3897_v57 = vmul.f32 %v6552_v40, %v3858_v20  ;;  %v3323_v21 = vadd.f32 %v3264_v28, %v6520_v43 }
 0x2a2   : > { %v3266_v53 = vpop.f32.mrf.mxu1  ;;  %v3802_v8 = vpop.f32.mrf.mxu0 }
 0x2a3   : > { %v4947_v6 = vpack.c.bf16 %v3967_v2, %v3966_v5  ;;  %v3859_v23 = vadd.f32 %v3800_v13, %v3323_v21  ;;  %v3936_v60 = vadd.f32 %v6559_v15, %v3897_v57 }
 0x2a4   : > { %v3269_v49 = vpop.f32.mrf.mxu1  ;;  %v3805_v25 = vpop.f32.mrf.mxu0 }
 0x2a5   : > { %4983 = vst [vmem:[%s6570_s26 + $0x50] sm:$0xff] %v4947_v6   ;;  %v3898_v62 = vmul.f32 %v6552_v40, %v3859_v23  ;;  %v3324_v9 = vadd.f32 %v3269_v49, %v6523_v1  ;;  %v3968_v10 = vmax.f32 %v3936_v60, 0.0 }
 0x2a6   : > { %v3271_v37 = vpop.f32.mrf.mxu1  ;;  %v3807_v32 = vpop.f32.mrf.mxu0 }
 0x2a7   : > { %v3937_v27 = vadd.f32 %v6559_v15, %v3898_v62  ;;  %v3860_v33 = vadd.f32 %v3805_v25, %v3324_v9 }
 0x2a8   : > { %v3272_v43 = vpop.f32.mrf.mxu1  ;;  %v3808_v34 = vpop.f32.mrf.mxu0 }
 0x2a9   : > { %v3969_v42 = vmax.f32 %v3937_v27, 0.0  ;;  %v3899_v58 = vmul.f32 %v6552_v40, %v3860_v33  ;;  %v3325_v39 = vadd.f32 %v3272_v43, %v6526_v7 }
 0x2aa   : > { %v3274_v30 = vpop.f32.mrf.mxu1  ;;  %v3810_v59 = vpop.f32.mrf.mxu0 }
 0x2ab   : > { %v4952_v31 = vpack.c.bf16 %v3969_v42, %v3968_v10  ;;  %v3861_v19 = vadd.f32 %v3808_v34, %v3325_v39  ;;  %v3938_v61 = vadd.f32 %v6559_v15, %v3899_v58 }
 0x2ac   : > { %v3277_v45 = vpop.f32.mrf.mxu1  ;;  %v3813_v1 = vpop.f32.mrf.mxu0 }
 0x2ad   : > { %4984 = vst [vmem:[%s6570_s26 + $0x58] sm:$0xff] %v4952_v31   ;;  %v3900_v4 = vmul.f32 %v6552_v40, %v3861_v19  ;;  %v3326_v52 = vadd.f32 %v3277_v45, %v6529_v22  ;;  %v3970_v55 = vmax.f32 %v3938_v61, 0.0 }
 0x2ae   : > { %v3279_v51 = vpop.f32.mrf.mxu1  ;;  %v3815_v47 = vpop.f32.mrf.mxu0 }
 0x2af   : > { %v3939_v18 = vadd.f32 %v6559_v15, %v3900_v4  ;;  %v3862_v38 = vadd.f32 %v3813_v1, %v3326_v52 }
 0x2b0   : > { %v3280_v7 = vpop.f32.mrf.mxu1  ;;  %v3816_v44 = vpop.f32.mrf.mxu0 }
 0x2b1   : > { %v3971_v3 = vmax.f32 %v3939_v18, 0.0  ;;  %v3901_v14 = vmul.f32 %v6552_v40, %v3862_v38  ;;  %v3327_v17 = vadd.f32 %v3280_v7, %v6532_v36 }
 0x2b2   : > { %v3282_v54 = vpop.f32.mrf.mxu1  ;;  %v3818_v0 = vpop.f32.mrf.mxu0 }
 0x2b3   : > { %v4957_v50 = vpack.c.bf16 %v3971_v3, %v3970_v55  ;;  %v3863_v12 = vadd.f32 %v3816_v44, %v3327_v17  ;;  %v3940_v11 = vadd.f32 %v6559_v15, %v3901_v14 }
 0x2b4   : > { %v3285_v41 = vpop.f32.mrf.mxu1  ;;  %v3821_v22 = vpop.f32.mrf.mxu0 }
 0x2b5   : > { %4985 = vst [vmem:[%s6570_s26 + $0x60] sm:$0xff] %v4957_v50   ;;  %v3902_v16 = vmul.f32 %v6552_v40, %v3863_v12  ;;  %v3328_v29 = vadd.f32 %v3285_v41, %v6535_v46  ;;  %v3972_v13 = vmax.f32 %v3940_v11, 0.0 }
 0x2b6   : > { %v3287_v63 = vpop.f32.mrf.mxu1  ;;  %v3823_v56 = vpop.f32.mrf.mxu0 }
 0x2b7   : > { %v3941_v35 = vadd.f32 %v6559_v15, %v3902_v16  ;;  %v3864_v20 = vadd.f32 %v3821_v22, %v3328_v29 }
 0x2b8   : > { %v3288_v36 = vpop.f32.mrf.mxu1  ;;  %v3824_v28 = vpop.f32.mrf.mxu0 }
 0x2b9   : > { %v3973_v5 = vmax.f32 %v3941_v35, 0.0  ;;  %v3903_v2 = vmul.f32 %v6552_v40, %v3864_v20  ;;  %v3329_v57 = vadd.f32 %v3288_v36, %v6538_v24 }
 0x2ba   : > { %v3290_v21 = vpop.f32.mrf.mxu1  ;;  %v3826_v53 = vpop.f32.mrf.mxu0 }
 0x2bb   : > { %v4962_v8 = vpack.c.bf16 %v3973_v5, %v3972_v13  ;;  %v3865_v6 = vadd.f32 %v3824_v28, %v3329_v57  ;;  %v3942_v49 = vadd.f32 %v6559_v15, %v3903_v2 }
 0x2bc   : > { %v3293_v23 = vpop.f32.mrf.mxu1  ;;  %v3829_v46 = vpop.f32.mrf.mxu0 }
 0x2bd   : > { %4986 = vst [vmem:[%s6570_s26 + $0x68] sm:$0xff] %v4962_v8   ;;  %v3904_v25 = vmul.f32 %v6552_v40, %v3865_v6  ;;  %v3330_v60 = vadd.f32 %v3293_v23, %v6541_v26  ;;  %v3974_v33 = vmax.f32 %v3942_v49, 0.0 }
 0x2be   : > { %v3295_v62 = vpop.f32.mrf.mxu1  ;;  %v3831_v9 = vpop.f32.mrf.mxu0 }
 0x2bf   : > { %v3943_v37 = vadd.f32 %v6559_v15, %v3904_v25  ;;  %v3866_v32 = vadd.f32 %v3829_v46, %v3330_v60 }
 0x2c0   : > { %v3296_v24 = vpop.f32.mrf.mxu1  ;;  %v3832_v27 = vpop.f32.mrf.mxu0 }
 0x2c1   : > { %v3975_v43 = vmax.f32 %v3943_v37, 0.0  ;;  %v3905_v34 = vmul.f32 %v6552_v40, %v3866_v32  ;;  %v3331_v10 = vadd.f32 %v3296_v24, %v6544_v48 }
 0x2c2   : > { %v3298_v42 = vpop.f32.mrf.mxu1  ;;  %v3834_v58 = vpop.f32.mrf.mxu0 }
 0x2c3   : > { %v4967_v39 = vpack.c.bf16 %v3975_v43, %v3974_v33  ;;  %v3867_v30 = vadd.f32 %v3832_v27, %v3331_v10  ;;  %v3944_v26 = vadd.f32 %v6559_v15, %v3905_v34 }
 0x2c5   : > { %4987 = vst [vmem:[%s6570_s26 + $0x70] sm:$0xff] %v4967_v39   ;;  %v3906_v59 = vmul.f32 %v6552_v40, %v3867_v30  ;;  %v3976_v19 = vmax.f32 %v3944_v26, 0.0 }
 0x2c7   : > { %v3945_v31 = vadd.f32 %v6559_v15, %v3906_v59 }
 0x2c9   : > { %v3977_v45 = vmax.f32 %v3945_v31, 0.0 }
 0x2cb   : > { %v4972_v1 = vpack.c.bf16 %v3977_v45, %v3976_v19 }
 0x2cd   : > { %4988 = vst [vmem:[%s6570_s26 + $0x78] sm:$0xff] %v4972_v1  }
 0x2ce PF: > { %s14_s15 = sadd.s32 1, %s5466_s15  }
 0x2cf   : > { %p11_p4 = scmp.ge.s32.totalorder %s14_s15, 4  }
 0x2d1   :  { %13 = sbr.rel (!%p11_p4) target bundleno = 1 (0x1), region = 76 }

// kernel: smnet_forward.5
= control target key start
LH: loop header
LB: loop body
LE: loop exit
PB: predicated region body
PF: predicated region fallthrough
CT: control target
= control target key end

     0   :  { %s4321_s15 = smov 0   ;;  %s5291_s0 = inlined_call_operand.vmem [shape: bf16[560,384], index: 0, kind: input, shape index: {}]   ;;  %s5292_s1 = inlined_call_operand.vmem [shape: bf16[3,384,64], index: 1, kind: input, shape index: {}]   ;;  %s5293_s2 = inlined_call_operand.vmem [shape: f32[1,64], index: 2, kind: input, shape index: {}]   ;;  %s5294_s3 = inlined_call_operand.vmem [shape: f32[1,64], index: 3, kind: input, shape index: {}]   ;;  %s5295_s4 = inlined_call_operand.vmem [shape: bf16[512,64], index: 4, kind: output, shape index: {}]  }
   0x1 LB: > { %s3055_s16 = sadd.s32 4294967295, %s4294_s15   ;;  %p3058_p0 = scmp.ge.s32.totalorder %s4294_s15, 1  ;;  %s4294_s15 = sphi %s4321_s15, %s14_s15  }
   0x2   : > { %p152_p1 = scmp.lt.s32.totalorder %s4294_s15, 3 }
   0x4   : > { %p153_p2 = pnand %p3058_p0, %p152_p1 }
   0x6   : > { %156 = sbr.rel (%p153_p2) target bundleno = 538 (0x21a), region = 36 }
   0xb   : > { %v4024_v0 = vld [vmem:[%s5292_s1 + $0x138] sm:$0xff]   ;;  %s4337_s21 = sshll.u32 %s3055_s16, 8  ;;  %v4026_v2 = vld [vmem:[%s5292_s1 + $0x130] sm:$0xff]   ;;  %v4028_v4 = vld [vmem:[%s5292_s1 + $0x128] sm:$0xff]   ;;  %vm2972_vm0 = vcmask 519168  }
   0xc   : > { %v4025_v1 = vld [vmem:[%s5292_s1 + $0xf8] sm:$0xff]   ;;  %3448 = vmatprep.subr.bf16.mxu0 %v4024_v0  ;;  %4000 = vmatprep.subr.bf16.mxu1 %v4024_v0  ;;  %v4027_v3 = vld [vmem:[%s5292_s1 + $0xf0] sm:$0xff]   ;;  %s298_s28 = sadd.s32 24, %s4337_s21  ;;  %v4029_v5 = vld [vmem:[%s5292_s1 + $0xe8] sm:$0xff]   ;;  %s181_s11 = sshra.s32 %s4337_s21, 3 }
   0xd   : > { %3449 = vmatpush3.bf16.msra.mxu0 %v4025_v1  ;;  %4008 = vmatpush3.bf16.msra.mxu1 %v4025_v1  ;;  %s299_s5 = sshra.s32 %s298_s28, 3  ;;  %v4030_v6 = vld [vmem:[%s5292_s1 + $0x120] sm:$0xff]   ;;  %v4032_v8 = vld [vmem:[%s5292_s1 + $0x118] sm:$0xff]   ;;  %v4034_v10 = vld [vmem:[%s5292_s1 + $0x110] sm:$0xff]   ;;  %s3413_s19 = smul.u32 12, %s181_s11 }
   0xe   : > { %3450 = vmatprep.subr.bf16.mxu0 %v4026_v2  ;;  %4001 = vmatprep.subr.bf16.mxu1 %v4026_v2  ;;  %s3414_s8 = smul.u32 12, %s299_s5  ;;  %v4031_v7 = vld [vmem:[%s5292_s1 + $0xe0] sm:$0xff]   ;;  %v4033_v9 = vld [vmem:[%s5292_s1 + $0xd8] sm:$0xff]   ;;  %v4035_v13 = vld [vmem:[%s5292_s1 + $0xd0] sm:$0xff]   ;;  %s1861_s14 = sadd.s32 48, %s4337_s21 }
   0xf   : > { %v4036_v14 = vld [vmem:[%s5292_s1 + $0x108] sm:$0xff]   ;;  %v4038_v16 = vld [vmem:[%s5292_s1 + $0x100] sm:$0xff]   ;;  %v4046_v18 = vld [vmem:[%s5292_s1 + $0x178] sm:$0xff]   ;;  %s4507_s27 = scalar_lea.vmem %s5291_s0, %s3413_s19  ;;  %s1862_s18 = sshra.s32 %s1861_s14, 3 }
  0x10   : > { %s4364_s17 = scalar_lea.vmem %s5291_s0, %s3414_s8  ;;  %v4037_v15 = vld [vmem:[%s5292_s1 + $0xc8] sm:$0xff]   ;;  %v4039_v17 = vld [vmem:[%s5292_s1 + $0xc0] sm:$0xff]   ;;  %v4047_v19 = vld [vmem:[%s5292_s1 + $0xb8] sm:$0xff]   ;;  %s3415_s21 = smul.u32 12, %s1862_s18 }
  0x11   : > { %3451 = vmatpush3.bf16.msra.mxu0 %v4027_v3  ;;  %4009 = vmatpush3.bf16.msra.mxu1 %v4027_v3  ;;  %v4042_v11 = vld [vmem:[%s4364_s17 + $0x4] ss:$12 sps:$4 sm:$0xff]   ;;  %v4040_v20 = vld [vmem:[%s4364_s17] ss:$12 sps:$4 sm:$0xff]   ;;  %v4049_v23 = vld [vmem:[%s4364_s17 + $0x1c] ss:$12 sps:$4 sm:$0xff]  }
  0x12   : > { %3452 = vmatprep.subr.bf16.mxu0 %v4028_v4  ;;  %4002 = vmatprep.subr.bf16.mxu1 %v4028_v4  ;;  %v4045_v12 = vld [vmem:[%s4364_s17 + $0x124] ss:$12 sps:$4 sm:$0xff]   ;;  %v4043_v21 = vld [vmem:[%s4364_s17 + $0x120] ss:$12 sps:$4 sm:$0xff]   ;;  %v4051_v24 = vld [vmem:[%s4364_s17 + $0x13c] ss:$12 sps:$4 sm:$0xff]   ;;  %s4571_s8 = scalar_lea.vmem %s5291_s0, %s3415_s21 }
  0x13   : > { %849 = vmatprep.mubr.bf16.mxu0 %v4042_v11  ;;  %945 = vmatprep.mubr.bf16.mxu1 %v4045_v12  ;;  %v4048_v22 = vld [vmem:[%s5292_s1 + $0x170] sm:$0xff]   ;;  %v4055_v26 = vld [vmem:[%s5292_s1 + $0x168] sm:$0xff]   ;;  %v4053_v28 = vld [vmem:[%s4364_s17 + $0x18] ss:$12 sps:$4 sm:$0xff]  }
  0x14   : > { %v4057_v25 = vld [vmem:[%s5292_s1 + $0xb0] sm:$0xff]   ;;  %v4073_v27 = vld [vmem:[%s5292_s1 + $0xa8] sm:$0xff]   ;;  %v4054_v29 = vld [vmem:[%s4364_s17 + $0x138] ss:$12 sps:$4 sm:$0xff]  }
  0x15   : > { %3453 = vmatpush3.bf16.msra.mxu0 %v4029_v5  ;;  %4010 = vmatpush3.bf16.msra.mxu1 %v4029_v5  ;;  %v4056_v30 = vld [vmem:[%s5292_s1 + $0x160] sm:$0xff]   ;;  %v4062_v34 = vld [vmem:[%s4364_s17 + $0x30] ss:$12 sps:$4 sm:$0xff]   ;;  %v4066_v38 = vld [vmem:[%s4364_s17 + $0x4c] ss:$12 sps:$4 sm:$0xff]  }
  0x16   : > { %3454 = vmatprep.subr.bf16.mxu0 %v4030_v6  ;;  %4003 = vmatprep.subr.bf16.mxu1 %v4030_v6  ;;  %v4058_v31 = vld [vmem:[%s4364_s17 + $0x34] ss:$12 sps:$4 sm:$0xff]   ;;  %v4064_v35 = vld [vmem:[%s5292_s1 + $0x158] sm:$0xff]   ;;  %v4072_v42 = vld [vmem:[%s5292_s1 + $0x148] sm:$0xff]  }
  0x17   : > { %v4060_v32 = vld [vmem:[%s4364_s17 + $0x154] ss:$12 sps:$4 sm:$0xff]   ;;  %v4063_v36 = vld [vmem:[%s4364_s17 + $0x150] ss:$12 sps:$4 sm:$0xff]   ;;  %v4068_v39 = vld [vmem:[%s4364_s17 + $0x16c] ss:$12 sps:$4 sm:$0xff]  }
  0x18   : > { %v4082_v33 = vld [vmem:[%s5292_s1 + $0xa0] sm:$0xff]   ;;  %v4065_v37 = vld [vmem:[%s5292_s1 + $0x150] sm:$0xff]   ;;  %v4095_v43 = vld [vmem:[%s5292_s1 + $0x98] sm:$0xff]  }
  0x19   : > { %3455 = vmatpush3.bf16.msra.mxu0 %v4031_v7  ;;  %4011 = vmatpush3.bf16.msra.mxu1 %v4031_v7  ;;  %v4070_v40 = vld [vmem:[%s4364_s17 + $0x48] ss:$12 sps:$4 sm:$0xff]   ;;  %v4074_v44 = vld [vmem:[%s5292_s1 + $0x140] sm:$0xff]   ;;  %v4080_v49 = vld [vmem:[%s5292_s1 + $0x78] sm:$0xff]  }
  0x1a   : > { %3456 = vmatprep.subr.bf16.mxu0 %v4032_v8  ;;  %4004 = vmatprep.subr.bf16.mxu1 %v4032_v8  ;;  %v4071_v41 = vld [vmem:[%s4364_s17 + $0x168] ss:$12 sps:$4 sm:$0xff]   ;;  %v4075_v45 = vld [vmem:[%s4364_s17 + $0x64] ss:$12 sps:$4 sm:$0xff]   ;;  %v4078_v47 = vld [vmem:[%s4364_s17 + $0x60] ss:$12 sps:$4 sm:$0xff]  }
  0x1b   : > { %v4077_v46 = vld [vmem:[%s4364_s17 + $0x8] ss:$12 sps:$4 sm:$0xff]   ;;  %v4079_v48 = vld [vmem:[%s4364_s17 + $0x20] ss:$12 sps:$4 sm:$0xff]   ;;  %v4081_v50 = vld [vmem:[%s5292_s1 + $0x38] sm:$0xff]  }
  0x1c   : > { %v4105_v51 = vld [vmem:[%s5292_s1 + $0x90] sm:$0xff]   ;;  %v4083_v52 = vld [vmem:[%s4364_s17 + $0x7c] ss:$12 sps:$4 sm:$0xff]   ;;  %v4085_v53 = vld [vmem:[%s4364_s17 + $0x38] ss:$12 sps:$4 sm:$0xff]  }
  0x1d   : > { %3457 = vmatpush3.bf16.msra.mxu0 %v4033_v9  ;;  %4012 = vmatpush3.bf16.msra.mxu1 %v4033_v9  ;;  %v4088_v54 = vld [vmem:[%s5292_s1 + $0x70] sm:$0xff]   ;;  %v4086_v56 = vld [vmem:[%s4364_s17 + $0x78] ss:$12 sps:$4 sm:$0xff]   ;;  %v4096_v57 = vld [vmem:[%s5292_s1 + $0x68] sm:$0xff]  }
  0x1e   : > { %3458 = vmatprep.subr.bf16.mxu0 %v4034_v10  ;;  %4005 = vmatprep.subr.bf16.mxu1 %v4034_v10  ;;  %v4089_v55 = vld [vmem:[%s5292_s1 + $0x30] sm:$0xff]   ;;  %v4118_v61 = vld [vmem:[%s5292_s1 + $0x88] sm:$0xff]   ;;  %v4103_v63 = vld [vmem:[%s5292_s1 + $0x60] sm:$0xff]  }
  0x1f   : > { %v4087_v58 = vld [vmem:[%s4364_s17 + $0x50] ss:$12 sps:$4 sm:$0xff]   ;;  %v4090_v59 = vld [vmem:[%s4364_s17 + $0x94] ss:$12 sps:$4 sm:$0xff]   ;;  %v4097_v62 = vld [vmem:[%s5292_s1 + $0x28] sm:$0xff]  }
  0x20   : > { %v4092_v60 = vld [vmem:[%s4364_s17 + $0x68] ss:$12 sps:$4 sm:$0xff]   ;;  %v4093_v0 = vld [vmem:[%s4364_s17 + $0x90] ss:$12 sps:$4 sm:$0xff]   ;;  %v4094_v1 = vld [vmem:[%s4364_s17 + $0x80] ss:$12 sps:$4 sm:$0xff]  }
  0x21   : > { %3459 = vmatpush3.bf16.msra.mxu0 %v4035_v13  ;;  %4013 = vmatpush3.bf16.msra.mxu1 %v4035_v13  ;;  %v4104_v2 = vld [vmem:[%s5292_s1 + $0x20] sm:$0xff]   ;;  %v4098_v3 = vld [vmem:[%s4364_s17 + $0xac] ss:$12 sps:$4 sm:$0xff]   ;;  %v4119_v8 = vld [vmem:[%s5292_s1 + $0x50] sm:$0xff]  }
  0x22   : > { %3460 = vmatprep.subr.bf16.mxu0 %v4036_v14  ;;  %4006 = vmatprep.subr.bf16.mxu1 %v4036_v14  ;;  %v4111_v4 = vld [vmem:[%s5292_s1 + $0x58] sm:$0xff]   ;;  %v4128_v6 = vld [vmem:[%s5292_s1 + $0x80] sm:$0xff]   ;;  %v4101_v9 = vld [vmem:[%s4364_s17 + $0xa8] ss:$12 sps:$4 sm:$0xff]  }
  0x23   : > { %v4100_v5 = vld [vmem:[%s4364_s17 + $0x98] ss:$12 sps:$4 sm:$0xff]   ;;  %v4102_v10 = vld [vmem:[%s4364_s17 + $0xb0] ss:$12 sps:$4 sm:$0xff]   ;;  %v4126_v12 = vld [vmem:[%s5292_s1 + $0x48] sm:$0xff]  }
  0x24   : > { %v4112_v7 = vld [vmem:[%s5292_s1 + $0x18] sm:$0xff]   ;;  %v4120_v11 = vld [vmem:[%s5292_s1 + $0x10] sm:$0xff]  }
  0x25   : > { %3461 = vmatpush3.bf16.msra.mxu0 %v4037_v15  ;;  %4014 = vmatpush3.bf16.msra.mxu1 %v4037_v15  ;;  %v4106_v13 = vld [vmem:[%s4364_s17 + $0xc4] ss:$12 sps:$4 sm:$0xff]   ;;  %v4108_v14 = vld [vmem:[%s4364_s17 + $0xc8] ss:$12 sps:$4 sm:$0xff]  }
  0x26   : > { %3462 = vmatprep.subr.bf16.mxu0 %v4038_v16  ;;  %4007 = vmatprep.subr.bf16.mxu1 %v4038_v16  ;;  %v4127_v15 = vld [vmem:[%s5292_s1 + $0x8] sm:$0xff]   ;;  %v4134_v16 = vld [vmem:[%s5292_s1 + $0x40] sm:$0xff]  }
  0x29   : > { %3463 = vmatpush3.bf16.msra.mxu0 %v4039_v17  ;;  %4015 = vmatpush3.bf16.msra.mxu1 %v4039_v17  ;;  %v4141_v17 = vld [vmem:[%s5292_s1 + $0x1f8] sm:$0xff]  }
  0x2a   : > { %3856 = vmatprep.subr.bf16.mxu1 %v4046_v18  ;;  %3904 = vmatprep.subr.bf16.mxu0 %v4047_v19 }
  0x2c   : > { %850 = vmatmul.mubr.bf16.vlgmr.msra.gmra.mxu0 %v4040_v20  ;;  %946 = vmatmul.mubr.bf16.vlgmr.msra.gmra.mxu1 %v4043_v21  ;;  %v4110_v20 = vld [vmem:[%s4364_s17 + $0xe0] ss:$12 sps:$4 sm:$0xff]   ;;  %v4143_v21 = vld [vmem:[%s5292_s1 + $0x238] sm:$0xff]  }
  0x2d   : > { %3857 = vmatpush3.bf16.msra.mxu1 %v4046_v18  ;;  %3905 = vmatpush3.bf16.msra.mxu0 %v4047_v19  ;;  %v4109_v18 = vld [vmem:[%s4364_s17 + $0xc0] ss:$12 sps:$4 sm:$0xff]  }
  0x2e   : > { %3858 = vmatprep.subr.bf16.mxu1 %v4048_v22  ;;  %857 = vmatprep.mubr.bf16.mxu0 %v4049_v23  ;;  %v4135_v19 = vld [vmem:[%s5292_s1] sm:$0xff]  }
  0x2f   : > { %953 = vmatprep.mubr.bf16.mxu1 %v4051_v24  ;;  %3906 = vmatprep.subr.bf16.mxu0 %v4057_v25  ;;  %v4115_v23 = vld [vmem:[%s4364_s17 + $0xf8] ss:$12 sps:$4 sm:$0xff]  }
  0x30   : > { %v4116_v24 = vld [vmem:[%s4364_s17 + $0xd8] ss:$12 sps:$4 sm:$0xff]  }
  0x31   : > { %3859 = vmatpush3.bf16.msra.mxu1 %v4048_v22  ;;  %3907 = vmatpush3.bf16.msra.mxu0 %v4057_v25  ;;  %v4113_v22 = vld [vmem:[%s4364_s17 + $0xdc] ss:$12 sps:$4 sm:$0xff]  }
  0x32   : > { %3860 = vmatprep.subr.bf16.mxu1 %v4055_v26  ;;  %3908 = vmatprep.subr.bf16.mxu0 %v4073_v27  ;;  %v4117_v25 = vld [vmem:[%s4364_s17 + $0x110] ss:$12 sps:$4 sm:$0xff]  }
  0x34   : > { %858 = vmatmul.mubr.bf16.gmra.mxu0 %v4053_v28  ;;  %954 = vmatmul.mubr.bf16.gmra.mxu1 %v4054_v29  ;;  %v4124_v28 = vld [vmem:[%s4364_s17 + $0xf0] ss:$12 sps:$4 sm:$0xff]   ;;  %v4125_v29 = vld [vmem:[%s4364_s17 + $0x140] ss:$12 sps:$4 sm:$0xff]  }
  0x35   : > { %3861 = vmatpush3.bf16.msra.mxu1 %v4055_v26  ;;  %865 = vmatprep.mubr.bf16.mxu0 %v4058_v31  ;;  %v4121_v26 = vld [vmem:[%s4364_s17 + $0xf4] ss:$12 sps:$4 sm:$0xff]   ;;  %v4131_v31 = vld [vmem:[%s4364_s17 + $0x158] ss:$12 sps:$4 sm:$0xff]  }
  0x36   : > { %3862 = vmatprep.subr.bf16.mxu1 %v4056_v30  ;;  %961 = vmatprep.mubr.bf16.mxu1 %v4060_v32  ;;  %v4132_v32 = vld [vmem:[%s4364_s17 + $0x108] ss:$12 sps:$4 sm:$0xff]  }
  0x37   : > { %3909 = vmatpush3.bf16.msra.mxu0 %v4073_v27  ;;  %v4123_v27 = vld [vmem:[%s4364_s17 + $0x128] ss:$12 sps:$4 sm:$0xff]  }
  0x38   : > { %3910 = vmatprep.subr.bf16.mxu0 %v4082_v33 }
  0x39   : > { %3863 = vmatpush3.bf16.msra.mxu1 %v4056_v30  ;;  %v4129_v30 = vld [vmem:[%s4364_s17 + $0x10c] ss:$12 sps:$4 sm:$0xff]  }
  0x3a   : > { %3864 = vmatprep.subr.bf16.mxu1 %v4064_v35 }
  0x3b   : > { %3911 = vmatpush3.bf16.msra.mxu0 %v4082_v33  ;;  %v4133_v33 = vld [vmem:[%s4364_s17 + $0x170] ss:$12 sps:$4 sm:$0xff]  }
  0x3c   : > { %866 = vmatmul.mubr.bf16.gmra.mxu0 %v4062_v34  ;;  %962 = vmatmul.mubr.bf16.gmra.mxu1 %v4063_v36  ;;  %v4138_v34 = vld [vmem:[%s4507_s27 + $0x4] ss:$12 sps:$4 sm:$0xff]   ;;  %v4136_v36 = vld [vmem:[%s4507_s27] ss:$12 sps:$4 sm:$0xff]  }
  0x3d   : > { %3865 = vmatpush3.bf16.msra.mxu1 %v4064_v35  ;;  %873 = vmatprep.mubr.bf16.mxu0 %v4066_v38  ;;  %v4139_v35 = vld [vmem:[%s4507_s27 + $0x8] ss:$12 sps:$4 sm:$0xff]   ;;  %v4142_v38 = vld [vmem:[%s5292_s1 + $0x1b8] sm:$0xff]  }
  0x3e   : > { %3866 = vmatprep.subr.bf16.mxu1 %v4065_v37  ;;  %969 = vmatprep.mubr.bf16.mxu1 %v4068_v39  ;;  %v4144_v39 = vld [vmem:[%s4507_s27 + $0x1c] ss:$12 sps:$4 sm:$0xff]  }
  0x3f   : > { %3912 = vmatprep.subr.bf16.mxu0 %v4095_v43 }
  0x40   : > { %3913 = vmatpush3.bf16.msra.mxu0 %v4095_v43  ;;  %v4150_v43 = vld [vmem:[%s5292_s1 + $0x1b0] sm:$0xff]  }
  0x41   : > { %3867 = vmatpush3.bf16.msra.mxu1 %v4065_v37  ;;  %3914 = vmatprep.subr.bf16.mxu0 %v4105_v51  ;;  %v4140_v37 = vld [vmem:[%s4507_s27 + $0x20] ss:$12 sps:$4 sm:$0xff]  }
  0x42   : > { %3868 = vmatprep.subr.bf16.mxu1 %v4072_v42 }
  0x44   : > { %874 = vmatmul.mubr.bf16.gmra.mxu0 %v4070_v40  ;;  %970 = vmatmul.mubr.bf16.gmra.mxu1 %v4071_v41  ;;  %v4146_v40 = vld [vmem:[%s4507_s27 + $0x38] ss:$12 sps:$4 sm:$0xff]   ;;  %v4149_v41 = vld [vmem:[%s5292_s1 + $0x1f0] sm:$0xff]  }
  0x45   : > { %3869 = vmatpush3.bf16.msra.mxu1 %v4072_v42  ;;  %881 = vmatprep.mubr.bf16.mxu0 %v4075_v45  ;;  %v4158_v42 = vld [vmem:[%s5292_s1 + $0x230] sm:$0xff]   ;;  %v4173_v45 = vld [vmem:[%s5292_s1 + $0x228] sm:$0xff]  }
  0x46   : > { %3870 = vmatprep.subr.bf16.mxu1 %v4074_v44  ;;  %3872 = vmatprep.mubr.bf16.mxu1 %v4077_v46  ;;  %v4147_v46 = vld [vmem:[%s4507_s27 + $0x18] ss:$12 sps:$4 sm:$0xff]  }
  0x47   : > { %3915 = vmatpush3.bf16.msra.mxu0 %v4105_v51  ;;  %v4164_v51 = vld [vmem:[%s5292_s1 + $0x1e0] sm:$0xff]  }
  0x48   : > { %3916 = vmatprep.subr.bf16.mxu0 %v4118_v61 }
  0x49   : > { %3871 = vmatpush3.bf16.msra.mxu1 %v4074_v44  ;;  %v4156_v44 = vld [vmem:[%s5292_s1 + $0x1e8] sm:$0xff]  }
  0x4a   : > { %3584 = vmatprep.subr.bf16.mxu1 %v4080_v49  ;;  %v4153_v49 = vld [vmem:[%s4507_s27 + $0x68] ss:$12 sps:$4 sm:$0xff]  }
  0x4b   : > { %3917 = vmatpush3.bf16.msra.mxu0 %v4118_v61  ;;  %v4179_v61 = vld [vmem:[%s5292_s1 + $0x1d0] sm:$0xff]  }
  0x4c   : > { %882 = vmatmul.mubr.bf16.gmra.mxu0 %v4078_v47  ;;  %3873 = vmatmul.mubr.bf16.vlgmr.msra.gmra.mxu1 %v4079_v48  ;;  %v4148_v47 = vld [vmem:[%s4507_s27 + $0x50] ss:$12 sps:$4 sm:$0xff]   ;;  %v4151_v48 = vld [vmem:[%s4507_s27 + $0x34] ss:$12 sps:$4 sm:$0xff]  }
  0x4d   : > { %3585 = vmatpush3.bf16.msra.mxu1 %v4081_v50  ;;  %889 = vmatprep.mubr.bf16.mxu0 %v4083_v52  ;;  %v4157_v50 = vld [vmem:[%s5292_s1 + $0x1a8] sm:$0xff]   ;;  %v4188_v52 = vld [vmem:[%s5292_s1 + $0x220] sm:$0xff]  }
  0x4e   : > { %3876 = vmatprep.mubr.bf16.mxu1 %v4085_v53  ;;  %3586 = vmatprep.subr.bf16.mxu1 %v4088_v54  ;;  %v4154_v53 = vld [vmem:[%s4507_s27 + $0x30] ss:$12 sps:$4 sm:$0xff]   ;;  %v4155_v54 = vld [vmem:[%s4507_s27 + $0x80] ss:$12 sps:$4 sm:$0xff]  }
  0x4f   : > { %3918 = vmatprep.subr.bf16.mxu0 %v4128_v6 }
  0x50   : > { %3919 = vmatpush3.bf16.msra.mxu0 %v4128_v6  ;;  %v4187_v6 = vld [vmem:[%s5292_s1 + $0x188] sm:$0xff]  }
  0x51   : > { %3587 = vmatpush3.bf16.msra.mxu1 %v4089_v55  ;;  %3720 = vmatprep.subr.bf16.mxu0 %v4141_v17  ;;  %v4165_v55 = vld [vmem:[%s5292_s1 + $0x1a0] sm:$0xff]   ;;  %v4183_v17 = vld [vmem:[%s4507_s27 + $0x128] ss:$12 sps:$4 sm:$0xff]  }
  0x52   : > { %3588 = vmatprep.subr.bf16.mxu1 %v4096_v57  ;;  %v4202_v57 = vld [vmem:[%s5292_s1 + $0x218] sm:$0xff]  }
  0x54   : > { %890 = vmatmul.mubr.bf16.gmra.mxu0 %v4086_v56  ;;  %3877 = vmatmul.mubr.bf16.gmra.mxu1 %v4087_v58  ;;  %v4171_v56 = vld [vmem:[%s5292_s1 + $0x1d8] sm:$0xff]  }
  0x55   : > { %897 = vmatprep.mubr.bf16.mxu0 %v4090_v59  ;;  %3880 = vmatprep.mubr.bf16.mxu1 %v4092_v60  ;;  %v4159_v58 = vld [vmem:[%s4507_s27 + $0x4c] ss:$12 sps:$4 sm:$0xff]  }
  0x56   : > { %3589 = vmatpush3.bf16.msra.mxu1 %v4097_v62  ;;  %v4161_v59 = vld [vmem:[%s4507_s27 + $0x98] ss:$12 sps:$4 sm:$0xff]   ;;  %v4215_v62 = vld [vmem:[%s5292_s1 + $0x210] sm:$0xff]  }
  0x57   : > { %3590 = vmatprep.subr.bf16.mxu1 %v4103_v63  ;;  %v4172_v60 = vld [vmem:[%s5292_s1 + $0x198] sm:$0xff]   ;;  %v4180_v63 = vld [vmem:[%s5292_s1 + $0x190] sm:$0xff]  }
  0x5a   : > { %3591 = vmatpush3.bf16.msra.mxu1 %v4104_v2  ;;  %v4162_v2 = vld [vmem:[%s4507_s27 + $0x48] ss:$12 sps:$4 sm:$0xff]  }
  0x5b   : > { %3592 = vmatprep.subr.bf16.mxu1 %v4111_v4  ;;  %v4166_v4 = vld [vmem:[%s4507_s27 + $0x64] ss:$12 sps:$4 sm:$0xff]  }
  0x5c   : > { %898 = vmatmul.mubr.bf16.gmra.mxu0 %v4093_v0  ;;  %3881 = vmatmul.mubr.bf16.gmra.mxu1 %v4094_v1  ;;  %v4186_v0 = vld [vmem:[%s5292_s1 + $0x1c8] sm:$0xff]  }
  0x5d   : > { %905 = vmatprep.mubr.bf16.mxu0 %v4098_v3  ;;  %3884 = vmatprep.mubr.bf16.mxu1 %v4100_v5  ;;  %v4228_v1 = vld [vmem:[%s5292_s1 + $0x208] sm:$0xff]   ;;  %v4163_v3 = vld [vmem:[%s4507_s27 + $0xb0] ss:$12 sps:$4 sm:$0xff]  }
  0x5e   : > { %3593 = vmatpush3.bf16.msra.mxu1 %v4112_v7  ;;  %v4168_v5 = vld [vmem:[%s4507_s27 + $0xc8] ss:$12 sps:$4 sm:$0xff]   ;;  %v4194_v7 = vld [vmem:[%s5292_s1 + $0x1c0] sm:$0xff]  }
  0x5f   : > { %3594 = vmatprep.subr.bf16.mxu1 %v4119_v8  ;;  %v4241_v8 = vld [vmem:[%s5292_s1 + $0x200] sm:$0xff]  }
  0x62   : > { %3595 = vmatpush3.bf16.msra.mxu1 %v4120_v11  ;;  %v4170_v11 = vld [vmem:[%s4507_s27 + $0xe0] ss:$12 sps:$4 sm:$0xff]  }
  0x63   : > { %3596 = vmatprep.subr.bf16.mxu1 %v4126_v12  ;;  %v4174_v12 = vld [vmem:[%s4507_s27 + $0x7c] ss:$12 sps:$4 sm:$0xff]  }
  0x64   : > { %906 = vmatmul.mubr.bf16.gmra.mxu0 %v4101_v9  ;;  %3885 = vmatmul.mubr.bf16.gmra.mxu1 %v4102_v10  ;;  %v4195_v9 = vld [vmem:[%s5292_s1 + $0x180] sm:$0xff]  }
  0x65   : > { %913 = vmatprep.mubr.bf16.mxu0 %v4106_v13  ;;  %3888 = vmatprep.mubr.bf16.mxu1 %v4108_v14  ;;  %v4169_v10 = vld [vmem:[%s4507_s27 + $0x60] ss:$12 sps:$4 sm:$0xff]   ;;  %v4176_v13 = vld [vmem:[%s4507_s27 + $0xf8] ss:$12 sps:$4 sm:$0xff]  }
  0x66   : > { %3597 = vmatpush3.bf16.msra.mxu1 %v4127_v15  ;;  %v4177_v14 = vld [vmem:[%s4507_s27 + $0x78] ss:$12 sps:$4 sm:$0xff]   ;;  %v4178_v15 = vld [vmem:[%s4507_s27 + $0x110] ss:$12 sps:$4 sm:$0xff]  }
  0x67   : > { %3598 = vmatprep.subr.bf16.mxu1 %v4134_v16  ;;  %v4181_v16 = vld [vmem:[%s4507_s27 + $0x94] ss:$12 sps:$4 sm:$0xff]  }
  0x6a   : > { %3599 = vmatpush3.bf16.msra.mxu1 %v4135_v19  ;;  %v4185_v19 = vld [vmem:[%s4507_s27 + $0x140] ss:$12 sps:$4 sm:$0xff]  }
  0x6b   : > { %3952 = vmatprep.subr.bf16.mxu1 %v4143_v21 }
  0x6c   : > { %914 = vmatmul.mubr.bf16.gmra.mxu0 %v4109_v18  ;;  %3889 = vmatmul.mubr.bf16.gmra.mxu1 %v4110_v20  ;;  %v4184_v18 = vld [vmem:[%s4507_s27 + $0x90] ss:$12 sps:$4 sm:$0xff]   ;;  %v4189_v20 = vld [vmem:[%s4507_s27 + $0xac] ss:$12 sps:$4 sm:$0xff]  }
  0x6d   : > { %921 = vmatprep.mubr.bf16.mxu0 %v4113_v22  ;;  %3892 = vmatprep.mubr.bf16.mxu1 %v4115_v23  ;;  %v4192_v22 = vld [vmem:[%s4507_s27 + $0xa8] ss:$12 sps:$4 sm:$0xff]   ;;  %v4193_v23 = vld [vmem:[%s4507_s27 + $0x170] ss:$12 sps:$4 sm:$0xff]  }
  0x74   : > { %922 = vmatmul.mubr.bf16.gmra.mxu0 %v4116_v24  ;;  %3893 = vmatmul.mubr.bf16.gmra.mxu1 %v4117_v25  ;;  %v4196_v24 = vld [vmem:[%s4507_s27 + $0xc4] ss:$12 sps:$4 sm:$0xff]  }
  0x75   : > { %929 = vmatprep.mubr.bf16.mxu0 %v4121_v26  ;;  %3896 = vmatprep.mubr.bf16.mxu1 %v4123_v27  ;;  %v4200_v25 = vld [vmem:[%s4571_s8 + $0x4] ss:$12 sps:$4 sm:$0xff]   ;;  %v4198_v26 = vld [vmem:[%s4571_s8] ss:$12 sps:$4 sm:$0xff]  }
  0x76   : > { %v4201_v27 = vld [vmem:[%s4507_s27 + $0xc0] ss:$12 sps:$4 sm:$0xff]  }
  0x7c   : > { %930 = vmatmul.mubr.bf16.gmra.mxu0 %v4124_v28  ;;  %3897 = vmatmul.mubr.bf16.gmra.mxu1 %v4125_v29  ;;  %v4203_v28 = vld [vmem:[%s4507_s27 + $0xdc] ss:$12 sps:$4 sm:$0xff]  }
  0x7d   : > { %937 = vmatprep.mubr.bf16.mxu0 %v4129_v30  ;;  %3900 = vmatprep.mubr.bf16.mxu1 %v4131_v31  ;;  %v4205_v29 = vld [vmem:[%s4571_s8 + $0x1c] ss:$12 sps:$4 sm:$0xff]   ;;  %v4207_v30 = vld [vmem:[%s4507_s27 + $0xd8] ss:$12 sps:$4 sm:$0xff]  }
  0x7e   : > { %v4208_v31 = vld [vmem:[%s4571_s8 + $0x18] ss:$12 sps:$4 sm:$0xff]  }
  0x84   : > { %938 = vmatmul.mubr.bf16.gmra.mxu0 %v4132_v32  ;;  %3901 = vmatmul.mubr.bf16.gmra.mxu1 %v4133_v33  ;;  %v4209_v32 = vld [vmem:[%s4507_s27 + $0xf4] ss:$12 sps:$4 sm:$0xff]  }
  0x85   : > { %1571 = vmatprep.mubr.bf16.mxu1 %v4138_v34  ;;  %3920 = vmatprep.mubr.bf16.mxu0 %v4139_v35  ;;  %v4211_v33 = vld [vmem:[%s4571_s8 + $0x34] ss:$12 sps:$4 sm:$0xff]   ;;  %v4213_v34 = vld [vmem:[%s4507_s27 + $0xf0] ss:$12 sps:$4 sm:$0xff]  }
  0x86   : > { %v4214_v35 = vld [vmem:[%s4571_s8 + $0x30] ss:$12 sps:$4 sm:$0xff]  }
  0x8c   : > { %1572 = vmatmul.mubr.bf16.vlgmr.msra.gmra.mxu1 %v4136_v36  ;;  %3921 = vmatmul.mubr.bf16.vlgmr.msra.gmra.mxu0 %v4140_v37  ;;  %v4216_v36 = vld [vmem:[%s4507_s27 + $0x10c] ss:$12 sps:$4 sm:$0xff]  }
  0x8d   : > { %3721 = vmatpush3.bf16.msra.mxu0 %v4142_v38  ;;  %3953 = vmatpush3.bf16.msra.mxu1 %v4143_v21  ;;  %v4191_v21 = vld [vmem:[%s4507_s27 + $0x158] ss:$12 sps:$4 sm:$0xff]   ;;  %v4220_v38 = vld [vmem:[%s4507_s27 + $0x108] ss:$12 sps:$4 sm:$0xff]  }
  0x8e   : > { %1579 = vmatprep.mubr.bf16.mxu1 %v4144_v39  ;;  %3924 = vmatprep.mubr.bf16.mxu0 %v4146_v40  ;;  %v4218_v37 = vld [vmem:[%s4571_s8 + $0x4c] ss:$12 sps:$4 sm:$0xff]   ;;  %v4221_v39 = vld [vmem:[%s4571_s8 + $0x48] ss:$12 sps:$4 sm:$0xff]   ;;  %v4222_v40 = vld [vmem:[%s4507_s27 + $0x124] ss:$12 sps:$4 sm:$0xff]  }
  0x8f   : > { %3722 = vmatprep.subr.bf16.mxu0 %v4149_v41  ;;  %3954 = vmatprep.subr.bf16.mxu1 %v4158_v42  ;;  %v4224_v41 = vld [vmem:[%s4571_s8 + $0x64] ss:$12 sps:$4 sm:$0xff]  }
  0x91   : > { %3723 = vmatpush3.bf16.msra.mxu0 %v4150_v43  ;;  %3955 = vmatpush3.bf16.msra.mxu1 %v4158_v42  ;;  %v4226_v42 = vld [vmem:[%s4507_s27 + $0x120] ss:$12 sps:$4 sm:$0xff]  }
  0x92   : > { %3724 = vmatprep.subr.bf16.mxu0 %v4156_v44  ;;  %3956 = vmatprep.subr.bf16.mxu1 %v4173_v45  ;;  %v4227_v43 = vld [vmem:[%s4571_s8 + $0x60] ss:$12 sps:$4 sm:$0xff]   ;;  %v4229_v44 = vld [vmem:[%s4507_s27 + $0x13c] ss:$12 sps:$4 sm:$0xff]  }
  0x94   : > { %1580 = vmatmul.mubr.bf16.gmra.mxu1 %v4147_v46  ;;  %3925 = vmatmul.mubr.bf16.gmra.mxu0 %v4148_v47 }
  0x95   : > { %1587 = vmatprep.mubr.bf16.mxu1 %v4151_v48  ;;  %3928 = vmatprep.mubr.bf16.mxu0 %v4153_v49 }
  0x96   : > { %3725 = vmatpush3.bf16.msra.mxu0 %v4157_v50  ;;  %3957 = vmatpush3.bf16.msra.mxu1 %v4173_v45  ;;  %v4231_v45 = vld [vmem:[%s4571_s8 + $0x7c] ss:$12 sps:$4 sm:$0xff]  }
  0x97   : > { %3726 = vmatprep.subr.bf16.mxu0 %v4164_v51  ;;  %3958 = vmatprep.subr.bf16.mxu1 %v4188_v52 }
  0x9a   : > { %3727 = vmatpush3.bf16.msra.mxu0 %v4165_v55  ;;  %3959 = vmatpush3.bf16.msra.mxu1 %v4188_v52  ;;  %v4234_v55 = vld [vmem:[%s4571_s8 + $0x78] ss:$12 sps:$4 sm:$0xff]  }
  0x9b   : > { %3728 = vmatprep.subr.bf16.mxu0 %v4171_v56  ;;  %3960 = vmatprep.subr.bf16.mxu1 %v4202_v57  ;;  %v4235_v56 = vld [vmem:[%s4507_s27 + $0x154] ss:$12 sps:$4 sm:$0xff]  }
  0x9c   : > { %1588 = vmatmul.mubr.bf16.gmra.mxu1 %v4154_v53  ;;  %3929 = vmatmul.mubr.bf16.gmra.mxu0 %v4155_v54  ;;  %v4233_v54 = vld [vmem:[%s4507_s27 + $0x138] ss:$12 sps:$4 sm:$0xff]  }
  0x9d   : > { %1595 = vmatprep.mubr.bf16.mxu1 %v4159_v58  ;;  %3932 = vmatprep.mubr.bf16.mxu0 %v4161_v59 }
  0x9e   : > { %3729 = vmatpush3.bf16.msra.mxu0 %v4172_v60  ;;  %3961 = vmatpush3.bf16.msra.mxu1 %v4202_v57  ;;  %v4237_v57 = vld [vmem:[%s4571_s8 + $0x94] ss:$12 sps:$4 sm:$0xff]  }
  0x9f   : > { %3730 = vmatprep.subr.bf16.mxu0 %v4179_v61  ;;  %3962 = vmatprep.subr.bf16.mxu1 %v4215_v62 }
  0xa2   : > { %3731 = vmatpush3.bf16.msra.mxu0 %v4180_v63  ;;  %3963 = vmatpush3.bf16.msra.mxu1 %v4215_v62 }
  0xa3   : > { %3732 = vmatprep.subr.bf16.mxu0 %v4186_v0  ;;  %3964 = vmatprep.subr.bf16.mxu1 %v4228_v1 }
  0xa4   : > { %1596 = vmatmul.mubr.bf16.gmra.mxu1 %v4162_v2  ;;  %3933 = vmatmul.mubr.bf16.gmra.mxu0 %v4163_v3 }
  0xa5   : > { %1603 = vmatprep.mubr.bf16.mxu1 %v4166_v4  ;;  %3936 = vmatprep.mubr.bf16.mxu0 %v4168_v5 }
  0xa6   : > { %3733 = vmatpush3.bf16.msra.mxu0 %v4187_v6  ;;  %3965 = vmatpush3.bf16.msra.mxu1 %v4228_v1  ;;  %v4239_v6 = vld [vmem:[%s4507_s27 + $0x150] ss:$12 sps:$4 sm:$0xff]  }
  0xa7   : > { %3734 = vmatprep.subr.bf16.mxu0 %v4194_v7  ;;  %3966 = vmatprep.subr.bf16.mxu1 %v4241_v8  ;;  %v4240_v7 = vld [vmem:[%s4571_s8 + $0x90] ss:$12 sps:$4 sm:$0xff]  }
  0xaa   : > { %3735 = vmatpush3.bf16.msra.mxu0 %v4195_v9  ;;  %3967 = vmatpush3.bf16.msra.mxu1 %v4241_v8  ;;  %v4242_v8 = vld [vmem:[%s4507_s27 + $0x16c] ss:$12 sps:$4 sm:$0xff]  }
  0xab   : > { %v4244_v9 = vld [vmem:[%s4571_s8 + $0xac] ss:$12 sps:$4 sm:$0xff]  }
  0xac   : > { %1604 = vmatmul.mubr.bf16.gmra.mxu1 %v4169_v10  ;;  %3937 = vmatmul.mubr.bf16.gmra.mxu0 %v4170_v11 }
  0xad   : > { %1611 = vmatprep.mubr.bf16.mxu1 %v4174_v12  ;;  %3940 = vmatprep.mubr.bf16.mxu0 %v4176_v13 }
  0xb4   : > { %1612 = vmatmul.mubr.bf16.gmra.mxu1 %v4177_v14  ;;  %3941 = vmatmul.mubr.bf16.gmra.mxu0 %v4178_v15 }
  0xb5   : > { %1619 = vmatprep.mubr.bf16.mxu1 %v4181_v16  ;;  %3944 = vmatprep.mubr.bf16.mxu0 %v4183_v17 }
  0xbc   : > { %1620 = vmatmul.mubr.bf16.gmra.mxu1 %v4184_v18  ;;  %3945 = vmatmul.mubr.bf16.gmra.mxu0 %v4185_v19 }
  0xbd   : > { %1627 = vmatprep.mubr.bf16.mxu1 %v4189_v20  ;;  %3948 = vmatprep.mubr.bf16.mxu0 %v4191_v21 }
  0xc4   : > { %1628 = vmatmul.mubr.bf16.gmra.mxu1 %v4192_v22  ;;  %3949 = vmatmul.mubr.bf16.gmra.mxu0 %v4193_v23  ;;  %v4246_v22 = vld [vmem:[%s4507_s27 + $0x168] ss:$12 sps:$4 sm:$0xff]   ;;  %s3059_s27 = sshll.u32 %s3055_s16, 5 }
  0xc5   : > { %1635 = vmatprep.mubr.bf16.mxu1 %v4196_v24  ;;  %2412 = vmatprep.mubr.bf16.mxu0 %v4200_v25  ;;  %v4247_v23 = vld [vmem:[%s4571_s8 + $0xa8] ss:$12 sps:$4 sm:$0xff]   ;;  %v4250_v24 = vld [vmem:[%s4571_s8 + $0xc4] ss:$12 sps:$4 sm:$0xff]   ;;  %p174_p3 = scmp.lt.s32.totalorder %s3059_s27, 63 }
  0xc6   : > { %v4251_v25 = vld [vmem:[%s4571_s8 + $0x8] ss:$12 sps:$4 sm:$0xff]  }
  0xc7   : > { %s5327_s27 = smov (!%p174_p3, %s3059_s27), 63 }
  0xc8   : > { %s3060_s17 = sshll.u32 %s5327_s27, 2 }
  0xc9   : > { %s5070_s26 = scalar_lea.vmem %s5295_s4, %s3060_s17 }
  0xcc   : > { %1636 = vmatmul.mubr.bf16.gmra.mxu1 %v4201_v27  ;;  %2413 = vmatmul.mubr.bf16.vlgmr.msra.gmra.mxu0 %v4198_v26 }
  0xcd   : > { %1643 = vmatprep.mubr.bf16.mxu1 %v4203_v28  ;;  %2420 = vmatprep.mubr.bf16.mxu0 %v4205_v29 }
  0xd4   : > { %1644 = vmatmul.mubr.bf16.gmra.mxu1 %v4207_v30  ;;  %2421 = vmatmul.mubr.bf16.gmra.mxu0 %v4208_v31 }
  0xd5   : > { %1651 = vmatprep.mubr.bf16.mxu1 %v4209_v32  ;;  %2428 = vmatprep.mubr.bf16.mxu0 %v4211_v33 }
  0xdc   : > { %1652 = vmatmul.mubr.bf16.gmra.mxu1 %v4213_v34  ;;  %2429 = vmatmul.mubr.bf16.gmra.mxu0 %v4214_v35 }
  0xdd   : > { %1659 = vmatprep.mubr.bf16.mxu1 %v4216_v36  ;;  %2436 = vmatprep.mubr.bf16.mxu0 %v4218_v37 }
  0xe4   : > { %1660 = vmatmul.mubr.bf16.gmra.mxu1 %v4220_v38  ;;  %2437 = vmatmul.mubr.bf16.gmra.mxu0 %v4221_v39  ;;  %v4248_v38 = vld [vmem:[%s4571_s8 + $0xc0] ss:$12 sps:$4 sm:$0xff]  }
  0xe5   : > { %1667 = vmatprep.mubr.bf16.mxu1 %v4222_v40  ;;  %2444 = vmatprep.mubr.bf16.mxu0 %v4224_v41  ;;  %v4252_v39 = vld [vmem:[%s4571_s8 + $0x20] ss:$12 sps:$4 sm:$0xff]   ;;  %v4255_v40 = vld [vmem:[%s4571_s8 + $0xdc] ss:$12 sps:$4 sm:$0xff]   ;;  %v4256_v41 = vld [vmem:[%s4571_s8 + $0x38] ss:$12 sps:$4 sm:$0xff]  }
  0xec   : > { %v3464_v46 = vpop.f32.mrf.mxu0  ;;  %v3536_v47 = vpop.f32.mrf.mxu1  ;;  %1668 = vmatmul.mubr.bf16.gmra.mxu1 %v4226_v42  ;;  %2445 = vmatmul.mubr.bf16.gmra.mxu0 %v4227_v43 }
  0xed   : > { %1675 = vmatprep.mubr.bf16.mxu1 %v4229_v44  ;;  %2452 = vmatprep.mubr.bf16.mxu0 %v4231_v45 }
  0xee   : > { %v3465_v48 = vpop.f32.mrf.mxu0  ;;  %v3537_v49 = vpop.f32.mrf.mxu1 }
  0xef   : > { %v4669_v50 = vadd.f32 %v3465_v48, %v3464_v46  ;;  %v4671_v51 = vadd.f32 %v3537_v49, %v3536_v47 }
  0xf0   : > { %v3467_v52 = vpop.f32.mrf.mxu0  ;;  %v3539_v53 = vpop.f32.mrf.mxu1 }
  0xf2   : > { %v3468_v58 = vpop.f32.mrf.mxu0  ;;  %v3540_v59 = vpop.f32.mrf.mxu1 }
  0xf3   : > { %v4677_v60 = vadd.f32 %v3468_v58, %v3467_v52  ;;  %v4679_v61 = vadd.f32 %v3540_v59, %v3539_v53  ;;  %v4257_v58 = vld [vmem:[%s4571_s8 + $0x50] ss:$12 sps:$4 sm:$0xff]  }
  0xf4   : > { %v3470_v62 = vpop.f32.mrf.mxu0  ;;  %v3542_v63 = vpop.f32.mrf.mxu1  ;;  %1676 = vmatmul.mubr.bf16.gmra.mxu1 %v4233_v54  ;;  %2453 = vmatmul.mubr.bf16.gmra.mxu0 %v4234_v55 }
  0xf5   : > { %1683 = vmatprep.mubr.bf16.mxu1 %v4235_v56  ;;  %2460 = vmatprep.mubr.bf16.mxu0 %v4237_v57  ;;  %v4253_v57 = vld [vmem:[%s4571_s8 + $0xd8] ss:$12 sps:$4 sm:$0xff]  }
  0xf6   : > { %v3471_v0 = vpop.f32.mrf.mxu0  ;;  %v3543_v1 = vpop.f32.mrf.mxu1 }
  0xf7   : > { %v3472_v2 = vadd.f32 %v3471_v0, %v3470_v62  ;;  %v4681_v3 = vadd.f32 %v3543_v1, %v3542_v63  ;;  %v4260_v62 = vld [vmem:[%s4571_s8 + $0xf4] ss:$12 sps:$4 sm:$0xff]  }
  0xf8   : > { %v3473_v4 = vpop.f32.mrf.mxu0  ;;  %v3545_v5 = vpop.f32.mrf.mxu1  ;;  %v4261_v63 = vld [vmem:[%s4571_s8 + $0x68] ss:$12 sps:$4 sm:$0xff]  }
  0xfa   : > { %v3474_v10 = vpop.f32.mrf.mxu0  ;;  %v3546_v11 = vpop.f32.mrf.mxu1 }
  0xfb   : > { %v3475_v12 = vadd.f32 %v3474_v10, %v3473_v4  ;;  %v4687_v13 = vadd.f32 %v3546_v11, %v3545_v5 }
  0xfc   : > { %v3476_v14 = vpop.f32.mrf.mxu0  ;;  %v3548_v15 = vpop.f32.mrf.mxu1  ;;  %1684 = vmatmul.mubr.bf16.gmra.mxu1 %v4239_v6  ;;  %2461 = vmatmul.mubr.bf16.gmra.mxu0 %v4240_v7 }
  0xfd   : > { %1691 = vmatprep.mubr.bf16.mxu1 %v4242_v8  ;;  %2468 = vmatprep.mubr.bf16.mxu0 %v4244_v9 }
  0xfe   : > { %v3477_v16 = vpop.f32.mrf.mxu0  ;;  %v3549_v17 = vpop.f32.mrf.mxu1 }
  0xff   : > { %v4689_v18 = vadd.f32 %v3477_v16, %v3476_v14  ;;  %v4691_v19 = vadd.f32 %v3549_v17, %v3548_v15  ;;  %v4262_v14 = vld [vmem:[%s4571_s8 + $0x80] ss:$12 sps:$4 sm:$0xff]   ;;  %v4266_v17 = vld [vmem:[%s4571_s8 + $0x98] ss:$12 sps:$4 sm:$0xff]  }
 0x100   : > { %v3479_v20 = vpop.f32.mrf.mxu0  ;;  %v3551_v21 = vpop.f32.mrf.mxu1  ;;  %v4265_v16 = vld [vmem:[%s4571_s8 + $0x10c] ss:$12 sps:$4 sm:$0xff]  }
 0x102   : > { %v3480_v26 = vpop.f32.mrf.mxu0  ;;  %v3552_v27 = vpop.f32.mrf.mxu1 }
 0x103   : > { %v4697_v28 = vadd.f32 %v3480_v26, %v3479_v20  ;;  %v4699_v29 = vadd.f32 %v3552_v27, %v3551_v21 }
 0x104   : > { %v3482_v30 = vpop.f32.mrf.mxu0  ;;  %v3554_v31 = vpop.f32.mrf.mxu1  ;;  %1692 = vmatmul.mubr.bf16.gmra.mxu1 %v4246_v22  ;;  %2469 = vmatmul.mubr.bf16.gmra.mxu0 %v4247_v23 }
 0x105   : > { %2476 = vmatprep.mubr.bf16.mxu0 %v4250_v24  ;;  %3968 = vmatprep.mubr.bf16.mxu1 %v4251_v25 }
 0x106   : > { %v3483_v32 = vpop.f32.mrf.mxu0  ;;  %v3555_v33 = vpop.f32.mrf.mxu1 }
 0x107   : > { %v3484_v34 = vadd.f32 %v3483_v32, %v3482_v30  ;;  %v4701_v35 = vadd.f32 %v3555_v33, %v3554_v31 }
 0x108   : > { %v3485_v36 = vpop.f32.mrf.mxu0  ;;  %v3557_v37 = vpop.f32.mrf.mxu1 }
 0x10a   : > { %v3486_v42 = vpop.f32.mrf.mxu0  ;;  %v3558_v43 = vpop.f32.mrf.mxu1 }
 0x10b   : > { %v3487_v44 = vadd.f32 %v3486_v42, %v3485_v36  ;;  %v4707_v45 = vadd.f32 %v3558_v43, %v3557_v37  ;;  %v4270_v37 = vld [vmem:[%s4571_s8 + $0x124] ss:$12 sps:$4 sm:$0xff]  }
 0x10c   : > { %v3488_v46 = vpop.f32.mrf.mxu0  ;;  %v3874_v47 = vpop.f32.mrf.mxu1  ;;  %2477 = vmatmul.mubr.bf16.gmra.mxu0 %v4248_v38  ;;  %3969 = vmatmul.mubr.bf16.vlgmr.msra.gmra.mxu1 %v4252_v39  ;;  %v4271_v38 = vld [vmem:[%s4571_s8 + $0xc8] ss:$12 sps:$4 sm:$0xff]  }
 0x10d   : > { %v4709_v48 = vadd.f32 %v3874_v47, %v3472_v2  ;;  %2484 = vmatprep.mubr.bf16.mxu0 %v4255_v40  ;;  %3972 = vmatprep.mubr.bf16.mxu1 %v4256_v41 }
 0x10e   : > { %v3489_v49 = vpop.f32.mrf.mxu0  ;;  %v1012_v52 = vpop.f32.mrf.mxu1 }
 0x10f   : > { %v3490_v53 = vadd.f32 %v3489_v49, %v3488_v46  ;;  %v4712_v54 = vadd.f32 %v4669_v50, %v1012_v52 }
 0x110   : > { %v3491_v55 = vpop.f32.mrf.mxu0  ;;  %v3875_v56 = vpop.f32.mrf.mxu1 }
 0x111   : > { %v4716_v59 = vadd.f32 %v3875_v56, %v3475_v12  ;;  %v4268_v56 = vld [vmem:[%s4571_s8 + $0x120] ss:$12 sps:$4 sm:$0xff]  }
 0x112   : > { %v3492_v0 = vpop.f32.mrf.mxu0  ;;  %v1015_v1 = vpop.f32.mrf.mxu1 }
 0x113   : > { %v3493_v2 = vadd.f32 %v3492_v0, %v3491_v55  ;;  %v4721_v4 = vadd.f32 %v4677_v60, %v1015_v1  ;;  %v4258_v60 = vld [vmem:[%s4571_s8 + $0xf0] ss:$12 sps:$4 sm:$0xff]  }
 0x114   : > { %v3494_v5 = vpop.f32.mrf.mxu0  ;;  %v3878_v50 = vpop.f32.mrf.mxu1  ;;  %2485 = vmatmul.mubr.bf16.gmra.mxu0 %v4253_v57  ;;  %3973 = vmatmul.mubr.bf16.gmra.mxu1 %v4257_v58  ;;  %v4272_v57 = vld [vmem:[%s4571_s8 + $0xe0] ss:$12 sps:$4 sm:$0xff]  }
 0x115   : > { %v4723_v6 = vadd.f32 %v3878_v50, %v3484_v34  ;;  %2492 = vmatprep.mubr.bf16.mxu0 %v4260_v62  ;;  %3976 = vmatprep.mubr.bf16.mxu1 %v4261_v63  ;;  %v4263_v34 = vld [vmem:[%s4571_s8 + $0x108] ss:$12 sps:$4 sm:$0xff]   ;;  %v4276_v63 = vld [vmem:[%s4571_s8 + $0xf8] ss:$12 sps:$4 sm:$0xff]  }
 0x116   : > { %v3495_v7 = vpop.f32.mrf.mxu0  ;;  %v1028_v8 = vpop.f32.mrf.mxu1  ;;  %v4275_v62 = vld [vmem:[%s4571_s8 + $0x13c] ss:$12 sps:$4 sm:$0xff]  }
 0x117   : > { %v3496_v9 = vadd.f32 %v3495_v7, %v3494_v5  ;;  %v4726_v10 = vadd.f32 %v4689_v18, %v1028_v8 }
 0x118   : > { %v3497_v11 = vpop.f32.mrf.mxu0  ;;  %v3879_v12 = vpop.f32.mrf.mxu1 }
 0x119   : > { %v4730_v15 = vadd.f32 %v3879_v12, %v3487_v44 }
 0x11a   : > { %v3498_v20 = vpop.f32.mrf.mxu0  ;;  %v1031_v21 = vpop.f32.mrf.mxu1 }
 0x11b   : > { %v3499_v22 = vadd.f32 %v3498_v20, %v3497_v11  ;;  %v4735_v23 = vadd.f32 %v4697_v28, %v1031_v21  ;;  %v4267_v28 = vld [vmem:[%s4571_s8 + $0xb0] ss:$12 sps:$4 sm:$0xff]   ;;  %v4280_v21 = vld [vmem:[%s4571_s8 + $0x154] ss:$12 sps:$4 sm:$0xff]  }
 0x11c   : > { %v3500_v24 = vpop.f32.mrf.mxu0  ;;  %v3882_v18 = vpop.f32.mrf.mxu1  ;;  %2493 = vmatmul.mubr.bf16.gmra.mxu0 %v4258_v60  ;;  %3977 = vmatmul.mubr.bf16.gmra.mxu1 %v4262_v14 }
 0x11d   : > { %v4737_v25 = vadd.f32 %v3882_v18, %v3496_v9  ;;  %2500 = vmatprep.mubr.bf16.mxu0 %v4265_v16  ;;  %3980 = vmatprep.mubr.bf16.mxu1 %v4266_v17  ;;  %v4273_v16 = vld [vmem:[%s4571_s8 + $0x138] ss:$12 sps:$4 sm:$0xff]   ;;  %v4277_v17 = vld [vmem:[%s4571_s8 + $0x110] ss:$12 sps:$4 sm:$0xff]  }
 0x11e   : > { %v3501_v26 = vpop.f32.mrf.mxu0  ;;  %v1044_v27 = vpop.f32.mrf.mxu1 }
 0x11f   : > { %v3502_v30 = vadd.f32 %v3501_v26, %v3500_v24  ;;  %v4739_v31 = vadd.f32 %v3490_v53, %v1044_v27 }
 0x120   : > { %v3503_v32 = vpop.f32.mrf.mxu0  ;;  %v3883_v33 = vpop.f32.mrf.mxu1 }
 0x121   : > { %v4743_v36 = vadd.f32 %v3883_v33, %v3499_v22  ;;  %v4281_v22 = vld [vmem:[%s4571_s8 + $0x128] ss:$12 sps:$4 sm:$0xff]  }
 0x122   : > { %v3504_v39 = vpop.f32.mrf.mxu0  ;;  %v1047_v40 = vpop.f32.mrf.mxu1 }
 0x123   : > { %v3505_v41 = vadd.f32 %v3504_v39, %v3503_v32  ;;  %v4747_v42 = vadd.f32 %v3493_v2, %v1047_v40  ;;  %v4278_v39 = vld [vmem:[%s4571_s8 + $0x150] ss:$12 sps:$4 sm:$0xff]   ;;  %v4282_v40 = vld [vmem:[%s4571_s8 + $0x140] ss:$12 sps:$4 sm:$0xff]  }
 0x124   : > { %v3506_v43 = vpop.f32.mrf.mxu0  ;;  %v3886_v44 = vpop.f32.mrf.mxu1  ;;  %2501 = vmatmul.mubr.bf16.gmra.mxu0 %v4263_v34  ;;  %3981 = vmatmul.mubr.bf16.gmra.mxu1 %v4267_v28 }
 0x125   : > { %2508 = vmatprep.mubr.bf16.mxu0 %v4270_v37  ;;  %3984 = vmatprep.mubr.bf16.mxu1 %v4271_v38 }
 0x126   : > { %v3507_v46 = vpop.f32.mrf.mxu0  ;;  %v1060_v47 = vpop.f32.mrf.mxu1 }
 0x127   : > { %v3508_v49 = vadd.f32 %v3507_v46, %v3506_v43  ;;  %v4749_v52 = vadd.f32 %v3502_v30, %v1060_v47  ;;  %v4285_v43 = vld [vmem:[%s4571_s8 + $0x16c] ss:$12 sps:$4 sm:$0xff]  }
 0x128   : > { %v3509_v53 = vpop.f32.mrf.mxu0  ;;  %v3887_v55 = vpop.f32.mrf.mxu1 }
 0x129   : > { %v4753_v58 = vadd.f32 %v3886_v44, %v3508_v49  ;;  %v4286_v44 = vld [vmem:[%s4571_s8 + $0x158] ss:$12 sps:$4 sm:$0xff]  }
 0x12a   : > { %v3510_v0 = vpop.f32.mrf.mxu0  ;;  %v1063_v1 = vpop.f32.mrf.mxu1 }
 0x12b   : > { %v3511_v2 = vadd.f32 %v3510_v0, %v3509_v53  ;;  %v4757_v5 = vadd.f32 %v3505_v41, %v1063_v1 }
 0x12c   : > { %v3512_v50 = vpop.f32.mrf.mxu0  ;;  %v3890_v7 = vpop.f32.mrf.mxu1  ;;  %2509 = vmatmul.mubr.bf16.gmra.mxu0 %v4268_v56  ;;  %3985 = vmatmul.mubr.bf16.gmra.mxu1 %v4272_v57 }
 0x12d   : > { %v4759_v8 = vadd.f32 %v3887_v55, %v3511_v2  ;;  %2516 = vmatprep.mubr.bf16.mxu0 %v4275_v62  ;;  %3988 = vmatprep.mubr.bf16.mxu1 %v4276_v63 }
 0x12e   : > { %v3513_v9 = vpop.f32.mrf.mxu0  ;;  %v1076_v11 = vpop.f32.mrf.mxu1 }
 0x12f   : > { %v3514_v12 = vadd.f32 %v3513_v9, %v3512_v50  ;;  %v4287_v9 = vld [vmem:[%s4571_s8 + $0x170] ss:$12 sps:$4 sm:$0xff]  }
 0x130   : > { %v3515_v60 = vpop.f32.mrf.mxu0  ;;  %v3891_v14 = vpop.f32.mrf.mxu1 }
 0x131   : > { %v4763_v20 = vadd.f32 %v3514_v12, %v1076_v11 }
 0x132   : > { %v3516_v24 = vpop.f32.mrf.mxu0  ;;  %v1079_v18 = vpop.f32.mrf.mxu1 }
 0x133   : > { %v3517_v26 = vadd.f32 %v3516_v24, %v3515_v60 }
 0x134   : > { %v3518_v27 = vpop.f32.mrf.mxu0  ;;  %v3894_v30 = vpop.f32.mrf.mxu1  ;;  %2517 = vmatmul.mubr.bf16.gmra.mxu0 %v4273_v16  ;;  %3989 = vmatmul.mubr.bf16.gmra.mxu1 %v4277_v17 }
 0x135   : > { %v4767_v32 = vadd.f32 %v3517_v26, %v1079_v18  ;;  %2524 = vmatprep.mubr.bf16.mxu0 %v4280_v21  ;;  %3992 = vmatprep.mubr.bf16.mxu1 %v4281_v22 }
 0x136   : > { %v3519_v33 = vpop.f32.mrf.mxu0  ;;  %v1092_v34 = vpop.f32.mrf.mxu1 }
 0x137   : > { %v3520_v28 = vadd.f32 %v3519_v33, %v3518_v27 }
 0x138   : > { %v3521_v37 = vpop.f32.mrf.mxu0  ;;  %v3895_v38 = vpop.f32.mrf.mxu1 }
 0x139   : > { %v4771_v41 = vadd.f32 %v3890_v7, %v3520_v28  ;;  %v4283_v7 = vld [vmem:[%s4571_s8 + $0x168] ss:$12 sps:$4 sm:$0xff]  }
 0x13a   : > { %v3522_v46 = vpop.f32.mrf.mxu0  ;;  %v1095_v47 = vpop.f32.mrf.mxu1 }
 0x13b   : > { %v3523_v49 = vadd.f32 %v3522_v46, %v3521_v37 }
 0x13c   : > { %v3524_v53 = vpop.f32.mrf.mxu0  ;;  %v3898_v55 = vpop.f32.mrf.mxu1  ;;  %2525 = vmatmul.mubr.bf16.gmra.mxu0 %v4278_v39  ;;  %3993 = vmatmul.mubr.bf16.gmra.mxu1 %v4282_v40 }
 0x13d   : > { %v4775_v56 = vadd.f32 %v3891_v14, %v3523_v49  ;;  %v4778_v57 = vadd.f32 %v3898_v55, %v4681_v3  ;;  %2532 = vmatprep.mubr.bf16.mxu0 %v4285_v43  ;;  %3996 = vmatprep.mubr.bf16.mxu1 %v4286_v44 }
 0x13e   : > { %v3525_v62 = vpop.f32.mrf.mxu0  ;;  %v1108_v63 = vpop.f32.mrf.mxu1 }
 0x13f   : > { %v3526_v0 = vadd.f32 %v3525_v62, %v3524_v53  ;;  %v4781_v1 = vadd.f32 %v4671_v51, %v1108_v63 }
 0x140   : > { %v3527_v2 = vpop.f32.mrf.mxu0  ;;  %v3899_v50 = vpop.f32.mrf.mxu1 }
 0x141   : > { %v4785_v11 = vadd.f32 %v3526_v0, %v1092_v34  ;;  %v4788_v12 = vadd.f32 %v3899_v50, %v4687_v13 }
 0x142   : > { %v3528_v60 = vpop.f32.mrf.mxu0  ;;  %v1111_v3 = vpop.f32.mrf.mxu1 }
 0x143   : > { %v3529_v14 = vadd.f32 %v3528_v60, %v3527_v2  ;;  %v4791_v16 = vadd.f32 %v4679_v61, %v1111_v3 }
 0x144   : > { %v3530_v17 = vpop.f32.mrf.mxu0  ;;  %v3902_v21 = vpop.f32.mrf.mxu1  ;;  %2533 = vmatmul.mubr.bf16.gmra.mxu0 %v4283_v7  ;;  %3997 = vmatmul.mubr.bf16.gmra.mxu1 %v4287_v9 }
 0x145   : > { %v4793_v51 = vadd.f32 %v3529_v14, %v1095_v47  ;;  %v4796_v22 = vadd.f32 %v3902_v21, %v4701_v35 }
 0x146   : > { %v3531_v24 = vpop.f32.mrf.mxu0  ;;  %v1124_v18 = vpop.f32.mrf.mxu1 }
 0x147   : > { %v3532_v26 = vadd.f32 %v3531_v24, %v3530_v17  ;;  %v4799_v13 = vadd.f32 %v4691_v19, %v1124_v18 }
 0x148   : > { %v3533_v27 = vpop.f32.mrf.mxu0  ;;  %v3903_v33 = vpop.f32.mrf.mxu1 }
 0x149   : > { %v4801_v34 = vadd.f32 %v3894_v30, %v3532_v26  ;;  %v4804_v61 = vadd.f32 %v3903_v33, %v4707_v45 }
 0x14a   : > { %v3534_v28 = vpop.f32.mrf.mxu0  ;;  %v1127_v37 = vpop.f32.mrf.mxu1 }
 0x14b   : > { %v3535_v39 = vadd.f32 %v3534_v28, %v3533_v27  ;;  %v4807_v40 = vadd.f32 %v4699_v29, %v1127_v37 }
 0x14c   : > { %v3600_v35 = vpop.f32.mrf.mxu1  ;;  %v3922_v43 = vpop.f32.mrf.mxu0 }
 0x14d   : > { %v4809_v44 = vadd.f32 %v3895_v38, %v3535_v39 }
 0x14e   : > { %v3601_v46 = vpop.f32.mrf.mxu1  ;;  %v1734_v19 = vpop.f32.mrf.mxu0 }
 0x14f   : > { %v3602_v47 = vadd.f32 %v3601_v46, %v3600_v35 }
 0x150   : > { %v3603_v49 = vpop.f32.mrf.mxu1  ;;  %v3923_v53 = vpop.f32.mrf.mxu0 }
 0x151   : > { %v1574_v30 = vadd.f32 %v3602_v47, %v4712_v54 }
 0x152   : > { %v3604_v55 = vpop.f32.mrf.mxu1  ;;  %v1737_v45 = vpop.f32.mrf.mxu0 }
 0x153   : > { %v4812_v62 = vadd.f32 %v1734_v19, %v1574_v30  ;;  %v3605_v63 = vadd.f32 %v3604_v55, %v3603_v49 }
 0x154   : > { %v3606_v0 = vpop.f32.mrf.mxu1  ;;  %v3926_v2 = vpop.f32.mrf.mxu0 }
 0x155   : > { %v1577_v29 = vadd.f32 %v3605_v63, %v4721_v4 }
 0x156   : > { %v3607_v50 = vpop.f32.mrf.mxu1  ;;  %v1750_v7 = vpop.f32.mrf.mxu0 }
 0x157   : > { %v4815_v38 = vadd.f32 %v1737_v45, %v1577_v29  ;;  %v3608_v9 = vadd.f32 %v3607_v50, %v3606_v0 }
 0x158   : > { %v3609_v60 = vpop.f32.mrf.mxu1  ;;  %v3927_v3 = vpop.f32.mrf.mxu0 }
 0x159   : > { %v1582_v14 = vadd.f32 %v3608_v9, %v4709_v48 }
 0x15a   : > { %v3610_v17 = vpop.f32.mrf.mxu1  ;;  %v1753_v54 = vpop.f32.mrf.mxu0 }
 0x15b   : > { %v3611_v21 = vadd.f32 %v3610_v17, %v3609_v60  ;;  %v4818_v24 = vadd.f32 %v3922_v43, %v1582_v14 }
 0x15c   : > { %v3612_v18 = vpop.f32.mrf.mxu1  ;;  %v3930_v26 = vpop.f32.mrf.mxu0 }
 0x15d   : > { %v1585_v27 = vadd.f32 %v3611_v21, %v4716_v59 }
 0x15e   : > { %v3613_v33 = vpop.f32.mrf.mxu1  ;;  %v1766_v4 = vpop.f32.mrf.mxu0 }
 0x15f   : > { %v3614_v28 = vadd.f32 %v3613_v33, %v3612_v18  ;;  %v4821_v37 = vadd.f32 %v3923_v53, %v1585_v27 }
 0x160   : > { %v3615_v39 = vpop.f32.mrf.mxu1  ;;  %v3931_v35 = vpop.f32.mrf.mxu0 }
 0x161   : > { %v1590_v46 = vadd.f32 %v3614_v28, %v4726_v10 }
 0x162   : > { %v3616_v19 = vpop.f32.mrf.mxu1  ;;  %v1769_v48 = vpop.f32.mrf.mxu0 }
 0x163   : > { %v3617_v47 = vadd.f32 %v3616_v19, %v3615_v39  ;;  %v4824_v49 = vadd.f32 %v1750_v7, %v1590_v46 }
 0x164   : > { %v3618_v43 = vpop.f32.mrf.mxu1  ;;  %v4826_v30 = vpop.f32.mrf.mxu0 }
 0x165   : > { %v1593_v55 = vadd.f32 %v3617_v47, %v4735_v23 }
 0x166   : > { %v3619_v59 = vpop.f32.mrf.mxu1  ;;  %v1782_v45 = vpop.f32.mrf.mxu0 }
 0x167   : > { %v3620_v63 = vadd.f32 %v3619_v59, %v3618_v43  ;;  %v4829_v0 = vadd.f32 %v1753_v54, %v1593_v55 }
 0x168   : > { %v3621_v53 = vpop.f32.mrf.mxu1  ;;  %v4831_v29 = vpop.f32.mrf.mxu0 }
 0x169   : > { %v1598_v10 = vadd.f32 %v3620_v63, %v4723_v6 }
 0x16a   : > { %v3622_v50 = vpop.f32.mrf.mxu1  ;;  %v1785_v9 = vpop.f32.mrf.mxu0 }
 0x16b   : > { %v3623_v60 = vadd.f32 %v3622_v50, %v3621_v53  ;;  %v4834_v7 = vadd.f32 %v3926_v2, %v1598_v10 }
 0x16c   : > { %v3624_v14 = vpop.f32.mrf.mxu1  ;;  %v4836_v17 = vpop.f32.mrf.mxu0 }
 0x16d   : > { %v1601_v23 = vadd.f32 %v3623_v60, %v4730_v15 }
 0x16e   : > { %v3625_v21 = vpop.f32.mrf.mxu1  ;;  %v4839_v18 = vpop.f32.mrf.mxu0 }
 0x16f   : > { %v3626_v54 = vadd.f32 %v3625_v21, %v3624_v14  ;;  %v4841_v27 = vadd.f32 %v3927_v3, %v1601_v23 }
 0x170   : > { %v3627_v33 = vpop.f32.mrf.mxu1  ;;  %v4843_v28 = vpop.f32.mrf.mxu0 }
 0x171   : > { %v1606_v6 = vadd.f32 %v3626_v54, %v4739_v31 }
 0x172   : > { %v3628_v39 = vpop.f32.mrf.mxu1  ;;  %v4846_v46 = vpop.f32.mrf.mxu0 }
 0x173   : > { %v3629_v2 = vadd.f32 %v3628_v39, %v3627_v33  ;;  %v4848_v19 = vadd.f32 %v1766_v4, %v1606_v6 }
 0x174   : > { %v3630_v47 = vpop.f32.mrf.mxu1  ;;  %v4850_v43 = vpop.f32.mrf.mxu0 }
 0x175   : > { %v1609_v15 = vadd.f32 %v3629_v2, %v4747_v42 }
 0x176   : > { %v3631_v55 = vpop.f32.mrf.mxu1  ;;  %v4853_v59 = vpop.f32.mrf.mxu0 }
 0x177   : > { %v3632_v3 = vadd.f32 %v3631_v55, %v3630_v47  ;;  %v4855_v63 = vadd.f32 %v1769_v48, %v1609_v15 }
 0x178   : > { %v3633_v53 = vpop.f32.mrf.mxu1  ;;  %v4857_v10 = vpop.f32.mrf.mxu0 }
 0x179   : > { %v1614_v31 = vadd.f32 %v3632_v3, %v4737_v25 }
 0x17a   : > { %v3634_v50 = vpop.f32.mrf.mxu1  ;;  %v4860_v60 = vpop.f32.mrf.mxu0 }
 0x17b   : > { %v3635_v4 = vadd.f32 %v3634_v50, %v3633_v53  ;;  %v4862_v14 = vadd.f32 %v3930_v26, %v1614_v31 }
 0x17c   : > { %v3636_v23 = vpop.f32.mrf.mxu1  ;;  %v4864_v21 = vpop.f32.mrf.mxu0 }
 0x17d   : > { %v1617_v42 = vadd.f32 %v3635_v4, %v4743_v36 }
 0x17e   : > { %v3637_v54 = vpop.f32.mrf.mxu1  ;;  %v4867_v33 = vpop.f32.mrf.mxu0 }
 0x17f   : > { %v3638_v48 = vadd.f32 %v3637_v54, %v3636_v23  ;;  %v4869_v6 = vadd.f32 %v3931_v35, %v1617_v42 }
 0x180   : > { %v3639_v39 = vpop.f32.mrf.mxu1  ;;  %v4871_v2 = vpop.f32.mrf.mxu0 }
 0x181   : > { %v1622_v25 = vadd.f32 %v3638_v48, %v4749_v52 }
 0x182   : > { %v3640_v47 = vpop.f32.mrf.mxu1  ;;  %v4874_v15 = vpop.f32.mrf.mxu0 }
 0x183   : > { %v3641_v26 = vadd.f32 %v3640_v47, %v3639_v39  ;;  %v4876_v55 = vadd.f32 %v1782_v45, %v1622_v25 }
 0x184   : > { %v3642_v3 = vpop.f32.mrf.mxu1  ;;  %v4878_v53 = vpop.f32.mrf.mxu0 }
 0x185   : > { %5296 = vst [vmem:[#allocation2_spill] sm:$0xff] %v4878_v53  ;;  %v1625_v36 = vadd.f32 %v3641_v26, %v4757_v5 }
 0x186   : > { %v3643_v31 = vpop.f32.mrf.mxu1  ;;  %v4881_v50 = vpop.f32.mrf.mxu0 }
 0x187   : > { %v3644_v35 = vadd.f32 %v3643_v31, %v3642_v3  ;;  %v4883_v4 = vadd.f32 %v1785_v9, %v1625_v36 }
 0x188   : > { %v3645_v23 = vpop.f32.mrf.mxu1  ;;  %v4885_v42 = vpop.f32.mrf.mxu0 }
 0x189   : > { %5297 = vst [vmem:[#allocation3_spill] sm:$0xff] %v4885_v42  ;;  %v1630_v52 = vadd.f32 %v3644_v35, %v4753_v58 }
 0x18a   : > { %v3646_v54 = vpop.f32.mrf.mxu1  ;;  %v4888_v48 = vpop.f32.mrf.mxu0 }
 0x18b   : > { %v3647_v45 = vadd.f32 %v3646_v54, %v3645_v23  ;;  %v4891_v39 = vadd.f32 %v4826_v30, %v1630_v52 }
 0x18c   : > { %v3648_v25 = vpop.f32.mrf.mxu1  ;;  %v4893_v5 = vpop.f32.mrf.mxu0 }
 0x18d   : > { %v1633_v47 = vadd.f32 %v3647_v45, %v4759_v8 }
 0x18e   : > { %v3649_v26 = vpop.f32.mrf.mxu1  ;;  %v4896_v9 = vpop.f32.mrf.mxu0 }
 0x18f   : > { %v3650_v3 = vadd.f32 %v3649_v26, %v3648_v25  ;;  %v4899_v36 = vadd.f32 %v4831_v29, %v1633_v47 }
 0x190   : > { %v3651_v58 = vpop.f32.mrf.mxu1  ;;  %v4901_v31 = vpop.f32.mrf.mxu0 }
 0x191   : > { %v1638_v35 = vadd.f32 %v3650_v3, %v4763_v20 }
 0x192   : > { %v3652_v23 = vpop.f32.mrf.mxu1  ;;  %v4904_v30 = vpop.f32.mrf.mxu0 }
 0x193   : > { %v3653_v52 = vadd.f32 %v3652_v23, %v3651_v58  ;;  %v4907_v54 = vadd.f32 %v4839_v18, %v1638_v35 }
 0x194   : > { %v3654_v8 = vpop.f32.mrf.mxu1  ;;  %v4909_v45 = vpop.f32.mrf.mxu0 }
 0x195   : > { %5298 = vst [vmem:[#allocation4_spill] sm:$0xff] %v4907_v54  ;;  %v1641_v25 = vadd.f32 %v3653_v52, %v4767_v32 }
 0x196   : > { %v3655_v26 = vpop.f32.mrf.mxu1  ;;  %v4912_v29 = vpop.f32.mrf.mxu0 }
 0x197   : > { %v3656_v47 = vadd.f32 %v3655_v26, %v3654_v8  ;;  %v4915_v42 = vadd.f32 %v4846_v46, %v1641_v25 }
 0x198   : > { %v3657_v20 = vpop.f32.mrf.mxu1  ;;  %v4917_v3 = vpop.f32.mrf.mxu0 }
 0x199   : > { %5299 = vst [vmem:[#allocation5_spill] sm:$0xff] %v4915_v42  ;;  %v1646_v58 = vadd.f32 %v3656_v47, %v4771_v41 }
 0x19a   : > { %v3658_v23 = vpop.f32.mrf.mxu1  ;;  %v4920_v18 = vpop.f32.mrf.mxu0 }
 0x19b   : > { %v3659_v35 = vadd.f32 %v3658_v23, %v3657_v20  ;;  %v4923_v53 = vadd.f32 %v4836_v17, %v1646_v58 }
 0x19c   : > { %v3660_v32 = vpop.f32.mrf.mxu1  ;;  %v4925_v52 = vpop.f32.mrf.mxu0 }
 0x19d   : > { %v1649_v8 = vadd.f32 %v3659_v35, %v4775_v56 }
 0x19e   : > { %v3661_v26 = vpop.f32.mrf.mxu1  ;;  %v4928_v46 = vpop.f32.mrf.mxu0 }
 0x19f   : > { %v3662_v25 = vadd.f32 %v3661_v26, %v3660_v32  ;;  %v4931_v42 = vadd.f32 %v4843_v28, %v1649_v8 }
 0x1a0   : > { %v3663_v41 = vpop.f32.mrf.mxu1  ;;  %v4933_v47 = vpop.f32.mrf.mxu0 }
 0x1a1   : > { %5300 = vst [vmem:[#allocation6_spill] sm:$0xff] %v4931_v42  ;;  %v1654_v20 = vadd.f32 %v3662_v25, %v4785_v11 }
 0x1a2   : > { %v3664_v23 = vpop.f32.mrf.mxu1  ;;  %v4936_v17 = vpop.f32.mrf.mxu0 }
 0x1a3   : > { %v3665_v58 = vadd.f32 %v3664_v23, %v3663_v41  ;;  %v4939_v54 = vadd.f32 %v4853_v59, %v1654_v20 }
 0x1a4   : > { %v3666_v56 = vpop.f32.mrf.mxu1  ;;  %v4941_v35 = vpop.f32.mrf.mxu0 }
 0x1a5   : > { %5301 = vst [vmem:[#allocation7_spill] sm:$0xff] %v4939_v54  ;;  %v1657_v32 = vadd.f32 %v3665_v58, %v4793_v51 }
 0x1a6   : > { %v3667_v26 = vpop.f32.mrf.mxu1  ;;  %v4944_v28 = vpop.f32.mrf.mxu0 }
 0x1a7   : > { %v3668_v8 = vadd.f32 %v3667_v26, %v3666_v56  ;;  %v4947_v42 = vadd.f32 %v4860_v60, %v1657_v32 }
 0x1a8   : > { %v3669_v11 = vpop.f32.mrf.mxu1  ;;  %v4949_v25 = vpop.f32.mrf.mxu0 }
 0x1a9   : > { %5302 = vst [vmem:[#allocation8_spill] sm:$0xff] %v4947_v42  ;;  %v1662_v41 = vadd.f32 %v3668_v8, %v4801_v34 }
 0x1aa   : > { %v3670_v23 = vpop.f32.mrf.mxu1  ;;  %v4952_v59 = vpop.f32.mrf.mxu0 }
 0x1ab   : > { %v3671_v20 = vadd.f32 %v3670_v23, %v3669_v11  ;;  %v4955_v54 = vadd.f32 %v4850_v43, %v1662_v41 }
 0x1ac   : > { %v3672_v51 = vpop.f32.mrf.mxu1  ;;  %v4957_v58 = vpop.f32.mrf.mxu0 }
 0x1ad   : > { %5303 = vst [vmem:[#allocation9_spill] sm:$0xff] %v4955_v54  ;;  %v1665_v56 = vadd.f32 %v3671_v20, %v4809_v44 }
 0x1ae   : > { %v3673_v26 = vpop.f32.mrf.mxu1  ;;  %v4960_v60 = vpop.f32.mrf.mxu0 }
 0x1af   : > { %v3674_v32 = vadd.f32 %v3673_v26, %v3672_v51  ;;  %v4963_v42 = vadd.f32 %v4857_v10, %v1665_v56 }
 0x1b0   : > { %v3675_v34 = vpop.f32.mrf.mxu1  ;;  %v4965_v8 = vpop.f32.mrf.mxu0 }
 0x1b1   : > { %5304 = vst [vmem:[#allocation10_spill] sm:$0xff] %v4963_v42  ;;  %v1670_v11 = vadd.f32 %v3674_v32, %v4781_v1 }
 0x1b2   : > { %v3676_v23 = vpop.f32.mrf.mxu1  ;;  %v4968_v43 = vpop.f32.mrf.mxu0 }
 0x1b3   : > { %v3677_v41 = vadd.f32 %v3676_v23, %v3675_v34  ;;  %v4971_v54 = vadd.f32 %v4867_v33, %v1670_v11 }
 0x1b4   : > { %v3678_v44 = vpop.f32.mrf.mxu1  ;;  %v4973_v20 = vpop.f32.mrf.mxu0 }
 0x1b5   : > { %5305 = vst [vmem:[#allocation11_spill] sm:$0xff] %v4971_v54  ;;  %v1673_v51 = vadd.f32 %v3677_v41, %v4791_v16 }
 0x1b6   : > { %v3679_v26 = vpop.f32.mrf.mxu1  ;;  %v4976_v10 = vpop.f32.mrf.mxu0 }
 0x1b7   : > { %v3680_v56 = vadd.f32 %v3679_v26, %v3678_v44  ;;  %v4979_v42 = vadd.f32 %v4874_v15, %v1673_v51 }
 0x1b8   : > { %v3681_v1 = vpop.f32.mrf.mxu1  ;;  %v4981_v32 = vpop.f32.mrf.mxu0 }
 0x1b9   : > { %5306 = vst [vmem:[#allocation12_spill] sm:$0xff] %v4979_v42  ;;  %v1678_v34 = vadd.f32 %v3680_v56, %v4778_v57 }
 0x1ba   : > { %v3682_v23 = vpop.f32.mrf.mxu1  ;;  %v4984_v33 = vpop.f32.mrf.mxu0 }
 0x1bb   : > { %v3683_v11 = vadd.f32 %v3682_v23, %v3681_v1  ;;  %v4987_v54 = vadd.f32 %v4864_v21, %v1678_v34 }
 0x1bc   : > { %v3684_v16 = vpop.f32.mrf.mxu1  ;;  %v4989_v41 = vpop.f32.mrf.mxu0 }
 0x1bd   : > { %5307 = vst [vmem:[#allocation13_spill] sm:$0xff] %v4987_v54  ;;  %v1681_v44 = vadd.f32 %v3683_v11, %v4788_v12 }
 0x1be   : > { %v3685_v26 = vpop.f32.mrf.mxu1  ;;  %v4992_v15 = vpop.f32.mrf.mxu0 }
 0x1bf   : > { %v3686_v51 = vadd.f32 %v3685_v26, %v3684_v16  ;;  %v4995_v42 = vadd.f32 %v4871_v2, %v1681_v44 }
 0x1c0   : > { %v3687_v57 = vpop.f32.mrf.mxu1  ;;  %v4997_v56 = vpop.f32.mrf.mxu0 }
 0x1c1   : > { %5308 = vst [vmem:[#allocation14_spill] sm:$0xff] %v4995_v42  ;;  %v1686_v1 = vadd.f32 %v3686_v51, %v4799_v13 }
 0x1c2   : > { %v3688_v21 = vpop.f32.mrf.mxu1  ;;  %v5000_v34 = vpop.f32.mrf.mxu0 }
 0x1c3   : > { %v3689_v23 = vadd.f32 %v3688_v21, %v3687_v57  ;;  %v5003_v54 = vadd.f32 %v4881_v50, %v1686_v1 }
 0x1c4   : > { %v3690_v12 = vpop.f32.mrf.mxu1  ;;  %v5005_v11 = vpop.f32.mrf.mxu0 }
 0x1c5   : > { %v1689_v16 = vadd.f32 %v3689_v23, %v4807_v40  ;;  %v3744_v40 = vadd.f32 %v4912_v29, %v4909_v45  ;;  %v3747_v29 = vadd.f32 %v4920_v18, %v4917_v3  ;;  %v3741_v3 = vadd.f32 %v4904_v30, %v4901_v31 }
 0x1c6   : > { %v3691_v2 = vpop.f32.mrf.mxu1  ;;  %v5008_v44 = vpop.f32.mrf.mxu0 }
 0x1c7   : > { %v3692_v26 = vadd.f32 %v3691_v2, %v3690_v12  ;;  %v5011_v42 = vadd.f32 %v4888_v48, %v1689_v16  ;;  %v3738_v12 = vadd.f32 %v4896_v9, %v4893_v5 }
 0x1c8   : > { %v3693_v13 = vpop.f32.mrf.mxu1  ;;  %v5013_v51 = vpop.f32.mrf.mxu0 }
 0x1c9   : > { %5309 = vst [vmem:[#allocation15_spill] sm:$0xff] %v5011_v42  ;;  %v5018_v50 = vadd.f32 %v3692_v26, %v4796_v22  ;;  %v5034_v22 = vld [vmem:[%s5293_s2] ss:$0 sm:$0xff] }
 0x1ca   : > { %v3694_v57 = vpop.f32.mrf.mxu1  ;;  %v5020_v1 = vpop.f32.mrf.mxu0 }
 0x1cb   : > { %v3695_v21 = vadd.f32 %v3694_v57, %v3693_v13 }
 0x1cc   : > { %v5024_v23 = vpop.f32.mrf.mxu0  ;;  %v3970_v48 = vpop.f32.mrf.mxu1 }
 0x1cd   : > { %v5029_v16 = vadd.f32 %v3695_v21, %v4804_v61  ;;  %v2584_v2 = vadd.f32 %v3970_v48, %v3744_v40  ;;  %v5044_v61 = vld [vmem:[%s5294_s3] ss:$0 sm:$0xff] }
 0x1ce   : > { %v5036_v26 = vpop.f32.mrf.mxu0  ;;  %v2575_v45 = vpop.f32.mrf.mxu1 }
 0x1cf   : > { %5310 = vst [vmem:[#allocation16_spill] sm:$0xff] %v5029_v16  ;;  %v2704_v13 = vadd.f32 %v2584_v2, %v4818_v24  ;;  %v2576_v57 = vadd.f32 %v3738_v12, %v2575_v45  ;;  %v3756_v12 = vadd.f32 %v4944_v28, %v4941_v35  ;;  %v3750_v35 = vadd.f32 %v4928_v46, %v4925_v52 }
 0x1d0   : > { %v5046_v5 = vpop.f32.mrf.mxu0  ;;  %v3971_v9 = vpop.f32.mrf.mxu1  ;;  %v3759_v28 = vadd.f32 %v4952_v59, %v4949_v25 }
 0x1d1   : > { %v2743_v40 = vmul.f32 %v5034_v22, %v2704_v13  ;;  %v2702_v21 = vadd.f32 %v2576_v57, %v4812_v62  ;;  %v2587_v48 = vadd.f32 %v3971_v9, %v3747_v29 }
 0x1d2   : > { %v5052_v18 = vpop.f32.mrf.mxu0  ;;  %v2578_v24 = vpop.f32.mrf.mxu1 }
 0x1d3   : > { %v2782_v2 = vadd.f32 %v5044_v61, %v2743_v40  ;;  %v2741_v45 = vmul.f32 %v5034_v22, %v2702_v21  ;;  %v2705_v42 = vadd.f32 %v2587_v48, %v4821_v37  ;;  %v2579_v13 = vadd.f32 %v3741_v3, %v2578_v24 }
 0x1d4   : > { %v5059_v16 = vpop.f32.mrf.mxu0  ;;  %v3974_v62 = vpop.f32.mrf.mxu1 }
 0x1d5   : > { %v2814_v29 = vmax.f32 %v2782_v2, 0.0  ;;  %v2780_v31 = vadd.f32 %v5044_v61, %v2741_v45  ;;  %v2744_v30 = vmul.f32 %v5034_v22, %v2705_v42  ;;  %v2600_v57 = vadd.f32 %v3974_v62, %v3756_v12 }
 0x1d6   : > { %v2703_v37 = vadd.f32 %v2579_v13, %v4815_v38  ;;  %v5073_v9 = vpop.f32.mrf.mxu0  ;;  %v2591_v40 = vpop.f32.mrf.mxu1  ;;  %v3753_v45 = vadd.f32 %v4936_v17, %v4933_v47 }
 0x1d7   : > { %v3418_v42 = vpack.c.bf16 %v2814_v29, %v2814_v29  ;;  %v2812_v21 = vmax.f32 %v2780_v31, 0.0  ;;  %v2783_v48 = vadd.f32 %v5044_v61, %v2744_v30  ;;  %v2708_v52 = vadd.f32 %v2600_v57, %v4834_v7 }
 0x1d8   : > { %v2742_v46 = vmul.f32 %v5034_v22, %v2703_v37  ;;  %v2592_v25 = vadd.f32 %v3750_v35, %v2591_v40  ;;  %v5078_v59 = vpop.f32.mrf.mxu0  ;;  %v3975_v3 = vpop.f32.mrf.mxu1  ;;  %v3768_v31 = vadd.f32 %v4976_v10, %v4973_v20 }
 0x1d9   : > { %2975 = vst.msk [vmem:[%s5070_s26 + $0x8] sm:$0xf] %vm2972_vm0, %v3418_v42  ;;  %v3416_v24 = vpack.c.bf16 %v2812_v21, %v2812_v21  ;;  %v2815_v38 = vmax.f32 %v2783_v48, 0.0  ;;  %v2747_v12 = vmul.f32 %v5034_v22, %v2708_v52  ;;  %v2603_v2 = vadd.f32 %v3975_v3, %v3759_v28 }
 0x1da   : > { %v2781_v7 = vadd.f32 %v5044_v61, %v2742_v46  ;;  %v2706_v13 = vadd.f32 %v2592_v25, %v4824_v49  ;;  %v5087_v62 = vpop.f32.mrf.mxu0  ;;  %v2594_v29 = vpop.f32.mrf.mxu1  ;;  %v3762_v42 = vadd.f32 %v4960_v60, %v4957_v58  ;;  %v3771_v25 = vadd.f32 %v4984_v33, %v4981_v32 }
 0x1db   : > { %2973 = vst.msk [vmem:[%s5070_s26] sm:$0xf] %vm2972_vm0, %v3416_v24  ;;  %v3419_v30 = vpack.c.bf16 %v2815_v38, %v2815_v38  ;;  %v2786_v57 = vadd.f32 %v5044_v61, %v2747_v12  ;;  %v2709_v35 = vadd.f32 %v2603_v2, %v4841_v27  ;;  %v2595_v17 = vadd.f32 %v3753_v45, %v2594_v29 }
 0x1dc   : > { %v2813_v28 = vmax.f32 %v2781_v7, 0.0  ;;  %v2745_v47 = vmul.f32 %v5034_v22, %v2706_v13  ;;  %v5096_v37 = vpop.f32.mrf.mxu0  ;;  %v3978_v49 = vpop.f32.mrf.mxu1  ;;  %v3765_v7 = vadd.f32 %v4968_v43, %v4965_v8 }
 0x1dd   : > { %2976 = vst.msk [vmem:[%s5070_s26 + $0xc] sm:$0xf] %vm2972_vm0, %v3419_v30  ;;  %v2818_v40 = vmax.f32 %v2786_v57, 0.0  ;;  %v2748_v20 = vmul.f32 %v5034_v22, %v2709_v35  ;;  %v2616_v10 = vadd.f32 %v3978_v49, %v3768_v31  ;;  %v2707_v48 = vadd.f32 %v2595_v17, %v4829_v0 }
 0x1de   : > { %v3417_v21 = vpack.c.bf16 %v2813_v28, %v2813_v28  ;;  %v2784_v27 = vadd.f32 %v5044_v61, %v2745_v47  ;;  %v5105_v52 = vpop.f32.mrf.mxu0  ;;  %v2607_v46 = vpop.f32.mrf.mxu1  ;;  %v3780_v57 = vadd.f32 %v5008_v44, %v5005_v11 }
 0x1df   : > { %v3422_v3 = vpack.c.bf16 %v2818_v40, %v2818_v40  ;;  %v2787_v24 = vadd.f32 %v5044_v61, %v2748_v20  ;;  %v2712_v38 = vadd.f32 %v2616_v10, %v4862_v14  ;;  %v2746_v60 = vmul.f32 %v5034_v22, %v2707_v48 }
 0x1e0   : > { %2974 = vst.msk [vmem:[%s5070_s26 + $0x4] sm:$0xf] %vm2972_vm0, %v3417_v21  ;;  %v2816_v58 = vmax.f32 %v2784_v27, 0.0  ;;  %v2608_v12 = vadd.f32 %v3762_v42, %v2607_v46  ;;  %v5114_v2 = vpop.f32.mrf.mxu0  ;;  %v3979_v0 = vpop.f32.mrf.mxu1  ;;  %v3774_v20 = vadd.f32 %v4992_v15, %v4989_v41  ;;  %v3783_v48 = vadd.f32 %v5020_v1, %v5013_v51 }
 0x1e1   : > { %2979 = vst.msk [vmem:[%s5070_s26 + $0x18] sm:$0xf] %vm2972_vm0, %v3422_v3  ;;  %v2819_v45 = vmax.f32 %v2787_v24, 0.0  ;;  %v2751_v32 = vmul.f32 %v5034_v22, %v2712_v38  ;;  %v2619_v33 = vadd.f32 %v3979_v0, %v3771_v25  ;;  %v2785_v13 = vadd.f32 %v5044_v61, %v2746_v60 }
 0x1e2   : > { %v3420_v14 = vpack.c.bf16 %v2816_v58, %v2816_v58  ;;  %v2710_v29 = vadd.f32 %v2608_v12, %v4848_v19  ;;  %v5123_v31 = vpop.f32.mrf.mxu0  ;;  %v2610_v30 = vpop.f32.mrf.mxu1  ;;  %v3777_v60 = vadd.f32 %v5000_v34, %v4997_v56 }
 0x1e3   : > { %v3423_v35 = vpack.c.bf16 %v2819_v45, %v2819_v45  ;;  %v2790_v28 = vadd.f32 %v5044_v61, %v2751_v32  ;;  %v2713_v47 = vadd.f32 %v2619_v33, %v4869_v6  ;;  %v2817_v8 = vmax.f32 %v2785_v13, 0.0 }
 0x1e4   : > { %2977 = vst.msk [vmem:[%s5070_s26 + $0x10] sm:$0xf] %vm2972_vm0, %v3420_v14  ;;  %v2749_v43 = vmul.f32 %v5034_v22, %v2710_v29  ;;  %v2611_v17 = vadd.f32 %v3765_v7, %v2610_v30  ;;  %v5132_v49 = vpop.f32.mrf.mxu0  ;;  %v3982_v19 = vpop.f32.mrf.mxu1  ;;  %v3792_v33 = vadd.f32 %v5073_v9, %v5059_v16 }
 0x1e5   : > { %2980 = vst.msk [vmem:[%s5070_s26 + $0x1c] sm:$0xf] %vm2972_vm0, %v3423_v35  ;;  %v2822_v40 = vmax.f32 %v2790_v28, 0.0  ;;  %v2752_v11 = vmul.f32 %v5034_v22, %v2713_v47  ;;  %v2632_v44 = vadd.f32 %v3982_v19, %v3780_v57  ;;  %v3421_v6 = vpack.c.bf16 %v2817_v8, %v2817_v8 }
 0x1e6   : > { %v2788_v10 = vadd.f32 %v5044_v61, %v2749_v43  ;;  %v2711_v42 = vadd.f32 %v2611_v17, %v4855_v63  ;;  %v3803_v21 = vpop.f32.mrf.mxu0  ;;  %v2623_v27 = vpop.f32.mrf.mxu1  ;;  %v3786_v35 = vadd.f32 %v5036_v26, %v5024_v23  ;;  %v3795_v17 = vadd.f32 %v5087_v62, %v5078_v59 }
 0x1e7   : > { %v3426_v46 = vpack.c.bf16 %v2822_v40, %v2822_v40  ;;  %v2791_v25 = vadd.f32 %v5044_v61, %v2752_v11  ;;  %v2716_v3 = vadd.f32 %v2632_v44, %v4891_v39  ;;  %2978 = vst.msk [vmem:[%s5070_s26 + $0x14] sm:$0xf] %vm2972_vm0, %v3421_v6  ;;  %v2624_v15 = vadd.f32 %v3774_v20, %v2623_v27  ;;  %v5311_v27 = vld [vmem:[#allocation4_spill] sm:$0xff] }
 0x1e8   : > { %v2820_v24 = vmax.f32 %v2788_v10, 0.0  ;;  %v2750_v41 = vmul.f32 %v5034_v22, %v2711_v42  ;;  %v5148_v38 = vpop.f32.mrf.mxu0  ;;  %v3983_v63 = vpop.f32.mrf.mxu1  ;;  %v3789_v10 = vadd.f32 %v5052_v18, %v5046_v5 }
 0x1e9   : > { %2983 = vst.msk [vmem:[%s5070_s26 + $0x28] sm:$0xf] %vm2972_vm0, %v3426_v46  ;;  %v2823_v58 = vmax.f32 %v2791_v25, 0.0  ;;  %v2755_v51 = vmul.f32 %v5034_v22, %v2716_v3  ;;  %v2635_v1 = vadd.f32 %v3983_v63, %v3783_v48  ;;  %v2714_v0 = vadd.f32 %v2624_v15, %v4876_v55  ;;  %v5312_v15 = vld [vmem:[#allocation6_spill] sm:$0xff] }
 0x1ea   : > { %v3424_v39 = vpack.c.bf16 %v2820_v24, %v2820_v24  ;;  %v2789_v12 = vadd.f32 %v5044_v61, %v2750_v41  ;;  %v3806_v45 = vpop.f32.mrf.mxu0  ;;  %v2626_v32 = vpop.f32.mrf.mxu1  ;;  %v3804_v3 = vadd.f32 %v3803_v21, %v5132_v49  ;;  %v3798_v21 = vadd.f32 %v5105_v52, %v5096_v37 }
 0x1eb   : > { %v3427_v7 = vpack.c.bf16 %v2823_v58, %v2823_v58  ;;  %v2794_v14 = vadd.f32 %v5044_v61, %v2755_v51  ;;  %v2717_v13 = vadd.f32 %v2635_v1, %v4899_v36  ;;  %v2753_v56 = vmul.f32 %v5034_v22, %v2714_v0 }
 0x1ec   : > { %2981 = vst.msk [vmem:[%s5070_s26 + $0x20] sm:$0xf] %vm2972_vm0, %v3424_v39  ;;  %v2821_v29 = vmax.f32 %v2789_v12, 0.0  ;;  %v2627_v34 = vadd.f32 %v3777_v60, %v2626_v32  ;;  %v5164_v30 = vpop.f32.mrf.mxu0  ;;  %v3986_v55 = vpop.f32.mrf.mxu1  ;;  %v5313_v32 = vld [vmem:[#allocation5_spill] sm:$0xff] }
 0x1ed   : > { %2984 = vst.msk [vmem:[%s5070_s26 + $0x2c] sm:$0xf] %vm2972_vm0, %v3427_v7  ;;  %v2826_v57 = vmax.f32 %v2794_v14, 0.0  ;;  %v2756_v16 = vmul.f32 %v5034_v22, %v2717_v13  ;;  %v2648_v9 = vadd.f32 %v3986_v55, %v3792_v33  ;;  %v2792_v28 = vadd.f32 %v5044_v61, %v2753_v56 }
 0x1ee   : > { %v3425_v36 = vpack.c.bf16 %v2821_v29, %v2821_v29  ;;  %v2715_v47 = vadd.f32 %v2627_v34, %v4883_v4  ;;  %v5173_v8 = vpop.f32.mrf.mxu0  ;;  %v2639_v43 = vpop.f32.mrf.mxu1  ;;  %v3807_v13 = vadd.f32 %v3806_v45, %v5148_v38  ;;  %v5314_v34 = vld [vmem:[#allocation9_spill] sm:$0xff]  ;;  %v3801_v45 = vadd.f32 %v5123_v31, %v5114_v2 }
 0x1ef   : > { %v3430_v19 = vpack.c.bf16 %v2826_v57, %v2826_v57  ;;  %v2795_v40 = vadd.f32 %v5044_v61, %v2756_v16  ;;  %v2720_v11 = vadd.f32 %v2648_v9, %v4923_v53  ;;  %v2824_v23 = vmax.f32 %v2792_v28, 0.0 }
 0x1f0   : > { %2982 = vst.msk [vmem:[%s5070_s26 + $0x24] sm:$0xf] %vm2972_vm0, %v3425_v36  ;;  %v2754_v26 = vmul.f32 %v5034_v22, %v2715_v47  ;;  %v2640_v44 = vadd.f32 %v3786_v35, %v2639_v43  ;;  %v5182_v20 = vpop.f32.mrf.mxu0  ;;  %v3987_v4 = vpop.f32.mrf.mxu1  ;;  %v5315_v43 = vld [vmem:[#allocation7_spill] sm:$0xff] }
 0x1f1   : > { %2987 = vst.msk [vmem:[%s5070_s26 + $0x38] sm:$0xf] %vm2972_vm0, %v3430_v19  ;;  %v2827_v6 = vmax.f32 %v2795_v40, 0.0  ;;  %v2759_v59 = vmul.f32 %v5034_v22, %v2720_v11  ;;  %v2651_v62 = vadd.f32 %v3987_v4, %v3795_v17  ;;  %v3428_v53 = vpack.c.bf16 %v2824_v23, %v2824_v23 }
 0x1f2   : > { %v2793_v42 = vadd.f32 %v5044_v61, %v2754_v26  ;;  %v2718_v48 = vadd.f32 %v2640_v44, %v5311_v27  ;;  %v5191_v46 = vpop.f32.mrf.mxu0  ;;  %v2642_v25 = vpop.f32.mrf.mxu1  ;;  %v5316_v44 = vld [vmem:[#allocation10_spill] sm:$0xff]  ;;  %v3810_v27 = vadd.f32 %v5173_v8, %v5164_v30 }
 0x1f3   : > { %v3431_v24 = vpack.c.bf16 %v2827_v6, %v2827_v6  ;;  %v2798_v41 = vadd.f32 %v5044_v61, %v2759_v59  ;;  %v2721_v63 = vadd.f32 %v2651_v62, %v5312_v15  ;;  %2985 = vst.msk [vmem:[%s5070_s26 + $0x30] sm:$0xf] %vm2972_vm0, %v3428_v53  ;;  %v2643_v18 = vadd.f32 %v3789_v10, %v2642_v25 }
 0x1f4   : > { %v2825_v58 = vmax.f32 %v2793_v42, 0.0  ;;  %v2757_v5 = vmul.f32 %v5034_v22, %v2718_v48  ;;  %v3814_v51 = vpop.f32.mrf.mxu0  ;;  %v3990_v1 = vpop.f32.mrf.mxu1 }
 0x1f5   : > { %2988 = vst.msk [vmem:[%s5070_s26 + $0x3c] sm:$0xf] %vm2972_vm0, %v3431_v24  ;;  %v2830_v60 = vmax.f32 %v2798_v41, 0.0  ;;  %v2760_v39 = vmul.f32 %v5034_v22, %v2721_v63  ;;  %v2664_v49 = vadd.f32 %v3990_v1, %v3804_v3  ;;  %v2719_v33 = vadd.f32 %v2643_v18, %v5313_v32  ;;  %v5317_v3 = vld [vmem:[#allocation8_spill] sm:$0xff]  ;;  %v5318_v18 = vld [vmem:[#allocation13_spill] sm:$0xff] }
 0x1f6   : > { %v3429_v12 = vpack.c.bf16 %v2825_v58, %v2825_v58  ;;  %v2796_v0 = vadd.f32 %v5044_v61, %v2757_v5  ;;  %v3815_v7 = vpop.f32.mrf.mxu0  ;;  %v2655_v14 = vpop.f32.mrf.mxu1 }
 0x1f7   : > { %v3434_v29 = vpack.c.bf16 %v2830_v60, %v2830_v60  ;;  %v2799_v56 = vadd.f32 %v5044_v61, %v2760_v39  ;;  %v2724_v55 = vadd.f32 %v2664_v49, %v5314_v34  ;;  %v2758_v37 = vmul.f32 %v5034_v22, %v2719_v33 }
 0x1f8   : > { %2986 = vst.msk [vmem:[%s5070_s26 + $0x34] sm:$0xf] %vm2972_vm0, %v3429_v12  ;;  %v2828_v57 = vmax.f32 %v2796_v0, 0.0  ;;  %v2656_v52 = vadd.f32 %v3798_v21, %v2655_v14  ;;  %v3817_v16 = vpop.f32.mrf.mxu0  ;;  %v3991_v9 = vpop.f32.mrf.mxu1  ;;  %v3816_v26 = vadd.f32 %v3815_v7, %v3814_v51  ;;  %v3813_v0 = vadd.f32 %v5191_v46, %v5182_v20  ;;  %v5319_v7 = vld [vmem:[#allocation11_spill] sm:$0xff] }
 0x1f9   : > { %2991 = vst.msk [vmem:[%s5070_s26 + $0x48] sm:$0xf] %vm2972_vm0, %v3434_v29  ;;  %v2831_v35 = vmax.f32 %v2799_v56, 0.0  ;;  %v2763_v36 = vmul.f32 %v5034_v22, %v2724_v55  ;;  %v2667_v38 = vadd.f32 %v3991_v9, %v3807_v13  ;;  %v2797_v47 = vadd.f32 %v5044_v61, %v2758_v37  ;;  %v5320_v55 = vld [vmem:[#allocation14_spill] sm:$0xff] }
 0x1fa   : > { %v3432_v28 = vpack.c.bf16 %v2828_v57, %v2828_v57  ;;  %v2722_v17 = vadd.f32 %v2656_v52, %v5315_v43  ;;  %v3818_v19 = vpop.f32.mrf.mxu0  ;;  %v2658_v40 = vpop.f32.mrf.mxu1 }
 0x1fb   : > { %v3435_v11 = vpack.c.bf16 %v2831_v35, %v2831_v35  ;;  %v2802_v23 = vadd.f32 %v5044_v61, %v2763_v36  ;;  %v2725_v4 = vadd.f32 %v2667_v38, %v5316_v44  ;;  %v2829_v6 = vmax.f32 %v2797_v47, 0.0 }
 0x1fc   : > { %2989 = vst.msk [vmem:[%s5070_s26 + $0x40] sm:$0xf] %vm2972_vm0, %v3432_v28  ;;  %v2761_v59 = vmul.f32 %v5034_v22, %v2722_v17  ;;  %v2659_v2 = vadd.f32 %v3801_v45, %v2658_v40  ;;  %v3820_v31 = vpop.f32.mrf.mxu0  ;;  %v3994_v62 = vpop.f32.mrf.mxu1  ;;  %v3819_v5 = vadd.f32 %v3818_v19, %v3817_v16  ;;  %v5321_v28 = vld [vmem:[#allocation12_spill] sm:$0xff] }
 0x1fd   : > { %2992 = vst.msk [vmem:[%s5070_s26 + $0x4c] sm:$0xf] %vm2972_vm0, %v3435_v11  ;;  %v2834_v10 = vmax.f32 %v2802_v23, 0.0  ;;  %v2764_v53 = vmul.f32 %v5034_v22, %v2725_v4  ;;  %v2680_v42 = vadd.f32 %v3994_v62, %v3816_v26  ;;  %v3433_v48 = vpack.c.bf16 %v2829_v6, %v2829_v6 }
 0x1fe   : > { %v2800_v25 = vadd.f32 %v5044_v61, %v2761_v59  ;;  %v2723_v24 = vadd.f32 %v2659_v2, %v5317_v3  ;;  %v3821_v41 = vpop.f32.mrf.mxu0  ;;  %v2671_v15 = vpop.f32.mrf.mxu1  ;;  %v5322_v59 = vld [vmem:[#allocation2_spill] sm:$0xff] }
 0x1ff   : > { %v3438_v63 = vpack.c.bf16 %v2834_v10, %v2834_v10  ;;  %v2803_v58 = vadd.f32 %v5044_v61, %v2764_v53  ;;  %v2728_v51 = vadd.f32 %v2680_v42, %v5318_v18  ;;  %2990 = vst.msk [vmem:[%s5070_s26 + $0x44] sm:$0xf] %vm2972_vm0, %v3433_v48  ;;  %v2672_v30 = vadd.f32 %v3810_v27, %v2671_v15 }
 0x200   : > { %v2832_v1 = vmax.f32 %v2800_v25, 0.0  ;;  %v2762_v60 = vmul.f32 %v5034_v22, %v2723_v24  ;;  %v3823_v8 = vpop.f32.mrf.mxu0  ;;  %v3995_v39 = vpop.f32.mrf.mxu1  ;;  %v3822_v35 = vadd.f32 %v3821_v41, %v3820_v31  ;;  %v1855_v2 = vadd.f32 %v5322_v59, %v5018_v50 }
 0x201   : > { %2995 = vst.msk [vmem:[%s5070_s26 + $0x58] sm:$0xf] %vm2972_vm0, %v3438_v63  ;;  %v2835_v49 = vmax.f32 %v2803_v58, 0.0  ;;  %v2767_v21 = vmul.f32 %v5034_v22, %v2728_v51  ;;  %v2683_v12 = vadd.f32 %v3995_v39, %v3819_v5  ;;  %v2726_v14 = vadd.f32 %v2672_v30, %v5319_v7  ;;  %v5323_v58 = vld [vmem:[#allocation16_spill] sm:$0xff]  ;;  %v5324_v5 = vld [vmem:[#allocation3_spill] sm:$0xff] }
 0x202   : > { %v3436_v32 = vpack.c.bf16 %v2832_v1, %v2832_v1  ;;  %v2801_v33 = vadd.f32 %v5044_v61, %v2762_v60  ;;  %v3824_v13 = vpop.f32.mrf.mxu0  ;;  %v2674_v29 = vpop.f32.mrf.mxu1  ;;  %v1858_v18 = vadd.f32 %v5324_v5, %v5323_v58  ;;  %v5325_v30 = vld [vmem:[#allocation15_spill] sm:$0xff] }
 0x203   : > { %v3439_v56 = vpack.c.bf16 %v2835_v49, %v2835_v49  ;;  %v2806_v34 = vadd.f32 %v5044_v61, %v2767_v21  ;;  %v2729_v57 = vadd.f32 %v2683_v12, %v5320_v55  ;;  %v2765_v52 = vmul.f32 %v5034_v22, %v2726_v14 }
 0x204   : > { %2993 = vst.msk [vmem:[%s5070_s26 + $0x50] sm:$0xf] %vm2972_vm0, %v3436_v32  ;;  %v2833_v37 = vmax.f32 %v2801_v33, 0.0  ;;  %v2675_v16 = vadd.f32 %v3813_v0, %v2674_v29  ;;  %v3826_v20 = vpop.f32.mrf.mxu0  ;;  %v3998_v46 = vpop.f32.mrf.mxu1  ;;  %v3825_v42 = vadd.f32 %v3824_v13, %v3823_v8 }
 0x205   : > { %2996 = vst.msk [vmem:[%s5070_s26 + $0x5c] sm:$0xf] %vm2972_vm0, %v3439_v56  ;;  %v2838_v9 = vmax.f32 %v2806_v34, 0.0  ;;  %v2768_v36 = vmul.f32 %v5034_v22, %v2729_v57  ;;  %v2804_v45 = vadd.f32 %v5044_v61, %v2765_v52 }
 0x206   : > { %v3437_v38 = vpack.c.bf16 %v2833_v37, %v2833_v37  ;;  %v2727_v47 = vadd.f32 %v2675_v16, %v5321_v28  ;;  %v3827_v43 = vpop.f32.mrf.mxu0  ;;  %v2687_v17 = vpop.f32.mrf.mxu1 }
 0x207   : > { %v3442_v19 = vpack.c.bf16 %v2838_v9, %v2838_v9  ;;  %v2807_v40 = vadd.f32 %v5044_v61, %v2768_v36  ;;  %v3828_v11 = vadd.f32 %v3827_v43, %v3826_v20  ;;  %v2688_v23 = vadd.f32 %v3822_v35, %v2687_v17 }
 0x208   : > { %2994 = vst.msk [vmem:[%s5070_s26 + $0x54] sm:$0xf] %vm2972_vm0, %v3437_v38  ;;  %v2836_v26 = vmax.f32 %v2804_v45, 0.0  ;;  %v2766_v44 = vmul.f32 %v5034_v22, %v2727_v47  ;;  %v3829_v4 = vpop.f32.mrf.mxu0  ;;  %v3999_v6 = vpop.f32.mrf.mxu1 }
 0x209   : > { %2999 = vst.msk [vmem:[%s5070_s26 + $0x68] sm:$0xf] %vm2972_vm0, %v3442_v19  ;;  %v2839_v31 = vmax.f32 %v2807_v40, 0.0  ;;  %v2696_v62 = vadd.f32 %v3998_v46, %v3828_v11  ;;  %v2730_v10 = vadd.f32 %v2688_v23, %v5003_v54 }
 0x20a   : > { %v3440_v53 = vpack.c.bf16 %v2836_v26, %v2836_v26  ;;  %v2805_v27 = vadd.f32 %v5044_v61, %v2766_v44  ;;  %v3830_v48 = vpop.f32.mrf.mxu0  ;;  %v2690_v25 = vpop.f32.mrf.mxu1 }
 0x20b   : > { %v3443_v3 = vpack.c.bf16 %v2839_v31, %v2839_v31  ;;  %v2732_v24 = vadd.f32 %v2696_v62, %v1855_v2  ;;  %v2769_v41 = vmul.f32 %v5034_v22, %v2730_v10  ;;  %v3831_v15 = vadd.f32 %v3830_v48, %v3829_v4 }
 0x20c   : > { %2997 = vst.msk [vmem:[%s5070_s26 + $0x60] sm:$0xf] %vm2972_vm0, %v3440_v53  ;;  %v2837_v50 = vmax.f32 %v2805_v27, 0.0  ;;  %v2691_v63 = vadd.f32 %v3825_v42, %v2690_v25 }
 0x20d   : > { %3000 = vst.msk [vmem:[%s5070_s26 + $0x6c] sm:$0xf] %vm2972_vm0, %v3443_v3  ;;  %v2771_v54 = vmul.f32 %v5034_v22, %v2732_v24  ;;  %v2808_v51 = vadd.f32 %v5044_v61, %v2769_v41  ;;  %v2699_v1 = vadd.f32 %v3999_v6, %v3831_v15 }
 0x20e   : > { %v3441_v60 = vpack.c.bf16 %v2837_v50, %v2837_v50  ;;  %v2731_v8 = vadd.f32 %v2691_v63, %v5325_v30 }
 0x20f   : > { %v2810_v39 = vadd.f32 %v5044_v61, %v2771_v54  ;;  %v2840_v49 = vmax.f32 %v2808_v51, 0.0  ;;  %v2733_v21 = vadd.f32 %v2699_v1, %v1858_v18 }
 0x210   : > { %2998 = vst.msk [vmem:[%s5070_s26 + $0x64] sm:$0xf] %vm2972_vm0, %v3441_v60  ;;  %v2770_v12 = vmul.f32 %v5034_v22, %v2731_v8 }
 0x211   : > { %v2842_v0 = vmax.f32 %v2810_v39, 0.0  ;;  %v3444_v32 = vpack.c.bf16 %v2840_v49, %v2840_v49  ;;  %v2772_v33 = vmul.f32 %v5034_v22, %v2733_v21 }
 0x212   : > { %v2809_v7 = vadd.f32 %v5044_v61, %v2770_v12 }
 0x213   : > { %v3446_v14 = vpack.c.bf16 %v2842_v0, %v2842_v0  ;;  %3001 = vst.msk [vmem:[%s5070_s26 + $0x70] sm:$0xf] %vm2972_vm0, %v3444_v32  ;;  %v2811_v13 = vadd.f32 %v5044_v61, %v2772_v33 }
 0x214   : > { %v2841_v29 = vmax.f32 %v2809_v7, 0.0 }
 0x215   : > { %3003 = vst.msk [vmem:[%s5070_s26 + $0x78] sm:$0xf] %vm2972_vm0, %v3446_v14  ;;  %v2843_v56 = vmax.f32 %v2811_v13, 0.0 }
 0x216   : > { %v3445_v34 = vpack.c.bf16 %v2841_v29, %v2841_v29 }
 0x217   : > { %v3447_v55 = vpack.c.bf16 %v2843_v56, %v2843_v56 }
 0x218   : > { %3002 = vst.msk [vmem:[%s5070_s26 + $0x74] sm:$0xf] %vm2972_vm0, %v3445_v34 }
 0x219   : > { %3004 = vst.msk [vmem:[%s5070_s26 + $0x7c] sm:$0xf] %vm2972_vm0, %v3447_v55 }
 0x21a PF: > { %s14_s15 = sadd.s32 1, %s4294_s15  }
 0x21b   : > { %p11_p4 = scmp.ge.s32.totalorder %s14_s15, 4  }
 0x21d   :  { %13 = sbr.rel (!%p11_p4) target bundleno = 1 (0x1), region = 68 }

// kernel: smnet_forward.6
= control target key start
LH: loop header
LB: loop body
LE: loop exit
PB: predicated region body
PF: predicated region fallthrough
CT: control target
= control target key end

     0   :  { %s2556_s15 = smov 0   ;;  %s3130_s0 = inlined_call_operand.vmem [shape: bf16[560,192], index: 0, kind: input, shape index: {}]   ;;  %s3131_s1 = inlined_call_operand.vmem [shape: bf16[3,192,48], index: 1, kind: input, shape index: {}]   ;;  %s3132_s2 = inlined_call_operand.vmem [shape: f32[1,48], index: 2, kind: input, shape index: {}]   ;;  %s3133_s3 = inlined_call_operand.vmem [shape: f32[1,48], index: 3, kind: input, shape index: {}]   ;;  %s3134_s4 = inlined_call_operand.vmem [shape: bf16[512,48], index: 4, kind: output, shape index: {}]  }
   0x1 LB: > { %s1997_s16 = sadd.s32 4294967295, %s2528_s15   ;;  %p2000_p0 = scmp.ge.s32.totalorder %s2528_s15, 1  ;;  %s2528_s15 = sphi %s2556_s15, %s14_s15  }
   0x2   : > { %p152_p1 = scmp.lt.s32.totalorder %s2528_s15, 3 }
   0x4   : > { %p153_p2 = pnand %p2000_p0, %p152_p1 }
   0x5   : > { %s2571_s19 = sshll.u32 (!%p153_p2), %s1997_s16, 8 }
   0x6   : > { %156 = sbr.rel (%p153_p2) target bundleno = 454 (0x1c6), region = 36  ;;  %s242_s22 = sadd.s32 (!%p153_p2), 24, %s2571_s19 }
   0x7   : > { %s243_s23 = sshra.s32 (!%p153_p2), %s242_s22, 3  ;;  %s1156_s29 = sadd.s32 (!%p153_p2), 48, %s2571_s19 }
   0x8   : > { %s2275_s26 = sshll.u32 (!%p153_p2), %s243_s23, 3  ;;  %s1157_s7 = sshra.s32 (!%p153_p2), %s1156_s29, 3 }
   0x9   : > { %s2590_s5 = scalar_lea.vmem (!%p153_p2), %s3130_s0, %s2275_s26  ;;  %s2276_s10 = sshll.u32 (!%p153_p2), %s1157_s7, 3 }
   0xa   : > { %s2677_s20 = scalar_lea.vmem (!%p153_p2), %s3130_s0, %s2571_s19  ;;  %s2682_s23 = scalar_lea.vmem (!%p153_p2), %s3130_s0, %s2276_s10 }
   0xb   : > { %v2342_v0 = vld [vmem:[%s3131_s1 + $0x98] sm:$0xff]   ;;  %v2530_v1 = vmov 0   ;;  %v2343_v2 = vld [vmem:[%s3131_s1 + $0x90] sm:$0xff]   ;;  %v2344_v3 = vld [vmem:[%s3131_s1 + $0x88] sm:$0xff]   ;;  %vm521_vm0 = vcmask 523264   ;;  %vm1914_vm1 = vcmask 388096  }
   0xc   : > { %570 = vmatprep.subr.bf16.mxu0 %v2530_v1  ;;  %2309 = vmatprep.subr.bf16.mxu1 %v2530_v1  ;;  %v2345_v4 = vld [vmem:[%s3131_s1 + $0x80] sm:$0xff]   ;;  %v2346_v6 = vld [vmem:[%s3131_s1 + $0x78] sm:$0xff]   ;;  %v2347_v8 = vld [vmem:[%s3131_s1 + $0x70] sm:$0xff]  }
   0xd   : > { %571 = vmatpush1.bf16.msra.mxu0 %v2342_v0  ;;  %2321 = vmatpush1.bf16.msra.mxu1 %v2342_v0  ;;  %v2356_v5 = vld [vmem:[%s2590_s5 + $0x4] ss:$8 sps:$4 sm:$0xff]   ;;  %v2350_v11 = vld [vmem:[%s3131_s1 + $0xb8] sm:$0xff]   ;;  %v2351_v12 = vld [vmem:[%s3131_s1 + $0xb0] sm:$0xff]  }
   0xe   : > { %572 = vmatprep.subr.bf16.mxu0 %v2530_v1  ;;  %2310 = vmatprep.subr.bf16.mxu1 %v2530_v1  ;;  %v2359_v7 = vld [vmem:[%s2590_s5 + $0x84] ss:$8 sps:$4 sm:$0xff]   ;;  %v2354_v15 = vld [vmem:[%s2590_s5] ss:$8 sps:$4 sm:$0xff]   ;;  %v2360_v17 = vld [vmem:[%s3131_s1 + $0x38] sm:$0xff]  }
   0xf   : > { %2076 = vmatprep.mubr.msk.bf16.mxu0 %vm521_vm0, %v2356_v5  ;;  %2084 = vmatprep.mubr.msk.bf16.mxu1 %vm521_vm0, %v2359_v7  ;;  %v2348_v9 = vld [vmem:[%s3131_s1 + $0x68] sm:$0xff]   ;;  %v2349_v10 = vld [vmem:[%s3131_s1 + $0x60] sm:$0xff]   ;;  %v2361_v18 = vld [vmem:[%s3131_s1 + $0xf8] sm:$0xff]  }
  0x10   : > { %v2352_v13 = vld [vmem:[%s3131_s1 + $0xa8] sm:$0xff]   ;;  %v2353_v14 = vld [vmem:[%s3131_s1 + $0xa0] sm:$0xff]   ;;  %v2362_v19 = vld [vmem:[%s2590_s5 + $0x14] ss:$8 sps:$4 sm:$0xff]  }
  0x11   : > { %573 = vmatpush1.bf16.msra.mxu0 %v2343_v2  ;;  %2322 = vmatpush1.bf16.msra.mxu1 %v2343_v2  ;;  %v2357_v16 = vld [vmem:[%s2590_s5 + $0x80] ss:$8 sps:$4 sm:$0xff]   ;;  %v2364_v20 = vld [vmem:[%s2590_s5 + $0x94] ss:$8 sps:$4 sm:$0xff]   ;;  %v2367_v23 = vld [vmem:[%s2590_s5 + $0x10] ss:$8 sps:$4 sm:$0xff]  }
  0x12   : > { %574 = vmatprep.subr.bf16.mxu0 %v2530_v1  ;;  %2311 = vmatprep.subr.bf16.mxu1 %v2530_v1  ;;  %v2366_v21 = vld [vmem:[%s3131_s1 + $0x30] sm:$0xff]   ;;  %v2370_v25 = vld [vmem:[%s3131_s1 + $0x28] sm:$0xff]   ;;  %v2378_v29 = vld [vmem:[%s3131_s1 + $0x20] sm:$0xff]  }
  0x13   : > { %v2369_v22 = vld [vmem:[%s3131_s1 + $0xf0] sm:$0xff]   ;;  %v2371_v26 = vld [vmem:[%s3131_s1 + $0xe8] sm:$0xff]   ;;  %v2379_v30 = vld [vmem:[%s3131_s1 + $0xe0] sm:$0xff]  }
  0x14   : > { %v2368_v24 = vld [vmem:[%s2590_s5 + $0x90] ss:$8 sps:$4 sm:$0xff]   ;;  %v2372_v27 = vld [vmem:[%s2590_s5 + $0x24] ss:$8 sps:$4 sm:$0xff]   ;;  %v2376_v31 = vld [vmem:[%s2590_s5 + $0x20] ss:$8 sps:$4 sm:$0xff]  }
  0x15   : > { %575 = vmatpush1.bf16.msra.mxu0 %v2344_v3  ;;  %2323 = vmatpush1.bf16.msra.mxu1 %v2344_v3  ;;  %v2374_v28 = vld [vmem:[%s2590_s5 + $0xa4] ss:$8 sps:$4 sm:$0xff]   ;;  %v2377_v32 = vld [vmem:[%s2590_s5 + $0xa0] ss:$8 sps:$4 sm:$0xff]   ;;  %v2380_v33 = vld [vmem:[%s2590_s5 + $0x34] ss:$8 sps:$4 sm:$0xff]  }
  0x16   : > { %576 = vmatprep.subr.bf16.mxu0 %v2530_v1  ;;  %2312 = vmatprep.subr.bf16.mxu1 %v2530_v1  ;;  %v2382_v34 = vld [vmem:[%s2590_s5 + $0xb4] ss:$8 sps:$4 sm:$0xff]   ;;  %v2385_v37 = vld [vmem:[%s2590_s5 + $0x30] ss:$8 sps:$4 sm:$0xff]   ;;  %v2390_v41 = vld [vmem:[%s2590_s5 + $0x44] ss:$8 sps:$4 sm:$0xff]  }
  0x17   : > { %v2384_v35 = vld [vmem:[%s3131_s1 + $0x18] sm:$0xff]   ;;  %v2388_v38 = vld [vmem:[%s3131_s1 + $0x10] sm:$0xff]   ;;  %v2392_v42 = vld [vmem:[%s2590_s5 + $0xc4] ss:$8 sps:$4 sm:$0xff]  }
  0x18   : > { %v2387_v36 = vld [vmem:[%s3131_s1 + $0xd8] sm:$0xff]   ;;  %v2389_v39 = vld [vmem:[%s3131_s1 + $0xd0] sm:$0xff]   ;;  %v2396_v43 = vld [vmem:[%s3131_s1 + $0x8] sm:$0xff]  }
  0x19   : > { %577 = vmatpush1.bf16.msra.mxu0 %v2345_v4  ;;  %2324 = vmatpush1.bf16.msra.mxu1 %v2345_v4  ;;  %v2386_v40 = vld [vmem:[%s2590_s5 + $0xb0] ss:$8 sps:$4 sm:$0xff]   ;;  %v2397_v44 = vld [vmem:[%s3131_s1 + $0xc8] sm:$0xff]   ;;  %v2402_v46 = vld [vmem:[%s3131_s1] sm:$0xff]  }
  0x1a   : > { %578 = vmatprep.subr.bf16.mxu0 %v2530_v1  ;;  %2313 = vmatprep.subr.bf16.mxu1 %v2530_v1  ;;  %v2394_v45 = vld [vmem:[%s2590_s5 + $0x40] ss:$8 sps:$4 sm:$0xff]   ;;  %v2398_v49 = vld [vmem:[%s2590_s5 + $0x54] ss:$8 sps:$4 sm:$0xff]   ;;  %v2403_v53 = vld [vmem:[%s2590_s5 + $0x50] ss:$8 sps:$4 sm:$0xff]  }
  0x1b   : > { %v2405_v47 = vld [vmem:[%s3131_s1 + $0xc0] sm:$0xff]   ;;  %v2400_v50 = vld [vmem:[%s2590_s5 + $0xd4] ss:$8 sps:$4 sm:$0xff]   ;;  %v2404_v56 = vld [vmem:[%s2590_s5 + $0xd0] ss:$8 sps:$4 sm:$0xff]  }
  0x1c   : > { %v2395_v48 = vld [vmem:[%s2590_s5 + $0xc0] ss:$8 sps:$4 sm:$0xff]   ;;  %v2406_v51 = vld [vmem:[%s3131_s1 + $0x58] sm:$0xff]   ;;  %v2414_v54 = vld [vmem:[%s3131_s1 + $0x50] sm:$0xff]  }
  0x1d   : > { %579 = vmatpush1.bf16.msra.mxu0 %v2346_v6  ;;  %2325 = vmatpush1.bf16.msra.mxu1 %v2346_v6  ;;  %v2407_v52 = vld [vmem:[%s3131_s1 + $0x118] sm:$0xff]   ;;  %v2415_v55 = vld [vmem:[%s3131_s1 + $0x110] sm:$0xff]   ;;  %v2408_v57 = vld [vmem:[%s2590_s5 + $0x64] ss:$8 sps:$4 sm:$0xff]  }
  0x1e   : > { %580 = vmatprep.subr.bf16.mxu0 %v2530_v1  ;;  %2314 = vmatprep.subr.bf16.mxu1 %v2530_v1  ;;  %v2410_v58 = vld [vmem:[%s2590_s5 + $0xe4] ss:$8 sps:$4 sm:$0xff]   ;;  %v2412_v63 = vld [vmem:[%s2590_s5 + $0x60] ss:$8 sps:$4 sm:$0xff]   ;;  %v2416_v2 = vld [vmem:[%s2590_s5 + $0x74] ss:$8 sps:$4 sm:$0xff]  }
  0x1f   : > { %v2420_v59 = vld [vmem:[%s3131_s1 + $0x48] sm:$0xff]   ;;  %v2424_v61 = vld [vmem:[%s3131_s1 + $0x40] sm:$0xff]   ;;  %v2418_v3 = vld [vmem:[%s2590_s5 + $0xf4] ss:$8 sps:$4 sm:$0xff]  }
  0x20   : > { %v2423_v60 = vld [vmem:[%s3131_s1 + $0x108] sm:$0xff]   ;;  %v2425_v62 = vld [vmem:[%s3131_s1 + $0x100] sm:$0xff]   ;;  %v2421_v4 = vld [vmem:[%s2590_s5 + $0x70] ss:$8 sps:$4 sm:$0xff]  }
  0x21   : > { %581 = vmatpush1.bf16.msra.mxu0 %v2347_v8  ;;  %2326 = vmatpush1.bf16.msra.mxu1 %v2347_v8  ;;  %v2413_v0 = vld [vmem:[%s2590_s5 + $0xe0] ss:$8 sps:$4 sm:$0xff]   ;;  %v2422_v5 = vld [vmem:[%s2590_s5 + $0xf0] ss:$8 sps:$4 sm:$0xff]   ;;  %v2431_v6 = vld [vmem:[%s2682_s23 + $0x4] ss:$8 sps:$4 sm:$0xff]  }
  0x22   : > { %582 = vmatprep.subr.bf16.mxu0 %v2530_v1  ;;  %2315 = vmatprep.subr.bf16.mxu1 %v2530_v1  ;;  %v2426_v7 = vld [vmem:[%s2677_s20] ss:$8 sps:$4 sm:$0xff]   ;;  %s2001_s5 = sshll.u32 %s1997_s16, 5 }
  0x23   : > { %v2429_v8 = vld [vmem:[%s2682_s23] ss:$8 sps:$4 sm:$0xff]   ;;  %p174_p3 = scmp.lt.s32.totalorder %s2001_s5, 63 }
  0x25   : > { %583 = vmatpush1.bf16.msra.mxu0 %v2348_v9  ;;  %2327 = vmatpush1.bf16.msra.mxu1 %v2348_v9  ;;  %v2432_v9 = vld [vmem:[%s2677_s20 + $0x14] ss:$8 sps:$4 sm:$0xff]   ;;  %s3136_s5 = smov (!%p174_p3, %s2001_s5), 63 }
  0x26   : > { %584 = vmatprep.subr.bf16.mxu0 %v2530_v1  ;;  %2316 = vmatprep.subr.bf16.mxu1 %v2530_v1  ;;  %s2002_s16 = sshll.u32 %s3136_s5, 2 }
  0x27   : > { %s2971_s21 = scalar_lea.vmem %s3134_s4, %s2002_s16 }
  0x29   : > { %585 = vmatpush1.bf16.msra.mxu0 %v2349_v10  ;;  %2328 = vmatpush1.bf16.msra.mxu1 %v2349_v10  ;;  %v2434_v10 = vld [vmem:[%s2682_s23 + $0x14] ss:$8 sps:$4 sm:$0xff]  }
  0x2a   : > { %594 = vmatprep.subr.bf16.mxu0 %v2530_v1  ;;  %2317 = vmatprep.subr.bf16.mxu1 %v2530_v1 }
  0x2d   : > { %595 = vmatpush2.bf16.msra.mxu0 %v2350_v11  ;;  %2329 = vmatpush2.bf16.msra.mxu1 %v2350_v11  ;;  %v2436_v11 = vld [vmem:[%s2677_s20 + $0x10] ss:$8 sps:$4 sm:$0xff]  }
  0x2e   : > { %596 = vmatprep.subr.bf16.mxu0 %v2530_v1  ;;  %2318 = vmatprep.subr.bf16.mxu1 %v2530_v1 }
  0x31   : > { %597 = vmatpush2.bf16.msra.mxu0 %v2351_v12  ;;  %2330 = vmatpush2.bf16.msra.mxu1 %v2351_v12  ;;  %v2437_v12 = vld [vmem:[%s2682_s23 + $0x10] ss:$8 sps:$4 sm:$0xff]  }
  0x32   : > { %598 = vmatprep.subr.bf16.mxu0 %v2530_v1  ;;  %2319 = vmatprep.subr.bf16.mxu1 %v2530_v1 }
  0x35   : > { %599 = vmatpush2.bf16.msra.mxu0 %v2352_v13  ;;  %2331 = vmatpush2.bf16.msra.mxu1 %v2352_v13  ;;  %v2438_v13 = vld [vmem:[%s2677_s20 + $0x24] ss:$8 sps:$4 sm:$0xff]  }
  0x36   : > { %600 = vmatprep.subr.bf16.mxu0 %v2530_v1  ;;  %2320 = vmatprep.subr.bf16.mxu1 %v2530_v1 }
  0x39   : > { %601 = vmatpush2.bf16.msra.mxu0 %v2353_v14  ;;  %2332 = vmatpush2.bf16.msra.mxu1 %v2353_v14  ;;  %v2440_v14 = vld [vmem:[%s2682_s23 + $0x24] ss:$8 sps:$4 sm:$0xff]  }
  0x3a   : > { %995 = vmatprep.subr.bf16.mxu1 %v2530_v1  ;;  %1483 = vmatprep.subr.bf16.mxu0 %v2530_v1 }
  0x3c   : > { %603 = vmatmul.mubr.bf16.vlgmr.msra.gmra.mxu0 %v2354_v15  ;;  %667 = vmatmul.mubr.bf16.vlgmr.msra.gmra.mxu1 %v2357_v16  ;;  %v2442_v15 = vld [vmem:[%s2677_s20 + $0x20] ss:$8 sps:$4 sm:$0xff]  }
  0x3d   : > { %996 = vmatpush1.bf16.msra.mxu1 %v2360_v17  ;;  %1484 = vmatpush1.bf16.msra.mxu0 %v2361_v18  ;;  %v2443_v16 = vld [vmem:[%s2682_s23 + $0x20] ss:$8 sps:$4 sm:$0xff]   ;;  %v2444_v17 = vld [vmem:[%s2677_s20 + $0x34] ss:$8 sps:$4 sm:$0xff]  }
  0x3e   : > { %997 = vmatprep.subr.bf16.mxu1 %v2530_v1  ;;  %2077 = vmatprep.mubr.msk.bf16.mxu0 %vm521_vm0, %v2362_v19  ;;  %v2446_v18 = vld [vmem:[%s2682_s23 + $0x34] ss:$8 sps:$4 sm:$0xff]   ;;  %v2448_v19 = vld [vmem:[%s2677_s20 + $0x30] ss:$8 sps:$4 sm:$0xff]  }
  0x3f   : > { %2085 = vmatprep.mubr.msk.bf16.mxu1 %vm521_vm0, %v2364_v20  ;;  %1485 = vmatprep.subr.bf16.mxu0 %v2530_v1  ;;  %v2449_v20 = vld [vmem:[%s2682_s23 + $0x30] ss:$8 sps:$4 sm:$0xff]  }
  0x41   : > { %998 = vmatpush1.bf16.msra.mxu1 %v2366_v21  ;;  %1486 = vmatpush1.bf16.msra.mxu0 %v2369_v22  ;;  %v2450_v21 = vld [vmem:[%s2677_s20 + $0x44] ss:$8 sps:$4 sm:$0xff]  }
  0x42   : > { %999 = vmatprep.subr.bf16.mxu1 %v2530_v1  ;;  %1487 = vmatprep.subr.bf16.mxu0 %v2530_v1  ;;  %v2452_v22 = vld [vmem:[%s2682_s23 + $0x44] ss:$8 sps:$4 sm:$0xff]  }
  0x44   : > { %611 = vmatmul.mubr.bf16.gmra.mxu0 %v2367_v23  ;;  %675 = vmatmul.mubr.bf16.gmra.mxu1 %v2368_v24  ;;  %v2454_v23 = vld [vmem:[%s2677_s20 + $0x40] ss:$8 sps:$4 sm:$0xff]  }
  0x45   : > { %1000 = vmatpush1.bf16.msra.mxu1 %v2370_v25  ;;  %1488 = vmatpush1.bf16.msra.mxu0 %v2371_v26  ;;  %v2455_v24 = vld [vmem:[%s2682_s23 + $0x40] ss:$8 sps:$4 sm:$0xff]   ;;  %v2456_v25 = vld [vmem:[%s2677_s20 + $0x54] ss:$8 sps:$4 sm:$0xff]  }
  0x46   : > { %2078 = vmatprep.mubr.msk.bf16.mxu0 %vm521_vm0, %v2372_v27  ;;  %2086 = vmatprep.mubr.msk.bf16.mxu1 %vm521_vm0, %v2374_v28  ;;  %v2458_v26 = vld [vmem:[%s2682_s23 + $0x54] ss:$8 sps:$4 sm:$0xff]   ;;  %v2460_v27 = vld [vmem:[%s2677_s20 + $0x50] ss:$8 sps:$4 sm:$0xff]  }
  0x47   : > { %1001 = vmatprep.subr.bf16.mxu1 %v2530_v1  ;;  %1489 = vmatprep.subr.bf16.mxu0 %v2530_v1  ;;  %v2461_v28 = vld [vmem:[%s2682_s23 + $0x50] ss:$8 sps:$4 sm:$0xff]  }
  0x49   : > { %1002 = vmatpush1.bf16.msra.mxu1 %v2378_v29  ;;  %1490 = vmatpush1.bf16.msra.mxu0 %v2379_v30  ;;  %v2462_v29 = vld [vmem:[%s2677_s20 + $0x64] ss:$8 sps:$4 sm:$0xff]  }
  0x4a   : > { %1003 = vmatprep.subr.bf16.mxu1 %v2530_v1  ;;  %1491 = vmatprep.subr.bf16.mxu0 %v2530_v1  ;;  %v2464_v30 = vld [vmem:[%s2682_s23 + $0x64] ss:$8 sps:$4 sm:$0xff]  }
  0x4c   : > { %619 = vmatmul.mubr.bf16.gmra.mxu0 %v2376_v31  ;;  %683 = vmatmul.mubr.bf16.gmra.mxu1 %v2377_v32  ;;  %v2466_v31 = vld [vmem:[%s2677_s20 + $0x60] ss:$8 sps:$4 sm:$0xff]  }
  0x4d   : > { %2079 = vmatprep.mubr.msk.bf16.mxu0 %vm521_vm0, %v2380_v33  ;;  %2087 = vmatprep.mubr.msk.bf16.mxu1 %vm521_vm0, %v2382_v34  ;;  %v2467_v32 = vld [vmem:[%s2682_s23 + $0x60] ss:$8 sps:$4 sm:$0xff]   ;;  %v2468_v33 = vld [vmem:[%s2677_s20 + $0x74] ss:$8 sps:$4 sm:$0xff]  }
  0x4e   : > { %1004 = vmatpush1.bf16.msra.mxu1 %v2384_v35  ;;  %1492 = vmatpush1.bf16.msra.mxu0 %v2387_v36  ;;  %v2470_v34 = vld [vmem:[%s2682_s23 + $0x74] ss:$8 sps:$4 sm:$0xff]   ;;  %v2472_v35 = vld [vmem:[%s2677_s20 + $0x70] ss:$8 sps:$4 sm:$0xff]  }
  0x4f   : > { %1005 = vmatprep.subr.bf16.mxu1 %v2530_v1  ;;  %1493 = vmatprep.subr.bf16.mxu0 %v2530_v1  ;;  %v2473_v36 = vld [vmem:[%s2682_s23 + $0x70] ss:$8 sps:$4 sm:$0xff]  }
  0x52   : > { %1006 = vmatpush1.bf16.msra.mxu1 %v2388_v38  ;;  %1494 = vmatpush1.bf16.msra.mxu0 %v2389_v39  ;;  %v2476_v38 = vld [vmem:[%s2682_s23 + $0x84] ss:$8 sps:$4 sm:$0xff]   ;;  %v2478_v39 = vld [vmem:[%s2677_s20 + $0x80] ss:$8 sps:$4 sm:$0xff]  }
  0x53   : > { %1007 = vmatprep.subr.bf16.mxu1 %v2530_v1  ;;  %1495 = vmatprep.subr.bf16.mxu0 %v2530_v1 }
  0x54   : > { %627 = vmatmul.mubr.bf16.gmra.mxu0 %v2385_v37  ;;  %691 = vmatmul.mubr.bf16.gmra.mxu1 %v2386_v40  ;;  %v2474_v37 = vld [vmem:[%s2677_s20 + $0x84] ss:$8 sps:$4 sm:$0xff]   ;;  %v2479_v40 = vld [vmem:[%s2682_s23 + $0x80] ss:$8 sps:$4 sm:$0xff]  }
  0x55   : > { %2080 = vmatprep.mubr.msk.bf16.mxu0 %vm521_vm0, %v2390_v41  ;;  %2088 = vmatprep.mubr.msk.bf16.mxu1 %vm521_vm0, %v2392_v42  ;;  %v2480_v41 = vld [vmem:[%s2677_s20 + $0x94] ss:$8 sps:$4 sm:$0xff]  }
  0x56   : > { %1008 = vmatpush1.bf16.msra.mxu1 %v2396_v43  ;;  %1496 = vmatpush1.bf16.msra.mxu0 %v2397_v44  ;;  %v2482_v42 = vld [vmem:[%s2682_s23 + $0x94] ss:$8 sps:$4 sm:$0xff]   ;;  %v2484_v43 = vld [vmem:[%s2677_s20 + $0x90] ss:$8 sps:$4 sm:$0xff]  }
  0x57   : > { %1009 = vmatprep.subr.bf16.mxu1 %v2530_v1  ;;  %1497 = vmatprep.subr.bf16.mxu0 %v2530_v1  ;;  %v2485_v44 = vld [vmem:[%s2682_s23 + $0x90] ss:$8 sps:$4 sm:$0xff]  }
  0x5a   : > { %1010 = vmatpush1.bf16.msra.mxu1 %v2402_v46  ;;  %1498 = vmatpush1.bf16.msra.mxu0 %v2405_v47  ;;  %v2488_v46 = vld [vmem:[%s2682_s23 + $0xa4] ss:$8 sps:$4 sm:$0xff]   ;;  %v2490_v47 = vld [vmem:[%s2677_s20 + $0xa0] ss:$8 sps:$4 sm:$0xff]  }
  0x5b   : > { %1019 = vmatprep.subr.bf16.mxu1 %v2530_v1  ;;  %1507 = vmatprep.subr.bf16.mxu0 %v2530_v1 }
  0x5c   : > { %635 = vmatmul.mubr.bf16.gmra.mxu0 %v2394_v45  ;;  %699 = vmatmul.mubr.bf16.gmra.mxu1 %v2395_v48  ;;  %v2486_v45 = vld [vmem:[%s2677_s20 + $0xa4] ss:$8 sps:$4 sm:$0xff]   ;;  %v2491_v48 = vld [vmem:[%s2682_s23 + $0xa0] ss:$8 sps:$4 sm:$0xff]  }
  0x5d   : > { %2081 = vmatprep.mubr.msk.bf16.mxu0 %vm521_vm0, %v2398_v49  ;;  %2089 = vmatprep.mubr.msk.bf16.mxu1 %vm521_vm0, %v2400_v50  ;;  %v2492_v49 = vld [vmem:[%s2677_s20 + $0xb4] ss:$8 sps:$4 sm:$0xff]  }
  0x5e   : > { %1020 = vmatpush2.bf16.msra.mxu1 %v2406_v51  ;;  %1508 = vmatpush2.bf16.msra.mxu0 %v2407_v52  ;;  %v2494_v50 = vld [vmem:[%s2682_s23 + $0xb4] ss:$8 sps:$4 sm:$0xff]   ;;  %v2496_v51 = vld [vmem:[%s2677_s20 + $0xb0] ss:$8 sps:$4 sm:$0xff]  }
  0x5f   : > { %1021 = vmatprep.subr.bf16.mxu1 %v2530_v1  ;;  %1509 = vmatprep.subr.bf16.mxu0 %v2530_v1  ;;  %v2497_v52 = vld [vmem:[%s2682_s23 + $0xb0] ss:$8 sps:$4 sm:$0xff]  }
  0x62   : > { %1022 = vmatpush2.bf16.msra.mxu1 %v2414_v54  ;;  %1510 = vmatpush2.bf16.msra.mxu0 %v2415_v55  ;;  %v2500_v54 = vld [vmem:[%s2682_s23 + $0xc4] ss:$8 sps:$4 sm:$0xff]   ;;  %v2502_v55 = vld [vmem:[%s2677_s20 + $0xc0] ss:$8 sps:$4 sm:$0xff]  }
  0x63   : > { %1023 = vmatprep.subr.bf16.mxu1 %v2530_v1  ;;  %1511 = vmatprep.subr.bf16.mxu0 %v2530_v1 }
  0x64   : > { %643 = vmatmul.mubr.bf16.gmra.mxu0 %v2403_v53  ;;  %707 = vmatmul.mubr.bf16.gmra.mxu1 %v2404_v56  ;;  %v2498_v53 = vld [vmem:[%s2677_s20 + $0xc4] ss:$8 sps:$4 sm:$0xff]   ;;  %v2503_v56 = vld [vmem:[%s2682_s23 + $0xc0] ss:$8 sps:$4 sm:$0xff]  }
  0x65   : > { %2082 = vmatprep.mubr.msk.bf16.mxu0 %vm521_vm0, %v2408_v57  ;;  %2090 = vmatprep.mubr.msk.bf16.mxu1 %vm521_vm0, %v2410_v58  ;;  %v2504_v57 = vld [vmem:[%s2677_s20 + $0xd4] ss:$8 sps:$4 sm:$0xff]  }
  0x66   : > { %1024 = vmatpush2.bf16.msra.mxu1 %v2420_v59  ;;  %1512 = vmatpush2.bf16.msra.mxu0 %v2423_v60  ;;  %v2506_v58 = vld [vmem:[%s2682_s23 + $0xd4] ss:$8 sps:$4 sm:$0xff]   ;;  %v2508_v59 = vld [vmem:[%s2677_s20 + $0xd0] ss:$8 sps:$4 sm:$0xff]  }
  0x67   : > { %1025 = vmatprep.subr.bf16.mxu1 %v2530_v1  ;;  %1513 = vmatprep.subr.bf16.mxu0 %v2530_v1  ;;  %v2428_v1 = vld [vmem:[%s2677_s20 + $0x4] ss:$8 sps:$4 sm:$0xff]   ;;  %v2509_v60 = vld [vmem:[%s2682_s23 + $0xd0] ss:$8 sps:$4 sm:$0xff]  }
  0x6a   : > { %1026 = vmatpush2.bf16.msra.mxu1 %v2424_v61  ;;  %1514 = vmatpush2.bf16.msra.mxu0 %v2425_v62  ;;  %v2510_v61 = vld [vmem:[%s2677_s20 + $0xe4] ss:$8 sps:$4 sm:$0xff]  }
  0x6b   : > { %v2512_v62 = vld [vmem:[%s2682_s23 + $0xe4] ss:$8 sps:$4 sm:$0xff]  }
  0x6c   : > { %651 = vmatmul.mubr.bf16.gmra.mxu0 %v2412_v63  ;;  %715 = vmatmul.mubr.bf16.gmra.mxu1 %v2413_v0  ;;  %v2514_v63 = vld [vmem:[%s2677_s20 + $0xe0] ss:$8 sps:$4 sm:$0xff]  }
  0x6d   : > { %2083 = vmatprep.mubr.msk.bf16.mxu0 %vm521_vm0, %v2416_v2  ;;  %2091 = vmatprep.mubr.msk.bf16.mxu1 %vm521_vm0, %v2418_v3  ;;  %v2515_v0 = vld [vmem:[%s2682_s23 + $0xe0] ss:$8 sps:$4 sm:$0xff]   ;;  %v2516_v2 = vld [vmem:[%s2677_s20 + $0xf4] ss:$8 sps:$4 sm:$0xff]  }
  0x6e   : > { %v2518_v3 = vld [vmem:[%s2682_s23 + $0xf4] ss:$8 sps:$4 sm:$0xff]  }
  0x74   : > { %659 = vmatmul.mubr.bf16.gmra.mxu0 %v2421_v4  ;;  %723 = vmatmul.mubr.bf16.gmra.mxu1 %v2422_v5  ;;  %v2520_v4 = vld [vmem:[%s2677_s20 + $0xf0] ss:$8 sps:$4 sm:$0xff]  }
  0x75   : > { %2136 = vmatprep.mubr.msk.bf16.mxu1 %vm521_vm0, %v2428_v1  ;;  %2222 = vmatprep.mubr.msk.bf16.mxu0 %vm521_vm0, %v2431_v6  ;;  %v2521_v5 = vld [vmem:[%s2682_s23 + $0xf0] ss:$8 sps:$4 sm:$0xff]  }
  0x7c   : > { %1028 = vmatmul.mubr.bf16.vlgmr.msra.gmra.mxu1 %v2426_v7  ;;  %1516 = vmatmul.mubr.bf16.vlgmr.msra.gmra.mxu0 %v2429_v8 }
  0x7d   : > { %2137 = vmatprep.mubr.msk.bf16.mxu1 %vm521_vm0, %v2432_v9  ;;  %2223 = vmatprep.mubr.msk.bf16.mxu0 %vm521_vm0, %v2434_v10 }
  0x84   : > { %1036 = vmatmul.mubr.bf16.gmra.mxu1 %v2436_v11  ;;  %1524 = vmatmul.mubr.bf16.gmra.mxu0 %v2437_v12 }
  0x85   : > { %2138 = vmatprep.mubr.msk.bf16.mxu1 %vm521_vm0, %v2438_v13  ;;  %2224 = vmatprep.mubr.msk.bf16.mxu0 %vm521_vm0, %v2440_v14 }
  0x8c   : > { %1044 = vmatmul.mubr.bf16.gmra.mxu1 %v2442_v15  ;;  %1532 = vmatmul.mubr.bf16.gmra.mxu0 %v2443_v16 }
  0x8d   : > { %2139 = vmatprep.mubr.msk.bf16.mxu1 %vm521_vm0, %v2444_v17  ;;  %2225 = vmatprep.mubr.msk.bf16.mxu0 %vm521_vm0, %v2446_v18 }
  0x94   : > { %1052 = vmatmul.mubr.bf16.gmra.mxu1 %v2448_v19  ;;  %1540 = vmatmul.mubr.bf16.gmra.mxu0 %v2449_v20 }
  0x95   : > { %2140 = vmatprep.mubr.msk.bf16.mxu1 %vm521_vm0, %v2450_v21  ;;  %2226 = vmatprep.mubr.msk.bf16.mxu0 %vm521_vm0, %v2452_v22 }
  0x9c   : > { %1060 = vmatmul.mubr.bf16.gmra.mxu1 %v2454_v23  ;;  %1548 = vmatmul.mubr.bf16.gmra.mxu0 %v2455_v24 }
  0x9d   : > { %2141 = vmatprep.mubr.msk.bf16.mxu1 %vm521_vm0, %v2456_v25  ;;  %2227 = vmatprep.mubr.msk.bf16.mxu0 %vm521_vm0, %v2458_v26 }
  0xa4   : > { %1068 = vmatmul.mubr.bf16.gmra.mxu1 %v2460_v27  ;;  %1556 = vmatmul.mubr.bf16.gmra.mxu0 %v2461_v28 }
  0xa5   : > { %2142 = vmatprep.mubr.msk.bf16.mxu1 %vm521_vm0, %v2462_v29  ;;  %2228 = vmatprep.mubr.msk.bf16.mxu0 %vm521_vm0, %v2464_v30 }
  0xac   : > { %1076 = vmatmul.mubr.bf16.gmra.mxu1 %v2466_v31  ;;  %1564 = vmatmul.mubr.bf16.gmra.mxu0 %v2467_v32 }
  0xad   : > { %2143 = vmatprep.mubr.msk.bf16.mxu1 %vm521_vm0, %v2468_v33  ;;  %2229 = vmatprep.mubr.msk.bf16.mxu0 %vm521_vm0, %v2470_v34 }
  0xb4   : > { %1084 = vmatmul.mubr.bf16.gmra.mxu1 %v2472_v35  ;;  %1572 = vmatmul.mubr.bf16.gmra.mxu0 %v2473_v36 }
  0xb5   : > { %2144 = vmatprep.mubr.msk.bf16.mxu1 %vm521_vm0, %v2474_v37  ;;  %2230 = vmatprep.mubr.msk.bf16.mxu0 %vm521_vm0, %v2476_v38 }
  0xbc   : > { %1092 = vmatmul.mubr.bf16.gmra.mxu1 %v2478_v39  ;;  %1580 = vmatmul.mubr.bf16.gmra.mxu0 %v2479_v40 }
  0xbd   : > { %2145 = vmatprep.mubr.msk.bf16.mxu1 %vm521_vm0, %v2480_v41  ;;  %2231 = vmatprep.mubr.msk.bf16.mxu0 %vm521_vm0, %v2482_v42 }
  0xc4   : > { %1100 = vmatmul.mubr.bf16.gmra.mxu1 %v2484_v43  ;;  %1588 = vmatmul.mubr.bf16.gmra.mxu0 %v2485_v44 }
  0xc5   : > { %2146 = vmatprep.mubr.msk.bf16.mxu1 %vm521_vm0, %v2486_v45  ;;  %2232 = vmatprep.mubr.msk.bf16.mxu0 %vm521_vm0, %v2488_v46 }
  0xcc   : > { %1108 = vmatmul.mubr.bf16.gmra.mxu1 %v2490_v47  ;;  %1596 = vmatmul.mubr.bf16.gmra.mxu0 %v2491_v48 }
  0xcd   : > { %2147 = vmatprep.mubr.msk.bf16.mxu1 %vm521_vm0, %v2492_v49  ;;  %2233 = vmatprep.mubr.msk.bf16.mxu0 %vm521_vm0, %v2494_v50 }
  0xd4   : > { %1116 = vmatmul.mubr.bf16.gmra.mxu1 %v2496_v51  ;;  %1604 = vmatmul.mubr.bf16.gmra.mxu0 %v2497_v52 }
  0xd5   : > { %2148 = vmatprep.mubr.msk.bf16.mxu1 %vm521_vm0, %v2498_v53  ;;  %2234 = vmatprep.mubr.msk.bf16.mxu0 %vm521_vm0, %v2500_v54 }
  0xdc   : > { %1124 = vmatmul.mubr.bf16.gmra.mxu1 %v2502_v55  ;;  %1612 = vmatmul.mubr.bf16.gmra.mxu0 %v2503_v56 }
  0xdd   : > { %2149 = vmatprep.mubr.msk.bf16.mxu1 %vm521_vm0, %v2504_v57  ;;  %2235 = vmatprep.mubr.msk.bf16.mxu0 %vm521_vm0, %v2506_v58 }
  0xe4   : > { %1132 = vmatmul.mubr.bf16.gmra.mxu1 %v2508_v59  ;;  %1620 = vmatmul.mubr.bf16.gmra.mxu0 %v2509_v60 }
  0xe5   : > { %2150 = vmatprep.mubr.msk.bf16.mxu1 %vm521_vm0, %v2510_v61  ;;  %2236 = vmatprep.mubr.msk.bf16.mxu0 %vm521_vm0, %v2512_v62 }
  0xec   : > { %1140 = vmatmul.mubr.bf16.gmra.mxu1 %v2514_v63  ;;  %1628 = vmatmul.mubr.bf16.gmra.mxu0 %v2515_v0 }
  0xed   : > { %2151 = vmatprep.mubr.msk.bf16.mxu1 %vm521_vm0, %v2516_v2  ;;  %2237 = vmatprep.mubr.msk.bf16.mxu0 %vm521_vm0, %v2518_v3 }
  0xf4   : > { %1148 = vmatmul.mubr.bf16.gmra.mxu1 %v2520_v4  ;;  %1636 = vmatmul.mubr.bf16.gmra.mxu0 %v2521_v5 }
  0xfc   : > { %v2886_v1 = vpop.f32.mrf.mxu0  ;;  %v2888_v6 = vpop.f32.mrf.mxu1 }
  0xfe   : > { %v606_v7 = vpop.f32.mrf.mxu0  ;;  %v670_v8 = vpop.f32.mrf.mxu1 }
 0x100   : > { %v2890_v9 = vpop.f32.mrf.mxu0  ;;  %v2892_v10 = vpop.f32.mrf.mxu1 }
 0x102   : > { %v609_v11 = vpop.f32.mrf.mxu0  ;;  %v673_v12 = vpop.f32.mrf.mxu1 }
 0x103   : > { %v2956_v12 = vld [vmem:[%s3132_s2] ss:$0 sm:$0xff] }
 0x104   : > { %v2894_v13 = vpop.f32.mrf.mxu0  ;;  %v2896_v14 = vpop.f32.mrf.mxu1 }
 0x106   : > { %v614_v15 = vpop.f32.mrf.mxu0  ;;  %v678_v16 = vpop.f32.mrf.mxu1 }
 0x108   : > { %v2898_v17 = vpop.f32.mrf.mxu0  ;;  %v2900_v18 = vpop.f32.mrf.mxu1 }
 0x10a   : > { %v617_v19 = vpop.f32.mrf.mxu0  ;;  %v681_v20 = vpop.f32.mrf.mxu1 }
 0x10b   : > { %v2961_v20 = vld [vmem:[%s3133_s3] ss:$0 sm:$0xff] }
 0x10c   : > { %v2902_v21 = vpop.f32.mrf.mxu0  ;;  %v2904_v22 = vpop.f32.mrf.mxu1 }
 0x10e   : > { %v622_v23 = vpop.f32.mrf.mxu0  ;;  %v686_v24 = vpop.f32.mrf.mxu1 }
 0x110   : > { %v2906_v25 = vpop.f32.mrf.mxu0  ;;  %v2908_v26 = vpop.f32.mrf.mxu1 }
 0x112   : > { %v625_v27 = vpop.f32.mrf.mxu0  ;;  %v689_v28 = vpop.f32.mrf.mxu1 }
 0x114   : > { %v2910_v29 = vpop.f32.mrf.mxu0  ;;  %v2912_v30 = vpop.f32.mrf.mxu1 }
 0x116   : > { %v630_v31 = vpop.f32.mrf.mxu0  ;;  %v694_v32 = vpop.f32.mrf.mxu1 }
 0x118   : > { %v2914_v33 = vpop.f32.mrf.mxu0  ;;  %v2916_v34 = vpop.f32.mrf.mxu1 }
 0x11a   : > { %v633_v35 = vpop.f32.mrf.mxu0  ;;  %v697_v36 = vpop.f32.mrf.mxu1 }
 0x11c   : > { %v2918_v37 = vpop.f32.mrf.mxu0  ;;  %v2920_v38 = vpop.f32.mrf.mxu1 }
 0x11e   : > { %v638_v39 = vpop.f32.mrf.mxu0  ;;  %v702_v40 = vpop.f32.mrf.mxu1 }
 0x120   : > { %v2922_v41 = vpop.f32.mrf.mxu0  ;;  %v2924_v42 = vpop.f32.mrf.mxu1 }
 0x122   : > { %v641_v43 = vpop.f32.mrf.mxu0  ;;  %v705_v44 = vpop.f32.mrf.mxu1 }
 0x124   : > { %v2926_v45 = vpop.f32.mrf.mxu0  ;;  %v2928_v46 = vpop.f32.mrf.mxu1 }
 0x126   : > { %v646_v47 = vpop.f32.mrf.mxu0  ;;  %v710_v48 = vpop.f32.mrf.mxu1 }
 0x128   : > { %v2930_v49 = vpop.f32.mrf.mxu0  ;;  %v2932_v50 = vpop.f32.mrf.mxu1 }
 0x12a   : > { %v649_v51 = vpop.f32.mrf.mxu0  ;;  %v713_v52 = vpop.f32.mrf.mxu1 }
 0x12c   : > { %v2934_v53 = vpop.f32.mrf.mxu0  ;;  %v2936_v54 = vpop.f32.mrf.mxu1 }
 0x12e   : > { %v654_v55 = vpop.f32.mrf.mxu0  ;;  %v718_v56 = vpop.f32.mrf.mxu1 }
 0x130   : > { %v2938_v57 = vpop.f32.mrf.mxu0  ;;  %v2940_v58 = vpop.f32.mrf.mxu1 }
 0x132   : > { %v657_v59 = vpop.f32.mrf.mxu0  ;;  %v721_v60 = vpop.f32.mrf.mxu1 }
 0x134   : > { %v2942_v61 = vpop.f32.mrf.mxu0  ;;  %v2944_v62 = vpop.f32.mrf.mxu1 }
 0x136   : > { %v662_v63 = vpop.f32.mrf.mxu0  ;;  %v726_v0 = vpop.f32.mrf.mxu1 }
 0x138   : > { %v2946_v2 = vpop.f32.mrf.mxu0  ;;  %v2948_v3 = vpop.f32.mrf.mxu1 }
 0x13a   : > { %v665_v4 = vpop.f32.mrf.mxu0  ;;  %v729_v5 = vpop.f32.mrf.mxu1 }
 0x13c   : > { %v1029_v7 = vpop.f32.mrf.mxu1  ;;  %v1517_v8 = vpop.f32.mrf.mxu0 }
 0x13d   : > { %v1030_v11 = vadd.f32 %v1029_v7, %v2886_v1 }
 0x13e   : > { %v1031_v15 = vpop.f32.mrf.mxu1  ;;  %v1519_v16 = vpop.f32.mrf.mxu0 }
 0x13f   : > { %v1644_v19 = vadd.f32 %v1517_v8, %v1030_v11 }
 0x140   : > { %v1032_v23 = vpop.f32.mrf.mxu1  ;;  %v1520_v24 = vpop.f32.mrf.mxu0 }
 0x141   : > { %v1683_v27 = vmul.f32 %v2956_v12, %v1644_v19  ;;  %v1033_v1 = vadd.f32 %v1032_v23, %v2890_v9 }
 0x142   : > { %v1034_v28 = vpop.f32.mrf.mxu1  ;;  %v1522_v31 = vpop.f32.mrf.mxu0 }
 0x143   : > { %v1722_v32 = vadd.f32 %v2961_v20, %v1683_v27  ;;  %v1645_v35 = vadd.f32 %v1520_v24, %v1033_v1 }
 0x144   : > { %v1037_v36 = vpop.f32.mrf.mxu1  ;;  %v1525_v39 = vpop.f32.mrf.mxu0 }
 0x145   : > { %v1754_v40 = vmax.f32 %v1722_v32, 0.0  ;;  %v1684_v43 = vmul.f32 %v2956_v12, %v1645_v35  ;;  %v1038_v44 = vadd.f32 %v1037_v36, %v2894_v13 }
 0x146   : > { %v1039_v9 = vpop.f32.mrf.mxu1  ;;  %v1527_v47 = vpop.f32.mrf.mxu0 }
 0x147   : > { %v2277_v48 = vpack.c.bf16 %v1754_v40, %v1754_v40  ;;  %v1723_v51 = vadd.f32 %v2961_v20, %v1684_v43  ;;  %v1646_v52 = vadd.f32 %v1525_v39, %v1038_v44 }
 0x148   : > { %v1040_v55 = vpop.f32.mrf.mxu1  ;;  %v1528_v56 = vpop.f32.mrf.mxu0 }
 0x149   : > { %1915 = vst.msk [vmem:[%s2971_s21] sm:$0xf] %vm1914_vm1, %v2277_v48  ;;  %v1755_v59 = vmax.f32 %v1723_v51, 0.0  ;;  %v1685_v13 = vmul.f32 %v2956_v12, %v1646_v52  ;;  %v1041_v60 = vadd.f32 %v1040_v55, %v2898_v17 }
 0x14a   : > { %v1042_v63 = vpop.f32.mrf.mxu1  ;;  %v1530_v0 = vpop.f32.mrf.mxu0 }
 0x14b   : > { %v2278_v4 = vpack.c.bf16 %v1755_v59, %v1755_v59  ;;  %v1724_v5 = vadd.f32 %v2961_v20, %v1685_v13  ;;  %v1647_v7 = vadd.f32 %v1528_v56, %v1041_v60 }
 0x14c   : > { %v1045_v8 = vpop.f32.mrf.mxu1  ;;  %v1533_v11 = vpop.f32.mrf.mxu0 }
 0x14d   : > { %1916 = vst.msk [vmem:[%s2971_s21 + $0x4] sm:$0xf] %vm1914_vm1, %v2278_v4  ;;  %v1756_v15 = vmax.f32 %v1724_v5, 0.0  ;;  %v1686_v16 = vmul.f32 %v2956_v12, %v1647_v7  ;;  %v1046_v19 = vadd.f32 %v1045_v8, %v2902_v21 }
 0x14e   : > { %v1047_v23 = vpop.f32.mrf.mxu1  ;;  %v1535_v24 = vpop.f32.mrf.mxu0 }
 0x14f   : > { %v2279_v27 = vpack.c.bf16 %v1756_v15, %v1756_v15  ;;  %v1725_v17 = vadd.f32 %v2961_v20, %v1686_v16  ;;  %v1648_v1 = vadd.f32 %v1533_v11, %v1046_v19 }
 0x150   : > { %v1048_v28 = vpop.f32.mrf.mxu1  ;;  %v1536_v31 = vpop.f32.mrf.mxu0 }
 0x151   : > { %1917 = vst.msk [vmem:[%s2971_s21 + $0x8] sm:$0xf] %vm1914_vm1, %v2279_v27  ;;  %v1757_v32 = vmax.f32 %v1725_v17, 0.0  ;;  %v1687_v35 = vmul.f32 %v2956_v12, %v1648_v1  ;;  %v1049_v36 = vadd.f32 %v1048_v28, %v2906_v25 }
 0x152   : > { %v1050_v39 = vpop.f32.mrf.mxu1  ;;  %v1538_v40 = vpop.f32.mrf.mxu0 }
 0x153   : > { %v2280_v43 = vpack.c.bf16 %v1757_v32, %v1757_v32  ;;  %v1726_v21 = vadd.f32 %v2961_v20, %v1687_v35  ;;  %v1649_v44 = vadd.f32 %v1536_v31, %v1049_v36 }
 0x154   : > { %v1053_v9 = vpop.f32.mrf.mxu1  ;;  %v1541_v47 = vpop.f32.mrf.mxu0 }
 0x155   : > { %1918 = vst.msk [vmem:[%s2971_s21 + $0xc] sm:$0xf] %vm1914_vm1, %v2280_v43  ;;  %v1758_v48 = vmax.f32 %v1726_v21, 0.0  ;;  %v1688_v51 = vmul.f32 %v2956_v12, %v1649_v44  ;;  %v1054_v52 = vadd.f32 %v1053_v9, %v2910_v29 }
 0x156   : > { %v1055_v55 = vpop.f32.mrf.mxu1  ;;  %v1543_v56 = vpop.f32.mrf.mxu0 }
 0x157   : > { %v2281_v59 = vpack.c.bf16 %v1758_v48, %v1758_v48  ;;  %v1727_v25 = vadd.f32 %v2961_v20, %v1688_v51  ;;  %v1650_v13 = vadd.f32 %v1541_v47, %v1054_v52 }
 0x158   : > { %v1056_v60 = vpop.f32.mrf.mxu1  ;;  %v1544_v63 = vpop.f32.mrf.mxu0 }
 0x159   : > { %1919 = vst.msk [vmem:[%s2971_s21 + $0x10] sm:$0xf] %vm1914_vm1, %v2281_v59  ;;  %v1759_v0 = vmax.f32 %v1727_v25, 0.0  ;;  %v1689_v4 = vmul.f32 %v2956_v12, %v1650_v13  ;;  %v1057_v5 = vadd.f32 %v1056_v60, %v2914_v33 }
 0x15a   : > { %v1058_v7 = vpop.f32.mrf.mxu1  ;;  %v1546_v8 = vpop.f32.mrf.mxu0 }
 0x15b   : > { %v2282_v11 = vpack.c.bf16 %v1759_v0, %v1759_v0  ;;  %v1728_v29 = vadd.f32 %v2961_v20, %v1689_v4  ;;  %v1651_v15 = vadd.f32 %v1544_v63, %v1057_v5 }
 0x15c   : > { %v1061_v16 = vpop.f32.mrf.mxu1  ;;  %v1549_v19 = vpop.f32.mrf.mxu0 }
 0x15d   : > { %1920 = vst.msk [vmem:[%s2971_s21 + $0x14] sm:$0xf] %vm1914_vm1, %v2282_v11  ;;  %v1760_v23 = vmax.f32 %v1728_v29, 0.0  ;;  %v1690_v24 = vmul.f32 %v2956_v12, %v1651_v15  ;;  %v1062_v27 = vadd.f32 %v1061_v16, %v2918_v37 }
 0x15e   : > { %v1063_v17 = vpop.f32.mrf.mxu1  ;;  %v1551_v1 = vpop.f32.mrf.mxu0 }
 0x15f   : > { %v2283_v28 = vpack.c.bf16 %v1760_v23, %v1760_v23  ;;  %v1729_v33 = vadd.f32 %v2961_v20, %v1690_v24  ;;  %v1652_v31 = vadd.f32 %v1549_v19, %v1062_v27 }
 0x160   : > { %v1064_v32 = vpop.f32.mrf.mxu1  ;;  %v1552_v35 = vpop.f32.mrf.mxu0 }
 0x161   : > { %1921 = vst.msk [vmem:[%s2971_s21 + $0x18] sm:$0xf] %vm1914_vm1, %v2283_v28  ;;  %v1761_v36 = vmax.f32 %v1729_v33, 0.0  ;;  %v1691_v39 = vmul.f32 %v2956_v12, %v1652_v31  ;;  %v1065_v40 = vadd.f32 %v1064_v32, %v2922_v41 }
 0x162   : > { %v1066_v43 = vpop.f32.mrf.mxu1  ;;  %v1554_v21 = vpop.f32.mrf.mxu0 }
 0x163   : > { %v2284_v44 = vpack.c.bf16 %v1761_v36, %v1761_v36  ;;  %v1730_v37 = vadd.f32 %v2961_v20, %v1691_v39  ;;  %v1653_v9 = vadd.f32 %v1552_v35, %v1065_v40 }
 0x164   : > { %v1069_v47 = vpop.f32.mrf.mxu1  ;;  %v1557_v48 = vpop.f32.mrf.mxu0 }
 0x165   : > { %1922 = vst.msk [vmem:[%s2971_s21 + $0x1c] sm:$0xf] %vm1914_vm1, %v2284_v44  ;;  %v1762_v51 = vmax.f32 %v1730_v37, 0.0  ;;  %v1692_v52 = vmul.f32 %v2956_v12, %v1653_v9  ;;  %v1070_v55 = vadd.f32 %v1069_v47, %v2926_v45 }
 0x166   : > { %v1071_v56 = vpop.f32.mrf.mxu1  ;;  %v1559_v59 = vpop.f32.mrf.mxu0 }
 0x167   : > { %v2285_v25 = vpack.c.bf16 %v1762_v51, %v1762_v51  ;;  %v1731_v41 = vadd.f32 %v2961_v20, %v1692_v52  ;;  %v1654_v13 = vadd.f32 %v1557_v48, %v1070_v55 }
 0x168   : > { %v1072_v60 = vpop.f32.mrf.mxu1  ;;  %v1560_v63 = vpop.f32.mrf.mxu0 }
 0x169   : > { %1923 = vst.msk [vmem:[%s2971_s21 + $0x20] sm:$0xf] %vm1914_vm1, %v2285_v25  ;;  %v1763_v0 = vmax.f32 %v1731_v41, 0.0  ;;  %v1693_v4 = vmul.f32 %v2956_v12, %v1654_v13  ;;  %v1073_v5 = vadd.f32 %v1072_v60, %v2930_v49 }
 0x16a   : > { %v1074_v7 = vpop.f32.mrf.mxu1  ;;  %v1562_v8 = vpop.f32.mrf.mxu0 }
 0x16b   : > { %v2286_v11 = vpack.c.bf16 %v1763_v0, %v1763_v0  ;;  %v1732_v45 = vadd.f32 %v2961_v20, %v1693_v4  ;;  %v1655_v29 = vadd.f32 %v1560_v63, %v1073_v5 }
 0x16c   : > { %v1077_v15 = vpop.f32.mrf.mxu1  ;;  %v1565_v16 = vpop.f32.mrf.mxu0 }
 0x16d   : > { %1924 = vst.msk [vmem:[%s2971_s21 + $0x24] sm:$0xf] %vm1914_vm1, %v2286_v11  ;;  %v1764_v19 = vmax.f32 %v1732_v45, 0.0  ;;  %v1694_v23 = vmul.f32 %v2956_v12, %v1655_v29  ;;  %v1078_v24 = vadd.f32 %v1077_v15, %v2934_v53 }
 0x16e   : > { %v1079_v27 = vpop.f32.mrf.mxu1  ;;  %v1567_v17 = vpop.f32.mrf.mxu0 }
 0x16f   : > { %v2287_v1 = vpack.c.bf16 %v1764_v19, %v1764_v19  ;;  %v1733_v49 = vadd.f32 %v2961_v20, %v1694_v23  ;;  %v1656_v28 = vadd.f32 %v1565_v16, %v1078_v24 }
 0x170   : > { %v1080_v33 = vpop.f32.mrf.mxu1  ;;  %v1568_v31 = vpop.f32.mrf.mxu0 }
 0x171   : > { %1925 = vst.msk [vmem:[%s2971_s21 + $0x28] sm:$0xf] %vm1914_vm1, %v2287_v1  ;;  %v1765_v32 = vmax.f32 %v1733_v49, 0.0  ;;  %v1695_v35 = vmul.f32 %v2956_v12, %v1656_v28  ;;  %v1081_v36 = vadd.f32 %v1080_v33, %v2938_v57 }
 0x172   : > { %v1082_v39 = vpop.f32.mrf.mxu1  ;;  %v1570_v40 = vpop.f32.mrf.mxu0 }
 0x173   : > { %v2288_v43 = vpack.c.bf16 %v1765_v32, %v1765_v32  ;;  %v1734_v53 = vadd.f32 %v2961_v20, %v1695_v35  ;;  %v1657_v21 = vadd.f32 %v1568_v31, %v1081_v36 }
 0x174   : > { %v1085_v44 = vpop.f32.mrf.mxu1  ;;  %v1573_v37 = vpop.f32.mrf.mxu0 }
 0x175   : > { %1926 = vst.msk [vmem:[%s2971_s21 + $0x2c] sm:$0xf] %vm1914_vm1, %v2288_v43  ;;  %v1766_v9 = vmax.f32 %v1734_v53, 0.0  ;;  %v1696_v47 = vmul.f32 %v2956_v12, %v1657_v21  ;;  %v1086_v48 = vadd.f32 %v1085_v44, %v2942_v61 }
 0x176   : > { %v1087_v51 = vpop.f32.mrf.mxu1  ;;  %v1575_v52 = vpop.f32.mrf.mxu0 }
 0x177   : > { %v2289_v55 = vpack.c.bf16 %v1766_v9, %v1766_v9  ;;  %v1735_v57 = vadd.f32 %v2961_v20, %v1696_v47  ;;  %v1658_v56 = vadd.f32 %v1573_v37, %v1086_v48 }
 0x178   : > { %v1088_v59 = vpop.f32.mrf.mxu1  ;;  %v1576_v25 = vpop.f32.mrf.mxu0 }
 0x179   : > { %1927 = vst.msk [vmem:[%s2971_s21 + $0x30] sm:$0xf] %vm1914_vm1, %v2289_v55  ;;  %v1767_v41 = vmax.f32 %v1735_v57, 0.0  ;;  %v1697_v13 = vmul.f32 %v2956_v12, %v1658_v56  ;;  %v1089_v60 = vadd.f32 %v1088_v59, %v2946_v2 }
 0x17a   : > { %v1090_v63 = vpop.f32.mrf.mxu1  ;;  %v1578_v0 = vpop.f32.mrf.mxu0 }
 0x17b   : > { %v2290_v4 = vpack.c.bf16 %v1767_v41, %v1767_v41  ;;  %v1736_v61 = vadd.f32 %v2961_v20, %v1697_v13  ;;  %v1659_v5 = vadd.f32 %v1576_v25, %v1089_v60 }
 0x17c   : > { %v1093_v7 = vpop.f32.mrf.mxu1  ;;  %v1581_v8 = vpop.f32.mrf.mxu0 }
 0x17d   : > { %1928 = vst.msk [vmem:[%s2971_s21 + $0x34] sm:$0xf] %vm1914_vm1, %v2290_v4  ;;  %v1768_v11 = vmax.f32 %v1736_v61, 0.0  ;;  %v1698_v45 = vmul.f32 %v2956_v12, %v1659_v5  ;;  %v1094_v29 = vadd.f32 %v1093_v7, %v2888_v6 }
 0x17e   : > { %v1095_v15 = vpop.f32.mrf.mxu1  ;;  %v1583_v16 = vpop.f32.mrf.mxu0 }
 0x17f   : > { %v2291_v19 = vpack.c.bf16 %v1768_v11, %v1768_v11  ;;  %v1737_v2 = vadd.f32 %v2961_v20, %v1698_v45  ;;  %v1660_v23 = vadd.f32 %v1581_v8, %v1094_v29 }
 0x180   : > { %v1096_v24 = vpop.f32.mrf.mxu1  ;;  %v1584_v27 = vpop.f32.mrf.mxu0 }
 0x181   : > { %1929 = vst.msk [vmem:[%s2971_s21 + $0x38] sm:$0xf] %vm1914_vm1, %v2291_v19  ;;  %v1769_v17 = vmax.f32 %v1737_v2, 0.0  ;;  %v1699_v1 = vmul.f32 %v2956_v12, %v1660_v23  ;;  %v1097_v49 = vadd.f32 %v1096_v24, %v2892_v10 }
 0x182   : > { %v1098_v28 = vpop.f32.mrf.mxu1  ;;  %v1586_v33 = vpop.f32.mrf.mxu0 }
 0x183   : > { %v2292_v31 = vpack.c.bf16 %v1769_v17, %v1769_v17  ;;  %v1738_v6 = vadd.f32 %v2961_v20, %v1699_v1  ;;  %v1661_v32 = vadd.f32 %v1584_v27, %v1097_v49 }
 0x184   : > { %v1101_v35 = vpop.f32.mrf.mxu1  ;;  %v1589_v36 = vpop.f32.mrf.mxu0 }
 0x185   : > { %1930 = vst.msk [vmem:[%s2971_s21 + $0x3c] sm:$0xf] %vm1914_vm1, %v2292_v31  ;;  %v1770_v39 = vmax.f32 %v1738_v6, 0.0  ;;  %v1700_v40 = vmul.f32 %v2956_v12, %v1661_v32  ;;  %v1102_v43 = vadd.f32 %v1101_v35, %v2896_v14 }
 0x186   : > { %v1103_v53 = vpop.f32.mrf.mxu1  ;;  %v1591_v21 = vpop.f32.mrf.mxu0 }
 0x187   : > { %v2293_v44 = vpack.c.bf16 %v1770_v39, %v1770_v39  ;;  %v1739_v10 = vadd.f32 %v2961_v20, %v1700_v40  ;;  %v1662_v37 = vadd.f32 %v1589_v36, %v1102_v43 }
 0x188   : > { %v1104_v9 = vpop.f32.mrf.mxu1  ;;  %v1592_v47 = vpop.f32.mrf.mxu0 }
 0x189   : > { %1931 = vst.msk [vmem:[%s2971_s21 + $0x40] sm:$0xf] %vm1914_vm1, %v2293_v44  ;;  %v1771_v48 = vmax.f32 %v1739_v10, 0.0  ;;  %v1701_v51 = vmul.f32 %v2956_v12, %v1662_v37  ;;  %v1105_v52 = vadd.f32 %v1104_v9, %v2900_v18 }
 0x18a   : > { %v1106_v55 = vpop.f32.mrf.mxu1  ;;  %v1594_v57 = vpop.f32.mrf.mxu0 }
 0x18b   : > { %v2294_v56 = vpack.c.bf16 %v1771_v48, %v1771_v48  ;;  %v1740_v14 = vadd.f32 %v2961_v20, %v1701_v51  ;;  %v1663_v59 = vadd.f32 %v1592_v47, %v1105_v52 }
 0x18c   : > { %v1109_v25 = vpop.f32.mrf.mxu1  ;;  %v1597_v41 = vpop.f32.mrf.mxu0 }
 0x18d   : > { %1932 = vst.msk [vmem:[%s2971_s21 + $0x44] sm:$0xf] %vm1914_vm1, %v2294_v56  ;;  %v1772_v13 = vmax.f32 %v1740_v14, 0.0  ;;  %v1702_v60 = vmul.f32 %v2956_v12, %v1663_v59  ;;  %v1110_v63 = vadd.f32 %v1109_v25, %v2904_v22 }
 0x18e   : > { %v1111_v0 = vpop.f32.mrf.mxu1  ;;  %v1599_v4 = vpop.f32.mrf.mxu0 }
 0x18f   : > { %v2295_v61 = vpack.c.bf16 %v1772_v13, %v1772_v13  ;;  %v1741_v18 = vadd.f32 %v2961_v20, %v1702_v60  ;;  %v1664_v5 = vadd.f32 %v1597_v41, %v1110_v63 }
 0x190   : > { %v1112_v7 = vpop.f32.mrf.mxu1  ;;  %v1600_v8 = vpop.f32.mrf.mxu0 }
 0x191   : > { %1933 = vst.msk [vmem:[%s2971_s21 + $0x48] sm:$0xf] %vm1914_vm1, %v2295_v61  ;;  %v1773_v11 = vmax.f32 %v1741_v18, 0.0  ;;  %v1703_v45 = vmul.f32 %v2956_v12, %v1664_v5  ;;  %v1113_v29 = vadd.f32 %v1112_v7, %v2908_v26 }
 0x192   : > { %v1114_v15 = vpop.f32.mrf.mxu1  ;;  %v1602_v16 = vpop.f32.mrf.mxu0 }
 0x193   : > { %v2296_v19 = vpack.c.bf16 %v1773_v11, %v1773_v11  ;;  %v1742_v22 = vadd.f32 %v2961_v20, %v1703_v45  ;;  %v1665_v2 = vadd.f32 %v1600_v8, %v1113_v29 }
 0x194   : > { %v1117_v23 = vpop.f32.mrf.mxu1  ;;  %v1605_v24 = vpop.f32.mrf.mxu0 }
 0x195   : > { %1934 = vst.msk [vmem:[%s2971_s21 + $0x4c] sm:$0xf] %vm1914_vm1, %v2296_v19  ;;  %v1774_v27 = vmax.f32 %v1742_v22, 0.0  ;;  %v1704_v17 = vmul.f32 %v2956_v12, %v1665_v2  ;;  %v1118_v1 = vadd.f32 %v1117_v23, %v2912_v30 }
 0x196   : > { %v1119_v49 = vpop.f32.mrf.mxu1  ;;  %v1607_v28 = vpop.f32.mrf.mxu0 }
 0x197   : > { %v2297_v33 = vpack.c.bf16 %v1774_v27, %v1774_v27  ;;  %v1743_v26 = vadd.f32 %v2961_v20, %v1704_v17  ;;  %v1666_v31 = vadd.f32 %v1605_v24, %v1118_v1 }
 0x198   : > { %v1120_v6 = vpop.f32.mrf.mxu1  ;;  %v1608_v32 = vpop.f32.mrf.mxu0 }
 0x199   : > { %1935 = vst.msk [vmem:[%s2971_s21 + $0x50] sm:$0xf] %vm1914_vm1, %v2297_v33  ;;  %v1775_v35 = vmax.f32 %v1743_v26, 0.0  ;;  %v1705_v36 = vmul.f32 %v2956_v12, %v1666_v31  ;;  %v1121_v39 = vadd.f32 %v1120_v6, %v2916_v34 }
 0x19a   : > { %v1122_v40 = vpop.f32.mrf.mxu1  ;;  %v1610_v43 = vpop.f32.mrf.mxu0 }
 0x19b   : > { %v2298_v53 = vpack.c.bf16 %v1775_v35, %v1775_v35  ;;  %v1744_v30 = vadd.f32 %v2961_v20, %v1705_v36  ;;  %v1667_v21 = vadd.f32 %v1608_v32, %v1121_v39 }
 0x19c   : > { %v1125_v44 = vpop.f32.mrf.mxu1  ;;  %v1613_v10 = vpop.f32.mrf.mxu0 }
 0x19d   : > { %1936 = vst.msk [vmem:[%s2971_s21 + $0x54] sm:$0xf] %vm1914_vm1, %v2298_v53  ;;  %v1776_v37 = vmax.f32 %v1744_v30, 0.0  ;;  %v1706_v9 = vmul.f32 %v2956_v12, %v1667_v21  ;;  %v1126_v47 = vadd.f32 %v1125_v44, %v2920_v38 }
 0x19e   : > { %v1127_v48 = vpop.f32.mrf.mxu1  ;;  %v1615_v51 = vpop.f32.mrf.mxu0 }
 0x19f   : > { %v2299_v52 = vpack.c.bf16 %v1776_v37, %v1776_v37  ;;  %v1745_v34 = vadd.f32 %v2961_v20, %v1706_v9  ;;  %v1668_v55 = vadd.f32 %v1613_v10, %v1126_v47 }
 0x1a0   : > { %v1128_v57 = vpop.f32.mrf.mxu1  ;;  %v1616_v56 = vpop.f32.mrf.mxu0 }
 0x1a1   : > { %1937 = vst.msk [vmem:[%s2971_s21 + $0x58] sm:$0xf] %vm1914_vm1, %v2299_v52  ;;  %v1777_v14 = vmax.f32 %v1745_v34, 0.0  ;;  %v1707_v59 = vmul.f32 %v2956_v12, %v1668_v55  ;;  %v1129_v25 = vadd.f32 %v1128_v57, %v2924_v42 }
 0x1a2   : > { %v1130_v41 = vpop.f32.mrf.mxu1  ;;  %v1618_v13 = vpop.f32.mrf.mxu0 }
 0x1a3   : > { %v2300_v60 = vpack.c.bf16 %v1777_v14, %v1777_v14  ;;  %v1746_v38 = vadd.f32 %v2961_v20, %v1707_v59  ;;  %v1669_v63 = vadd.f32 %v1616_v56, %v1129_v25 }
 0x1a4   : > { %v1133_v0 = vpop.f32.mrf.mxu1  ;;  %v1621_v4 = vpop.f32.mrf.mxu0 }
 0x1a5   : > { %1938 = vst.msk [vmem:[%s2971_s21 + $0x5c] sm:$0xf] %vm1914_vm1, %v2300_v60  ;;  %v1778_v61 = vmax.f32 %v1746_v38, 0.0  ;;  %v1708_v18 = vmul.f32 %v2956_v12, %v1669_v63  ;;  %v1134_v5 = vadd.f32 %v1133_v0, %v2928_v46 }
 0x1a6   : > { %v1135_v7 = vpop.f32.mrf.mxu1  ;;  %v1623_v8 = vpop.f32.mrf.mxu0 }
 0x1a7   : > { %v2301_v11 = vpack.c.bf16 %v1778_v61, %v1778_v61  ;;  %v1747_v42 = vadd.f32 %v2961_v20, %v1708_v18  ;;  %v1670_v45 = vadd.f32 %v1621_v4, %v1134_v5 }
 0x1a8   : > { %v1136_v29 = vpop.f32.mrf.mxu1  ;;  %v1624_v15 = vpop.f32.mrf.mxu0 }
 0x1a9   : > { %1939 = vst.msk [vmem:[%s2971_s21 + $0x60] sm:$0xf] %vm1914_vm1, %v2301_v11  ;;  %v1779_v16 = vmax.f32 %v1747_v42, 0.0  ;;  %v1709_v19 = vmul.f32 %v2956_v12, %v1670_v45  ;;  %v1137_v22 = vadd.f32 %v1136_v29, %v2932_v50 }
 0x1aa   : > { %v1138_v2 = vpop.f32.mrf.mxu1  ;;  %v1626_v23 = vpop.f32.mrf.mxu0 }
 0x1ab   : > { %v2302_v24 = vpack.c.bf16 %v1779_v16, %v1779_v16  ;;  %v1748_v46 = vadd.f32 %v2961_v20, %v1709_v19  ;;  %v1671_v27 = vadd.f32 %v1624_v15, %v1137_v22 }
 0x1ac   : > { %v1141_v17 = vpop.f32.mrf.mxu1  ;;  %v1629_v1 = vpop.f32.mrf.mxu0 }
 0x1ad   : > { %1940 = vst.msk [vmem:[%s2971_s21 + $0x64] sm:$0xf] %vm1914_vm1, %v2302_v24  ;;  %v1780_v49 = vmax.f32 %v1748_v46, 0.0  ;;  %v1710_v28 = vmul.f32 %v2956_v12, %v1671_v27  ;;  %v1142_v33 = vadd.f32 %v1141_v17, %v2936_v54 }
 0x1ae   : > { %v1143_v26 = vpop.f32.mrf.mxu1  ;;  %v1631_v31 = vpop.f32.mrf.mxu0 }
 0x1af   : > { %v2303_v6 = vpack.c.bf16 %v1780_v49, %v1780_v49  ;;  %v1749_v50 = vadd.f32 %v2961_v20, %v1710_v28  ;;  %v1672_v32 = vadd.f32 %v1629_v1, %v1142_v33 }
 0x1b0   : > { %v1144_v35 = vpop.f32.mrf.mxu1  ;;  %v1632_v36 = vpop.f32.mrf.mxu0 }
 0x1b1   : > { %1941 = vst.msk [vmem:[%s2971_s21 + $0x68] sm:$0xf] %vm1914_vm1, %v2303_v6  ;;  %v1781_v39 = vmax.f32 %v1749_v50, 0.0  ;;  %v1711_v40 = vmul.f32 %v2956_v12, %v1672_v32  ;;  %v1145_v43 = vadd.f32 %v1144_v35, %v2940_v58 }
 0x1b2   : > { %v1146_v53 = vpop.f32.mrf.mxu1  ;;  %v1634_v30 = vpop.f32.mrf.mxu0 }
 0x1b3   : > { %v2304_v21 = vpack.c.bf16 %v1781_v39, %v1781_v39  ;;  %v1750_v54 = vadd.f32 %v2961_v20, %v1711_v40  ;;  %v1673_v44 = vadd.f32 %v1632_v36, %v1145_v43 }
 0x1b4   : > { %v1149_v10 = vpop.f32.mrf.mxu1  ;;  %v1637_v37 = vpop.f32.mrf.mxu0 }
 0x1b5   : > { %1942 = vst.msk [vmem:[%s2971_s21 + $0x6c] sm:$0xf] %vm1914_vm1, %v2304_v21  ;;  %v1782_v9 = vmax.f32 %v1750_v54, 0.0  ;;  %v1712_v47 = vmul.f32 %v2956_v12, %v1673_v44  ;;  %v1150_v48 = vadd.f32 %v1149_v10, %v2944_v62 }
 0x1b6   : > { %v1151_v51 = vpop.f32.mrf.mxu1  ;;  %v1639_v52 = vpop.f32.mrf.mxu0 }
 0x1b7   : > { %v2305_v58 = vpack.c.bf16 %v1782_v9, %v1782_v9  ;;  %v1751_v34 = vadd.f32 %v2961_v20, %v1712_v47  ;;  %v1674_v55 = vadd.f32 %v1637_v37, %v1150_v48 }
 0x1b8   : > { %v1152_v57 = vpop.f32.mrf.mxu1  ;;  %v1640_v56 = vpop.f32.mrf.mxu0 }
 0x1b9   : > { %1943 = vst.msk [vmem:[%s2971_s21 + $0x70] sm:$0xf] %vm1914_vm1, %v2305_v58  ;;  %v1783_v14 = vmax.f32 %v1751_v34, 0.0  ;;  %v1713_v59 = vmul.f32 %v2956_v12, %v1674_v55  ;;  %v1153_v25 = vadd.f32 %v1152_v57, %v2948_v3 }
 0x1ba   : > { %v1154_v41 = vpop.f32.mrf.mxu1  ;;  %v1642_v62 = vpop.f32.mrf.mxu0 }
 0x1bb   : > { %v2306_v13 = vpack.c.bf16 %v1783_v14, %v1783_v14  ;;  %v1752_v60 = vadd.f32 %v2961_v20, %v1713_v59  ;;  %v1675_v38 = vadd.f32 %v1640_v56, %v1153_v25 }
 0x1bd   : > { %1944 = vst.msk [vmem:[%s2971_s21 + $0x74] sm:$0xf] %vm1914_vm1, %v2306_v13  ;;  %v1784_v63 = vmax.f32 %v1752_v60, 0.0  ;;  %v1714_v0 = vmul.f32 %v2956_v12, %v1675_v38 }
 0x1bf   : > { %v2307_v4 = vpack.c.bf16 %v1784_v63, %v1784_v63  ;;  %v1753_v61 = vadd.f32 %v2961_v20, %v1714_v0 }
 0x1c1   : > { %1945 = vst.msk [vmem:[%s2971_s21 + $0x78] sm:$0xf] %vm1914_vm1, %v2307_v4  ;;  %v1785_v18 = vmax.f32 %v1753_v61, 0.0 }
 0x1c3   : > { %v2308_v5 = vpack.c.bf16 %v1785_v18, %v1785_v18 }
 0x1c5   : > { %1946 = vst.msk [vmem:[%s2971_s21 + $0x7c] sm:$0xf] %vm1914_vm1, %v2308_v5 }
 0x1c6 PF: > { %s14_s15 = sadd.s32 1, %s2528_s15  }
 0x1c7   : > { %p11_p4 = scmp.ge.s32.totalorder %s14_s15, 4  }
 0x1c9   :  { %13 = sbr.rel (!%p11_p4) target bundleno = 1 (0x1), region = 68 }

// kernel: smnet_forward.7
= control target key start
LH: loop header
LB: loop body
LE: loop exit
PB: predicated region body
PF: predicated region fallthrough
CT: control target
= control target key end

     0   :  { %s2657_s21 = smov 0   ;;  %s3257_s0 = inlined_call_operand.vmem [shape: bf16[560,144], index: 0, kind: input, shape index: {}]   ;;  %s3258_s1 = inlined_call_operand.vmem [shape: bf16[3,144,48], index: 1, kind: input, shape index: {}]   ;;  %s3259_s2 = inlined_call_operand.vmem [shape: f32[1,48], index: 2, kind: input, shape index: {}]   ;;  %s3260_s3 = inlined_call_operand.vmem [shape: f32[1,48], index: 3, kind: input, shape index: {}]   ;;  %s3261_s4 = inlined_call_operand.vmem [shape: bf16[48,8], index: 4, kind: input, shape index: {}]   ;;  %s3262_s5 = inlined_call_operand.vmem [shape: f32[1,8], index: 5, kind: input, shape index: {}]   ;;  %s3263_s6 = inlined_call_operand.vmem [shape: f32[512,8], index: 6, kind: output, shape index: {}]  }
   0x1 LB: > { %s2108_s22 = sadd.s32 4294967295, %s2619_s21   ;;  %p2111_p0 = scmp.ge.s32.totalorder %s2619_s21, 1  ;;  %s2619_s21 = sphi %s2657_s21, %s16_s21  }
   0x2   : > { %p202_p1 = scmp.lt.s32.totalorder %s2619_s21, 3 }
   0x4   : > { %p203_p2 = pnand %p2111_p0, %p202_p1 }
   0x5   : > { %s2683_s7 = sshll.u32 (!%p203_p2), %s2108_s22, 8 }
   0x6   : > { %206 = sbr.rel (%p203_p2) target bundleno = 689 (0x2b1), region = 44  ;;  %s290_s12 = sadd.s32 (!%p203_p2), 24, %s2683_s7 }
   0x7   : > { %s291_s15 = sshra.s32 (!%p203_p2), %s290_s12, 3  ;;  %s2722_s9 = scalar_lea.vmem (!%p203_p2), %s3257_s0, %s2683_s7 }
   0x8   : > { %s2353_s18 = sshll.u32 (!%p203_p2), %s291_s15, 3  ;;  %s1162_s17 = sadd.s32 (!%p203_p2), 48, %s2683_s7 }
   0x9   : > { %s2713_s27 = scalar_lea.vmem (!%p203_p2), %s3257_s0, %s2353_s18  ;;  %s1163_s20 = sshra.s32 (!%p203_p2), %s1162_s17, 3 }
   0xa   : > { %s2354_s24 = sshll.u32 (!%p203_p2), %s1163_s20, 3  ;;  %s2112_s17 = sshll.u32 (!%p203_p2), %s2108_s22, 5 }
   0xb   : > { %v2439_v0 = vld [vmem:[%s3258_s1 + $0x80] sm:$0xff]   ;;  %v2621_v1 = vmov 0   ;;  %v2440_v2 = vld [vmem:[%s3258_s1 + $0x38] sm:$0xff]   ;;  %v2442_v4 = vld [vmem:[%s3258_s1 + $0x30] sm:$0xff]   ;;  %vm545_vm0 = vcmask 130048   ;;  %s2833_s30 = scalar_lea.vmem %s3257_s0, %s2354_s24  ;;  %vm1815_vm1 = vcmask 392192  }
   0xc   : > { %594 = vmatprep.subr.bf16.mxu0 %v2621_v1  ;;  %1001 = vmatprep.subr.bf16.mxu1 %v2621_v1  ;;  %v2441_v3 = vld [vmem:[%s3258_s1 + $0x78] sm:$0xff]   ;;  %v2443_v5 = vld [vmem:[%s3258_s1 + $0x70] sm:$0xff]   ;;  %v2444_v6 = vld [vmem:[%s3258_s1 + $0x28] sm:$0xff]   ;;  %p228_p3 = scmp.lt.s32.totalorder %s2112_s17, 63  ;;  %vm2025_vm2 = vcmask 64512  }
   0xd   : > { %595 = vmatpush1.bf16.msra.mxu0 %v2439_v0  ;;  %1002 = vmatpush1.bf16.msra.mxu1 %v2440_v2  ;;  %v2445_v7 = vld [vmem:[%s3258_s1 + $0x68] sm:$0xff]   ;;  %v2446_v8 = vld [vmem:[%s3258_s1 + $0x20] sm:$0xff]   ;;  %v2448_v10 = vld [vmem:[%s3258_s1 + $0x18] sm:$0xff]  }
   0xe   : > { %596 = vmatprep.subr.bf16.mxu0 %v2621_v1  ;;  %1003 = vmatprep.subr.bf16.mxu1 %v2621_v1  ;;  %v2447_v9 = vld [vmem:[%s3258_s1 + $0x60] sm:$0xff]   ;;  %v2449_v11 = vld [vmem:[%s3258_s1 + $0x58] sm:$0xff]   ;;  %v2450_v12 = vld [vmem:[%s3258_s1 + $0x10] sm:$0xff]   ;;  %s3265_s17 = smov (!%p228_p3, %s2112_s17), 63 }
   0xf   : > { %v2459_v13 = vld [vmem:[%s2713_s27 + $0x4] ss:$8 sps:$4 sm:$0xff]   ;;  %v2451_v15 = vld [vmem:[%s3258_s1 + $0x50] sm:$0xff]   ;;  %v2457_v21 = vld [vmem:[%s2713_s27] ss:$8 sps:$4 sm:$0xff]   ;;  %s2113_s18 = sshll.u32 %s3265_s17, 3 }
  0x10   : > { %v2462_v14 = vld [vmem:[%s2722_s9 + $0x4] ss:$8 sps:$4 sm:$0xff]   ;;  %2178 = vmatprep.mubr.msk.bf16.mxu0 %vm545_vm0, %v2459_v13  ;;  %v2460_v22 = vld [vmem:[%s2722_s9] ss:$8 sps:$4 sm:$0xff]   ;;  %v2464_v24 = vld [vmem:[%s2713_s27 + $0x14] ss:$8 sps:$4 sm:$0xff]   ;;  %s3156_s24 = scalar_lea.vmem %s3263_s6, %s2113_s18 }
  0x11   : > { %597 = vmatpush1.bf16.msra.mxu0 %v2441_v3  ;;  %1004 = vmatpush1.bf16.msra.mxu1 %v2442_v4  ;;  %v2452_v16 = vld [vmem:[%s3258_s1 + $0x8] sm:$0xff]   ;;  %v2454_v18 = vld [vmem:[%s3258_s1] sm:$0xff]   ;;  %v2466_v25 = vld [vmem:[%s2722_s9 + $0x14] ss:$8 sps:$4 sm:$0xff]  }
  0x12   : > { %598 = vmatprep.subr.bf16.mxu0 %v2621_v1  ;;  %1005 = vmatprep.subr.bf16.mxu1 %v2621_v1  ;;  %v2453_v17 = vld [vmem:[%s3258_s1 + $0x48] sm:$0xff]   ;;  %v2456_v20 = vld [vmem:[%s3258_s1 + $0x40] sm:$0xff]   ;;  %v2468_v27 = vld [vmem:[%s2713_s27 + $0x10] ss:$8 sps:$4 sm:$0xff]  }
  0x13   : > { %2235 = vmatprep.mubr.msk.bf16.mxu1 %vm545_vm0, %v2462_v14  ;;  %v2455_v19 = vld [vmem:[%s3258_s1 + $0x88] sm:$0xff]   ;;  %v2476_v26 = vld [vmem:[%s3258_s1 + $0xc0] sm:$0xff]   ;;  %v2469_v28 = vld [vmem:[%s2722_s9 + $0x10] ss:$8 sps:$4 sm:$0xff]  }
  0x14   : > { %v2463_v23 = vld [vmem:[%s3258_s1 + $0xc8] sm:$0xff]   ;;  %v2483_v31 = vld [vmem:[%s3258_s1 + $0xb8] sm:$0xff]   ;;  %v2496_v32 = vld [vmem:[%s3258_s1 + $0xb0] sm:$0xff]  }
  0x15   : > { %599 = vmatpush1.bf16.msra.mxu0 %v2443_v5  ;;  %1006 = vmatpush1.bf16.msra.mxu1 %v2444_v6  ;;  %v2470_v29 = vld [vmem:[%s2713_s27 + $0x24] ss:$8 sps:$4 sm:$0xff]   ;;  %v2474_v33 = vld [vmem:[%s2713_s27 + $0x20] ss:$8 sps:$4 sm:$0xff]   ;;  %v2477_v35 = vld [vmem:[%s2713_s27 + $0x34] ss:$8 sps:$4 sm:$0xff]  }
  0x16   : > { %600 = vmatprep.subr.bf16.mxu0 %v2621_v1  ;;  %1007 = vmatprep.subr.bf16.mxu1 %v2621_v1  ;;  %v2472_v30 = vld [vmem:[%s2722_s9 + $0x24] ss:$8 sps:$4 sm:$0xff]   ;;  %v2475_v34 = vld [vmem:[%s2722_s9 + $0x20] ss:$8 sps:$4 sm:$0xff]   ;;  %v2479_v36 = vld [vmem:[%s2722_s9 + $0x34] ss:$8 sps:$4 sm:$0xff]  }
  0x17   : > { %v2509_v37 = vld [vmem:[%s3258_s1 + $0xa8] sm:$0xff]   ;;  %v2522_v38 = vld [vmem:[%s3258_s1 + $0xa0] sm:$0xff]   ;;  %v2481_v39 = vld [vmem:[%s2713_s27 + $0x30] ss:$8 sps:$4 sm:$0xff]  }
  0x18   : > { %v2482_v40 = vld [vmem:[%s2722_s9 + $0x30] ss:$8 sps:$4 sm:$0xff]   ;;  %v2484_v41 = vld [vmem:[%s2713_s27 + $0x44] ss:$8 sps:$4 sm:$0xff]   ;;  %v2488_v45 = vld [vmem:[%s2713_s27 + $0x40] ss:$8 sps:$4 sm:$0xff]  }
  0x19   : > { %601 = vmatpush1.bf16.msra.mxu0 %v2445_v7  ;;  %1008 = vmatpush1.bf16.msra.mxu1 %v2446_v8  ;;  %v2486_v42 = vld [vmem:[%s2722_s9 + $0x44] ss:$8 sps:$4 sm:$0xff]   ;;  %v2533_v43 = vld [vmem:[%s3258_s1 + $0x98] sm:$0xff]   ;;  %v2542_v44 = vld [vmem:[%s3258_s1 + $0x90] sm:$0xff]  }
  0x1a   : > { %602 = vmatprep.subr.bf16.mxu0 %v2621_v1  ;;  %1009 = vmatprep.subr.bf16.mxu1 %v2621_v1  ;;  %v2489_v46 = vld [vmem:[%s2722_s9 + $0x40] ss:$8 sps:$4 sm:$0xff]   ;;  %v2490_v47 = vld [vmem:[%s2713_s27 + $0x54] ss:$8 sps:$4 sm:$0xff]   ;;  %v2494_v50 = vld [vmem:[%s2713_s27 + $0x50] ss:$8 sps:$4 sm:$0xff]  }
  0x1b   : > { %v2492_v48 = vld [vmem:[%s2722_s9 + $0x54] ss:$8 sps:$4 sm:$0xff]   ;;  %v2495_v51 = vld [vmem:[%s2722_s9 + $0x50] ss:$8 sps:$4 sm:$0xff]   ;;  %v2497_v52 = vld [vmem:[%s2713_s27 + $0x64] ss:$8 sps:$4 sm:$0xff]  }
  0x1c   : > { %v2555_v49 = vld [vmem:[%s3258_s1 + $0xd0] sm:$0xff]   ;;  %v2499_v53 = vld [vmem:[%s2722_s9 + $0x64] ss:$8 sps:$4 sm:$0xff]   ;;  %v2501_v54 = vld [vmem:[%s2713_s27 + $0x60] ss:$8 sps:$4 sm:$0xff]  }
  0x1d   : > { %603 = vmatpush1.bf16.msra.mxu0 %v2447_v9  ;;  %1010 = vmatpush1.bf16.msra.mxu1 %v2448_v10  ;;  %v2502_v55 = vld [vmem:[%s2722_s9 + $0x60] ss:$8 sps:$4 sm:$0xff]   ;;  %v2503_v56 = vld [vmem:[%s2713_s27 + $0x74] ss:$8 sps:$4 sm:$0xff]   ;;  %v2507_v58 = vld [vmem:[%s2713_s27 + $0x70] ss:$8 sps:$4 sm:$0xff]  }
  0x1e   : > { %604 = vmatprep.subr.bf16.mxu0 %v2621_v1  ;;  %1011 = vmatprep.subr.bf16.mxu1 %v2621_v1  ;;  %v2505_v57 = vld [vmem:[%s2722_s9 + $0x74] ss:$8 sps:$4 sm:$0xff]   ;;  %v2508_v59 = vld [vmem:[%s2722_s9 + $0x70] ss:$8 sps:$4 sm:$0xff]   ;;  %v2510_v60 = vld [vmem:[%s2713_s27 + $0x84] ss:$8 sps:$4 sm:$0xff]  }
  0x1f   : > { %v2512_v61 = vld [vmem:[%s2722_s9 + $0x84] ss:$8 sps:$4 sm:$0xff]   ;;  %v2514_v62 = vld [vmem:[%s2713_s27 + $0x80] ss:$8 sps:$4 sm:$0xff]   ;;  %v2516_v0 = vld [vmem:[%s2713_s27 + $0x94] ss:$8 sps:$4 sm:$0xff]  }
  0x20   : > { %v2515_v63 = vld [vmem:[%s2722_s9 + $0x80] ss:$8 sps:$4 sm:$0xff]   ;;  %v2520_v2 = vld [vmem:[%s2713_s27 + $0x90] ss:$8 sps:$4 sm:$0xff]   ;;  %v2523_v4 = vld [vmem:[%s2713_s27 + $0xa4] ss:$8 sps:$4 sm:$0xff]  }
  0x21   : > { %605 = vmatpush1.bf16.msra.mxu0 %v2449_v11  ;;  %1012 = vmatpush1.bf16.msra.mxu1 %v2450_v12  ;;  %v2521_v3 = vld [vmem:[%s2722_s9 + $0x90] ss:$8 sps:$4 sm:$0xff]   ;;  %v2525_v5 = vld [vmem:[%s2722_s9 + $0xa4] ss:$8 sps:$4 sm:$0xff]   ;;  %v2527_v6 = vld [vmem:[%s2713_s27 + $0xa0] ss:$8 sps:$4 sm:$0xff]  }
  0x22   : > { %606 = vmatprep.subr.bf16.mxu0 %v2621_v1  ;;  %1013 = vmatprep.subr.bf16.mxu1 %v2621_v1  ;;  %v2528_v7 = vld [vmem:[%s2722_s9 + $0xa0] ss:$8 sps:$4 sm:$0xff]   ;;  %v2529_v8 = vld [vmem:[%s2713_s27 + $0xb4] ss:$8 sps:$4 sm:$0xff]   ;;  %v2534_v10 = vld [vmem:[%s2713_s27 + $0xb0] ss:$8 sps:$4 sm:$0xff]  }
  0x23   : > { %v2531_v9 = vld [vmem:[%s2722_s9 + $0xb4] ss:$8 sps:$4 sm:$0xff]   ;;  %v2535_v11 = vld [vmem:[%s2722_s9 + $0xb0] ss:$8 sps:$4 sm:$0xff]   ;;  %v2536_v12 = vld [vmem:[%s2713_s27 + $0xc4] ss:$8 sps:$4 sm:$0xff]  }
  0x24   : > { %v2538_v13 = vld [vmem:[%s2722_s9 + $0xc4] ss:$8 sps:$4 sm:$0xff]   ;;  %v2540_v14 = vld [vmem:[%s2713_s27 + $0xc0] ss:$8 sps:$4 sm:$0xff]  }
  0x25   : > { %607 = vmatpush1.bf16.msra.mxu0 %v2451_v15  ;;  %1014 = vmatpush1.bf16.msra.mxu1 %v2452_v16  ;;  %v2541_v15 = vld [vmem:[%s2722_s9 + $0xc0] ss:$8 sps:$4 sm:$0xff]   ;;  %v2543_v16 = vld [vmem:[%s2713_s27 + $0xd4] ss:$8 sps:$4 sm:$0xff]  }
  0x26   : > { %608 = vmatprep.subr.bf16.mxu0 %v2621_v1  ;;  %1015 = vmatprep.subr.bf16.mxu1 %v2621_v1 }
  0x29   : > { %609 = vmatpush1.bf16.msra.mxu0 %v2453_v17  ;;  %1016 = vmatpush1.bf16.msra.mxu1 %v2454_v18  ;;  %v2545_v17 = vld [vmem:[%s2722_s9 + $0xd4] ss:$8 sps:$4 sm:$0xff]   ;;  %v2547_v18 = vld [vmem:[%s2713_s27 + $0xd0] ss:$8 sps:$4 sm:$0xff]  }
  0x2a   : > { %624 = vmatprep.subr.bf16.mxu0 %v2621_v1  ;;  %1031 = vmatprep.subr.bf16.mxu1 %v2621_v1 }
  0x2d   : > { %625 = vmatpush2.bf16.msra.mxu0 %v2455_v19  ;;  %1032 = vmatpush2.bf16.msra.mxu1 %v2456_v20  ;;  %v2548_v19 = vld [vmem:[%s2722_s9 + $0xd0] ss:$8 sps:$4 sm:$0xff]   ;;  %v2549_v20 = vld [vmem:[%s2713_s27 + $0xe4] ss:$8 sps:$4 sm:$0xff]  }
  0x2e   : > { %1465 = vmatprep.subr.bf16.mxu0 %v2621_v1  ;;  %2412 = vmatprep.subr.bf16.mxu1 %v2621_v1 }
  0x30   : > { %627 = vmatmul.mubr.bf16.vlgmr.msra.gmra.mxu0 %v2457_v21  ;;  %1034 = vmatmul.mubr.bf16.vlgmr.msra.gmra.mxu1 %v2460_v22  ;;  %v2551_v21 = vld [vmem:[%s2722_s9 + $0xe4] ss:$8 sps:$4 sm:$0xff]   ;;  %v2553_v22 = vld [vmem:[%s2713_s27 + $0xe0] ss:$8 sps:$4 sm:$0xff]  }
  0x31   : > { %1466 = vmatpush1.bf16.msra.mxu0 %v2463_v23  ;;  %2179 = vmatprep.mubr.msk.bf16.mxu0 %vm545_vm0, %v2464_v24  ;;  %v2556_v24 = vld [vmem:[%s2713_s27 + $0xf4] ss:$8 sps:$4 sm:$0xff]  }
  0x32   : > { %2236 = vmatprep.mubr.msk.bf16.mxu1 %vm545_vm0, %v2466_v25  ;;  %1467 = vmatprep.subr.bf16.mxu0 %v2621_v1  ;;  %v2558_v25 = vld [vmem:[%s2722_s9 + $0xf4] ss:$8 sps:$4 sm:$0xff]  }
  0x33   : > { %2421 = vmatpush1.bf16.msra.mxu1 %v2463_v23  ;;  %v2554_v23 = vld [vmem:[%s2722_s9 + $0xe0] ss:$8 sps:$4 sm:$0xff]  }
  0x34   : > { %2413 = vmatprep.subr.bf16.mxu1 %v2621_v1 }
  0x35   : > { %1468 = vmatpush1.bf16.msra.mxu0 %v2476_v26 }
  0x36   : > { %1469 = vmatprep.subr.bf16.mxu0 %v2621_v1 }
  0x37   : > { %2422 = vmatpush1.bf16.msra.mxu1 %v2476_v26  ;;  %v2560_v26 = vld [vmem:[%s2713_s27 + $0xf0] ss:$8 sps:$4 sm:$0xff]  }
  0x38   : > { %635 = vmatmul.mubr.bf16.gmra.mxu0 %v2468_v27  ;;  %2414 = vmatprep.subr.bf16.mxu1 %v2621_v1  ;;  %v2561_v27 = vld [vmem:[%s2722_s9 + $0xf0] ss:$8 sps:$4 sm:$0xff]  }
  0x39   : > { %1042 = vmatmul.mubr.bf16.gmra.mxu1 %v2469_v28  ;;  %2180 = vmatprep.mubr.msk.bf16.mxu0 %vm545_vm0, %v2470_v29  ;;  %v2564_v28 = vld [vmem:[%s2833_s30 + $0x4] ss:$8 sps:$4 sm:$0xff]  }
  0x3a   : > { %2237 = vmatprep.mubr.msk.bf16.mxu1 %vm545_vm0, %v2472_v30  ;;  %1470 = vmatpush1.bf16.msra.mxu0 %v2483_v31  ;;  %v2567_v29 = vld [vmem:[%s2833_s30 + $0xc4] ss:$8 sps:$4 sm:$0xff]   ;;  %v2562_v30 = vld [vmem:[%s2833_s30] ss:$8 sps:$4 sm:$0xff]  }
  0x3b   : > { %1471 = vmatprep.subr.bf16.mxu0 %v2621_v1  ;;  %2423 = vmatpush1.bf16.msra.mxu1 %v2483_v31  ;;  %v2565_v31 = vld [vmem:[%s2833_s30 + $0xc0] ss:$8 sps:$4 sm:$0xff]  }
  0x3c   : > { %2415 = vmatprep.subr.bf16.mxu1 %v2621_v1 }
  0x3e   : > { %1472 = vmatpush1.bf16.msra.mxu0 %v2496_v32 }
  0x3f   : > { %1473 = vmatprep.subr.bf16.mxu0 %v2621_v1  ;;  %2424 = vmatpush1.bf16.msra.mxu1 %v2496_v32  ;;  %v2568_v32 = vld [vmem:[%s2833_s30 + $0x14] ss:$8 sps:$4 sm:$0xff]  }
  0x40   : > { %643 = vmatmul.mubr.bf16.gmra.mxu0 %v2474_v33  ;;  %2416 = vmatprep.subr.bf16.mxu1 %v2621_v1  ;;  %v2570_v33 = vld [vmem:[%s2833_s30 + $0xd4] ss:$8 sps:$4 sm:$0xff]  }
  0x41   : > { %1050 = vmatmul.mubr.bf16.gmra.mxu1 %v2475_v34  ;;  %2181 = vmatprep.mubr.msk.bf16.mxu0 %vm545_vm0, %v2477_v35  ;;  %v2572_v34 = vld [vmem:[%s2833_s30 + $0x10] ss:$8 sps:$4 sm:$0xff]  }
  0x42   : > { %2238 = vmatprep.mubr.msk.bf16.mxu1 %vm545_vm0, %v2479_v36  ;;  %1474 = vmatpush1.bf16.msra.mxu0 %v2509_v37  ;;  %v2573_v35 = vld [vmem:[%s2833_s30 + $0xd0] ss:$8 sps:$4 sm:$0xff]   ;;  %v2574_v36 = vld [vmem:[%s2833_s30 + $0x24] ss:$8 sps:$4 sm:$0xff]  }
  0x43   : > { %1475 = vmatprep.subr.bf16.mxu0 %v2621_v1  ;;  %2425 = vmatpush1.bf16.msra.mxu1 %v2509_v37  ;;  %v2576_v37 = vld [vmem:[%s2833_s30 + $0xe4] ss:$8 sps:$4 sm:$0xff]  }
  0x44   : > { %2417 = vmatprep.subr.bf16.mxu1 %v2621_v1 }
  0x46   : > { %1476 = vmatpush1.bf16.msra.mxu0 %v2522_v38 }
  0x47   : > { %1477 = vmatprep.subr.bf16.mxu0 %v2621_v1  ;;  %2426 = vmatpush1.bf16.msra.mxu1 %v2522_v38  ;;  %v2578_v38 = vld [vmem:[%s2833_s30 + $0x20] ss:$8 sps:$4 sm:$0xff]  }
  0x48   : > { %651 = vmatmul.mubr.bf16.gmra.mxu0 %v2481_v39  ;;  %2418 = vmatprep.subr.bf16.mxu1 %v2621_v1  ;;  %v2579_v39 = vld [vmem:[%s2833_s30 + $0xe0] ss:$8 sps:$4 sm:$0xff]  }
  0x49   : > { %1058 = vmatmul.mubr.bf16.gmra.mxu1 %v2482_v40  ;;  %2182 = vmatprep.mubr.msk.bf16.mxu0 %vm545_vm0, %v2484_v41  ;;  %v2580_v40 = vld [vmem:[%s2833_s30 + $0x34] ss:$8 sps:$4 sm:$0xff]  }
  0x4a   : > { %2239 = vmatprep.mubr.msk.bf16.mxu1 %vm545_vm0, %v2486_v42  ;;  %1478 = vmatpush1.bf16.msra.mxu0 %v2533_v43  ;;  %v2582_v41 = vld [vmem:[%s2833_s30 + $0xf4] ss:$8 sps:$4 sm:$0xff]   ;;  %v2584_v42 = vld [vmem:[%s2833_s30 + $0x30] ss:$8 sps:$4 sm:$0xff]  }
  0x4b   : > { %1479 = vmatprep.subr.bf16.mxu0 %v2621_v1  ;;  %2427 = vmatpush1.bf16.msra.mxu1 %v2533_v43  ;;  %v2585_v43 = vld [vmem:[%s2833_s30 + $0xf0] ss:$8 sps:$4 sm:$0xff]  }
  0x4c   : > { %2419 = vmatprep.subr.bf16.mxu1 %v2621_v1 }
  0x4e   : > { %1480 = vmatpush1.bf16.msra.mxu0 %v2542_v44 }
  0x4f   : > { %1495 = vmatprep.subr.bf16.mxu0 %v2621_v1  ;;  %2428 = vmatpush1.bf16.msra.mxu1 %v2542_v44  ;;  %v2586_v44 = vld [vmem:[%s2833_s30 + $0x44] ss:$8 sps:$4 sm:$0xff]  }
  0x50   : > { %659 = vmatmul.mubr.bf16.gmra.mxu0 %v2488_v45  ;;  %2420 = vmatprep.subr.bf16.mxu1 %v2621_v1  ;;  %v2518_v1 = vld [vmem:[%s2722_s9 + $0x94] ss:$8 sps:$4 sm:$0xff]   ;;  %v2588_v45 = vld [vmem:[%s2833_s30 + $0x40] ss:$8 sps:$4 sm:$0xff]  }
  0x51   : > { %1066 = vmatmul.mubr.bf16.gmra.mxu1 %v2489_v46  ;;  %2183 = vmatprep.mubr.msk.bf16.mxu0 %vm545_vm0, %v2490_v47  ;;  %v2589_v46 = vld [vmem:[%s2833_s30 + $0x54] ss:$8 sps:$4 sm:$0xff]   ;;  %v2591_v47 = vld [vmem:[%s2833_s30 + $0x50] ss:$8 sps:$4 sm:$0xff]  }
  0x52   : > { %2240 = vmatprep.mubr.msk.bf16.mxu1 %vm545_vm0, %v2492_v48  ;;  %1496 = vmatpush2.bf16.msra.mxu0 %v2555_v49  ;;  %v2592_v48 = vld [vmem:[%s2833_s30 + $0x64] ss:$8 sps:$4 sm:$0xff]  }
  0x53   : > { %2429 = vmatpush2.bf16.msra.mxu1 %v2555_v49  ;;  %v2594_v49 = vld [vmem:[%s2833_s30 + $0x60] ss:$8 sps:$4 sm:$0xff]  }
  0x58   : > { %667 = vmatmul.mubr.bf16.gmra.mxu0 %v2494_v50  ;;  %v2595_v50 = vld [vmem:[%s2833_s30 + $0x74] ss:$8 sps:$4 sm:$0xff]  }
  0x59   : > { %1074 = vmatmul.mubr.bf16.gmra.mxu1 %v2495_v51  ;;  %2184 = vmatprep.mubr.msk.bf16.mxu0 %vm545_vm0, %v2497_v52  ;;  %v2597_v51 = vld [vmem:[%s2833_s30 + $0x70] ss:$8 sps:$4 sm:$0xff]   ;;  %v2598_v52 = vld [vmem:[%s2833_s30 + $0x84] ss:$8 sps:$4 sm:$0xff]  }
  0x5a   : > { %2241 = vmatprep.mubr.msk.bf16.mxu1 %vm545_vm0, %v2499_v53  ;;  %v2600_v53 = vld [vmem:[%s2833_s30 + $0x80] ss:$8 sps:$4 sm:$0xff]  }
  0x60   : > { %675 = vmatmul.mubr.bf16.gmra.mxu0 %v2501_v54  ;;  %v2601_v54 = vld [vmem:[%s2833_s30 + $0x94] ss:$8 sps:$4 sm:$0xff]  }
  0x61   : > { %1082 = vmatmul.mubr.bf16.gmra.mxu1 %v2502_v55  ;;  %2185 = vmatprep.mubr.msk.bf16.mxu0 %vm545_vm0, %v2503_v56 }
  0x62   : > { %2242 = vmatprep.mubr.msk.bf16.mxu1 %vm545_vm0, %v2505_v57 }
  0x68   : > { %683 = vmatmul.mubr.bf16.gmra.mxu0 %v2507_v58 }
  0x69   : > { %1090 = vmatmul.mubr.bf16.gmra.mxu1 %v2508_v59  ;;  %2186 = vmatprep.mubr.msk.bf16.mxu0 %vm545_vm0, %v2510_v60 }
  0x6a   : > { %2243 = vmatprep.mubr.msk.bf16.mxu1 %vm545_vm0, %v2512_v61  ;;  %v2603_v61 = vld [vmem:[%s2833_s30 + $0x90] ss:$8 sps:$4 sm:$0xff]  }
  0x70   : > { %691 = vmatmul.mubr.bf16.gmra.mxu0 %v2514_v62 }
  0x71   : > { %1098 = vmatmul.mubr.bf16.gmra.mxu1 %v2515_v63  ;;  %2187 = vmatprep.mubr.msk.bf16.mxu0 %vm545_vm0, %v2516_v0  ;;  %v2604_v63 = vld [vmem:[%s2833_s30 + $0xa4] ss:$8 sps:$4 sm:$0xff]  }
  0x72   : > { %2244 = vmatprep.mubr.msk.bf16.mxu1 %vm545_vm0, %v2518_v1 }
  0x78   : > { %699 = vmatmul.mubr.bf16.gmra.mxu0 %v2520_v2 }
  0x79   : > { %1106 = vmatmul.mubr.bf16.gmra.mxu1 %v2521_v3  ;;  %2188 = vmatprep.mubr.msk.bf16.mxu0 %vm545_vm0, %v2523_v4 }
  0x7a   : > { %2245 = vmatprep.mubr.msk.bf16.mxu1 %vm545_vm0, %v2525_v5 }
  0x80   : > { %707 = vmatmul.mubr.bf16.gmra.mxu0 %v2527_v6 }
  0x81   : > { %1114 = vmatmul.mubr.bf16.gmra.mxu1 %v2528_v7  ;;  %2189 = vmatprep.mubr.msk.bf16.mxu0 %vm545_vm0, %v2529_v8  ;;  %v2610_v7 = vld [vmem:[%s3261_s4 + $0x10] sm:$0xff]  }
  0x82   : > { %2246 = vmatprep.mubr.msk.bf16.mxu1 %vm545_vm0, %v2531_v9  ;;  %2374 = vmatprep.subr.bf16.mxu1 %v2610_v7 }
  0x88   : > { %715 = vmatmul.mubr.bf16.gmra.mxu0 %v2534_v10  ;;  %v2606_v10 = vld [vmem:[%s2833_s30 + $0xa0] ss:$8 sps:$4 sm:$0xff]  }
  0x89   : > { %1122 = vmatmul.mubr.bf16.gmra.mxu1 %v2535_v11  ;;  %2190 = vmatprep.mubr.msk.bf16.mxu0 %vm545_vm0, %v2536_v12  ;;  %v2607_v12 = vld [vmem:[%s2833_s30 + $0xb4] ss:$8 sps:$4 sm:$0xff]  }
  0x8a   : > { %2247 = vmatprep.mubr.msk.bf16.mxu1 %vm545_vm0, %v2538_v13 }
  0x90   : > { %723 = vmatmul.mubr.bf16.gmra.mxu0 %v2540_v14 }
  0x91   : > { %1130 = vmatmul.mubr.bf16.gmra.mxu1 %v2541_v15  ;;  %2191 = vmatprep.mubr.msk.bf16.mxu0 %vm545_vm0, %v2543_v16  ;;  %v2611_v15 = vld [vmem:[%s3261_s4 + $0x8] sm:$0xff]  }
  0x92   : > { %2248 = vmatprep.mubr.msk.bf16.mxu1 %vm545_vm0, %v2545_v17 }
  0x98   : > { %731 = vmatmul.mubr.bf16.gmra.mxu0 %v2547_v18 }
  0x99   : > { %1138 = vmatmul.mubr.bf16.gmra.mxu1 %v2548_v19  ;;  %2192 = vmatprep.mubr.msk.bf16.mxu0 %vm545_vm0, %v2549_v20 }
  0x9a   : > { %2249 = vmatprep.mubr.msk.bf16.mxu1 %vm545_vm0, %v2551_v21  ;;  %v2612_v21 = vld [vmem:[%s3261_s4] sm:$0xff]  }
  0xa0   : > { %739 = vmatmul.mubr.bf16.gmra.mxu0 %v2553_v22 }
  0xa1   : > { %1146 = vmatmul.mubr.bf16.gmra.mxu1 %v2554_v23  ;;  %2193 = vmatprep.mubr.msk.bf16.mxu0 %vm545_vm0, %v2556_v24  ;;  %v2609_v24 = vld [vmem:[%s2833_s30 + $0xb0] ss:$8 sps:$4 sm:$0xff]  }
  0xa2   : > { %2250 = vmatprep.mubr.msk.bf16.mxu1 %vm545_vm0, %v2558_v25 }
  0xa8   : > { %747 = vmatmul.mubr.bf16.gmra.mxu0 %v2560_v26 }
  0xa9   : > { %1154 = vmatmul.mubr.bf16.gmra.mxu1 %v2561_v27  ;;  %2312 = vmatprep.mubr.msk.bf16.mxu0 %vm545_vm0, %v2564_v28 }
  0xaa   : > { %2324 = vmatprep.mubr.msk.bf16.mxu1 %vm545_vm0, %v2567_v29 }
  0xb0   : > { %1498 = vmatmul.mubr.bf16.vlgmr.msra.gmra.mxu0 %v2562_v30 }
  0xb1   : > { %1594 = vmatmul.mubr.bf16.vlgmr.msra.gmra.mxu1 %v2565_v31  ;;  %2313 = vmatprep.mubr.msk.bf16.mxu0 %vm545_vm0, %v2568_v32 }
  0xb2   : > { %2325 = vmatprep.mubr.msk.bf16.mxu1 %vm545_vm0, %v2570_v33  ;;  %2375 = vmatpush3.bf16.msra.mxu1 %v2610_v7 }
  0xb3   : > { %2376 = vmatprep.subr.bf16.mxu1 %v2611_v15 }
  0xb6   : > { %2377 = vmatpush3.bf16.msra.mxu1 %v2611_v15 }
  0xb7   : > { %2378 = vmatprep.subr.bf16.mxu1 %v2612_v21 }
  0xb8   : > { %1506 = vmatmul.mubr.bf16.gmra.mxu0 %v2572_v34 }
  0xb9   : > { %1602 = vmatmul.mubr.bf16.gmra.mxu1 %v2573_v35  ;;  %2314 = vmatprep.mubr.msk.bf16.mxu0 %vm545_vm0, %v2574_v36 }
  0xba   : > { %2326 = vmatprep.mubr.msk.bf16.mxu1 %vm545_vm0, %v2576_v37  ;;  %2379 = vmatpush3.bf16.msra.mxu1 %v2612_v21 }
  0xc0   : > { %1514 = vmatmul.mubr.bf16.gmra.mxu0 %v2578_v38 }
  0xc1   : > { %1610 = vmatmul.mubr.bf16.gmra.mxu1 %v2579_v39  ;;  %2315 = vmatprep.mubr.msk.bf16.mxu0 %vm545_vm0, %v2580_v40 }
  0xc2   : > { %2327 = vmatprep.mubr.msk.bf16.mxu1 %vm545_vm0, %v2582_v41 }
  0xc8   : > { %1522 = vmatmul.mubr.bf16.gmra.mxu0 %v2584_v42 }
  0xc9   : > { %1618 = vmatmul.mubr.bf16.gmra.mxu1 %v2585_v43  ;;  %2316 = vmatprep.mubr.msk.bf16.mxu0 %vm545_vm0, %v2586_v44 }
  0xd0   : > { %1530 = vmatmul.mubr.bf16.gmra.mxu0 %v2588_v45 }
  0xd1   : > { %2317 = vmatprep.mubr.msk.bf16.mxu0 %vm545_vm0, %v2589_v46 }
  0xd8   : > { %1538 = vmatmul.mubr.bf16.gmra.mxu0 %v2591_v47 }
  0xd9   : > { %2318 = vmatprep.mubr.msk.bf16.mxu0 %vm545_vm0, %v2592_v48 }
  0xe0   : > { %1546 = vmatmul.mubr.bf16.gmra.mxu0 %v2594_v49 }
  0xe1   : > { %2319 = vmatprep.mubr.msk.bf16.mxu0 %vm545_vm0, %v2595_v50 }
  0xe8   : > { %1554 = vmatmul.mubr.bf16.gmra.mxu0 %v2597_v51 }
  0xe9   : > { %2320 = vmatprep.mubr.msk.bf16.mxu0 %vm545_vm0, %v2598_v52 }
  0xf0   : > { %v628_v55 = vpop.f32.mrf.mxu0  ;;  %1562 = vmatmul.mubr.bf16.gmra.mxu0 %v2600_v53  ;;  %v1035_v56 = vpop.f32.mrf.mxu1 }
  0xf1   : > { %2321 = vmatprep.mubr.msk.bf16.mxu0 %vm545_vm0, %v2601_v54  ;;  %v2941_v57 = vadd.f32 %v1035_v56, %v628_v55 }
  0xf2   : > { %v630_v58 = vpop.f32.mrf.mxu0  ;;  %v1037_v59 = vpop.f32.mrf.mxu1 }
  0xf4   : > { %v631_v60 = vpop.f32.mrf.mxu0  ;;  %v1038_v62 = vpop.f32.mrf.mxu1 }
  0xf5   : > { %v2945_v0 = vadd.f32 %v1038_v62, %v631_v60 }
  0xf6   : > { %v633_v1 = vpop.f32.mrf.mxu0  ;;  %v1040_v2 = vpop.f32.mrf.mxu1 }
  0xf8   : > { %v636_v3 = vpop.f32.mrf.mxu0  ;;  %1570 = vmatmul.mubr.bf16.gmra.mxu0 %v2603_v61 }
  0xf9   : > { %v1043_v4 = vpop.f32.mrf.mxu1  ;;  %2322 = vmatprep.mubr.msk.bf16.mxu0 %vm545_vm0, %v2604_v63 }
  0xfa   : > { %v2948_v5 = vadd.f32 %v1043_v4, %v636_v3  ;;  %v638_v6 = vpop.f32.mrf.mxu0 }
  0xfb   : > { %v1045_v8 = vpop.f32.mrf.mxu1 }
  0xfc   : > { %v639_v9 = vpop.f32.mrf.mxu0 }
  0xfd   : > { %v1046_v11 = vpop.f32.mrf.mxu1 }
  0xfe   : > { %v2955_v13 = vadd.f32 %v1046_v11, %v639_v9  ;;  %v641_v14 = vpop.f32.mrf.mxu0 }
  0xff   : > { %v1048_v16 = vpop.f32.mrf.mxu1 }
 0x100   : > { %v644_v17 = vpop.f32.mrf.mxu0  ;;  %1578 = vmatmul.mubr.bf16.gmra.mxu0 %v2606_v10 }
 0x101   : > { %v1051_v18 = vpop.f32.mrf.mxu1  ;;  %2323 = vmatprep.mubr.msk.bf16.mxu0 %vm545_vm0, %v2607_v12 }
 0x102   : > { %v2961_v19 = vadd.f32 %v1051_v18, %v644_v17  ;;  %v646_v20 = vpop.f32.mrf.mxu0 }
 0x103   : > { %v1053_v22 = vpop.f32.mrf.mxu1 }
 0x104   : > { %v647_v23 = vpop.f32.mrf.mxu0 }
 0x105   : > { %v1054_v25 = vpop.f32.mrf.mxu1 }
 0x106   : > { %v2967_v26 = vadd.f32 %v1054_v25, %v647_v23  ;;  %v649_v27 = vpop.f32.mrf.mxu0 }
 0x107   : > { %v1056_v28 = vpop.f32.mrf.mxu1 }
 0x108   : > { %v652_v29 = vpop.f32.mrf.mxu0  ;;  %1586 = vmatmul.mubr.bf16.gmra.mxu0 %v2609_v24 }
 0x109   : > { %v1059_v30 = vpop.f32.mrf.mxu1 }
 0x10a   : > { %v2969_v31 = vadd.f32 %v1059_v30, %v652_v29  ;;  %v654_v32 = vpop.f32.mrf.mxu0 }
 0x10b   : > { %v1061_v33 = vpop.f32.mrf.mxu1 }
 0x10c   : > { %v655_v34 = vpop.f32.mrf.mxu0 }
 0x10d   : > { %v1062_v35 = vpop.f32.mrf.mxu1 }
 0x10e   : > { %v2971_v36 = vadd.f32 %v1062_v35, %v655_v34  ;;  %v657_v37 = vpop.f32.mrf.mxu0 }
 0x10f   : > { %v1064_v38 = vpop.f32.mrf.mxu1 }
 0x110   : > { %v660_v39 = vpop.f32.mrf.mxu0 }
 0x111   : > { %v1067_v40 = vpop.f32.mrf.mxu1 }
 0x112   : > { %v2973_v41 = vadd.f32 %v1067_v40, %v660_v39  ;;  %v662_v42 = vpop.f32.mrf.mxu0 }
 0x113   : > { %v1069_v43 = vpop.f32.mrf.mxu1 }
 0x114   : > { %v663_v44 = vpop.f32.mrf.mxu0 }
 0x115   : > { %v1070_v45 = vpop.f32.mrf.mxu1 }
 0x116   : > { %v2975_v46 = vadd.f32 %v1070_v45, %v663_v44  ;;  %v665_v47 = vpop.f32.mrf.mxu0 }
 0x117   : > { %v1072_v48 = vpop.f32.mrf.mxu1 }
 0x118   : > { %v668_v49 = vpop.f32.mrf.mxu0 }
 0x119   : > { %v1075_v50 = vpop.f32.mrf.mxu1 }
 0x11a   : > { %v2977_v51 = vadd.f32 %v1075_v50, %v668_v49  ;;  %v670_v52 = vpop.f32.mrf.mxu0 }
 0x11b   : > { %v1077_v53 = vpop.f32.mrf.mxu1 }
 0x11c   : > { %v671_v54 = vpop.f32.mrf.mxu0 }
 0x11d   : > { %v1078_v55 = vpop.f32.mrf.mxu1 }
 0x11e   : > { %v2979_v56 = vadd.f32 %v1078_v55, %v671_v54  ;;  %v673_v58 = vpop.f32.mrf.mxu0 }
 0x11f   : > { %v1080_v59 = vpop.f32.mrf.mxu1 }
 0x120   : > { %v676_v60 = vpop.f32.mrf.mxu0 }
 0x121   : > { %v1083_v61 = vpop.f32.mrf.mxu1 }
 0x122   : > { %v2981_v62 = vadd.f32 %v1083_v61, %v676_v60  ;;  %v678_v63 = vpop.f32.mrf.mxu0 }
 0x123   : > { %v1085_v1 = vpop.f32.mrf.mxu1 }
 0x124   : > { %v679_v2 = vpop.f32.mrf.mxu0 }
 0x125   : > { %v1086_v3 = vpop.f32.mrf.mxu1 }
 0x126   : > { %v2983_v4 = vadd.f32 %v1086_v3, %v679_v2  ;;  %v681_v6 = vpop.f32.mrf.mxu0 }
 0x127   : > { %v1088_v7 = vpop.f32.mrf.mxu1 }
 0x128   : > { %v684_v8 = vpop.f32.mrf.mxu0 }
 0x129   : > { %v1091_v9 = vpop.f32.mrf.mxu1 }
 0x12a   : > { %v2985_v10 = vadd.f32 %v1091_v9, %v684_v8  ;;  %v686_v11 = vpop.f32.mrf.mxu0 }
 0x12b   : > { %v1093_v12 = vpop.f32.mrf.mxu1 }
 0x12c   : > { %v687_v14 = vpop.f32.mrf.mxu0 }
 0x12d   : > { %v1094_v15 = vpop.f32.mrf.mxu1 }
 0x12e   : > { %v2987_v16 = vadd.f32 %v1094_v15, %v687_v14  ;;  %v689_v17 = vpop.f32.mrf.mxu0 }
 0x12f   : > { %v1096_v18 = vpop.f32.mrf.mxu1 }
 0x130   : > { %v692_v20 = vpop.f32.mrf.mxu0 }
 0x131   : > { %v1099_v21 = vpop.f32.mrf.mxu1 }
 0x132   : > { %v2989_v22 = vadd.f32 %v1099_v21, %v692_v20  ;;  %v694_v23 = vpop.f32.mrf.mxu0 }
 0x133   : > { %v1101_v24 = vpop.f32.mrf.mxu1 }
 0x134   : > { %v695_v25 = vpop.f32.mrf.mxu0 }
 0x135   : > { %v1102_v27 = vpop.f32.mrf.mxu1 }
 0x136   : > { %v2991_v28 = vadd.f32 %v1102_v27, %v695_v25  ;;  %v697_v29 = vpop.f32.mrf.mxu0 }
 0x137   : > { %v1104_v30 = vpop.f32.mrf.mxu1 }
 0x138   : > { %v700_v32 = vpop.f32.mrf.mxu0 }
 0x139   : > { %v1107_v33 = vpop.f32.mrf.mxu1 }
 0x13a   : > { %v2993_v34 = vadd.f32 %v1107_v33, %v700_v32  ;;  %v702_v35 = vpop.f32.mrf.mxu0 }
 0x13b   : > { %v1109_v37 = vpop.f32.mrf.mxu1 }
 0x13c   : > { %v703_v38 = vpop.f32.mrf.mxu0 }
 0x13d   : > { %v1110_v39 = vpop.f32.mrf.mxu1 }
 0x13e   : > { %v2995_v40 = vadd.f32 %v1110_v39, %v703_v38  ;;  %v705_v42 = vpop.f32.mrf.mxu0 }
 0x13f   : > { %v1112_v43 = vpop.f32.mrf.mxu1 }
 0x140   : > { %v708_v44 = vpop.f32.mrf.mxu0 }
 0x141   : > { %v1115_v45 = vpop.f32.mrf.mxu1 }
 0x142   : > { %v2997_v47 = vadd.f32 %v1115_v45, %v708_v44  ;;  %v710_v48 = vpop.f32.mrf.mxu0 }
 0x143   : > { %v1117_v49 = vpop.f32.mrf.mxu1 }
 0x144   : > { %v711_v50 = vpop.f32.mrf.mxu0 }
 0x145   : > { %v1118_v52 = vpop.f32.mrf.mxu1 }
 0x146   : > { %v2999_v53 = vadd.f32 %v1118_v52, %v711_v50  ;;  %v713_v54 = vpop.f32.mrf.mxu0 }
 0x147   : > { %v1120_v55 = vpop.f32.mrf.mxu1 }
 0x148   : > { %v716_v58 = vpop.f32.mrf.mxu0 }
 0x149   : > { %v1123_v59 = vpop.f32.mrf.mxu1 }
 0x14a   : > { %v3001_v60 = vadd.f32 %v1123_v59, %v716_v58  ;;  %v718_v61 = vpop.f32.mrf.mxu0 }
 0x14b   : > { %v1125_v63 = vpop.f32.mrf.mxu1 }
 0x14c   : > { %v719_v1 = vpop.f32.mrf.mxu0 }
 0x14d   : > { %v1126_v2 = vpop.f32.mrf.mxu1 }
 0x14e   : > { %v3003_v3 = vadd.f32 %v1126_v2, %v719_v1  ;;  %v721_v6 = vpop.f32.mrf.mxu0 }
 0x14f   : > { %v1128_v7 = vpop.f32.mrf.mxu1 }
 0x150   : > { %v724_v8 = vpop.f32.mrf.mxu0 }
 0x151   : > { %v1131_v9 = vpop.f32.mrf.mxu1 }
 0x152   : > { %v1132_v11 = vadd.f32 %v1131_v9, %v724_v8  ;;  %v726_v12 = vpop.f32.mrf.mxu0  ;;  %v3018_v9 = vld [vmem:[%s3259_s2] ss:$0 sm:$0xff] }
 0x153   : > { %v1133_v14 = vpop.f32.mrf.mxu1 }
 0x154   : > { %v727_v15 = vpop.f32.mrf.mxu0 }
 0x155   : > { %v1134_v17 = vpop.f32.mrf.mxu1 }
 0x156   : > { %v1135_v18 = vadd.f32 %v1134_v17, %v727_v15  ;;  %v729_v20 = vpop.f32.mrf.mxu0 }
 0x157   : > { %v1136_v21 = vpop.f32.mrf.mxu1 }
 0x158   : > { %v732_v23 = vpop.f32.mrf.mxu0 }
 0x159   : > { %v1139_v24 = vpop.f32.mrf.mxu1 }
 0x15a   : > { %v1140_v25 = vadd.f32 %v1139_v24, %v732_v23  ;;  %v734_v27 = vpop.f32.mrf.mxu0  ;;  %v3025_v23 = vld [vmem:[%s3260_s3] ss:$0 sm:$0xff] }
 0x15b   : > { %v1141_v29 = vpop.f32.mrf.mxu1 }
 0x15c   : > { %v735_v30 = vpop.f32.mrf.mxu0 }
 0x15d   : > { %v1142_v32 = vpop.f32.mrf.mxu1 }
 0x15e   : > { %v3005_v33 = vadd.f32 %v1142_v32, %v735_v30  ;;  %v737_v35 = vpop.f32.mrf.mxu0 }
 0x15f   : > { %v1144_v37 = vpop.f32.mrf.mxu1 }
 0x160   : > { %v740_v38 = vpop.f32.mrf.mxu0 }
 0x161   : > { %v1147_v39 = vpop.f32.mrf.mxu1 }
 0x162   : > { %v3007_v42 = vadd.f32 %v1147_v39, %v740_v38  ;;  %v742_v43 = vpop.f32.mrf.mxu0 }
 0x163   : > { %v1149_v44 = vpop.f32.mrf.mxu1 }
 0x164   : > { %v743_v45 = vpop.f32.mrf.mxu0 }
 0x165   : > { %v1150_v48 = vpop.f32.mrf.mxu1 }
 0x166   : > { %v3009_v49 = vadd.f32 %v1150_v48, %v743_v45  ;;  %v745_v50 = vpop.f32.mrf.mxu0 }
 0x167   : > { %v1152_v52 = vpop.f32.mrf.mxu1 }
 0x168   : > { %v748_v54 = vpop.f32.mrf.mxu0 }
 0x169   : > { %v1155_v55 = vpop.f32.mrf.mxu1 }
 0x16a   : > { %v3011_v58 = vadd.f32 %v1155_v55, %v748_v54  ;;  %v750_v59 = vpop.f32.mrf.mxu0 }
 0x16b   : > { %v1157_v61 = vpop.f32.mrf.mxu1 }
 0x16c   : > { %v751_v63 = vpop.f32.mrf.mxu0 }
 0x16d   : > { %v1158_v1 = vpop.f32.mrf.mxu1 }
 0x16e   : > { %v3013_v2 = vadd.f32 %v1158_v1, %v751_v63  ;;  %v753_v6 = vpop.f32.mrf.mxu0 }
 0x16f   : > { %v1160_v7 = vpop.f32.mrf.mxu1 }
 0x170   : > { %v1499_v8 = vpop.f32.mrf.mxu0 }
 0x171   : > { %v1626_v12 = vadd.f32 %v1499_v8, %v2941_v57  ;;  %v1595_v14 = vpop.f32.mrf.mxu1 }
 0x172   : > { %v1650_v15 = vadd.f32 %v1595_v14, %v1132_v11  ;;  %v1501_v17 = vpop.f32.mrf.mxu0 }
 0x173   : > { %v1665_v20 = vmul.f32 %v3018_v9, %v1626_v12  ;;  %v1597_v21 = vpop.f32.mrf.mxu1 }
 0x174   : > { %v1689_v24 = vmul.f32 %v3018_v9, %v1650_v15  ;;  %v1502_v27 = vpop.f32.mrf.mxu0 }
 0x175   : > { %v1627_v29 = vadd.f32 %v1502_v27, %v2945_v0  ;;  %v1598_v30 = vpop.f32.mrf.mxu1  ;;  %v1704_v57 = vadd.f32 %v3025_v23, %v1665_v20 }
 0x176   : > { %v1651_v32 = vadd.f32 %v1598_v30, %v1135_v18  ;;  %v1504_v35 = vpop.f32.mrf.mxu0  ;;  %v1728_v38 = vadd.f32 %v3025_v23, %v1689_v24 }
 0x177   : > { %v1666_v11 = vmul.f32 %v3018_v9, %v1627_v29  ;;  %v1600_v37 = vpop.f32.mrf.mxu1  ;;  %v1736_v52 = vmax.f32 %v1704_v57, 0.0 }
 0x178   : > { %v1690_v39 = vmul.f32 %v3018_v9, %v1651_v32  ;;  %v1507_v43 = vpop.f32.mrf.mxu0  ;;  %v1760_v61 = vmax.f32 %v1728_v38, 0.0 }
 0x179   : > { %v1705_v44 = vadd.f32 %v3025_v23, %v1666_v11  ;;  %v1628_v45 = vadd.f32 %v1507_v43, %v2948_v5  ;;  %v1603_v48 = vpop.f32.mrf.mxu1 }
 0x17a   : > { %v1729_v0 = vadd.f32 %v3025_v23, %v1690_v39  ;;  %v1652_v50 = vadd.f32 %v1603_v48, %v1140_v25  ;;  %v1509_v18 = vpop.f32.mrf.mxu0 }
 0x17b   : > { %v1737_v54 = vmax.f32 %v1705_v44, 0.0  ;;  %v1667_v55 = vmul.f32 %v3018_v9, %v1628_v45  ;;  %v1605_v59 = vpop.f32.mrf.mxu1 }
 0x17c   : > { %v1761_v63 = vmax.f32 %v1729_v0, 0.0  ;;  %v1691_v1 = vmul.f32 %v3018_v9, %v1652_v50  ;;  %v1510_v6 = vpop.f32.mrf.mxu0 }
 0x17d   : > { %v1768_v7 = vpack.c.bf16 %v1737_v54, %v1736_v52  ;;  %v1629_v8 = vadd.f32 %v1510_v6, %v2955_v13  ;;  %v1606_v5 = vpop.f32.mrf.mxu1  ;;  %v1706_v15 = vadd.f32 %v3025_v23, %v1667_v55 }
 0x17e   : > { %v3039_v12 = vpack.c.bf16 %v1761_v63, %v1760_v61  ;;  %v1653_v25 = vadd.f32 %v1606_v5, %v3005_v33  ;;  %v1512_v14 = vpop.f32.mrf.mxu0  ;;  %v1730_v21 = vadd.f32 %v3025_v23, %v1691_v1 }
 0x17f   : > { %v1668_v17 = vmul.f32 %v3018_v9, %v1629_v8  ;;  %v1608_v20 = vpop.f32.mrf.mxu1  ;;  %2380 = vmatprep.mubr.msk.bf16.mxu1 %vm1815_vm1, %v1768_v7  ;;  %v1738_v57 = vmax.f32 %v1706_v15, 0.0 }
 0x180   : > { %v1692_v24 = vmul.f32 %v3018_v9, %v1653_v25  ;;  %v1515_v27 = vpop.f32.mrf.mxu0  ;;  %v1762_v39 = vmax.f32 %v1730_v21, 0.0 }
 0x181   : > { %v1707_v13 = vadd.f32 %v3025_v23, %v1668_v17  ;;  %v1630_v29 = vadd.f32 %v1515_v27, %v2961_v19  ;;  %v1611_v30 = vpop.f32.mrf.mxu1 }
 0x182   : > { %v1731_v33 = vadd.f32 %v3025_v23, %v1692_v24  ;;  %v1654_v32 = vadd.f32 %v1611_v30, %v3007_v42  ;;  %v1517_v35 = vpop.f32.mrf.mxu0 }
 0x183   : > { %v1739_v11 = vmax.f32 %v1707_v13, 0.0  ;;  %v1669_v37 = vmul.f32 %v3018_v9, %v1630_v29  ;;  %v1613_v38 = vpop.f32.mrf.mxu1 }
 0x184   : > { %v1763_v43 = vmax.f32 %v1731_v33, 0.0  ;;  %v1693_v44 = vmul.f32 %v3018_v9, %v1654_v32  ;;  %v1518_v45 = vpop.f32.mrf.mxu0 }
 0x185   : > { %v1769_v48 = vpack.c.bf16 %v1739_v11, %v1738_v57  ;;  %v1631_v0 = vadd.f32 %v1518_v45, %v2967_v26  ;;  %v1614_v19 = vpop.f32.mrf.mxu1  ;;  %v1708_v52 = vadd.f32 %v3025_v23, %v1669_v37 }
 0x186   : > { %v3054_v50 = vpack.c.bf16 %v1763_v43, %v1762_v39  ;;  %v1655_v18 = vadd.f32 %v1614_v19, %v3009_v49  ;;  %v1520_v42 = vpop.f32.mrf.mxu0  ;;  %v1732_v59 = vadd.f32 %v3025_v23, %v1693_v44 }
 0x187   : > { %v1670_v54 = vmul.f32 %v3018_v9, %v1631_v0  ;;  %v1616_v55 = vpop.f32.mrf.mxu1  ;;  %2381 = vmatmul.mubr.msk.bf16.vlgmr.msra.gmra.mxu1 %vm1815_vm1, %v1769_v48  ;;  %v1740_v5 = vmax.f32 %v1708_v52, 0.0 }
 0x188   : > { %v1694_v61 = vmul.f32 %v3018_v9, %v1655_v18  ;;  %v1523_v63 = vpop.f32.mrf.mxu0  ;;  %v1764_v17 = vmax.f32 %v1732_v59, 0.0 }
 0x189   : > { %v1709_v26 = vadd.f32 %v3025_v23, %v1670_v54  ;;  %v1632_v1 = vadd.f32 %v1523_v63, %v2969_v31  ;;  %v1619_v6 = vpop.f32.mrf.mxu1 }
 0x18a   : > { %v1733_v49 = vadd.f32 %v3025_v23, %v1694_v61  ;;  %v1656_v7 = vadd.f32 %v1619_v6, %v3011_v58  ;;  %v1525_v8 = vpop.f32.mrf.mxu0 }
 0x18b   : > { %v1741_v25 = vmax.f32 %v1709_v26, 0.0  ;;  %v1671_v14 = vmul.f32 %v3018_v9, %v1632_v1  ;;  %v1621_v15 = vpop.f32.mrf.mxu1 }
 0x18c   : > { %v1765_v20 = vmax.f32 %v1733_v49, 0.0  ;;  %v1695_v21 = vmul.f32 %v3018_v9, %v1656_v7  ;;  %v1526_v24 = vpop.f32.mrf.mxu0 }
 0x18d   : > { %v1770_v27 = vpack.c.bf16 %v1741_v25, %v1740_v5  ;;  %v1633_v13 = vadd.f32 %v1526_v24, %v2971_v36  ;;  %v1622_v31 = vpop.f32.mrf.mxu1  ;;  %v1710_v33 = vadd.f32 %v3025_v23, %v1671_v14 }
 0x18e   : > { %v3069_v29 = vpack.c.bf16 %v1765_v20, %v1764_v17  ;;  %v1657_v30 = vadd.f32 %v1622_v31, %v3013_v2  ;;  %v1528_v58 = vpop.f32.mrf.mxu0  ;;  %v1734_v57 = vadd.f32 %v3025_v23, %v1695_v21 }
 0x18f   : > { %v1672_v32 = vmul.f32 %v3018_v9, %v1633_v13  ;;  %2384 = vmatprep.mubr.msk.bf16.mxu1 %vm1815_vm1, %v1770_v27  ;;  %v1624_v35 = vpop.f32.mrf.mxu1  ;;  %v1742_v43 = vmax.f32 %v1710_v33, 0.0 }
 0x190   : > { %v1696_v11 = vmul.f32 %v3018_v9, %v1657_v30  ;;  %v1531_v37 = vpop.f32.mrf.mxu0  ;;  %v1766_v48 = vmax.f32 %v1734_v57, 0.0 }
 0x191   : > { %v1711_v36 = vadd.f32 %v3025_v23, %v1672_v32  ;;  %v1634_v38 = vadd.f32 %v1531_v37, %v2973_v41 }
 0x192   : > { %v1735_v39 = vadd.f32 %v3025_v23, %v1696_v11  ;;  %v1533_v2 = vpop.f32.mrf.mxu0 }
 0x193   : > { %v1743_v44 = vmax.f32 %v1711_v36, 0.0  ;;  %v1673_v45 = vmul.f32 %v3018_v9, %v1634_v38 }
 0x194   : > { %v1767_v0 = vmax.f32 %v1735_v39, 0.0  ;;  %v1534_v19 = vpop.f32.mrf.mxu0 }
 0x195   : > { %v1771_v18 = vpack.c.bf16 %v1743_v44, %v1742_v43  ;;  %v1635_v42 = vadd.f32 %v1534_v19, %v2975_v46  ;;  %v1712_v55 = vadd.f32 %v3025_v23, %v1673_v45 }
 0x196   : > { %v3082_v52 = vpack.c.bf16 %v1767_v0, %v1766_v48  ;;  %v1536_v54 = vpop.f32.mrf.mxu0 }
 0x197   : > { %v1674_v41 = vmul.f32 %v3018_v9, %v1635_v42  ;;  %2385 = vmatmul.mubr.msk.bf16.gmra.mxu1 %vm1815_vm1, %v1771_v18  ;;  %v1744_v1 = vmax.f32 %v1712_v55, 0.0 }
 0x198   : > { %v1539_v59 = vpop.f32.mrf.mxu0 }
 0x199   : > { %v1713_v61 = vadd.f32 %v3025_v23, %v1674_v41  ;;  %v1636_v63 = vadd.f32 %v1539_v59, %v2977_v51 }
 0x19a   : > { %v1541_v26 = vpop.f32.mrf.mxu0 }
 0x19b   : > { %v1745_v6 = vmax.f32 %v1713_v61, 0.0  ;;  %v1675_v49 = vmul.f32 %v3018_v9, %v1636_v63 }
 0x19c   : > { %v1542_v46 = vpop.f32.mrf.mxu0 }
 0x19d   : > { %v1772_v7 = vpack.c.bf16 %v1745_v6, %v1744_v1  ;;  %v1637_v8 = vadd.f32 %v1542_v46, %v2979_v56  ;;  %v1714_v25 = vadd.f32 %v3025_v23, %v1675_v49 }
 0x19e   : > { %v1544_v5 = vpop.f32.mrf.mxu0 }
 0x19f   : > { %v1676_v14 = vmul.f32 %v3018_v9, %v1637_v8  ;;  %2388 = vmatprep.mubr.msk.bf16.mxu1 %vm1815_vm1, %v1772_v7  ;;  %v1746_v21 = vmax.f32 %v1714_v25, 0.0 }
 0x1a0   : > { %v1547_v15 = vpop.f32.mrf.mxu0 }
 0x1a1   : > { %v1715_v17 = vadd.f32 %v3025_v23, %v1676_v14  ;;  %v1638_v51 = vadd.f32 %v1547_v15, %v2981_v62 }
 0x1a2   : > { %v1549_v20 = vpop.f32.mrf.mxu0 }
 0x1a3   : > { %v1747_v24 = vmax.f32 %v1715_v17, 0.0  ;;  %v1677_v27 = vmul.f32 %v3018_v9, %v1638_v51 }
 0x1a4   : > { %v1550_v13 = vpop.f32.mrf.mxu0 }
 0x1a5   : > { %v1773_v31 = vpack.c.bf16 %v1747_v24, %v1746_v21  ;;  %v1639_v56 = vadd.f32 %v1550_v13, %v2983_v4  ;;  %v1716_v58 = vadd.f32 %v3025_v23, %v1677_v27 }
 0x1a6   : > { %v1552_v30 = vpop.f32.mrf.mxu0 }
 0x1a7   : > { %v1678_v33 = vmul.f32 %v3018_v9, %v1639_v56  ;;  %2389 = vmatmul.mubr.msk.bf16.gmra.mxu1 %vm1815_vm1, %v1773_v31  ;;  %v1748_v11 = vmax.f32 %v1716_v58, 0.0 }
 0x1a8   : > { %v1555_v32 = vpop.f32.mrf.mxu0 }
 0x1a9   : > { %v1717_v35 = vadd.f32 %v3025_v23, %v1678_v33  ;;  %v1640_v62 = vadd.f32 %v1555_v32, %v2985_v10 }
 0x1aa   : > { %v1557_v57 = vpop.f32.mrf.mxu0 }
 0x1ab   : > { %v1749_v37 = vmax.f32 %v1717_v35, 0.0  ;;  %v1679_v36 = vmul.f32 %v3018_v9, %v1640_v62 }
 0x1ac   : > { %v1558_v38 = vpop.f32.mrf.mxu0 }
 0x1ad   : > { %v1774_v39 = vpack.c.bf16 %v1749_v37, %v1748_v11  ;;  %v1641_v4 = vadd.f32 %v1558_v38, %v2987_v16  ;;  %v1718_v43 = vadd.f32 %v3025_v23, %v1679_v36 }
 0x1ae   : > { %v1560_v2 = vpop.f32.mrf.mxu0 }
 0x1af   : > { %v1680_v44 = vmul.f32 %v3018_v9, %v1641_v4  ;;  %2392 = vmatprep.mubr.msk.bf16.mxu1 %vm1815_vm1, %v1774_v39  ;;  %v1750_v19 = vmax.f32 %v1718_v43, 0.0 }
 0x1b0   : > { %v1563_v45 = vpop.f32.mrf.mxu0 }
 0x1b1   : > { %v1719_v48 = vadd.f32 %v3025_v23, %v1680_v44  ;;  %v1642_v10 = vadd.f32 %v1563_v45, %v2989_v22 }
 0x1b2   : > { %v1565_v0 = vpop.f32.mrf.mxu0 }
 0x1b3   : > { %v1751_v18 = vmax.f32 %v1719_v48, 0.0  ;;  %v1681_v42 = vmul.f32 %v3018_v9, %v1642_v10 }
 0x1b4   : > { %v1566_v54 = vpop.f32.mrf.mxu0 }
 0x1b5   : > { %v1775_v55 = vpack.c.bf16 %v1751_v18, %v1750_v19  ;;  %v1643_v16 = vadd.f32 %v1566_v54, %v2991_v28  ;;  %v1720_v59 = vadd.f32 %v3025_v23, %v1681_v42 }
 0x1b6   : > { %v1568_v41 = vpop.f32.mrf.mxu0 }
 0x1b7   : > { %v1682_v61 = vmul.f32 %v3018_v9, %v1643_v16  ;;  %2393 = vmatmul.mubr.msk.bf16.gmra.mxu1 %vm1815_vm1, %v1775_v55  ;;  %v1752_v6 = vmax.f32 %v1720_v59, 0.0 }
 0x1b8   : > { %v1571_v63 = vpop.f32.mrf.mxu0 }
 0x1b9   : > { %v1721_v26 = vadd.f32 %v3025_v23, %v1682_v61  ;;  %v1644_v22 = vadd.f32 %v1571_v63, %v2993_v34 }
 0x1ba   : > { %v1573_v1 = vpop.f32.mrf.mxu0 }
 0x1bb   : > { %v1753_v49 = vmax.f32 %v1721_v26, 0.0  ;;  %v1683_v46 = vmul.f32 %v3018_v9, %v1644_v22 }
 0x1bc   : > { %v1574_v7 = vpop.f32.mrf.mxu0 }
 0x1bd   : > { %v1776_v8 = vpack.c.bf16 %v1753_v49, %v1752_v6  ;;  %v1645_v28 = vadd.f32 %v1574_v7, %v2995_v40  ;;  %v1722_v25 = vadd.f32 %v3025_v23, %v1683_v46 }
 0x1be   : > { %v1576_v5 = vpop.f32.mrf.mxu0 }
 0x1bf   : > { %v1684_v14 = vmul.f32 %v3018_v9, %v1645_v28  ;;  %2396 = vmatprep.mubr.msk.bf16.mxu1 %vm1815_vm1, %v1776_v8  ;;  %v1754_v20 = vmax.f32 %v1722_v25, 0.0 }
 0x1c0   : > { %v1579_v15 = vpop.f32.mrf.mxu0 }
 0x1c1   : > { %v1723_v17 = vadd.f32 %v3025_v23, %v1684_v14  ;;  %v1646_v34 = vadd.f32 %v1579_v15, %v2997_v47 }
 0x1c2   : > { %v1581_v51 = vpop.f32.mrf.mxu0 }
 0x1c3   : > { %v1755_v21 = vmax.f32 %v1723_v17, 0.0  ;;  %v1685_v24 = vmul.f32 %v3018_v9, %v1646_v34 }
 0x1c4   : > { %v1582_v27 = vpop.f32.mrf.mxu0 }
 0x1c5   : > { %v1777_v13 = vpack.c.bf16 %v1755_v21, %v1754_v20  ;;  %v1647_v40 = vadd.f32 %v1582_v27, %v2999_v53  ;;  %v1724_v56 = vadd.f32 %v3025_v23, %v1685_v24 }
 0x1c6   : > { %v1584_v31 = vpop.f32.mrf.mxu0 }
 0x1c7   : > { %v1686_v30 = vmul.f32 %v3018_v9, %v1647_v40  ;;  %2397 = vmatmul.mubr.msk.bf16.gmra.mxu1 %vm1815_vm1, %v1777_v13  ;;  %v1756_v35 = vmax.f32 %v1724_v56, 0.0 }
 0x1c8   : > { %v1587_v58 = vpop.f32.mrf.mxu0 }
 0x1c9   : > { %v1725_v33 = vadd.f32 %v3025_v23, %v1686_v30  ;;  %v1648_v47 = vadd.f32 %v1587_v58, %v3001_v60 }
 0x1ca   : > { %v1589_v32 = vpop.f32.mrf.mxu0 }
 0x1cb   : > { %v1757_v62 = vmax.f32 %v1725_v33, 0.0  ;;  %v1687_v57 = vmul.f32 %v3018_v9, %v1648_v47 }
 0x1cc   : > { %v1590_v11 = vpop.f32.mrf.mxu0 }
 0x1cd   : > { %v1778_v53 = vpack.c.bf16 %v1757_v62, %v1756_v35  ;;  %v1649_v37 = vadd.f32 %v1590_v11, %v3003_v3  ;;  %v1726_v38 = vadd.f32 %v3025_v23, %v1687_v57  ;;  %v3151_v3 = vld [vmem:[%s3262_s5] ss:$0 sm:$0xff] }
 0x1ce   : > { %v1592_v36 = vpop.f32.mrf.mxu0 }
 0x1cf   : > { %v1688_v39 = vmul.f32 %v3018_v9, %v1649_v37  ;;  %2400 = vmatprep.mubr.msk.bf16.mxu1 %vm1815_vm1, %v1778_v53  ;;  %v1758_v60 = vmax.f32 %v1726_v38, 0.0 }
 0x1d1   : > { %v1727_v4 = vadd.f32 %v3025_v23, %v1688_v39 }
 0x1d3   : > { %v1759_v2 = vmax.f32 %v1727_v4, 0.0 }
 0x1d5   : > { %v1779_v43 = vpack.c.bf16 %v1759_v2, %v1758_v60 }
 0x1d7   : > { %2401 = vmatmul.mubr.msk.bf16.gmra.mxu1 %vm1815_vm1, %v1779_v43 }
 0x1d8   : > { %2404 = vmatprep.mubr.msk.bf16.mxu1 %vm1815_vm1, %v3039_v12 }
 0x1df   : > { %2405 = vmatmul.mubr.msk.bf16.gmra.mxu1 %vm1815_vm1, %v3054_v50 }
 0x1e0   : > { %2408 = vmatprep.mubr.msk.bf16.mxu1 %vm1815_vm1, %v3069_v29 }
 0x1e7   : > { %2409 = vmatmul.mubr.msk.bf16.gmra.mxu1 %vm1815_vm1, %v3082_v52 }
 0x247   : > { %v2382_v9 = vpop.f32.mrf.mxu1 }
 0x248   : > { %v1907_v23 = vadd.f32 %v2382_v9, %v3151_v3 }
 0x249   : > { %v1898_v12 = vpop.f32.mrf.mxu1 }
 0x24a   : > { %2028 = vst.msk [vmem:[%s3156_s24 + $0x10] sm:$0xff] %vm2025_vm2, %v1907_v23  ;;  %v1899_v50 = vadd.f32 %v3151_v3, %v1898_v12 }
 0x24b   : > { %v2383_v29 = vpop.f32.mrf.mxu1 }
 0x24c   : > { %2026 = vst.msk [vmem:[%s3156_s24] sm:$0xff] %vm2025_vm2, %v1899_v50  ;;  %v1910_v52 = vadd.f32 %v2383_v29, %v3151_v3 }
 0x24d   : > { %v1901_v44 = vpop.f32.mrf.mxu1 }
 0x24e   : > { %2029 = vst.msk [vmem:[%s3156_s24 + $0x18] sm:$0xff] %vm2025_vm2, %v1910_v52  ;;  %v1902_v45 = vadd.f32 %v3151_v3, %v1901_v44 }
 0x250   : > { %2027 = vst.msk [vmem:[%s3156_s24 + $0x8] sm:$0xff] %vm2025_vm2, %v1902_v45 }
 0x257   : > { %v2386_v48 = vpop.f32.mrf.mxu1 }
 0x258   : > { %v1923_v10 = vadd.f32 %v2386_v48, %v3151_v3 }
 0x259   : > { %v1914_v0 = vpop.f32.mrf.mxu1 }
 0x25a   : > { %2032 = vst.msk [vmem:[%s3156_s24 + $0x30] sm:$0xff] %vm2025_vm2, %v1923_v10  ;;  %v1915_v19 = vadd.f32 %v3151_v3, %v1914_v0 }
 0x25b   : > { %v2387_v18 = vpop.f32.mrf.mxu1 }
 0x25c   : > { %2030 = vst.msk [vmem:[%s3156_s24 + $0x20] sm:$0xff] %vm2025_vm2, %v1915_v19  ;;  %v1926_v42 = vadd.f32 %v2387_v18, %v3151_v3 }
 0x25d   : > { %v1917_v54 = vpop.f32.mrf.mxu1 }
 0x25e   : > { %2033 = vst.msk [vmem:[%s3156_s24 + $0x38] sm:$0xff] %vm2025_vm2, %v1926_v42  ;;  %v1918_v55 = vadd.f32 %v3151_v3, %v1917_v54 }
 0x260   : > { %2031 = vst.msk [vmem:[%s3156_s24 + $0x28] sm:$0xff] %vm2025_vm2, %v1918_v55 }
 0x267   : > { %v2390_v16 = vpop.f32.mrf.mxu1 }
 0x268   : > { %v1939_v41 = vadd.f32 %v2390_v16, %v3151_v3 }
 0x269   : > { %v1930_v59 = vpop.f32.mrf.mxu1 }
 0x26a   : > { %2036 = vst.msk [vmem:[%s3156_s24 + $0x50] sm:$0xff] %vm2025_vm2, %v1939_v41  ;;  %v1931_v61 = vadd.f32 %v3151_v3, %v1930_v59 }
 0x26b   : > { %v2391_v63 = vpop.f32.mrf.mxu1 }
 0x26c   : > { %2034 = vst.msk [vmem:[%s3156_s24 + $0x40] sm:$0xff] %vm2025_vm2, %v1931_v61  ;;  %v1942_v26 = vadd.f32 %v2391_v63, %v3151_v3 }
 0x26d   : > { %v1933_v22 = vpop.f32.mrf.mxu1 }
 0x26e   : > { %2037 = vst.msk [vmem:[%s3156_s24 + $0x58] sm:$0xff] %vm2025_vm2, %v1942_v26  ;;  %v1934_v1 = vadd.f32 %v3151_v3, %v1933_v22 }
 0x270   : > { %2035 = vst.msk [vmem:[%s3156_s24 + $0x48] sm:$0xff] %vm2025_vm2, %v1934_v1 }
 0x277   : > { %v2394_v6 = vpop.f32.mrf.mxu1 }
 0x278   : > { %v1955_v49 = vadd.f32 %v2394_v6, %v3151_v3 }
 0x279   : > { %v1946_v46 = vpop.f32.mrf.mxu1 }
 0x27a   : > { %2040 = vst.msk [vmem:[%s3156_s24 + $0x70] sm:$0xff] %vm2025_vm2, %v1955_v49  ;;  %v1947_v7 = vadd.f32 %v3151_v3, %v1946_v46 }
 0x27b   : > { %v2395_v8 = vpop.f32.mrf.mxu1 }
 0x27c   : > { %2038 = vst.msk [vmem:[%s3156_s24 + $0x60] sm:$0xff] %vm2025_vm2, %v1947_v7  ;;  %v1958_v28 = vadd.f32 %v2395_v8, %v3151_v3 }
 0x27d   : > { %v1949_v5 = vpop.f32.mrf.mxu1 }
 0x27e   : > { %2041 = vst.msk [vmem:[%s3156_s24 + $0x78] sm:$0xff] %vm2025_vm2, %v1958_v28  ;;  %v1950_v25 = vadd.f32 %v3151_v3, %v1949_v5 }
 0x280   : > { %2039 = vst.msk [vmem:[%s3156_s24 + $0x68] sm:$0xff] %vm2025_vm2, %v1950_v25 }
 0x287   : > { %v2398_v14 = vpop.f32.mrf.mxu1 }
 0x288   : > { %v1971_v15 = vadd.f32 %v2398_v14, %v3151_v3 }
 0x289   : > { %v1962_v17 = vpop.f32.mrf.mxu1 }
 0x28a   : > { %2044 = vst.msk [vmem:[%s3156_s24 + $0x90] sm:$0xff] %vm2025_vm2, %v1971_v15  ;;  %v1963_v34 = vadd.f32 %v3151_v3, %v1962_v17 }
 0x28b   : > { %v2399_v51 = vpop.f32.mrf.mxu1 }
 0x28c   : > { %2042 = vst.msk [vmem:[%s3156_s24 + $0x80] sm:$0xff] %vm2025_vm2, %v1963_v34  ;;  %v1974_v20 = vadd.f32 %v2399_v51, %v3151_v3 }
 0x28d   : > { %v1965_v21 = vpop.f32.mrf.mxu1 }
 0x28e   : > { %2045 = vst.msk [vmem:[%s3156_s24 + $0x98] sm:$0xff] %vm2025_vm2, %v1974_v20  ;;  %v1966_v24 = vadd.f32 %v3151_v3, %v1965_v21 }
 0x290   : > { %2043 = vst.msk [vmem:[%s3156_s24 + $0x88] sm:$0xff] %vm2025_vm2, %v1966_v24 }
 0x297   : > { %v2402_v27 = vpop.f32.mrf.mxu1 }
 0x298   : > { %v1987_v13 = vadd.f32 %v2402_v27, %v3151_v3 }
 0x299   : > { %v1978_v40 = vpop.f32.mrf.mxu1 }
 0x29a   : > { %2048 = vst.msk [vmem:[%s3156_s24 + $0xb0] sm:$0xff] %vm2025_vm2, %v1987_v13  ;;  %v1979_v31 = vadd.f32 %v3151_v3, %v1978_v40 }
 0x29b   : > { %v2403_v56 = vpop.f32.mrf.mxu1 }
 0x29c   : > { %2046 = vst.msk [vmem:[%s3156_s24 + $0xa0] sm:$0xff] %vm2025_vm2, %v1979_v31  ;;  %v1990_v30 = vadd.f32 %v2403_v56, %v3151_v3 }
 0x29d   : > { %v1981_v58 = vpop.f32.mrf.mxu1 }
 0x29e   : > { %2049 = vst.msk [vmem:[%s3156_s24 + $0xb8] sm:$0xff] %vm2025_vm2, %v1990_v30  ;;  %v1982_v33 = vadd.f32 %v3151_v3, %v1981_v58 }
 0x29f   : > { %v2406_v47 = vpop.f32.mrf.mxu1 }
 0x2a0   : > { %2047 = vst.msk [vmem:[%s3156_s24 + $0xa8] sm:$0xff] %vm2025_vm2, %v1982_v33  ;;  %v2003_v32 = vadd.f32 %v2406_v47, %v3151_v3 }
 0x2a1   : > { %v1994_v35 = vpop.f32.mrf.mxu1 }
 0x2a2   : > { %2052 = vst.msk [vmem:[%s3156_s24 + $0xd0] sm:$0xff] %vm2025_vm2, %v2003_v32  ;;  %v1995_v62 = vadd.f32 %v3151_v3, %v1994_v35 }
 0x2a3   : > { %v2407_v57 = vpop.f32.mrf.mxu1 }
 0x2a4   : > { %2050 = vst.msk [vmem:[%s3156_s24 + $0xc0] sm:$0xff] %vm2025_vm2, %v1995_v62  ;;  %v2006_v11 = vadd.f32 %v2407_v57, %v3151_v3 }
 0x2a5   : > { %v1997_v53 = vpop.f32.mrf.mxu1 }
 0x2a6   : > { %2053 = vst.msk [vmem:[%s3156_s24 + $0xd8] sm:$0xff] %vm2025_vm2, %v2006_v11  ;;  %v1998_v37 = vadd.f32 %v3151_v3, %v1997_v53 }
 0x2a7   : > { %v2410_v36 = vpop.f32.mrf.mxu1 }
 0x2a8   : > { %2051 = vst.msk [vmem:[%s3156_s24 + $0xc8] sm:$0xff] %vm2025_vm2, %v1998_v37  ;;  %v2019_v38 = vadd.f32 %v2410_v36, %v3151_v3 }
 0x2a9   : > { %v2010_v39 = vpop.f32.mrf.mxu1 }
 0x2aa   : > { %2056 = vst.msk [vmem:[%s3156_s24 + $0xf0] sm:$0xff] %vm2025_vm2, %v2019_v38  ;;  %v2011_v4 = vadd.f32 %v3151_v3, %v2010_v39 }
 0x2ab   : > { %v2411_v60 = vpop.f32.mrf.mxu1 }
 0x2ac   : > { %2054 = vst.msk [vmem:[%s3156_s24 + $0xe0] sm:$0xff] %vm2025_vm2, %v2011_v4  ;;  %v2022_v2 = vadd.f32 %v2411_v60, %v3151_v3 }
 0x2ad   : > { %v2013_v43 = vpop.f32.mrf.mxu1 }
 0x2ae   : > { %2057 = vst.msk [vmem:[%s3156_s24 + $0xf8] sm:$0xff] %vm2025_vm2, %v2022_v2  ;;  %v2014_v9 = vadd.f32 %v3151_v3, %v2013_v43 }
 0x2b0   : > { %2055 = vst.msk [vmem:[%s3156_s24 + $0xe8] sm:$0xff] %vm2025_vm2, %v2014_v9 }
 0x2b1 PF: > { %s16_s21 = sadd.s32 1, %s2619_s21  }
 0x2b2   : > { %p13_p4 = scmp.ge.s32.totalorder %s16_s21, 4  }
 0x2b4   :  { %15 = sbr.rel (!%p13_p4) target bundleno = 1 (0x1), region = 76 }

</bundles_post_ra>
